<compile_context>
chip_gen: v7x
topology: tpu7x:2x2x1
jax: 0.10.0
libtpu: 0.0.40
codegen_flags: <defaults>
</compile_context>

<pallas_src>
import numpy as np
import jax
import jax.numpy as jnp
from jax import lax
from jax.experimental import pallas as pl
from jax.experimental.pallas import tpu as pltpu

LN_EPS = 1e-5

# dot_general dimension numbers (leading axis = head batch dim).
_BATCH_QKT = (((2,), (2,)), ((0,), (0,)))   # (H,tq,dk) x (H,n,dk) -> (H,tq,n)
_BATCH_PV = (((2,), (1,)), ((0,), (0,)))    # (H,tq,n)  x (H,n,dv) -> (H,tq,dv)


def _layer_norm(x, gamma, beta):
    # PyTorch nn.LayerNorm: biased variance, eps inside the rsqrt, over last dim.
    mu = jnp.mean(x, axis=-1, keepdims=True)
    var = jnp.mean((x - mu) ** 2, axis=-1, keepdims=True)
    return (x - mu) * jax.lax.rsqrt(var + LN_EPS) * gamma + beta


def encoder_layer_kernel(
    x_ref,                    # (1, n, d_model)  bf16, full sequence (resident across qi)
    wq_ref,                   # (d_model, H*d_k) bf16  (1/sqrt(d_k) pre-folded)
    wkv_ref,                  # (d_model, H*(d_k+d_v)) bf16  (W_K | W_V fused)
    wo_ref,                   # (H*d_v, d_model) bf16
    ln1_g_ref, ln1_b_ref,     # (1, d_model) f32
    w1_ref,                   # (d_model, d_ff) bf16
    b1_ref,                   # (1, d_ff) f32
    w2_ref,                   # (d_ff, d_model) bf16
    b2_ref,                   # (1, d_model) f32
    ln2_g_ref, ln2_b_ref,     # (1, d_model) f32
    o_ref,                    # (1, tq, d_model)
    k_cache,                  # (H, n, d_k) bf16 VMEM scratch (persists across qi)
    v_cache,                  # (H, n, d_v) bf16 VMEM scratch (persists across qi)
):
    f32 = jnp.float32
    md = x_ref.dtype                      # matmul operand dtype (bf16 by default)
    H, n, d_k = k_cache.shape
    d_v = v_cache.shape[2]
    tq = o_ref.shape[1]
    qi = pl.program_id(1)

    # --- K/V projection: once per batch element, fused (N = H*(d_k+d_v)) ---
    @pl.when(qi == 0)
    def _build_kv_cache():
        x_all = x_ref[0]                                              # (n, d_model)
        kv = jnp.dot(x_all, wkv_ref[...], preferred_element_type=f32)  # (n, H*(dk+dv))
        k2d = kv[:, : H * d_k].astype(md)                              # cast early: bf16 cache
        v2d = kv[:, H * d_k :].astype(md)
        # Head-split relayout done once per batch element, not per query tile.
        k_cache[...] = jnp.transpose(k2d.reshape(n, H, d_k), (1, 0, 2))
        v_cache[...] = jnp.transpose(v2d.reshape(n, H, d_v), (1, 0, 2))

    # --- Query tile sliced from the resident full-sequence block ---
    q_start = pl.multiple_of(qi * tq, tq)
    xq = x_ref[0, pl.ds(q_start, tq), :]                               # (tq, d_model)

    # Q projection, fused over heads (N = H*d_k); scale already folded into wq.
    q2d = jnp.dot(xq, wq_ref[...], preferred_element_type=f32)        # (tq, H*d_k) f32
    qh = jnp.transpose(q2d.reshape(tq, H, d_k), (1, 0, 2)).astype(md)  # (H, tq, d_k)

    # Scores + exact softmax in f32.
    s = lax.dot_general(qh, k_cache[...], _BATCH_QKT,
                        preferred_element_type=f32)                   # (H, tq, n)
    s = s - jnp.max(s, axis=-1, keepdims=True)
    p = jnp.exp(s)
    attn = (p / jnp.sum(p, axis=-1, keepdims=True)).astype(md)        # bf16 before attn@V

    ctx = lax.dot_general(attn, v_cache[...], _BATCH_PV,
                          preferred_element_type=f32)                 # (H, tq, d_v)
    # Fused output projection: head sum becomes the MXU contraction (K = H*d_v).
    ctx2d = jnp.transpose(ctx, (1, 0, 2)).reshape(tq, H * d_v).astype(md)
    mha = jnp.dot(ctx2d, wo_ref[...], preferred_element_type=f32)     # (tq, d_model)

    y = _layer_norm(mha + xq.astype(f32), ln1_g_ref[...], ln1_b_ref[...])

    # --- Position-wise FFN ---
    h1 = jnp.dot(y.astype(md), w1_ref[...], preferred_element_type=f32) + b1_ref[...]
    h1 = jnp.maximum(h1, 0.0)
    ffn = jnp.dot(h1.astype(md), w2_ref[...], preferred_element_type=f32) + b2_ref[...]
    z = _layer_norm(ffn + y, ln2_g_ref[...], ln2_b_ref[...])

    o_ref[0] = z.astype(o_ref.dtype)


def _resident_spec(shape, single_buffer):
    """Constant-index block (weights / LN params): fetched once, reused for all steps."""
    index_map = lambda b, qi, _s=len(shape): (0,) * _s
    if single_buffer:
        try:
            # Constant block index => no overlap benefit from double buffering.
            return pl.BlockSpec(shape, index_map, pipeline_mode=pl.Buffered(1))
        except (AttributeError, TypeError):
            pass  # older jax: fall back to default buffering
    return pl.BlockSpec(shape, index_map)


def encoder_layer(x, params, n_heads, *, tq=None, matmul_dtype=jnp.bfloat16,
                  out_dtype=None, single_buffer_weights=True):
    f32 = jnp.float32
    md = matmul_dtype
    B, n, d_model = x.shape
    H = n_heads
    d_k = params["wq"].shape[1] // H
    d_v = params["wv"].shape[1] // H
    d_ff = params["w1"].shape[1]
    if out_dtype is None:
        out_dtype = x.dtype

    if tq is None:
        # v6e/v7x MXU-friendly default; use ~128 on v5e (128x128 MXU).
        tq = min(n, 256)
    tq = min(tq, n)
    sub = 16 if np.dtype(md).itemsize == 2 else 8
    assert n % tq == 0, "sequence length must be divisible by the query tile"
    assert tq % sub == 0, f"tq must be a multiple of {sub} for {np.dtype(md)} sublane tiling"

    scale = 1.0 / np.sqrt(d_k)
    xm = x.astype(md)
    wq = (params["wq"].astype(f32) * scale).astype(md)   # fold 1/sqrt(d_k) into W_Q
    wkv = jnp.concatenate([params["wk"], params["wv"]], axis=1).astype(md)
    wo = params["wo"].astype(md)
    w1 = params["w1"].astype(md)
    w2 = params["w2"].astype(md)

    itm = np.dtype(md).itemsize
    w_elems = wq.size + wkv.size + wo.size + w1.size + w2.size
    w_bytes = int(w_elems) * itm

    # Advisory cost estimate (K/V projections counted once per batch element).
    flops = int(2 * B * (n * d_model * H * (d_k + d_v)          # K/V proj (once / b)
                         + n * d_model * H * d_k                # Q proj
                         + H * n * n * (d_k + d_v)              # scores + attn@V
                         + n * H * d_v * d_model                # output proj
                         + 2 * n * d_model * d_ff))             # FFN
    cost = pl.CostEstimate(
        flops=flops,
        transcendentals=int(B * H * n * n),
        bytes_accessed=int(B * n * d_model * itm
                           + B * n * d_model * np.dtype(out_dtype).itemsize
                           + w_bytes + (d_ff + 5 * d_model) * 4),
    )

    # Rough VMEM footprint -> explicit scoped limit (lifts 16/32 MiB defaults,
    # capped at 48 MiB so the same config leaves headroom on v7x's 64 MiB).
    est = (2 * w_bytes                                          # weights (x2 safety)
           + 2 * n * d_model * itm                              # x block (double buffered)
           + 2 * tq * d_model * np.dtype(out_dtype).itemsize    # out block
           + 4 * H * n * (d_k + d_v) * itm                      # K/V caches (+lane padding)
           + (3 * H * tq * n + tq * d_ff + 8 * tq * d_model) * 4)  # f32 intermediates
    vmem_limit = int(min(max(2 * est, 32 * 1024 * 1024), 48 * 1024 * 1024))

    sb = single_buffer_weights
    grid_spec = pltpu.PrefetchScalarGridSpec(
        num_scalar_prefetch=0,
        grid=(B, n // tq),
        in_specs=[
            # Full sequence block: constant index along qi -> fetched once per b.
            pl.BlockSpec((1, n, d_model), lambda b, qi: (b, 0, 0)),
            _resident_spec((d_model, H * d_k), sb),             # wq (scaled)
            _resident_spec((d_model, H * (d_k + d_v)), sb),     # wk|wv fused
            _resident_spec((H * d_v, d_model), sb),             # wo
            _resident_spec((1, d_model), sb),                   # ln1 gamma
            _resident_spec((1, d_model), sb),                   # ln1 beta
            _resident_spec((d_model, d_ff), sb),                # w1
            _resident_spec((1, d_ff), sb),                      # b1
            _resident_spec((d_ff, d_model), sb),                # w2
            _resident_spec((1, d_model), sb),                   # b2
            _resident_spec((1, d_model), sb),                   # ln2 gamma
            _resident_spec((1, d_model), sb),                   # ln2 beta
        ],
        out_specs=pl.BlockSpec((1, tq, d_model), lambda b, qi: (b, qi, 0)),
        scratch_shapes=[
            pltpu.VMEM((H, n, d_k), md),    # K cache (bf16), persists across qi
            pltpu.VMEM((H, n, d_v), md),    # V cache (bf16), persists across qi
        ],
    )

    return pl.pallas_call(
        encoder_layer_kernel,
        out_shape=jax.ShapeDtypeStruct((B, n, d_model), out_dtype),
        grid_spec=grid_spec,
        compiler_params=pltpu.CompilerParams(
            # qi carries the K/V-cache dependence -> "arbitrary"; batch stays
            # "parallel" (>=2 parallel steps keeps both v7x TensorCores busy).
            dimension_semantics=("parallel", "arbitrary"),
            vmem_limit_bytes=vmem_limit),
        cost_estimate=cost,
    )(
        xm, wq, wkv, wo,
        params["ln1_g"], params["ln1_b"],
        w1, params["b1"], w2, params["b2"],
        params["ln2_g"], params["ln2_b"],
    )


def encoder_layer_ref_matched(x, params, n_heads, matmul_dtype=jnp.bfloat16):
    """Pure-JAX reference mirroring the kernel's precision exactly
    (bf16 matmul operands, f32 accumulation, exact f32 softmax/LayerNorm)."""
    f32 = jnp.float32
    md = matmul_dtype
    B, n, d_model = x.shape
    H = n_heads
    d_k = params["wq"].shape[1] // H
    d_v = params["wv"].shape[1] // H
    scale = 1.0 / np.sqrt(d_k)

    xm = x.astype(md)
    wq = (params["wq"].astype(f32) * scale).astype(md)
    wk = params["wk"].astype(md)
    wv = params["wv"].astype(md)
    wo = params["wo"].astype(md)
    w1 = params["w1"].astype(md)
    w2 = params["w2"].astype(md)

    q = jnp.einsum("bnd,de->bne", xm, wq, preferred_element_type=f32)
    k = jnp.einsum("bnd,de->bne", xm, wk, preferred_element_type=f32)
    v = jnp.einsum("bnd,de->bne", xm, wv, preferred_element_type=f32)
    qh = q.reshape(B, n, H, d_k).transpose(0, 2, 1, 3).astype(md)
    kh = k.reshape(B, n, H, d_k).transpose(0, 2, 1, 3).astype(md)
    vh = v.reshape(B, n, H, d_v).transpose(0, 2, 1, 3).astype(md)

    s = jnp.einsum("bhqk,bhsk->bhqs", qh, kh, preferred_element_type=f32)
    p = jnp.exp(s - jnp.max(s, axis=-1, keepdims=True))
    attn = (p / jnp.sum(p, axis=-1, keepdims=True)).astype(md)
    ctx = jnp.einsum("bhqs,bhsv->bhqv", attn, vh, preferred_element_type=f32)
    ctx = ctx.transpose(0, 2, 1, 3).reshape(B, n, H * d_v).astype(md)
    mha = jnp.einsum("bne,ed->bnd", ctx, wo, preferred_element_type=f32)
    y = _layer_norm(mha + xm.astype(f32), params["ln1_g"], params["ln1_b"])

    h1 = jnp.einsum("bnd,df->bnf", y.astype(md), w1,
                    preferred_element_type=f32) + params["b1"]
    h1 = jnp.maximum(h1, 0.0)
    ffn = jnp.einsum("bnf,fd->bnd", h1.astype(md), w2,
                     preferred_element_type=f32) + params["b2"]
    return _layer_norm(ffn + y, params["ln2_g"], params["ln2_b"])


def encoder_layer_ref_f32(x, params, n_heads):
    """Canonical full-f32 reference == PyTorch EncoderLayer forward semantics."""
    B, n, d_model = x.shape
    H = n_heads
    d_k = params["wq"].shape[1] // H
    d_v = params["wv"].shape[1] // H

    q = (x @ params["wq"]).reshape(B, n, H, d_k).transpose(0, 2, 1, 3)
    k = (x @ params["wk"]).reshape(B, n, H, d_k).transpose(0, 2, 1, 3)
    v = (x @ params["wv"]).reshape(B, n, H, d_v).transpose(0, 2, 1, 3)
    s = jnp.einsum("bhqk,bhsk->bhqs", q, k) / np.sqrt(d_k)
    attn = jax.nn.softmax(s, axis=-1)
    ctx = jnp.einsum("bhqs,bhsv->bhqv", attn, v)
    ctx = ctx.transpose(0, 2, 1, 3).reshape(B, n, H * d_v)
    mha = ctx @ params["wo"]
    y = _layer_norm(mha + x, params["ln1_g"], params["ln1_b"])
    h1 = jnp.maximum(y @ params["w1"] + params["b1"], 0.0)
    ffn = h1 @ params["w2"] + params["b2"]
    return _layer_norm(ffn + y, params["ln2_g"], params["ln2_b"])


def init_params(key, d_model, n_heads, d_k, d_v, d_ff):
    # Fused-projection layout == PyTorch nn.Linear weight.T:
    #   wq/wk: (d_model, H*d_k), wv: (d_model, H*d_v), wo: (H*d_v, d_model).
    # Column/row order is head-major, matching .view(B,-1,H,d_k) / .reshape(B,-1,H*d_v).
    ks = jax.random.split(key, 8)
    s = 0.1
    return {
        "wq": s * jax.random.normal(ks[0], (d_model, n_heads * d_k), jnp.float32),
        "wk": s * jax.random.normal(ks[1], (d_model, n_heads * d_k), jnp.float32),
        "wv": s * jax.random.normal(ks[2], (d_model, n_heads * d_v), jnp.float32),
        "wo": s * jax.random.normal(ks[3], (n_heads * d_v, d_model), jnp.float32),
        "ln1_g": jnp.ones((1, d_model), jnp.float32),
        "ln1_b": jnp.zeros((1, d_model), jnp.float32),
        "w1": s * jax.random.normal(ks[4], (d_model, d_ff), jnp.float32),
        "b1": s * jax.random.normal(ks[5], (1, d_ff), jnp.float32),
        "w2": s * jax.random.normal(ks[6], (d_ff, d_model), jnp.float32),
        "b2": s * jax.random.normal(ks[7], (1, d_model), jnp.float32),
        "ln2_g": jnp.ones((1, d_model), jnp.float32),
        "ln2_b": jnp.zeros((1, d_model), jnp.float32),
    }


if __name__ == "__main__":
    # Small but lane/sublane-aligned shapes: d_model / d_ff / H*d_k multiples of
    # 128, tq a multiple of 16 (bf16 sublane packing), n > tq so the K/V cache
    # reuse across query tiles is exercised, and B >= 2 parallel grid steps.
    B, n = 2, 64
    d_model, n_heads, d_k, d_v, d_ff = 128, 4, 32, 32, 256
    tq = 32

    key = jax.random.PRNGKey(0)
    kx, kp = jax.random.split(key)
    x = jax.random.normal(kx, (B, n, d_model), jnp.float32)
    params = init_params(kp, d_model, n_heads, d_k, d_v, d_ff)

    try:
        out = jax.block_until_ready(encoder_layer(x, params, n_heads, tq=tq))
    except Exception:
        # pl.Buffered(1) not supported by this jax/libtpu combo: retry with
        # default (double) buffering for the resident weight blocks.
        out = jax.block_until_ready(
            encoder_layer(x, params, n_heads, tq=tq, single_buffer_weights=False))

    # Tight check: reference mirroring the kernel's precision (bf16 matmul
    # operands, f32 accumulation, exact softmax) and fused-matmul structure.
    ref_m = encoder_layer_ref_matched(x, params, n_heads)
    np.testing.assert_allclose(np.asarray(out), np.asarray(ref_m),
                               rtol=2e-2, atol=2e-2)

    # Loose semantic check vs. the exact-f32 PyTorch forward (difference is the
    # end-to-end bf16 matmul error budget).
    ref_f = encoder_layer_ref_f32(x, params, n_heads)
    np.testing.assert_allclose(np.asarray(out), np.asarray(ref_f),
                               rtol=1e-1, atol=1e-1)

    print("KERNEL_OK")
</pallas_src>

<mosaic_0001>
module attributes {stable_mosaic.version = 11 : i64} {
  func.func @encoder_layer_kernel(%arg0: i32, %arg1: i32, %arg2: memref<1x64x128xbf16, #tpu.memory_space<vmem>>, %arg3: memref<128x128xbf16, #tpu.memory_space<vmem>>, %arg4: memref<128x256xbf16, #tpu.memory_space<vmem>>, %arg5: memref<128x128xbf16, #tpu.memory_space<vmem>>, %arg6: memref<1x128xf32, #tpu.memory_space<vmem>>, %arg7: memref<1x128xf32, #tpu.memory_space<vmem>>, %arg8: memref<128x256xbf16, #tpu.memory_space<vmem>>, %arg9: memref<1x256xf32, #tpu.memory_space<vmem>>, %arg10: memref<256x128xbf16, #tpu.memory_space<vmem>>, %arg11: memref<1x128xf32, #tpu.memory_space<vmem>>, %arg12: memref<1x128xf32, #tpu.memory_space<vmem>>, %arg13: memref<1x128xf32, #tpu.memory_space<vmem>>, %arg14: memref<1x32x128xf32, #tpu.memory_space<vmem>>, %arg15: memref<4x64x32xbf16, #tpu.memory_space<vmem>>, %arg16: memref<4x64x32xbf16, #tpu.memory_space<vmem>>) attributes {dimension_semantics = [#tpu.dimension_semantics<parallel>, #tpu.dimension_semantics<arbitrary>], iteration_bounds = array<i64: 2, 2>, scalar_prefetch = 0 : i64, scratch_operands = 2 : i64, tpu.core_type = #tpu.core_type<tc>, window_params = [{transform_indices = @transform_0, window_bounds = array<i64: 1, 64, 128>}, {pipeline_mode = #tpu.pipeline_mode<synchronous>, transform_indices = @transform_1, window_bounds = array<i64: 128, 128>}, {pipeline_mode = #tpu.pipeline_mode<synchronous>, transform_indices = @transform_2, window_bounds = array<i64: 128, 256>}, {pipeline_mode = #tpu.pipeline_mode<synchronous>, transform_indices = @transform_3, window_bounds = array<i64: 128, 128>}, {pipeline_mode = #tpu.pipeline_mode<synchronous>, transform_indices = @transform_4, window_bounds = array<i64: 1, 128>}, {pipeline_mode = #tpu.pipeline_mode<synchronous>, transform_indices = @transform_5, window_bounds = array<i64: 1, 128>}, {pipeline_mode = #tpu.pipeline_mode<synchronous>, transform_indices = @transform_6, window_bounds = array<i64: 128, 256>}, {pipeline_mode = #tpu.pipeline_mode<synchronous>, transform_indices = @transform_7, window_bounds = array<i64: 1, 256>}, {pipeline_mode = #tpu.pipeline_mode<synchronous>, transform_indices = @transform_8, window_bounds = array<i64: 256, 128>}, {pipeline_mode = #tpu.pipeline_mode<synchronous>, transform_indices = @transform_9, window_bounds = array<i64: 1, 128>}, {pipeline_mode = #tpu.pipeline_mode<synchronous>, transform_indices = @transform_10, window_bounds = array<i64: 1, 128>}, {pipeline_mode = #tpu.pipeline_mode<synchronous>, transform_indices = @transform_11, window_bounds = array<i64: 1, 128>}, {transform_indices = @transform_12, window_bounds = array<i64: 1, 32, 128>}]} {
    %c0_i32 = arith.constant 0 : i32
    %0 = arith.cmpi eq, %arg1, %c0_i32 : i32
    %1 = arith.extui %0 : i1 to i32
    %c0_i32_0 = arith.constant 0 : i32
    %2 = arith.cmpi ne, %1, %c0_i32_0 : i32
    scf.if %2 {
      %c0_49 = arith.constant 0 : index
      %c0_50 = arith.constant 0 : index
      %c0_51 = arith.constant 0 : index
      %100 = vector.load %arg2[%c0_49, %c0_50, %c0_51] : memref<1x64x128xbf16, #tpu.memory_space<vmem>>, vector<1x64x128xbf16>
      %101 = vector.shape_cast %100 : vector<1x64x128xbf16> to vector<64x128xbf16>
      %c0_52 = arith.constant 0 : index
      %c0_53 = arith.constant 0 : index
      %102 = vector.load %arg4[%c0_52, %c0_53] : memref<128x256xbf16, #tpu.memory_space<vmem>>, vector<128x256xbf16>
      %cst_54 = arith.constant dense<0.000000e+00> : vector<64x256xf32>
      %103 = tpu.matmul %101, %102, %cst_54 {dimension_numbers = #tpu.dot_dimension_numbers<[1], [0], [0], [1], [0, 0, 1, 1], [], []>} : vector<64x128xbf16>, vector<128x256xbf16>, vector<64x256xf32> -> vector<64x256xf32>
      %104 = vector.extract_strided_slice %103 {offsets = [0, 0], sizes = [64, 128], strides = [1, 1]} : vector<64x256xf32> to vector<64x128xf32>
      %105 = arith.truncf %104 : vector<64x128xf32> to vector<64x128xbf16>
      %106 = vector.extract_strided_slice %103 {offsets = [0, 128], sizes = [64, 128], strides = [1, 1]} : vector<64x256xf32> to vector<64x128xf32>
      %107 = arith.truncf %106 : vector<64x128xf32> to vector<64x128xbf16>
      %108 = vector.shape_cast %105 : vector<64x128xbf16> to vector<64x4x32xbf16>
      %109 = tpu.transpose %108, [1, 0, 2] : vector<64x4x32xbf16> -> vector<4x64x32xbf16>
      %c0_55 = arith.constant 0 : index
      %c0_56 = arith.constant 0 : index
      %c0_57 = arith.constant 0 : index
      %110 = vector.load %arg15[%c0_55, %c0_56, %c0_57] : memref<4x64x32xbf16, #tpu.memory_space<vmem>>, vector<4x64x32xbf16>
      tpu.vector_store %arg15[%c0_55, %c0_56, %c0_57], %109 {strides = array<i32>} : memref<4x64x32xbf16, #tpu.memory_space<vmem>>, vector<4x64x32xbf16>,
      %111 = vector.shape_cast %107 : vector<64x128xbf16> to vector<64x4x32xbf16>
      %112 = tpu.transpose %111, [1, 0, 2] : vector<64x4x32xbf16> -> vector<4x64x32xbf16>
      %c0_58 = arith.constant 0 : index
      %c0_59 = arith.constant 0 : index
      %c0_60 = arith.constant 0 : index
      %113 = vector.load %arg16[%c0_58, %c0_59, %c0_60] : memref<4x64x32xbf16, #tpu.memory_space<vmem>>, vector<4x64x32xbf16>
      tpu.vector_store %arg16[%c0_58, %c0_59, %c0_60], %112 {strides = array<i32>} : memref<4x64x32xbf16, #tpu.memory_space<vmem>>, vector<4x64x32xbf16>,
    } else {
    }
    %c32_i32 = arith.constant 32 : i32
    %3 = arith.muli %arg1, %c32_i32 : i32
    %4 = tpu.assume_multiple %3, 32 : i32
    %c0 = arith.constant 0 : index
    %5 = arith.index_cast %4 : i32 to index
    %c0_1 = arith.constant 0 : index
    %6 = vector.load %arg2[%c0, %5, %c0_1] : memref<1x64x128xbf16, #tpu.memory_space<vmem>>, vector<1x32x128xbf16>
    %7 = vector.shape_cast %6 : vector<1x32x128xbf16> to vector<32x128xbf16>
    %c0_2 = arith.constant 0 : index
    %c0_3 = arith.constant 0 : index
    %8 = vector.load %arg3[%c0_2, %c0_3] : memref<128x128xbf16, #tpu.memory_space<vmem>>, vector<128x128xbf16>
    %cst = arith.constant dense<0.000000e+00> : vector<32x128xf32>
    %9 = tpu.matmul %7, %8, %cst {dimension_numbers = #tpu.dot_dimension_numbers<[1], [0], [0], [1], [0, 0, 1, 1], [], []>} : vector<32x128xbf16>, vector<128x128xbf16>, vector<32x128xf32> -> vector<32x128xf32>
    %10 = vector.shape_cast %9 : vector<32x128xf32> to vector<32x4x32xf32>
    %11 = tpu.transpose %10, [1, 0, 2] : vector<32x4x32xf32> -> vector<4x32x32xf32>
    %12 = arith.truncf %11 : vector<4x32x32xf32> to vector<4x32x32xbf16>
    %c0_4 = arith.constant 0 : index
    %c0_5 = arith.constant 0 : index
    %c0_6 = arith.constant 0 : index
    %13 = vector.load %arg15[%c0_4, %c0_5, %c0_6] : memref<4x64x32xbf16, #tpu.memory_space<vmem>>, vector<4x64x32xbf16>
    %cst_7 = arith.constant dense<0.000000e+00> : vector<4x32x64xf32>
    %14 = tpu.matmul %12, %13, %cst_7 {dimension_numbers = #tpu.dot_dimension_numbers<[2], [2], [1], [1], [0, 0, 0, 1, 1, 1], [0], [0]>} : vector<4x32x32xbf16>, vector<4x64x32xbf16>, vector<4x32x64xf32> -> vector<4x32x64xf32>
    %cst_8 = arith.constant dense<0xFF800000> : vector<4x32xf32>
    %15 = vector.multi_reduction <maximumf>, %14, %cst_8 [2] : vector<4x32x64xf32> to vector<4x32xf32>
    %16 = vector.shape_cast %15 : vector<4x32xf32> to vector<4x32x1xf32>
    %17 = vector.broadcast %16 : vector<4x32x1xf32> to vector<4x32x64xf32>
    %18 = arith.subf %14, %17 : vector<4x32x64xf32>
    %19 = math.exp %18 : vector<4x32x64xf32>
    %cst_9 = arith.constant dense<0.000000e+00> : vector<4x32xf32>
    %20 = vector.multi_reduction <add>, %19, %cst_9 [2] : vector<4x32x64xf32> to vector<4x32xf32>
    %21 = vector.shape_cast %20 : vector<4x32xf32> to vector<4x32x1xf32>
    %22 = vector.broadcast %21 : vector<4x32x1xf32> to vector<4x32x64xf32>
    %23 = arith.divf %19, %22 : vector<4x32x64xf32>
    %24 = arith.truncf %23 : vector<4x32x64xf32> to vector<4x32x64xbf16>
    %c0_10 = arith.constant 0 : index
    %c0_11 = arith.constant 0 : index
    %c0_12 = arith.constant 0 : index
    %25 = vector.load %arg16[%c0_10, %c0_11, %c0_12] : memref<4x64x32xbf16, #tpu.memory_space<vmem>>, vector<4x64x32xbf16>
    %cst_13 = arith.constant dense<0.000000e+00> : vector<4x32x32xf32>
    %26 = tpu.matmul %24, %25, %cst_13 {dimension_numbers = #tpu.dot_dimension_numbers<[2], [1], [1], [2], [0, 0, 0, 1, 1, 2], [0], [0]>} : vector<4x32x64xbf16>, vector<4x64x32xbf16>, vector<4x32x32xf32> -> vector<4x32x32xf32>
    %27 = tpu.transpose %26, [1, 0, 2] : vector<4x32x32xf32> -> vector<32x4x32xf32>
    %28 = vector.shape_cast %27 : vector<32x4x32xf32> to vector<32x128xf32>
    %29 = arith.truncf %28 : vector<32x128xf32> to vector<32x128xbf16>
    %c0_14 = arith.constant 0 : index
    %c0_15 = arith.constant 0 : index
    %30 = vector.load %arg5[%c0_14, %c0_15] : memref<128x128xbf16, #tpu.memory_space<vmem>>, vector<128x128xbf16>
    %cst_16 = arith.constant dense<0.000000e+00> : vector<32x128xf32>
    %31 = tpu.matmul %29, %30, %cst_16 {dimension_numbers = #tpu.dot_dimension_numbers<[1], [0], [0], [1], [0, 0, 1, 1], [], []>} : vector<32x128xbf16>, vector<128x128xbf16>, vector<32x128xf32> -> vector<32x128xf32>
    %32 = arith.extf %7 : vector<32x128xbf16> to vector<32x128xf32>
    %33 = arith.addf %31, %32 : vector<32x128xf32>
    %c0_17 = arith.constant 0 : index
    %c0_18 = arith.constant 0 : index
    %34 = vector.load %arg6[%c0_17, %c0_18] : memref<1x128xf32, #tpu.memory_space<vmem>>, vector<1x128xf32>
    %c0_19 = arith.constant 0 : index
    %c0_20 = arith.constant 0 : index
    %35 = vector.load %arg7[%c0_19, %c0_20] : memref<1x128xf32, #tpu.memory_space<vmem>>, vector<1x128xf32>
    %cst_21 = arith.constant dense<0.000000e+00> : vector<32xf32>
    %36 = vector.multi_reduction <add>, %33, %cst_21 [1] : vector<32x128xf32> to vector<32xf32>
    %37 = vector.shape_cast %36 : vector<32xf32> to vector<32x1xf32>
    %cst_22 = arith.constant 1.280000e+02 : f32
    %38 = vector.broadcast %cst_22 : f32 to vector<32x1xf32>
    %39 = arith.divf %37, %38 : vector<32x1xf32>
    %40 = vector.broadcast %39 : vector<32x1xf32> to vector<32x128xf32>
    %41 = arith.subf %33, %40 : vector<32x128xf32>
    %42 = arith.mulf %41, %41 : vector<32x128xf32>
    %cst_23 = arith.constant dense<0.000000e+00> : vector<32xf32>
    %43 = vector.multi_reduction <add>, %42, %cst_23 [1] : vector<32x128xf32> to vector<32xf32>
    %44 = vector.shape_cast %43 : vector<32xf32> to vector<32x1xf32>
    %cst_24 = arith.constant 1.280000e+02 : f32
    %45 = vector.broadcast %cst_24 : f32 to vector<32x1xf32>
    %46 = arith.divf %44, %45 : vector<32x1xf32>
    %47 = vector.broadcast %39 : vector<32x1xf32> to vector<32x128xf32>
    %48 = arith.subf %33, %47 : vector<32x128xf32>
    %cst_25 = arith.constant 9.99999974E-6 : f32
    %49 = vector.broadcast %cst_25 : f32 to vector<32x1xf32>
    %50 = arith.addf %46, %49 : vector<32x1xf32>
    %51 = math.rsqrt %50 : vector<32x1xf32>
    %52 = vector.broadcast %51 : vector<32x1xf32> to vector<32x128xf32>
    %53 = arith.mulf %48, %52 : vector<32x128xf32>
    %54 = vector.broadcast %34 : vector<1x128xf32> to vector<32x128xf32>
    %55 = arith.mulf %53, %54 : vector<32x128xf32>
    %56 = vector.broadcast %35 : vector<1x128xf32> to vector<32x128xf32>
    %57 = arith.addf %55, %56 : vector<32x128xf32>
    %58 = arith.truncf %57 : vector<32x128xf32> to vector<32x128xbf16>
    %c0_26 = arith.constant 0 : index
    %c0_27 = arith.constant 0 : index
    %59 = vector.load %arg8[%c0_26, %c0_27] : memref<128x256xbf16, #tpu.memory_space<vmem>>, vector<128x256xbf16>
    %cst_28 = arith.constant dense<0.000000e+00> : vector<32x256xf32>
    %60 = tpu.matmul %58, %59, %cst_28 {dimension_numbers = #tpu.dot_dimension_numbers<[1], [0], [0], [1], [0, 0, 1, 1], [], []>} : vector<32x128xbf16>, vector<128x256xbf16>, vector<32x256xf32> -> vector<32x256xf32>
    %c0_29 = arith.constant 0 : index
    %c0_30 = arith.constant 0 : index
    %61 = vector.load %arg9[%c0_29, %c0_30] : memref<1x256xf32, #tpu.memory_space<vmem>>, vector<1x256xf32>
    %62 = vector.broadcast %61 : vector<1x256xf32> to vector<32x256xf32>
    %63 = arith.addf %60, %62 : vector<32x256xf32>
    %cst_31 = arith.constant 0.000000e+00 : f32
    %64 = vector.broadcast %cst_31 : f32 to vector<32x256xf32>
    %65 = arith.maximumf %63, %64 : vector<32x256xf32>
    %66 = arith.truncf %65 : vector<32x256xf32> to vector<32x256xbf16>
    %c0_32 = arith.constant 0 : index
    %c0_33 = arith.constant 0 : index
    %67 = vector.load %arg10[%c0_32, %c0_33] : memref<256x128xbf16, #tpu.memory_space<vmem>>, vector<256x128xbf16>
    %cst_34 = arith.constant dense<0.000000e+00> : vector<32x128xf32>
    %68 = tpu.matmul %66, %67, %cst_34 {dimension_numbers = #tpu.dot_dimension_numbers<[1], [0], [0], [1], [0, 0, 1, 1], [], []>} : vector<32x256xbf16>, vector<256x128xbf16>, vector<32x128xf32> -> vector<32x128xf32>
    %c0_35 = arith.constant 0 : index
    %c0_36 = arith.constant 0 : index
    %69 = vector.load %arg11[%c0_35, %c0_36] : memref<1x128xf32, #tpu.memory_space<vmem>>, vector<1x128xf32>
    %70 = vector.broadcast %69 : vector<1x128xf32> to vector<32x128xf32>
    %71 = arith.addf %68, %70 : vector<32x128xf32>
    %72 = arith.addf %71, %57 : vector<32x128xf32>
    %c0_37 = arith.constant 0 : index
    %c0_38 = arith.constant 0 : index
    %73 = vector.load %arg12[%c0_37, %c0_38] : memref<1x128xf32, #tpu.memory_space<vmem>>, vector<1x128xf32>
    %c0_39 = arith.constant 0 : index
    %c0_40 = arith.constant 0 : index
    %74 = vector.load %arg13[%c0_39, %c0_40] : memref<1x128xf32, #tpu.memory_space<vmem>>, vector<1x128xf32>
    %cst_41 = arith.constant dense<0.000000e+00> : vector<32xf32>
    %75 = vector.multi_reduction <add>, %72, %cst_41 [1] : vector<32x128xf32> to vector<32xf32>
    %76 = vector.shape_cast %75 : vector<32xf32> to vector<32x1xf32>
    %cst_42 = arith.constant 1.280000e+02 : f32
    %77 = vector.broadcast %cst_42 : f32 to vector<32x1xf32>
    %78 = arith.divf %76, %77 : vector<32x1xf32>
    %79 = vector.broadcast %78 : vector<32x1xf32> to vector<32x128xf32>
    %80 = arith.subf %72, %79 : vector<32x128xf32>
    %81 = arith.mulf %80, %80 : vector<32x128xf32>
    %cst_43 = arith.constant dense<0.000000e+00> : vector<32xf32>
    %82 = vector.multi_reduction <add>, %81, %cst_43 [1] : vector<32x128xf32> to vector<32xf32>
    %83 = vector.shape_cast %82 : vector<32xf32> to vector<32x1xf32>
    %cst_44 = arith.constant 1.280000e+02 : f32
    %84 = vector.broadcast %cst_44 : f32 to vector<32x1xf32>
    %85 = arith.divf %83, %84 : vector<32x1xf32>
    %86 = vector.broadcast %78 : vector<32x1xf32> to vector<32x128xf32>
    %87 = arith.subf %72, %86 : vector<32x128xf32>
    %cst_45 = arith.constant 9.99999974E-6 : f32
    %88 = vector.broadcast %cst_45 : f32 to vector<32x1xf32>
    %89 = arith.addf %85, %88 : vector<32x1xf32>
    %90 = math.rsqrt %89 : vector<32x1xf32>
    %91 = vector.broadcast %90 : vector<32x1xf32> to vector<32x128xf32>
    %92 = arith.mulf %87, %91 : vector<32x128xf32>
    %93 = vector.broadcast %73 : vector<1x128xf32> to vector<32x128xf32>
    %94 = arith.mulf %92, %93 : vector<32x128xf32>
    %95 = vector.broadcast %74 : vector<1x128xf32> to vector<32x128xf32>
    %96 = arith.addf %94, %95 : vector<32x128xf32>
    %c0_46 = arith.constant 0 : index
    %c0_47 = arith.constant 0 : index
    %c0_48 = arith.constant 0 : index
    %97 = vector.load %arg14[%c0_46, %c0_47, %c0_48] : memref<1x32x128xf32, #tpu.memory_space<vmem>>, vector<1x32x128xf32>
    %98 = vector.shape_cast %97 : vector<1x32x128xf32> to vector<32x128xf32>
    %99 = vector.shape_cast %96 : vector<32x128xf32> to vector<1x32x128xf32>
    tpu.vector_store %arg14[%c0_46, %c0_47, %c0_48], %99 {strides = array<i32>} : memref<1x32x128xf32, #tpu.memory_space<vmem>>, vector<1x32x128xf32>,
    return
  }
  func.func @transform_0(%arg0: i32, %arg1: i32) -> (i32, i32, i32) {
    %c0_i32 = arith.constant 0 : i32
    %c0_i32_0 = arith.constant 0 : i32
    %c0_i32_1 = arith.constant 0 : i32
    return %arg0, %c0_i32, %c0_i32_0 : i32, i32, i32
  }
  func.func @transform_1(%arg0: i32, %arg1: i32) -> (i32, i32) {
    %c0_i32 = arith.constant 0 : i32
    %c0_i32_0 = arith.constant 0 : i32
    %c0_i32_1 = arith.constant 0 : i32
    return %c0_i32, %c0_i32_0 : i32, i32
  }
  func.func @transform_2(%arg0: i32, %arg1: i32) -> (i32, i32) {
    %c0_i32 = arith.constant 0 : i32
    %c0_i32_0 = arith.constant 0 : i32
    %c0_i32_1 = arith.constant 0 : i32
    return %c0_i32, %c0_i32_0 : i32, i32
  }
  func.func @transform_3(%arg0: i32, %arg1: i32) -> (i32, i32) {
    %c0_i32 = arith.constant 0 : i32
    %c0_i32_0 = arith.constant 0 : i32
    %c0_i32_1 = arith.constant 0 : i32
    return %c0_i32, %c0_i32_0 : i32, i32
  }
  func.func @transform_4(%arg0: i32, %arg1: i32) -> (i32, i32) {
    %c0_i32 = arith.constant 0 : i32
    %c0_i32_0 = arith.constant 0 : i32
    %c0_i32_1 = arith.constant 0 : i32
    return %c0_i32, %c0_i32_0 : i32, i32
  }
  func.func @transform_5(%arg0: i32, %arg1: i32) -> (i32, i32) {
    %c0_i32 = arith.constant 0 : i32
    %c0_i32_0 = arith.constant 0 : i32
    %c0_i32_1 = arith.constant 0 : i32
    return %c0_i32, %c0_i32_0 : i32, i32
  }
  func.func @transform_6(%arg0: i32, %arg1: i32) -> (i32, i32) {
    %c0_i32 = arith.constant 0 : i32
    %c0_i32_0 = arith.constant 0 : i32
    %c0_i32_1 = arith.constant 0 : i32
    return %c0_i32, %c0_i32_0 : i32, i32
  }
  func.func @transform_7(%arg0: i32, %arg1: i32) -> (i32, i32) {
    %c0_i32 = arith.constant 0 : i32
    %c0_i32_0 = arith.constant 0 : i32
    %c0_i32_1 = arith.constant 0 : i32
    return %c0_i32, %c0_i32_0 : i32, i32
  }
  func.func @transform_8(%arg0: i32, %arg1: i32) -> (i32, i32) {
    %c0_i32 = arith.constant 0 : i32
    %c0_i32_0 = arith.constant 0 : i32
    %c0_i32_1 = arith.constant 0 : i32
    return %c0_i32, %c0_i32_0 : i32, i32
  }
  func.func @transform_9(%arg0: i32, %arg1: i32) -> (i32, i32) {
    %c0_i32 = arith.constant 0 : i32
    %c0_i32_0 = arith.constant 0 : i32
    %c0_i32_1 = arith.constant 0 : i32
    return %c0_i32, %c0_i32_0 : i32, i32
  }
  func.func @transform_10(%arg0: i32, %arg1: i32) -> (i32, i32) {
    %c0_i32 = arith.constant 0 : i32
    %c0_i32_0 = arith.constant 0 : i32
    %c0_i32_1 = arith.constant 0 : i32
    return %c0_i32, %c0_i32_0 : i32, i32
  }
  func.func @transform_11(%arg0: i32, %arg1: i32) -> (i32, i32) {
    %c0_i32 = arith.constant 0 : i32
    %c0_i32_0 = arith.constant 0 : i32
    %c0_i32_1 = arith.constant 0 : i32
    return %c0_i32, %c0_i32_0 : i32, i32
  }
  func.func @transform_12(%arg0: i32, %arg1: i32) -> (i32, i32, i32) {
    %c0_i32 = arith.constant 0 : i32
    %c0_i32_0 = arith.constant 0 : i32
    return %arg0, %arg1, %c0_i32 : i32, i32, i32
  }
}

module attributes {stable_mosaic.version = 11 : i64} {
  func.func @encoder_layer_kernel(%arg0: i32, %arg1: i32, %arg2: memref<1x64x128xbf16, #tpu.memory_space<vmem>>, %arg3: memref<128x128xbf16, #tpu.memory_space<vmem>>, %arg4: memref<128x256xbf16, #tpu.memory_space<vmem>>, %arg5: memref<128x128xbf16, #tpu.memory_space<vmem>>, %arg6: memref<1x128xf32, #tpu.memory_space<vmem>>, %arg7: memref<1x128xf32, #tpu.memory_space<vmem>>, %arg8: memref<128x256xbf16, #tpu.memory_space<vmem>>, %arg9: memref<1x256xf32, #tpu.memory_space<vmem>>, %arg10: memref<256x128xbf16, #tpu.memory_space<vmem>>, %arg11: memref<1x128xf32, #tpu.memory_space<vmem>>, %arg12: memref<1x128xf32, #tpu.memory_space<vmem>>, %arg13: memref<1x128xf32, #tpu.memory_space<vmem>>, %arg14: memref<1x32x128xf32, #tpu.memory_space<vmem>>, %arg15: memref<4x64x32xbf16, #tpu.memory_space<vmem>>, %arg16: memref<4x64x32xbf16, #tpu.memory_space<vmem>>) attributes {dimension_semantics = [#tpu.dimension_semantics<parallel>, #tpu.dimension_semantics<arbitrary>], iteration_bounds = array<i64: 2, 2>, scalar_prefetch = 0 : i64, scratch_operands = 2 : i64, tpu.core_type = #tpu.core_type<tc>, window_params = [{transform_indices = @transform_0, window_bounds = array<i64: 1, 64, 128>}, {pipeline_mode = #tpu.pipeline_mode<synchronous>, transform_indices = @transform_1, window_bounds = array<i64: 128, 128>}, {pipeline_mode = #tpu.pipeline_mode<synchronous>, transform_indices = @transform_2, window_bounds = array<i64: 128, 256>}, {pipeline_mode = #tpu.pipeline_mode<synchronous>, transform_indices = @transform_3, window_bounds = array<i64: 128, 128>}, {pipeline_mode = #tpu.pipeline_mode<synchronous>, transform_indices = @transform_4, window_bounds = array<i64: 1, 128>}, {pipeline_mode = #tpu.pipeline_mode<synchronous>, transform_indices = @transform_5, window_bounds = array<i64: 1, 128>}, {pipeline_mode = #tpu.pipeline_mode<synchronous>, transform_indices = @transform_6, window_bounds = array<i64: 128, 256>}, {pipeline_mode = #tpu.pipeline_mode<synchronous>, transform_indices = @transform_7, window_bounds = array<i64: 1, 256>}, {pipeline_mode = #tpu.pipeline_mode<synchronous>, transform_indices = @transform_8, window_bounds = array<i64: 256, 128>}, {pipeline_mode = #tpu.pipeline_mode<synchronous>, transform_indices = @transform_9, window_bounds = array<i64: 1, 128>}, {pipeline_mode = #tpu.pipeline_mode<synchronous>, transform_indices = @transform_10, window_bounds = array<i64: 1, 128>}, {pipeline_mode = #tpu.pipeline_mode<synchronous>, transform_indices = @transform_11, window_bounds = array<i64: 1, 128>}, {transform_indices = @transform_12, window_bounds = array<i64: 1, 32, 128>}]} {
    %c0_i32 = arith.constant 0 : i32
    %0 = arith.cmpi eq, %arg1, %c0_i32 : i32
    %1 = arith.extui %0 : i1 to i32
    %c0_i32_0 = arith.constant 0 : i32
    %2 = arith.cmpi ne, %1, %c0_i32_0 : i32
    scf.if %2 {
      %c0_49 = arith.constant 0 : index
      %c0_50 = arith.constant 0 : index
      %c0_51 = arith.constant 0 : index
      %100 = vector.load %arg2[%c0_49, %c0_50, %c0_51] : memref<1x64x128xbf16, #tpu.memory_space<vmem>>, vector<1x64x128xbf16>
      %101 = vector.shape_cast %100 : vector<1x64x128xbf16> to vector<64x128xbf16>
      %c0_52 = arith.constant 0 : index
      %c0_53 = arith.constant 0 : index
      %102 = vector.load %arg4[%c0_52, %c0_53] : memref<128x256xbf16, #tpu.memory_space<vmem>>, vector<128x256xbf16>
      %cst_54 = arith.constant dense<0.000000e+00> : vector<64x256xf32>
      %103 = tpu.matmul %101, %102, %cst_54 {dimension_numbers = #tpu.dot_dimension_numbers<[1], [0], [0], [1], [0, 0, 1, 1], [], []>} : vector<64x128xbf16>, vector<128x256xbf16>, vector<64x256xf32> -> vector<64x256xf32>
      %104 = vector.extract_strided_slice %103 {offsets = [0, 0], sizes = [64, 128], strides = [1, 1]} : vector<64x256xf32> to vector<64x128xf32>
      %105 = arith.truncf %104 : vector<64x128xf32> to vector<64x128xbf16>
      %106 = vector.extract_strided_slice %103 {offsets = [0, 128], sizes = [64, 128], strides = [1, 1]} : vector<64x256xf32> to vector<64x128xf32>
      %107 = arith.truncf %106 : vector<64x128xf32> to vector<64x128xbf16>
      %108 = vector.shape_cast %105 : vector<64x128xbf16> to vector<64x4x32xbf16>
      %109 = tpu.transpose %108, [1, 0, 2] : vector<64x4x32xbf16> -> vector<4x64x32xbf16>
      %c0_55 = arith.constant 0 : index
      %c0_56 = arith.constant 0 : index
      %c0_57 = arith.constant 0 : index
      %110 = vector.load %arg15[%c0_55, %c0_56, %c0_57] : memref<4x64x32xbf16, #tpu.memory_space<vmem>>, vector<4x64x32xbf16>
      tpu.vector_store %arg15[%c0_55, %c0_56, %c0_57], %109 {strides = array<i32>} : memref<4x64x32xbf16, #tpu.memory_space<vmem>>, vector<4x64x32xbf16>,
      %111 = vector.shape_cast %107 : vector<64x128xbf16> to vector<64x4x32xbf16>
      %112 = tpu.transpose %111, [1, 0, 2] : vector<64x4x32xbf16> -> vector<4x64x32xbf16>
      %c0_58 = arith.constant 0 : index
      %c0_59 = arith.constant 0 : index
      %c0_60 = arith.constant 0 : index
      %113 = vector.load %arg16[%c0_58, %c0_59, %c0_60] : memref<4x64x32xbf16, #tpu.memory_space<vmem>>, vector<4x64x32xbf16>
      tpu.vector_store %arg16[%c0_58, %c0_59, %c0_60], %112 {strides = array<i32>} : memref<4x64x32xbf16, #tpu.memory_space<vmem>>, vector<4x64x32xbf16>,
    } else {
    }
    %c32_i32 = arith.constant 32 : i32
    %3 = arith.muli %arg1, %c32_i32 : i32
    %4 = tpu.assume_multiple %3, 32 : i32
    %c0 = arith.constant 0 : index
    %5 = arith.index_cast %4 : i32 to index
    %c0_1 = arith.constant 0 : index
    %6 = vector.load %arg2[%c0, %5, %c0_1] : memref<1x64x128xbf16, #tpu.memory_space<vmem>>, vector<1x32x128xbf16>
    %7 = vector.shape_cast %6 : vector<1x32x128xbf16> to vector<32x128xbf16>
    %c0_2 = arith.constant 0 : index
    %c0_3 = arith.constant 0 : index
    %8 = vector.load %arg3[%c0_2, %c0_3] : memref<128x128xbf16, #tpu.memory_space<vmem>>, vector<128x128xbf16>
    %cst = arith.constant dense<0.000000e+00> : vector<32x128xf32>
    %9 = tpu.matmul %7, %8, %cst {dimension_numbers = #tpu.dot_dimension_numbers<[1], [0], [0], [1], [0, 0, 1, 1], [], []>} : vector<32x128xbf16>, vector<128x128xbf16>, vector<32x128xf32> -> vector<32x128xf32>
    %10 = vector.shape_cast %9 : vector<32x128xf32> to vector<32x4x32xf32>
    %11 = tpu.transpose %10, [1, 0, 2] : vector<32x4x32xf32> -> vector<4x32x32xf32>
    %12 = arith.truncf %11 : vector<4x32x32xf32> to vector<4x32x32xbf16>
    %c0_4 = arith.constant 0 : index
    %c0_5 = arith.constant 0 : index
    %c0_6 = arith.constant 0 : index
    %13 = vector.load %arg15[%c0_4, %c0_5, %c0_6] : memref<4x64x32xbf16, #tpu.memory_space<vmem>>, vector<4x64x32xbf16>
    %cst_7 = arith.constant dense<0.000000e+00> : vector<4x32x64xf32>
    %14 = tpu.matmul %12, %13, %cst_7 {dimension_numbers = #tpu.dot_dimension_numbers<[2], [2], [1], [1], [0, 0, 0, 1, 1, 1], [0], [0]>} : vector<4x32x32xbf16>, vector<4x64x32xbf16>, vector<4x32x64xf32> -> vector<4x32x64xf32>
    %cst_8 = arith.constant dense<0xFF800000> : vector<4x32xf32>
    %15 = vector.multi_reduction <maximumf>, %14, %cst_8 [2] : vector<4x32x64xf32> to vector<4x32xf32>
    %16 = vector.shape_cast %15 : vector<4x32xf32> to vector<4x32x1xf32>
    %17 = vector.broadcast %16 : vector<4x32x1xf32> to vector<4x32x64xf32>
    %18 = arith.subf %14, %17 : vector<4x32x64xf32>
    %19 = math.exp %18 : vector<4x32x64xf32>
    %cst_9 = arith.constant dense<0.000000e+00> : vector<4x32xf32>
    %20 = vector.multi_reduction <add>, %19, %cst_9 [2] : vector<4x32x64xf32> to vector<4x32xf32>
    %21 = vector.shape_cast %20 : vector<4x32xf32> to vector<4x32x1xf32>
    %22 = vector.broadcast %21 : vector<4x32x1xf32> to vector<4x32x64xf32>
    %23 = arith.divf %19, %22 : vector<4x32x64xf32>
    %24 = arith.truncf %23 : vector<4x32x64xf32> to vector<4x32x64xbf16>
    %c0_10 = arith.constant 0 : index
    %c0_11 = arith.constant 0 : index
    %c0_12 = arith.constant 0 : index
    %25 = vector.load %arg16[%c0_10, %c0_11, %c0_12] : memref<4x64x32xbf16, #tpu.memory_space<vmem>>, vector<4x64x32xbf16>
    %cst_13 = arith.constant dense<0.000000e+00> : vector<4x32x32xf32>
    %26 = tpu.matmul %24, %25, %cst_13 {dimension_numbers = #tpu.dot_dimension_numbers<[2], [1], [1], [2], [0, 0, 0, 1, 1, 2], [0], [0]>} : vector<4x32x64xbf16>, vector<4x64x32xbf16>, vector<4x32x32xf32> -> vector<4x32x32xf32>
    %27 = tpu.transpose %26, [1, 0, 2] : vector<4x32x32xf32> -> vector<32x4x32xf32>
    %28 = vector.shape_cast %27 : vector<32x4x32xf32> to vector<32x128xf32>
    %29 = arith.truncf %28 : vector<32x128xf32> to vector<32x128xbf16>
    %c0_14 = arith.constant 0 : index
    %c0_15 = arith.constant 0 : index
    %30 = vector.load %arg5[%c0_14, %c0_15] : memref<128x128xbf16, #tpu.memory_space<vmem>>, vector<128x128xbf16>
    %cst_16 = arith.constant dense<0.000000e+00> : vector<32x128xf32>
    %31 = tpu.matmul %29, %30, %cst_16 {dimension_numbers = #tpu.dot_dimension_numbers<[1], [0], [0], [1], [0, 0, 1, 1], [], []>} : vector<32x128xbf16>, vector<128x128xbf16>, vector<32x128xf32> -> vector<32x128xf32>
    %32 = arith.extf %7 : vector<32x128xbf16> to vector<32x128xf32>
    %33 = arith.addf %31, %32 : vector<32x128xf32>
    %c0_17 = arith.constant 0 : index
    %c0_18 = arith.constant 0 : index
    %34 = vector.load %arg6[%c0_17, %c0_18] : memref<1x128xf32, #tpu.memory_space<vmem>>, vector<1x128xf32>
    %c0_19 = arith.constant 0 : index
    %c0_20 = arith.constant 0 : index
    %35 = vector.load %arg7[%c0_19, %c0_20] : memref<1x128xf32, #tpu.memory_space<vmem>>, vector<1x128xf32>
    %cst_21 = arith.constant dense<0.000000e+00> : vector<32xf32>
    %36 = vector.multi_reduction <add>, %33, %cst_21 [1] : vector<32x128xf32> to vector<32xf32>
    %37 = vector.shape_cast %36 : vector<32xf32> to vector<32x1xf32>
    %cst_22 = arith.constant 1.280000e+02 : f32
    %38 = vector.broadcast %cst_22 : f32 to vector<32x1xf32>
    %39 = arith.divf %37, %38 : vector<32x1xf32>
    %40 = vector.broadcast %39 : vector<32x1xf32> to vector<32x128xf32>
    %41 = arith.subf %33, %40 : vector<32x128xf32>
    %42 = arith.mulf %41, %41 : vector<32x128xf32>
    %cst_23 = arith.constant dense<0.000000e+00> : vector<32xf32>
    %43 = vector.multi_reduction <add>, %42, %cst_23 [1] : vector<32x128xf32> to vector<32xf32>
    %44 = vector.shape_cast %43 : vector<32xf32> to vector<32x1xf32>
    %cst_24 = arith.constant 1.280000e+02 : f32
    %45 = vector.broadcast %cst_24 : f32 to vector<32x1xf32>
    %46 = arith.divf %44, %45 : vector<32x1xf32>
    %47 = vector.broadcast %39 : vector<32x1xf32> to vector<32x128xf32>
    %48 = arith.subf %33, %47 : vector<32x128xf32>
    %cst_25 = arith.constant 9.99999974E-6 : f32
    %49 = vector.broadcast %cst_25 : f32 to vector<32x1xf32>
    %50 = arith.addf %46, %49 : vector<32x1xf32>
    %51 = math.rsqrt %50 : vector<32x1xf32>
    %52 = vector.broadcast %51 : vector<32x1xf32> to vector<32x128xf32>
    %53 = arith.mulf %48, %52 : vector<32x128xf32>
    %54 = vector.broadcast %34 : vector<1x128xf32> to vector<32x128xf32>
    %55 = arith.mulf %53, %54 : vector<32x128xf32>
    %56 = vector.broadcast %35 : vector<1x128xf32> to vector<32x128xf32>
    %57 = arith.addf %55, %56 : vector<32x128xf32>
    %58 = arith.truncf %57 : vector<32x128xf32> to vector<32x128xbf16>
    %c0_26 = arith.constant 0 : index
    %c0_27 = arith.constant 0 : index
    %59 = vector.load %arg8[%c0_26, %c0_27] : memref<128x256xbf16, #tpu.memory_space<vmem>>, vector<128x256xbf16>
    %cst_28 = arith.constant dense<0.000000e+00> : vector<32x256xf32>
    %60 = tpu.matmul %58, %59, %cst_28 {dimension_numbers = #tpu.dot_dimension_numbers<[1], [0], [0], [1], [0, 0, 1, 1], [], []>} : vector<32x128xbf16>, vector<128x256xbf16>, vector<32x256xf32> -> vector<32x256xf32>
    %c0_29 = arith.constant 0 : index
    %c0_30 = arith.constant 0 : index
    %61 = vector.load %arg9[%c0_29, %c0_30] : memref<1x256xf32, #tpu.memory_space<vmem>>, vector<1x256xf32>
    %62 = vector.broadcast %61 : vector<1x256xf32> to vector<32x256xf32>
    %63 = arith.addf %60, %62 : vector<32x256xf32>
    %cst_31 = arith.constant 0.000000e+00 : f32
    %64 = vector.broadcast %cst_31 : f32 to vector<32x256xf32>
    %65 = arith.maximumf %63, %64 : vector<32x256xf32>
    %66 = arith.truncf %65 : vector<32x256xf32> to vector<32x256xbf16>
    %c0_32 = arith.constant 0 : index
    %c0_33 = arith.constant 0 : index
    %67 = vector.load %arg10[%c0_32, %c0_33] : memref<256x128xbf16, #tpu.memory_space<vmem>>, vector<256x128xbf16>
    %cst_34 = arith.constant dense<0.000000e+00> : vector<32x128xf32>
    %68 = tpu.matmul %66, %67, %cst_34 {dimension_numbers = #tpu.dot_dimension_numbers<[1], [0], [0], [1], [0, 0, 1, 1], [], []>} : vector<32x256xbf16>, vector<256x128xbf16>, vector<32x128xf32> -> vector<32x128xf32>
    %c0_35 = arith.constant 0 : index
    %c0_36 = arith.constant 0 : index
    %69 = vector.load %arg11[%c0_35, %c0_36] : memref<1x128xf32, #tpu.memory_space<vmem>>, vector<1x128xf32>
    %70 = vector.broadcast %69 : vector<1x128xf32> to vector<32x128xf32>
    %71 = arith.addf %68, %70 : vector<32x128xf32>
    %72 = arith.addf %71, %57 : vector<32x128xf32>
    %c0_37 = arith.constant 0 : index
    %c0_38 = arith.constant 0 : index
    %73 = vector.load %arg12[%c0_37, %c0_38] : memref<1x128xf32, #tpu.memory_space<vmem>>, vector<1x128xf32>
    %c0_39 = arith.constant 0 : index
    %c0_40 = arith.constant 0 : index
    %74 = vector.load %arg13[%c0_39, %c0_40] : memref<1x128xf32, #tpu.memory_space<vmem>>, vector<1x128xf32>
    %cst_41 = arith.constant dense<0.000000e+00> : vector<32xf32>
    %75 = vector.multi_reduction <add>, %72, %cst_41 [1] : vector<32x128xf32> to vector<32xf32>
    %76 = vector.shape_cast %75 : vector<32xf32> to vector<32x1xf32>
    %cst_42 = arith.constant 1.280000e+02 : f32
    %77 = vector.broadcast %cst_42 : f32 to vector<32x1xf32>
    %78 = arith.divf %76, %77 : vector<32x1xf32>
    %79 = vector.broadcast %78 : vector<32x1xf32> to vector<32x128xf32>
    %80 = arith.subf %72, %79 : vector<32x128xf32>
    %81 = arith.mulf %80, %80 : vector<32x128xf32>
    %cst_43 = arith.constant dense<0.000000e+00> : vector<32xf32>
    %82 = vector.multi_reduction <add>, %81, %cst_43 [1] : vector<32x128xf32> to vector<32xf32>
    %83 = vector.shape_cast %82 : vector<32xf32> to vector<32x1xf32>
    %cst_44 = arith.constant 1.280000e+02 : f32
    %84 = vector.broadcast %cst_44 : f32 to vector<32x1xf32>
    %85 = arith.divf %83, %84 : vector<32x1xf32>
    %86 = vector.broadcast %78 : vector<32x1xf32> to vector<32x128xf32>
    %87 = arith.subf %72, %86 : vector<32x128xf32>
    %cst_45 = arith.constant 9.99999974E-6 : f32
    %88 = vector.broadcast %cst_45 : f32 to vector<32x1xf32>
    %89 = arith.addf %85, %88 : vector<32x1xf32>
    %90 = math.rsqrt %89 : vector<32x1xf32>
    %91 = vector.broadcast %90 : vector<32x1xf32> to vector<32x128xf32>
    %92 = arith.mulf %87, %91 : vector<32x128xf32>
    %93 = vector.broadcast %73 : vector<1x128xf32> to vector<32x128xf32>
    %94 = arith.mulf %92, %93 : vector<32x128xf32>
    %95 = vector.broadcast %74 : vector<1x128xf32> to vector<32x128xf32>
    %96 = arith.addf %94, %95 : vector<32x128xf32>
    %c0_46 = arith.constant 0 : index
    %c0_47 = arith.constant 0 : index
    %c0_48 = arith.constant 0 : index
    %97 = vector.load %arg14[%c0_46, %c0_47, %c0_48] : memref<1x32x128xf32, #tpu.memory_space<vmem>>, vector<1x32x128xf32>
    %98 = vector.shape_cast %97 : vector<1x32x128xf32> to vector<32x128xf32>
    %99 = vector.shape_cast %96 : vector<32x128xf32> to vector<1x32x128xf32>
    tpu.vector_store %arg14[%c0_46, %c0_47, %c0_48], %99 {strides = array<i32>} : memref<1x32x128xf32, #tpu.memory_space<vmem>>, vector<1x32x128xf32>,
    return
  }
  func.func @transform_0(%arg0: i32, %arg1: i32) -> (i32, i32, i32) {
    %c0_i32 = arith.constant 0 : i32
    %c0_i32_0 = arith.constant 0 : i32
    %c0_i32_1 = arith.constant 0 : i32
    return %arg0, %c0_i32, %c0_i32_0 : i32, i32, i32
  }
  func.func @transform_1(%arg0: i32, %arg1: i32) -> (i32, i32) {
    %c0_i32 = arith.constant 0 : i32
    %c0_i32_0 = arith.constant 0 : i32
    %c0_i32_1 = arith.constant 0 : i32
    return %c0_i32, %c0_i32_0 : i32, i32
  }
  func.func @transform_2(%arg0: i32, %arg1: i32) -> (i32, i32) {
    %c0_i32 = arith.constant 0 : i32
    %c0_i32_0 = arith.constant 0 : i32
    %c0_i32_1 = arith.constant 0 : i32
    return %c0_i32, %c0_i32_0 : i32, i32
  }
  func.func @transform_3(%arg0: i32, %arg1: i32) -> (i32, i32) {
    %c0_i32 = arith.constant 0 : i32
    %c0_i32_0 = arith.constant 0 : i32
    %c0_i32_1 = arith.constant 0 : i32
    return %c0_i32, %c0_i32_0 : i32, i32
  }
  func.func @transform_4(%arg0: i32, %arg1: i32) -> (i32, i32) {
    %c0_i32 = arith.constant 0 : i32
    %c0_i32_0 = arith.constant 0 : i32
    %c0_i32_1 = arith.constant 0 : i32
    return %c0_i32, %c0_i32_0 : i32, i32
  }
  func.func @transform_5(%arg0: i32, %arg1: i32) -> (i32, i32) {
    %c0_i32 = arith.constant 0 : i32
    %c0_i32_0 = arith.constant 0 : i32
    %c0_i32_1 = arith.constant 0 : i32
    return %c0_i32, %c0_i32_0 : i32, i32
  }
  func.func @transform_6(%arg0: i32, %arg1: i32) -> (i32, i32) {
    %c0_i32 = arith.constant 0 : i32
    %c0_i32_0 = arith.constant 0 : i32
    %c0_i32_1 = arith.constant 0 : i32
    return %c0_i32, %c0_i32_0 : i32, i32
  }
  func.func @transform_7(%arg0: i32, %arg1: i32) -> (i32, i32) {
    %c0_i32 = arith.constant 0 : i32
    %c0_i32_0 = arith.constant 0 : i32
    %c0_i32_1 = arith.constant 0 : i32
    return %c0_i32, %c0_i32_0 : i32, i32
  }
  func.func @transform_8(%arg0: i32, %arg1: i32) -> (i32, i32) {
    %c0_i32 = arith.constant 0 : i32
    %c0_i32_0 = arith.constant 0 : i32
    %c0_i32_1 = arith.constant 0 : i32
    return %c0_i32, %c0_i32_0 : i32, i32
  }
  func.func @transform_9(%arg0: i32, %arg1: i32) -> (i32, i32) {
    %c0_i32 = arith.constant 0 : i32
    %c0_i32_0 = arith.constant 0 : i32
    %c0_i32_1 = arith.constant 0 : i32
    return %c0_i32, %c0_i32_0 : i32, i32
  }
  func.func @transform_10(%arg0: i32, %arg1: i32) -> (i32, i32) {
    %c0_i32 = arith.constant 0 : i32
    %c0_i32_0 = arith.constant 0 : i32
    %c0_i32_1 = arith.constant 0 : i32
    return %c0_i32, %c0_i32_0 : i32, i32
  }
  func.func @transform_11(%arg0: i32, %arg1: i32) -> (i32, i32) {
    %c0_i32 = arith.constant 0 : i32
    %c0_i32_0 = arith.constant 0 : i32
    %c0_i32_1 = arith.constant 0 : i32
    return %c0_i32, %c0_i32_0 : i32, i32
  }
  func.func @transform_12(%arg0: i32, %arg1: i32) -> (i32, i32, i32) {
    %c0_i32 = arith.constant 0 : i32
    %c0_i32_0 = arith.constant 0 : i32
    return %arg0, %arg1, %c0_i32 : i32, i32, i32
  }
}

</mosaic_0001>

<bundles_post_ra>
// kernel: tpu_custom_call.1
= control target key start
LH: loop header
LB: loop body
LE: loop exit
PB: predicated region body
PF: predicated region fallthrough
CT: control target
= control target key end

     0   :  { %s8451_s0 = inlined_call_operand.hbm [shape: bf16[2,64,128], index: 0, kind: input, shape index: {}]   ;;  %s8452_s1 = inlined_call_operand.hbm [shape: bf16[128,128], index: 1, kind: input, shape index: {}]   ;;  %s8453_s2 = inlined_call_operand.hbm [shape: bf16[128,256], index: 2, kind: input, shape index: {}]   ;;  %s8454_s3 = inlined_call_operand.hbm [shape: bf16[128,128], index: 3, kind: input, shape index: {}]   ;;  %s8455_s4 = inlined_call_operand.vmem [shape: f32[1,128], index: 4, kind: input, shape index: {}]   ;;  %s8456_s5 = inlined_call_operand.vmem [shape: f32[1,128], index: 5, kind: input, shape index: {}]   ;;  %s8457_s6 = inlined_call_operand.hbm [shape: bf16[128,256], index: 6, kind: input, shape index: {}]   ;;  %s8458_s7 = inlined_call_operand.vmem [shape: f32[1,256], index: 7, kind: input, shape index: {}]   ;;  %s8459_s8 = inlined_call_operand.hbm [shape: bf16[256,128], index: 8, kind: input, shape index: {}]   ;;  %s8460_s9 = inlined_call_operand.vmem [shape: f32[1,128], index: 9, kind: input, shape index: {}]   ;;  %s8461_s10 = inlined_call_operand.vmem [shape: f32[1,128], index: 10, kind: input, shape index: {}]   ;;  %s8462_s11 = inlined_call_operand.vmem [shape: f32[1,128], index: 11, kind: input, shape index: {}]   ;;  %s8463_s12 = inlined_call_operand.hbm [shape: f32[2,64,128], index: 12, kind: output, shape index: {}]  }
   0x1   :  { %8478 = sst [smem:[#allocation26_spill]] %s8451_s0 }
   0x2   :  { %8479 = sst [smem:[#allocation27_spill]] %s8452_s1 }
   0x3   :  { %8480 = sst [smem:[#allocation28_spill]] %s8453_s2 }
   0x4   :  { %8481 = sst [smem:[#allocation29_spill]] %s8454_s3 }
   0x5   :  { %8482 = sst [smem:[#allocation30_spill]] %s8455_s4 }
   0x6   :  { %8483 = sst [smem:[#allocation31_spill]] %s8456_s5 }
   0x7   :  { %8484 = sst [smem:[#allocation32_spill]] %s8457_s6 }
   0x8   :  { %8485 = sst [smem:[#allocation33_spill]] %s8458_s7 }
   0x9   :  { %8486 = sst [smem:[#allocation34_spill]] %s8459_s8 }
   0xa   :  { %8487 = sst [smem:[#allocation35_spill]] %s8460_s9 }
   0xb   :  { %8488 = sst [smem:[#allocation36_spill]] %s8461_s10 }
   0xc   :  { %8489 = sst [smem:[#allocation37_spill]] %s8462_s11 }
   0xd   :  { %8490 = sst [smem:[#allocation38_spill]] %s8463_s12 }
   0xe   :  { %17 = vsyncpa [#allocation5], 0 }
   0xf   :  { %19 = vsyncpa [#allocation5 + $0x1], 0 }
  0x10   :  { %20 = vsyncpa [#allocation8], 0 }
  0x11   :  { %21 = vsyncpa [#allocation11], 0 }
  0x12   :  { %22 = vsyncpa [#allocation14], 0 }
  0x13   :  { %23 = vsyncpa [#allocation6], 0 }
  0x14   :  { %25 = vsyncpa [#allocation6 + $0x1], 0  ;;  %s6950_s21 = smov 0   ;;  %s6952_s22 = smov 0  }
  0x15   :  { %s6954_s23 = smov 0   ;;  %s6956_s24 = smov 0  }
  0x16   :  { %s6958_s25 = smov 0   ;;  %s6960_s26 = smov 0  }
  0x17   :  { %s6962_s27 = smov 0   ;;  %s6964_s28 = smov 0  }
  0x18   :  { %s6966_s29 = smov 0   ;;  %s6968_s30 = smov 0  }
  0x19   :  { %s6970_s13 = smov 0  }
  0x1a LB: > { %8491 = sst [smem:[#allocation21_spill]] %s6842_s27  ;;  %s5750_s14 = sadd.s32 4294967295, %s6858_s13   ;;  %s6858_s13 = sphi %s6970_s13, %s31_s13   ;;  %s6854_s30 = sphi %s6968_s30, %s8542_s30   ;;  %s6850_s29 = sphi %s6966_s29, %s8541_s29   ;;  %s6846_s28 = sphi %s6964_s28, %s8540_s28   ;;  %s6842_s27 = sphi %s6962_s27, %s8539_s27   ;;  %s6838_s26 = sphi %s6960_s26, %s8538_s26   ;;  %s6834_s25 = sphi %s6958_s25, %s8537_s25   ;;  %s6830_s24 = sphi %s6956_s24, %s8536_s24   ;;  %s6826_s23 = sphi %s6954_s23, %s8535_s23   ;;  %s6822_s22 = sphi %s6952_s22, %s8534_s22   ;;  %s6818_s21 = sphi %s6950_s21, %s8533_s21  }
  0x1b   : > { %8492 = sst [smem:[#allocation22_spill]] %s6846_s28  ;;  %p5752_p0 = scmp.ge.s32.totalorder %s6858_s13, 1 }
  0x1c   : > { %p7007_p1 = scmp.eq.s32.totalorder %s5750_s14, 0  ;;  %p7011_p2 = scmp.eq.s32.totalorder %s5750_s14, 3 }
  0x1d   : > { %p333_p3 = scmp.lt.s32.totalorder %s6858_s13, 5  ;;  %s6860_s18 = smov [#allocation7]  }
  0x1e   : > { %s8493_s15 = scalar_select %p7007_p1, 1, 0 }
  0x1f   : > { %s8494_s16 = scalar_select %p7011_p2, 1, 0 }
  0x20   : > { %p7016_p4 = pnand %p5752_p0, %p333_p3  ;;  %s345_s19 = sshll.u32 %s6860_s18, 4  ;;  %s7020_s19 = int_to_ptr.vmem [resolvable:$true] %s345_s19 }
  0x21   : > { %8495 = sst [smem:[#allocation23_spill]] %s8494_s16  ;;  %s6861_s14 = smov [#allocation10]  }
  0x22   : > { %s8496_s17 = scalar_select %p7016_p4, 1, 0 }
  0x23   : > { %p6207_p5 = pneg %p7016_p4  ;;  %s371_s12 = sshll.u32 %s6861_s14, 4  ;;  %s7030_s12 = int_to_ptr.vmem [resolvable:$true] %s371_s12 }
  0x24   : > { %8497 = sst [smem:[#allocation24_spill]] %s8496_s17  ;;  %s6862_s11 = smov [#allocation9]  }
  0x25   : > { %p7026_p6 = pnand %p6207_p5, %p7007_p1  ;;  %s358_s10 = sshll.u32 %s6862_s11, 4  ;;  %s7032_s10 = int_to_ptr.vmem [resolvable:$true] %s358_s10 }
  0x26   : > { %s8499_s1 = sld [smem:[#allocation27_spill]] }
  0x27   : > { %p7042_p8 = pneg %p7026_p6 }
  0x2c   : > { %s6554_s9 = scalar_lea.hbm %s8499_s1, 1024 }
  0x2d   : > { %p6555_p7 = scmp.ne.s32.totalorder %s8499_s1, %s6554_s9  ;;  %p6561_p11 = scmp.lt.u32.totalorder %s6554_s9, %s8499_s1 }
  0x2f   : > { %p6557_p9 = pnand %p7042_p8, %p6555_p7 }
  0x31   : > { %p6558_p10 = pneg %p6557_p9 }
  0x33   : > { %p6563_p12 = pnand %p6561_p11, %p6558_p10 }
  0x35   : > { %6566 = shalt.err (!%p6563_p12)
}
  0x36   : > { %s6567_s5 = scalar_lea.vmem %s7020_s19, 1024  ;;  %p6575_p5 = scmp.lt.s32.totalorder %s7020_s19, %s7020_s19 }
  0x37   : > { %p6568_p13 = scmp.ne.s32.totalorder %s7020_s19, %s6567_s5  ;;  %p6576_p4 = scmp.lt.s32.totalorder %s6567_s5, %s6567_s5 }
  0x39   : > { %p6570_p0 = pnand %p6568_p13, %p7042_p8  ;;  %p6577_p7 = por %p6576_p4, %p6575_p5 }
  0x3b   : > { %p6571_p3 = pneg %p6570_p0 }
  0x3d   : > { %p6578_p9 = pnand %p6577_p7, %p6571_p3 }
  0x3f   : > { %6581 = shalt.err (!%p6578_p9)
}
  0x40   : > { %s8470_s7 = smov 64   ;;  %s8472_s9 = smov 4  }
  0x41   : > { %6210 = dma.hbm_to_vmem [thread:$0]  (!%p7026_p6), %s8499_s1, 1024, %s7020_s19, [#allocation8], %s8470_s7, %s8470_s7, %s8472_s9  }
  0x42   : > { %s8501_s3 = sld [smem:[#allocation29_spill]] }
  0x48   : > { %s6582_s5 = scalar_lea.hbm %s8501_s3, 1024 }
  0x49   : > { %p6583_p4 = scmp.ne.s32.totalorder %s8501_s3, %s6582_s5  ;;  %p6589_p12 = scmp.lt.u32.totalorder %s6582_s5, %s8501_s3 }
  0x4b   : > { %p6585_p10 = pnand %p6583_p4, %p7042_p8 }
  0x4d   : > { %p6586_p11 = pneg %p6585_p10 }
  0x4f   : > { %p6591_p13 = pnand %p6589_p12, %p6586_p11 }
  0x51   : > { %6594 = shalt.err (!%p6591_p13)
}
  0x52   : > { %s6595_s19 = scalar_lea.vmem %s7030_s12, 1024  ;;  %p6603_p7 = scmp.lt.s32.totalorder %s7030_s12, %s7030_s12 }
  0x53   : > { %p6596_p0 = scmp.ne.s32.totalorder %s7030_s12, %s6595_s19  ;;  %p6604_p9 = scmp.lt.s32.totalorder %s6595_s19, %s6595_s19 }
  0x55   : > { %p6598_p3 = pnand %p6596_p0, %p7042_p8  ;;  %p6605_p4 = por %p6604_p9, %p6603_p7 }
  0x57   : > { %p6599_p5 = pneg %p6598_p3 }
  0x59   : > { %p6606_p10 = pnand %p6605_p4, %p6599_p5 }
  0x5b   : > { %6609 = shalt.err (!%p6606_p10)
}
  0x5c   : > { %6216 = dma.hbm_to_vmem [thread:$0]  (!%p7026_p6), %s8501_s3, 1024, %s7030_s12, [#allocation11], %s8470_s7, %s8470_s7, %s8472_s9  }
  0x5d   : > { %s8502_s2 = sld [smem:[#allocation28_spill]] }
  0x63   : > { %s6610_s28 = scalar_lea.hbm %s8502_s2, 2048 }
  0x64   : > { %p6611_p11 = scmp.ne.s32.totalorder %s8502_s2, %s6610_s28  ;;  %p6617_p0 = scmp.lt.u32.totalorder %s6610_s28, %s8502_s2 }
  0x66   : > { %p6613_p12 = pnand %p6611_p11, %p7042_p8 }
  0x68   : > { %p6614_p13 = pneg %p6613_p12 }
  0x6a   : > { %p6619_p3 = pnand %p6617_p0, %p6614_p13 }
  0x6c   : > { %6622 = shalt.err (!%p6619_p3)
}
  0x6d   : > { %s6623_s12 = scalar_lea.vmem %s7032_s10, 2048  ;;  %p6631_p4 = scmp.lt.s32.totalorder %s7032_s10, %s7032_s10 }
  0x6e   : > { %p6624_p5 = scmp.ne.s32.totalorder %s7032_s10, %s6623_s12  ;;  %p6632_p10 = scmp.lt.s32.totalorder %s6623_s12, %s6623_s12 }
  0x70   : > { %p6626_p7 = pnand %p6624_p5, %p7042_p8  ;;  %p6633_p11 = por %p6632_p10, %p6631_p4 }
  0x72   : > { %p6627_p9 = pneg %p6626_p7 }
  0x74   : > { %p6634_p12 = pnand %p6633_p11, %p6627_p9 }
  0x76   : > { %6637 = shalt.err (!%p6634_p12)
}
  0x77   : > { %s6865_s19 = smov 128   ;;  %s6866_s0 = smov 8  }
  0x78   : > { %6213 = dma.hbm_to_vmem [thread:$0]  (!%p7026_p6), %s8502_s2, 2048, %s7032_s10, [#allocation8], %s6865_s19, %s6865_s19, %s6866_s0  }
  0x79   : > { %s6867_s17 = smov [#allocation12]   ;;  %s6868_s18 = smov [#allocation13]  }
  0x7a   : > { %s390_s28 = sshll.u32 %s6867_s17, 4  ;;  %s406_s11 = sshll.u32 %s6868_s18, 4  ;;  %s391_s28 = int_to_ptr.vmem [resolvable:$true] %s390_s28  ;;  %s7115_s11 = int_to_ptr.vmem [resolvable:$true] %s406_s11 }
  0x7b   : > { %s8503_s6 = sld [smem:[#allocation32_spill]] }
  0x81   : > { %s6638_s12 = scalar_lea.hbm %s8503_s6, 2048 }
  0x82   : > { %p6639_p13 = scmp.ne.s32.totalorder %s8503_s6, %s6638_s12  ;;  %p6645_p5 = scmp.lt.u32.totalorder %s6638_s12, %s8503_s6 }
  0x84   : > { %p6641_p0 = pnand %p6639_p13, %p7042_p8 }
  0x86   : > { %p6642_p3 = pneg %p6641_p0 }
  0x88   : > { %p6647_p7 = pnand %p6645_p5, %p6642_p3 }
  0x8a   : > { %6650 = shalt.err (!%p6647_p7)
}
  0x8b   : > { %s6651_s16 = scalar_lea.vmem %s391_s28, 2048  ;;  %p6659_p11 = scmp.lt.s32.totalorder %s391_s28, %s391_s28 }
  0x8c   : > { %p6652_p9 = scmp.ne.s32.totalorder %s391_s28, %s6651_s16  ;;  %p6660_p12 = scmp.lt.s32.totalorder %s6651_s16, %s6651_s16 }
  0x8e   : > { %p6654_p4 = pnand %p6652_p9, %p7042_p8  ;;  %p6661_p2 = por %p6660_p12, %p6659_p11 }
  0x90   : > { %p6655_p10 = pneg %p6654_p4 }
  0x92   : > { %p6662_p1 = pnand %p6661_p2, %p6655_p10 }
  0x94   : > { %6665 = shalt.err (!%p6662_p1)
}
  0x95   : > { %6219 = dma.hbm_to_vmem [thread:$0]  (!%p7026_p6), %s8503_s6, 2048, %s391_s28, [#allocation11], %s6865_s19, %s6865_s19, %s6866_s0  }
  0x96   : > { %s8504_s8 = sld [smem:[#allocation34_spill]] }
  0x9c   : > { %s6666_s14 = scalar_lea.hbm %s8504_s8, 2048 }
  0x9d   : > { %p6667_p13 = scmp.ne.s32.totalorder %s8504_s8, %s6666_s14  ;;  %p6673_p1 = scmp.lt.u32.totalorder %s6666_s14, %s8504_s8 }
  0x9f   : > { %p6669_p0 = pnand %p6667_p13, %p7042_p8 }
  0xa1   : > { %p6670_p3 = pneg %p6669_p0 }
  0xa3   : > { %p6675_p2 = pnand %p6673_p1, %p6670_p3 }
  0xa5   : > { %6678 = shalt.err (!%p6675_p2)
}
  0xa6   : > { %s6679_s19 = scalar_lea.vmem %s7115_s11, 2048  ;;  %p6687_p4 = scmp.lt.s32.totalorder %s7115_s11, %s7115_s11 }
  0xa7   : > { %p6680_p5 = scmp.ne.s32.totalorder %s7115_s11, %s6679_s19  ;;  %p6688_p10 = scmp.lt.s32.totalorder %s6679_s19, %s6679_s19 }
  0xa9   : > { %p6682_p7 = pnand %p6680_p5, %p7042_p8  ;;  %p6689_p11 = por %p6688_p10, %p6687_p4 }
  0xab   : > { %p6683_p9 = pneg %p6682_p7 }
  0xad   : > { %p6690_p12 = pnand %p6689_p11, %p6683_p9 }
  0xaf   : > { %6693 = shalt.err (!%p6690_p12)
}
  0xb0   : > { %s8505_s0 = smov 4   ;;  %s8506_s28 = smov 64  }
  0xb1   : > { %6222 = dma.hbm_to_vmem [thread:$0]  (!%p7026_p6), %s8504_s8, 2048, %s7115_s11, [#allocation14], %s8506_s28, %s8506_s28, %s8505_s0  }
  0xb2   : > { %s5751_s4 = sadd.s32 4294967294, %s6858_s13   ;;  %s40_s20 = sadd.s32 1, %s6850_s29 }
  0xb3   : > { %p41_p8 = scmp.ge.s32.totalorder %s40_s20, 2  ;;  %s43_s9 = sadd.s32 1, %s6854_s30 }
  0xb4   : > { %s50_s17 = sadd.s32 1, %s6838_s26  ;;  %p57_p13 = scmp.ne.s32.totalorder %s6838_s26, %s6834_s25 }
  0xb5   : > { %s8544_s20 = smov (%p41_p8, %s40_s20), 0  ;;  %s8507_s18 = sld [smem:[#allocation23_spill]] }
  0xb6   : > { %s8546_s9 = smov (!%p41_p8, %s43_s9), %s6854_s30  ;;  %p58_p0 = scmp.eq.s32.totalorder %s6858_s13, 0 }
  0xb7   : > { %p63_p6 = scmp.ne.s32.totalorder %s6834_s25, %s6830_s24  ;;  %p45_p3 = scmp.ge.s32.totalorder %s8546_s9, 2 }
  0xb8   : > { %s305_s11 = ssub.s32 %s6850_s29, %s8544_s20  ;;  %p7175_p1 = por %p58_p0, %p57_p13 }
  0xb9   : > { %p8509_p2 = scmp.ne.s32.totalorder %s8493_s15, 0  ;;  %s8548_s9 = smov (%p45_p3, %s8546_s9), 0 }
  0xba   : > { %8511 = sst [smem:[#allocation25_spill]] %s8548_s9  ;;  %s309_s12 = sadd.s32 1, %s6826_s23 }
  0xbb   : > { %p7181_p5 = por %p8509_p2, %p63_p6  ;;  %p319_p7 = scmp.ne.s32.totalorder %s6826_s23, %s6822_s22 }
  0xbc   : > { %s47_s24 = ssub.s32 %s6854_s30, %s8548_s9  ;;  %p325_p9 = scmp.ne.s32.totalorder %s6822_s22, %s6818_s21 }
  0xbd   : > { %p48_p4 = scmp.eq.s32.totalorder %s47_s24, 0  ;;  %s306_s27 = sor.u32 %s305_s11, %s47_s24 }
  0xbe   : > { %p307_p10 = scmp.eq.s32.totalorder %s306_s27, 0  ;;  %p8512_p11 = scmp.ne.s32.totalorder %s8507_s18, 0 }
  0xbf   : > { %s7201_s19 = scalar_select %p48_p4, %s6838_s26, %s50_s17  }
  0xc0   : > { %p7196_p12 = por %p8512_p11, %p319_p7  ;;  %p326_p8 = scmp.eq.s32.totalorder %s5751_s4, 3 }
  0xc1   : > { %s7204_s16 = scalar_select %p307_p10, %s6826_s23, %s309_s12  }
  0xc2   : > { %s8513_s10 = scalar_select %p7196_p12, 1, 0 }
  0xc3   : > { %p6236_p13 = scmp.lt.s32.totalorder %s6858_s13, 4  ;;  %s429_s7 = sand.u32 1, %s6838_s26  }
  0xc4   : > { %s5918_s1 = sshll.u32 %s6854_s30, 9  ;;  %p7209_p0 = por %p326_p8, %p325_p9 }
  0xc5   : > { %s5759_s3 = sshll.u32 %s429_s7, 5  ;;  %s8515_s18 = sld [smem:[#allocation26_spill]] }
  0xc6   : > { %s8514_s2 = scalar_select %p7209_p0, 1, 0 }
  0xc7   : > { %p7220_p6 = pnand %p6236_p13, %p7175_p1  ;;  %s433_s17 = scalar_lea.vmem [#allocation4], %s5759_s3 }
  0xc8   : > { %s440_s12 = sshll.u32 %s433_s17, 4  ;;  %s7226_s6 = scalar_lea.sflag [#allocation5], %s429_s7  ;;  %s7224_s12 = int_to_ptr.vmem [resolvable:$true] %s440_s12 }
  0xc9   : > { %p6696_p2 = pneg %p7220_p6 }
  0xcb   : > { %s7216_s27 = scalar_lea.hbm %s8515_s18, %s5918_s1  ;;  %s6699_s24 = scalar_lea.hbm %s8515_s18, 1024 }
  0xcc   : > { %s6694_s11 = scalar_lea.hbm %s7216_s27, 512  ;;  %p6700_p1 = scmp.lt.u32.totalorder %s7216_s27, %s8515_s18 }
  0xcd   : > { %p6695_p3 = scmp.ne.s32.totalorder %s7216_s27, %s6694_s11  ;;  %p6701_p4 = scmp.lt.u32.totalorder %s6699_s24, %s6694_s11 }
  0xce   : > { %p6703_p11 = scmp.lt.u32.totalorder %s6694_s11, %s7216_s27 }
  0xcf   : > { %p6697_p7 = pnand %p6696_p2, %p6695_p3  ;;  %p6702_p10 = por %p6701_p4, %p6700_p1 }
  0xd1   : > { %p6698_p9 = pneg %p6697_p7  ;;  %p6704_p8 = por %p6703_p11, %p6702_p10 }
  0xd3   : > { %p6705_p13 = pnand %p6704_p8, %p6698_p9 }
  0xd5   : > { %6708 = shalt.err (!%p6705_p13)
}
  0xd6   : > { %s6709_s3 = scalar_lea.vmem %s7224_s12, 512  ;;  %s6869_s7 = smov [#allocation4]  }
  0xd7   : > { %p6710_p3 = scmp.ne.s32.totalorder %s7224_s12, %s6709_s3  ;;  %s6714_s17 = sshll.u32 %s6869_s7, 4  ;;  %s6715_s17 = int_to_ptr.vmem [resolvable:$false] %s6714_s17 }
  0xd8   : > { %s6716_s8 = scalar_lea.vmem %s6715_s17, 1024  ;;  %p6717_p12 = scmp.lt.s32.totalorder %s7224_s12, %s6715_s17 }
  0xd9   : > { %p6712_p7 = pnand %p6710_p3, %p6696_p2  ;;  %p6718_p1 = scmp.lt.s32.totalorder %s6716_s8, %s6709_s3 }
  0xdb   : > { %p6713_p0 = pneg %p6712_p7  ;;  %p6719_p4 = por %p6718_p1, %p6717_p12 }
  0xdd   : > { %p6720_p10 = pnand %p6719_p4, %p6713_p0 }
  0xdf   : > { %6723 = shalt.err (!%p6720_p10)
}
  0xe0   : > { %6226 = dma.hbm_to_vmem [thread:$0]  (!%p7220_p6), %s7216_s27, 512, %s7224_s12, %s7226_s6, %s8506_s28, %s8506_s28, %s8505_s0  }
  0xe1   : > { %s8517_s9 = sld [smem:[#allocation24_spill]] }
  0xe7   : > { %p8518_p2 = scmp.ne.s32.totalorder %s8517_s9, 0 }
  0xe8   : > { %s454_s11 = sand.u32 (!%p8518_p2), 1, %s6834_s25  }
  0xe9   : > { %452 = sbr.rel (%p8518_p2) target bundleno = 3459 (0xd83), region = 68  ;;  %s5763_s1 = sshll.u32 (!%p8518_p2), %s454_s11, 5 }
  0xea   : > { %s455_s14 = scalar_lea.sflag (!%p8518_p2), [#allocation5], %s454_s11  ;;  %s7260_s24 = scalar_lea.vmem (!%p8518_p2), [#allocation4], %s5763_s1 }
  0xf0   : > { %6797 = dma.done.wait (%p7181_p5), %s455_s14, 512  }
  0xf1   : > { %6799 = vsyncadd (%p7181_p5), %s455_s14, 4294966784  ;;  %p8519_p12 = scmp.ne.s32.totalorder %s8493_s15, 0 }
  0xf3   : > { %6801 = dma.done.wait (%p8519_p12), [#allocation8], 3072  }
  0xf4   : > { %6803 = vsyncadd (%p8519_p12), [#allocation8], 4294964224 }
  0xf5   : > { %6805 = dma.done.wait (%p8519_p12), [#allocation11], 3072  }
  0xf6   : > { %6807 = vsyncadd (%p8519_p12), [#allocation11], 4294964224 }
  0xf7   : > { %6809 = dma.done.wait (%p8519_p12), [#allocation14], 2048  }
  0xf8   : > { %6811 = vsyncadd (%p8519_p12), [#allocation14], 4294965248  ;;  %s516_s6 = sand.u32 1, %s6822_s22   ;;  %s8520_s5 = sld [smem:[#allocation21_spill]] }
  0xf9   : > { %s5769_s0 = sshll.u32 %s516_s6, 5 }
  0xfa   : > { %s7281_s28 = scalar_lea.vmem [#allocation15], %s5769_s0 }
  0xfe   : > { %p5770_p5 = scmp.ne.s32.totalorder %s8520_s5, 0 }
  0xff   : > { %v6354_v0 = vld [vmem:[#allocation9 + $0x4] ss:$8 sps:$4 sm:$0xff] (!%p5770_p5)   ;;  %v6356_v1 = vld [vmem:[#allocation9] ss:$8 sps:$4 sm:$0xff] (!%p5770_p5)   ;;  %v6870_v2 = vmov (!%p5770_p5), 0   ;;  %v6379_v18 = vld [vmem:[%s7260_s24 + $0x10] sm:$0xff] (!%p5770_p5)   ;;  %v836_v47 = vlaneseq (!%p5770_p5) }
 0x100   : > { %524 = sbr.rel (%p5770_p5) target bundleno = 779 (0x30b), region = 96  ;;  %685 = vmatprep.mubr.bf16.mxu0 (!%p5770_p5), %v6870_v2  ;;  %705 = vmatprep.mubr.bf16.mxu1 (!%p5770_p5), %v6870_v2  ;;  %v6357_v3 = vld [vmem:[#allocation9 + $0x14] ss:$8 sps:$4 sm:$0xff] (!%p5770_p5)   ;;  %v6359_v4 = vld [vmem:[#allocation9 + $0x10] ss:$8 sps:$4 sm:$0xff] (!%p5770_p5)   ;;  %v6378_v17 = vld [vmem:[%s7260_s24] sm:$0xff] (!%p5770_p5)   ;;  %v7337_v56 = vpack.i.b16 (!%p5770_p5), %v6870_v2, %v6870_v2 }
 0x101   : > { %653 = vmatprep.subr.bf16.mxu0 (!%p5770_p5), %v6354_v0  ;;  %6151 = vmatprep.subr.bf16.mxu1 (!%p5770_p5), %v6354_v0  ;;  %v6360_v5 = vld [vmem:[#allocation9 + $0x24] ss:$8 sps:$4 sm:$0xff] (!%p5770_p5)   ;;  %v6362_v6 = vld [vmem:[#allocation9 + $0x20] ss:$8 sps:$4 sm:$0xff] (!%p5770_p5)   ;;  %v6363_v7 = vld [vmem:[#allocation9 + $0x34] ss:$8 sps:$4 sm:$0xff] (!%p5770_p5)  }
 0x102   : > { %654 = vmatpush1.bf16.msra.mxu0 (!%p5770_p5), %v6356_v1  ;;  %6159 = vmatpush1.bf16.msra.mxu1 (!%p5770_p5), %v6356_v1  ;;  %v6365_v8 = vld [vmem:[#allocation9 + $0x30] ss:$8 sps:$4 sm:$0xff] (!%p5770_p5)   ;;  %v6366_v9 = vld [vmem:[#allocation9 + $0x44] ss:$8 sps:$4 sm:$0xff] (!%p5770_p5)   ;;  %v6368_v10 = vld [vmem:[#allocation9 + $0x40] ss:$8 sps:$4 sm:$0xff] (!%p5770_p5)  }
 0x103   : > { %655 = vmatprep.subr.bf16.mxu0 (!%p5770_p5), %v6357_v3  ;;  %6152 = vmatprep.subr.bf16.mxu1 (!%p5770_p5), %v6357_v3  ;;  %v6369_v11 = vld [vmem:[#allocation9 + $0x54] ss:$8 sps:$4 sm:$0xff] (!%p5770_p5)   ;;  %v6371_v12 = vld [vmem:[#allocation9 + $0x50] ss:$8 sps:$4 sm:$0xff] (!%p5770_p5)   ;;  %v6372_v13 = vld [vmem:[#allocation9 + $0x64] ss:$8 sps:$4 sm:$0xff] (!%p5770_p5)  }
 0x104   : > { %v6374_v14 = vld [vmem:[#allocation9 + $0x60] ss:$8 sps:$4 sm:$0xff] (!%p5770_p5)   ;;  %v6375_v15 = vld [vmem:[#allocation9 + $0x74] ss:$8 sps:$4 sm:$0xff] (!%p5770_p5)   ;;  %v6377_v16 = vld [vmem:[#allocation9 + $0x70] ss:$8 sps:$4 sm:$0xff] (!%p5770_p5)  }
 0x105   : > { %v6380_v19 = vld [vmem:[%s7260_s24 + $0x18] sm:$0xff] (!%p5770_p5)   ;;  %v6381_v20 = vld [vmem:[%s7260_s24 + $0x8] sm:$0xff] (!%p5770_p5)   ;;  %s6871_s15 = smov (!%p5770_p5), 96   ;;  %s6872_s27 = smov (!%p5770_p5), 64   ;;  %v6874_v45 = vmov (!%p5770_p5), 1983009808  }
 0x106   : > { %656 = vmatpush1.bf16.msra.mxu0 (!%p5770_p5), %v6359_v4  ;;  %6160 = vmatpush1.bf16.msra.mxu1 (!%p5770_p5), %v6359_v4  ;;  %s6873_s4 = smov (!%p5770_p5), 32   ;;  %v834_v46 = vunpack.c.l.s4 (!%p5770_p5), %v6874_v45  ;;  %v6875_v52 = vmov (!%p5770_p5), 1934713408   ;;  %v837_v55 = vshrl.u32 (!%p5770_p5), %v836_v47, 7  ;;  %vm1824_vm0 = vcmask (!%p5770_p5), 261120  }
 0x107   : > { %657 = vmatprep.subr.bf16.mxu0 %v6360_v5  ;;  %6153 = vmatprep.subr.bf16.mxu1 %v6360_v5  ;;  %v865_v53 = vunpack.c.l.s4 %v6875_v52 }
 0x108   : > { %v835_v54 = vunpack.c.0.s8 %v834_v46 }
 0x109   : > { %v866_v0 = vunpack.c.0.s8 %v865_v53 }
 0x10a   : > { %658 = vmatpush1.bf16.msra.mxu0 %v6362_v6  ;;  %6161 = vmatpush1.bf16.msra.mxu1 %v6362_v6  ;;  %v7341_v1 = vsub.s32 %v835_v54, %v837_v55 }
 0x10b   : > { %659 = vmatprep.subr.bf16.mxu0 %v6363_v7  ;;  %6154 = vmatprep.subr.bf16.mxu1 %v6363_v7 }
 0x10e   : > { %660 = vmatpush1.bf16.msra.mxu0 %v6365_v8  ;;  %6162 = vmatpush1.bf16.msra.mxu1 %v6365_v8 }
 0x10f   : > { %661 = vmatprep.subr.bf16.mxu0 %v6366_v9  ;;  %6155 = vmatprep.subr.bf16.mxu1 %v6366_v9 }
 0x112   : > { %662 = vmatpush1.bf16.msra.mxu0 %v6368_v10  ;;  %6163 = vmatpush1.bf16.msra.mxu1 %v6368_v10 }
 0x113   : > { %663 = vmatprep.subr.bf16.mxu0 %v6369_v11  ;;  %6156 = vmatprep.subr.bf16.mxu1 %v6369_v11 }
 0x116   : > { %664 = vmatpush1.bf16.msra.mxu0 %v6371_v12  ;;  %6164 = vmatpush1.bf16.msra.mxu1 %v6371_v12 }
 0x117   : > { %665 = vmatprep.subr.bf16.mxu0 %v6372_v13  ;;  %6157 = vmatprep.subr.bf16.mxu1 %v6372_v13  ;;  %v7351_v13 = vsub.s32 %v866_v0, %v837_v55 }
 0x11a   : > { %666 = vmatpush1.bf16.msra.mxu0 %v6374_v14  ;;  %6165 = vmatpush1.bf16.msra.mxu1 %v6374_v14 }
 0x11b   : > { %667 = vmatprep.subr.bf16.mxu0 %v6375_v15  ;;  %6158 = vmatprep.subr.bf16.mxu1 %v6375_v15 }
 0x11e   : > { %668 = vmatpush1.bf16.msra.mxu0 %v6377_v16  ;;  %6166 = vmatpush1.bf16.msra.mxu1 %v6377_v16 }
 0x121   : > { %686 = vmatmul.mubr.bf16.vlgmr.msra.gmra.mrb[0].mxu0 %v6378_v17  ;;  %706 = vmatmul.mubr.bf16.vlgmr.msra.gmra.mrb[0].mxu1 %v6379_v18 }
 0x122   : > { %715 = vmatprep.mubr.bf16.mxu1 %v6870_v2  ;;  %695 = vmatprep.mubr.bf16.mxu0 %v6870_v2 }
 0x129   : > { %716 = vmatmul.mubr.bf16.gmra.mrb[4].mxu1 %v6380_v19  ;;  %696 = vmatmul.mubr.bf16.gmra.mrb[4].mxu0 %v6381_v20 }
 0x1f4   : > { %v687_v21 = vpop.f32.mrb[0].mxu0  ;;  %v707_v22 = vpop.f32.mrb[0].mxu1 }
 0x1f5   : > { %v689_v23 = vpop.f32.mrb[1].mxu0  ;;  %v709_v24 = vpop.f32.mrb[1].mxu1 }
 0x1f6   : > { %v691_v25 = vpop.f32.mrb[2].mxu0  ;;  %v711_v26 = vpop.f32.mrb[2].mxu1 }
 0x1f7   : > { %v7292_v27 = vpack.c.bf16 %v691_v25, %v687_v21  ;;  %v728_v28 = vpack.c.bf16 %v711_v26, %v707_v22  ;;  %v713_v29 = vpop.f32.mrb[3].mxu1  ;;  %v693_v30 = vpop.f32.mrb[3].mxu0 }
 0x1f8   : > { %v7294_v31 = vpack.c.bf16 %v713_v29, %v709_v24  ;;  %v7296_v32 = vpack.c.bf16 %v693_v30, %v689_v23 }
 0x1f9   : > { %742 = vrot.lane.b32.xlu1 %v728_v28, %s6871_s15  ;;  %738 = vrot.lane.b32.xlu0 %v7292_v27, %s6871_s15  ;;  %v804_v58 = vshrl.u32 %v728_v28, 16  ;;  %v766_v59 = vshrl.u32 %v7292_v27, 16 }
 0x1fa   : > { %v1873_v6 = vshrl.u32 %v7296_v32, 16  ;;  %v1905_v2 = vshrl.u32 %v7294_v31, 16 }
 0x1fc   : > { %v717_v33 = vpop.f32.mrb[4].mxu1  ;;  %v697_v34 = vpop.f32.mrb[4].mxu0 }
 0x1fd   : > { %v719_v35 = vpop.f32.mrb[5].mxu1  ;;  %746 = vrot.lane.b32.xlu0 %v7292_v27, %s6872_s27  ;;  %v699_v36 = vpop.f32.mrb[5].mxu0 }
 0x1fe   : > { %v721_v37 = vpop.f32.mrb[6].mxu1  ;;  %v701_v38 = vpop.f32.mrb[6].mxu0 }
 0x1ff   : > { %v7302_v39 = vpack.c.bf16 %v721_v37, %v717_v33  ;;  %v7304_v40 = vpack.c.bf16 %v701_v38, %v697_v34  ;;  %v723_v41 = vpop.f32.mrb[7].mxu1  ;;  %v703_v42 = vpop.f32.mrb[7].mxu0 }
 0x200   : > { %v7306_v43 = vpack.c.bf16 %v723_v41, %v719_v35  ;;  %v7308_v44 = vpack.c.bf16 %v703_v42, %v699_v36 }
 0x201   : > { %744 = vrot.lane.b32.xlu1 %v7302_v39, %s6871_s15  ;;  %750 = vrot.lane.b32.xlu0 %v728_v28, %s6872_s27  ;;  %v820_v9 = vshrl.u32 %v7302_v39, 16  ;;  %v788_v14 = vshrl.u32 %v7304_v40, 16 }
 0x202   : > { %v1889_v17 = vshrl.u32 %v7308_v44, 16  ;;  %v1921_v18 = vshrl.u32 %v7306_v43, 16 }
 0x205   : > { %754 = vrot.lane.b32.xlu0 %v7292_v27, %s6873_s4  ;;  %748 = vrot.lane.b32.xlu1 %v7304_v40, %s6872_s27 }
 0x209   : > { %758 = vrot.lane.b32.xlu0 %v728_v28, %s6873_s4  ;;  %752 = vrot.lane.b32.xlu1 %v7302_v39, %s6872_s27 }
 0x20d   : > { %1845 = vrot.lane.b32.xlu0 %v7296_v32, %s6871_s15  ;;  %756 = vrot.lane.b32.xlu1 %v7304_v40, %s6873_s4 }
 0x211   : > { %1849 = vrot.lane.b32.xlu0 %v7294_v31, %s6871_s15  ;;  %760 = vrot.lane.b32.xlu1 %v7302_v39, %s6873_s4 }
 0x215   : > { %1853 = vrot.lane.b32.xlu0 %v7296_v32, %s6872_s27  ;;  %1847 = vrot.lane.b32.xlu1 %v7308_v44, %s6871_s15 }
 0x219   : > { %1857 = vrot.lane.b32.xlu0 %v7294_v31, %s6872_s27  ;;  %1851 = vrot.lane.b32.xlu1 %v7306_v43, %s6871_s15 }
 0x21d   : > { %1861 = vrot.lane.b32.xlu0 %v7296_v32, %s6873_s4  ;;  %1855 = vrot.lane.b32.xlu1 %v7308_v44, %s6872_s27 }
 0x221   : > { %740 = vrot.lane.b32.xlu0 %v7304_v40, %s6871_s15  ;;  %1859 = vrot.lane.b32.xlu1 %v7306_v43, %s6872_s27 }
 0x225   : > { %1865 = vrot.lane.b32.xlu0 %v7294_v31, %s6873_s4  ;;  %1863 = vrot.lane.b32.xlu1 %v7308_v44, %s6873_s4 }
 0x229   : > { %1867 = vrot.lane.b32.xlu1 %v7306_v43, %s6873_s4 }
 0x26b   : > { %v743_v48 = vpop.permute.xlu1 %742  ;;  %v739_v49 = vpop.permute.xlu0 %738 }
 0x26c   : > { %v805_v50 = vshrl.u32 %v743_v48, 16  ;;  %v767_v51 = vshrl.u32 %v739_v49, 16  ;;  %v802_v57 = vpack.i.b16 %v743_v48, %v728_v28  ;;  %v764_v61 = vpack.i.b16 %v739_v49, %v7292_v27 }
 0x26e   : > { %v806_v62 = vpack.i.b16 %v805_v50, %v804_v58  ;;  %v768_v63 = vpack.i.b16 %v767_v51, %v766_v59  ;;  %v1096_v3 = vcombine.high %v802_v57, %v7337_v56  ;;  %v832_v7 = vcombine.high %v764_v61, %v7337_v56 }
 0x26f   : > { %v747_v60 = vpop.permute.xlu0 %746  ;;  %v7355_v15 = vrot.slane %v802_v57, %v7341_v1  ;;  %v839_v21 = vrot.slane %v764_v61, %v7341_v1 }
 0x270   : > { %v1162_v11 = vcombine.high %v806_v62, %v7337_v56  ;;  %v898_v12 = vcombine.high %v768_v63, %v7337_v56  ;;  %v7360_v19 = vrot.slane %v1096_v3, %v7341_v1  ;;  %v7363_v20 = vrot.slane %v806_v62, %v7341_v1 }
 0x271   : > { %v846_v24 = vrot.slane %v832_v7, %v7341_v1  ;;  %v905_v25 = vrot.slane %v768_v63, %v7341_v1  ;;  %v774_v33 = vshrl.u32 %v747_v60, 16 }
 0x272   : > { %v7373_v29 = vrot.slane %v1162_v11, %v7341_v1  ;;  %v912_v30 = vrot.slane %v898_v12, %v7341_v1 }
 0x273   : > { %v745_v4 = vpop.permute.xlu1 %744  ;;  %v751_v5 = vpop.permute.xlu0 %750 }
 0x274   : > { %v818_v8 = vpack.i.b16 %v745_v4, %v7302_v39  ;;  %v821_v10 = vshrl.u32 %v745_v4, 16  ;;  %v812_v36 = vshrl.u32 %v751_v5, 16 }
 0x276   : > { %v822_v16 = vpack.i.b16 %v821_v10, %v820_v9  ;;  %v1228_v22 = vcombine.high %v818_v8, %v7337_v56  ;;  %v7377_v35 = vrot.slane %v818_v8, %v7341_v1 }
 0x277   : > { %v755_v23 = vpop.permute.xlu0 %754  ;;  %v7370_v28 = vpop.permute.xlu1 %748 }
 0x278   : > { %v1294_v26 = vcombine.high %v822_v16, %v7337_v56  ;;  %v772_v27 = vpack.i.b16 %v755_v23, %v747_v60  ;;  %v775_v34 = vshrl.u32 %v755_v23, 16  ;;  %v7382_v39 = vrot.slane %v1228_v22, %v7341_v1 }
 0x279   : > { %v7385_v41 = vrot.slane %v822_v16, %v7341_v1  ;;  %v796_v45 = vshrl.u32 %v7370_v28, 16 }
 0x27a   : > { %v847_v37 = vcombine.high %v772_v27, %v7337_v56  ;;  %v854_v38 = vrot.slane %v772_v27, %v7341_v1  ;;  %v776_v42 = vpack.i.b16 %v775_v34, %v774_v33  ;;  %v7389_v47 = vrot.slane %v1294_v26, %v7341_v1 }
 0x27b   : > { %v759_v46 = vpop.permute.xlu0 %758 }
 0x27c   : > { %v861_v48 = vrot.slane %v847_v37, %v7341_v1  ;;  %v862_v49 = vcombine.low %v839_v21, %v854_v38  ;;  %v863_v50 = vcombine.high %v839_v21, %v854_v38  ;;  %v913_v51 = vcombine.high %v776_v42, %v7337_v56 }
 0x27d   : > { %v920_v52 = vrot.slane %v776_v42, %v7341_v1  ;;  %v810_v53 = vpack.i.b16 %v759_v46, %v751_v5  ;;  %v813_v54 = vshrl.u32 %v759_v46, 16 }
 0x27e   : > { %v870_v55 = vrot.slane %v862_v49, %v7351_v13  ;;  %v877_v57 = vrot.slane %v863_v50, %v7351_v13  ;;  %v878_v58 = vcombine.low %v846_v24, %v861_v48  ;;  %v879_v59 = vcombine.high %v846_v24, %v861_v48 }
 0x27f   : > { %v927_v60 = vrot.slane %v913_v51, %v7341_v1  ;;  %v928_v61 = vcombine.low %v905_v25, %v920_v52  ;;  %v929_v62 = vcombine.high %v905_v25, %v920_v52  ;;  %v814_v63 = vpack.i.b16 %v813_v54, %v812_v36 }
 0x280   : > { %v886_v0 = vrot.slane %v878_v58, %v7351_v13  ;;  %v893_v3 = vrot.slane %v879_v59, %v7351_v13  ;;  %v1360_v4 = vcombine.low %v870_v55, %v877_v57  ;;  %v5791_v7 = vcombine.high %v870_v55, %v877_v57 }
 0x281   : > { %v936_v5 = vrot.slane %v928_v61, %v7351_v13  ;;  %v943_v8 = vrot.slane %v929_v62, %v7351_v13  ;;  %v944_v9 = vcombine.low %v912_v30, %v927_v60  ;;  %v945_v10 = vcombine.high %v912_v30, %v927_v60 }
 0x282   : > { %v1367_v11 = vrot.slane %v1360_v4, %v7341_v1  ;;  %v1375_v12 = vrot.slane %v5791_v7, %v7341_v1  ;;  %v1376_v16 = vcombine.low %v886_v0, %v893_v3  ;;  %v5792_v21 = vcombine.high %v886_v0, %v893_v3  ;;  %v7423_v0 = vpop.permute.xlu1 %752 }
 0x283   : > { %v952_v22 = vrot.slane %v944_v9, %v7351_v13  ;;  %v959_v23 = vrot.slane %v945_v10, %v7351_v13  ;;  %v1410_v24 = vcombine.low %v936_v5, %v943_v8  ;;  %v5793_v25 = vcombine.high %v936_v5, %v943_v8 }
 0x284   : > { %v1383_v26 = vrot.slane %v1376_v16, %v7341_v1  ;;  %v1391_v27 = vrot.slane %v5792_v21, %v7341_v1  ;;  %v1392_v33 = vcombine.low %v1367_v11, %v1375_v12  ;;  %v1111_v34 = vcombine.high %v810_v53, %v7337_v56 }
 0x285   : > { %v1417_v30 = vrot.slane %v1410_v24, %v7341_v1  ;;  %v1425_v36 = vrot.slane %v5793_v25, %v7341_v1  ;;  %v1426_v37 = vcombine.low %v952_v22, %v959_v23  ;;  %v5794_v38 = vcombine.high %v952_v22, %v959_v23  ;;  %v1846_v24 = vpop.permute.xlu0 %1845 }
 0x286   : > { %v1399_v42 = vrot.slane %v1392_v33, %v7351_v13  ;;  %v1400_v46 = vcombine.low %v1383_v26, %v1391_v27  ;;  %v1118_v48 = vrot.slane %v810_v53, %v7341_v1  ;;  %v1125_v49 = vrot.slane %v1111_v34, %v7341_v1 }
 0x287   : > { %v1433_v50 = vrot.slane %v1426_v37, %v7341_v1  ;;  %v1441_v51 = vrot.slane %v5794_v38, %v7341_v1  ;;  %v1442_v52 = vcombine.low %v1417_v30, %v1425_v36  ;;  %v1177_v54 = vcombine.high %v814_v63, %v7337_v56  ;;  %v757_v38 = vpop.permute.xlu1 %756 }
 0x288   : > { %v1407_v55 = vrot.slane %v1400_v46, %v7351_v13  ;;  %v1126_v57 = vcombine.low %v7355_v15, %v1118_v48  ;;  %v1127_v58 = vcombine.high %v7355_v15, %v1118_v48  ;;  %v1142_v59 = vcombine.low %v7360_v19, %v1125_v49 }
 0x289   : > { %v1449_v60 = vrot.slane %v1442_v52, %v7351_v13  ;;  %v1450_v53 = vcombine.low %v1433_v50, %v1441_v51  ;;  %v1143_v61 = vcombine.high %v7360_v19, %v1125_v49  ;;  %v1184_v62 = vrot.slane %v814_v63, %v7341_v1 }
 0x28a   : > { %v1408_v3 = vcombine.low %v1399_v42, %v1407_v55  ;;  %v1409_v4 = vcombine.high %v1399_v42, %v1407_v55  ;;  %v1134_v7 = vrot.slane %v1126_v57, %v7351_v13  ;;  %v1141_v5 = vrot.slane %v1127_v58, %v7351_v13 }
 0x28b   : > { %v1457_v8 = vrot.slane %v1450_v53, %v7351_v13  ;;  %v1150_v15 = vrot.slane %v1142_v59, %v7351_v13  ;;  %v1157_v9 = vrot.slane %v1143_v61, %v7351_v13  ;;  %v1191_v10 = vrot.slane %v1177_v54, %v7341_v1  ;;  %v1850_v61 = vpop.permute.xlu0 %1849 }
 0x28c   : > { %v1764_v11 = vshrl.u32 %v1408_v3, 16  ;;  %v1772_v19 = vshrl.u32 %v1409_v4, 16  ;;  %v1192_v63 = vcombine.low %v7363_v20, %v1184_v62  ;;  %v1193_v12 = vcombine.high %v7363_v20, %v1184_v62 }
 0x28d   : > { %v1458_v16 = vcombine.low %v1449_v60, %v1457_v8  ;;  %v1459_v21 = vcombine.high %v1449_v60, %v1457_v8  ;;  %v1208_v22 = vcombine.low %v7373_v29, %v1191_v10  ;;  %v1209_v23 = vcombine.high %v7373_v29, %v1191_v10  ;;  %v761_v10 = vpop.permute.xlu1 %760 }
 0x28e   : > { %v1200_v25 = vrot.slane %v1192_v63, %v7351_v13  ;;  %v1207_v26 = vrot.slane %v1193_v12, %v7351_v13  ;;  %v1560_v27 = vcombine.low %v1134_v7, %v1141_v5  ;;  %v5799_v33 = vcombine.high %v1134_v7, %v1141_v5 }
 0x28f   : > { %v1762_v34 = vpack.i.b16 %v1458_v16, %v1408_v3  ;;  %v1765_v30 = vshrl.u32 %v1458_v16, 16  ;;  %v1770_v36 = vpack.i.b16 %v1459_v21, %v1409_v4  ;;  %v1773_v37 = vshrl.u32 %v1459_v21, 16 }
 0x290   : > { %v1216_v20 = vrot.slane %v1208_v22, %v7351_v13  ;;  %v1223_v42 = vrot.slane %v1209_v23, %v7351_v13  ;;  %v1567_v46 = vrot.slane %v1560_v27, %v7341_v1  ;;  %v1575_v29 = vrot.slane %v5799_v33, %v7341_v1 }
 0x291   : > { %v1766_v48 = vpack.i.b16 %v1765_v30, %v1764_v11  ;;  %v1774_v49 = vpack.i.b16 %v1773_v37, %v1772_v19  ;;  %1825 = vst.msk [vmem:[#allocation2] sm:$0xff] %vm1824_vm0, %v1762_v34  ;;  %1833 = vst.msk [vmem:[#allocation2 + $0x40] sm:$0xff] %vm1824_vm0, %v1770_v36  ;;  %v1576_v50 = vcombine.low %v1150_v15, %v1157_v9  ;;  %v828_v7 = vshrl.u32 %v7423_v0, 16 }
 0x292   : > { %v5800_v51 = vcombine.high %v1150_v15, %v1157_v9  ;;  %v1592_v52 = vcombine.low %v1567_v46, %v1575_v29  ;;  %v1610_v54 = vcombine.low %v1200_v25, %v1207_v26  ;;  %v5801_v55 = vcombine.high %v1200_v25, %v1207_v26  ;;  %v1848_v29 = vpop.permute.xlu1 %1847 }
 0x293   : > { %v1626_v57 = vcombine.low %v1216_v20, %v1223_v42  ;;  %1829 = vst.msk [vmem:[#allocation2 + $0x20] sm:$0xff] %vm1824_vm0, %v1766_v48  ;;  %1837 = vst.msk [vmem:[#allocation2 + $0x60] sm:$0xff] %vm1824_vm0, %v1774_v49  ;;  %v1583_v58 = vrot.slane %v1576_v50, %v7341_v1  ;;  %v5802_v60 = vcombine.high %v1216_v20, %v1223_v42  ;;  %v1874_v15 = vshrl.u32 %v1846_v24, 16 }
 0x294   : > { %v1591_v59 = vrot.slane %v5800_v51, %v7341_v1  ;;  %v1871_v53 = vpack.i.b16 %v1846_v24, %v7296_v32  ;;  %v1617_v62 = vrot.slane %v1610_v54, %v7341_v1  ;;  %v1625_v3 = vrot.slane %v5801_v55, %v7341_v1 }
 0x295   : > { %v1633_v4 = vrot.slane %v1626_v57, %v7341_v1  ;;  %v1641_v8 = vrot.slane %v5802_v60, %v7341_v1  ;;  %v1599_v11 = vrot.slane %v1592_v52, %v7351_v13  ;;  %v794_v63 = vpack.i.b16 %v757_v38, %v7370_v28 }
 0x296   : > { %v1600_v5 = vcombine.low %v1583_v58, %v1591_v59  ;;  %v1933_v9 = vcombine.high %v1871_v53, %v7337_v56  ;;  %v1642_v19 = vcombine.low %v1617_v62, %v1625_v3  ;;  %v797_v12 = vshrl.u32 %v757_v38, 16 }
 0x297   : > { %v1650_v21 = vcombine.low %v1633_v4, %v1641_v8  ;;  %v1875_v22 = vpack.i.b16 %v1874_v15, %v1873_v6  ;;  %v7460_v23 = vrot.slane %v1871_v53, %v7341_v1  ;;  %v979_v27 = vcombine.high %v794_v63, %v7337_v56  ;;  %v7471_v6 = vpop.permute.xlu0 %1853 }
 0x298   : > { %v1607_v16 = vrot.slane %v1600_v5, %v7351_v13  ;;  %v1649_v24 = vrot.slane %v1642_v19, %v7351_v13  ;;  %v7464_v25 = vrot.slane %v1933_v9, %v7341_v1  ;;  %v798_v26 = vpack.i.b16 %v797_v12, %v796_v45  ;;  %v1852_v19 = vpop.permute.xlu1 %1851 }
 0x299   : > { %v1657_v30 = vrot.slane %v1650_v21, %v7351_v13  ;;  %v1999_v32 = vcombine.high %v1875_v22, %v7337_v56  ;;  %v7474_v36 = vrot.slane %v1875_v22, %v7341_v1  ;;  %v7477_v37 = vrot.slane %v794_v63, %v7341_v1 }
 0x29a   : > { %v1608_v33 = vcombine.low %v1599_v11, %v1607_v16  ;;  %v1609_v34 = vcombine.high %v1599_v11, %v1607_v16  ;;  %v7480_v38 = vrot.slane %v979_v27, %v7341_v1  ;;  %v1045_v28 = vcombine.high %v798_v26, %v7337_v56 }
 0x29b   : > { %v1658_v45 = vcombine.low %v1649_v24, %v1657_v30  ;;  %v1659_v20 = vcombine.high %v1649_v24, %v1657_v30  ;;  %v7484_v46 = vrot.slane %v798_v26, %v7341_v1  ;;  %v7487_v49 = vrot.slane %v1999_v32, %v7341_v1  ;;  %v7502_v5 = vpop.permute.xlu0 %1857 }
 0x29c   : > { %v1796_v42 = vshrl.u32 %v1608_v33, 16  ;;  %v1804_v48 = vshrl.u32 %v1609_v34, 16  ;;  %v1903_v50 = vpack.i.b16 %v1850_v61, %v7294_v31  ;;  %v1906_v51 = vshrl.u32 %v1850_v61, 16 }
 0x29d   : > { %v1794_v52 = vpack.i.b16 %v1658_v45, %v1608_v33  ;;  %v1797_v54 = vshrl.u32 %v1658_v45, 16  ;;  %v1802_v55 = vpack.i.b16 %v1659_v20, %v1609_v34  ;;  %v1805_v57 = vshrl.u32 %v1659_v20, 16 }
 0x29e   : > { %v7491_v58 = vrot.slane %v1045_v28, %v7341_v1  ;;  %v1907_v59 = vpack.i.b16 %v1906_v51, %v1905_v2  ;;  %v2197_v60 = vcombine.high %v1903_v50, %v7337_v56  ;;  %v826_v53 = vpack.i.b16 %v761_v10, %v7423_v0 }
 0x29f   : > { %v1798_v62 = vpack.i.b16 %v1797_v54, %v1796_v42  ;;  %v1806_v3 = vpack.i.b16 %v1805_v57, %v1804_v48  ;;  %1827 = vst.msk [vmem:[#allocation2 + $0x10] sm:$0xff] %vm1824_vm0, %v1794_v52  ;;  %1835 = vst.msk [vmem:[#allocation2 + $0x50] sm:$0xff] %vm1824_vm0, %v1802_v55  ;;  %v7500_v61 = vrot.slane %v1903_v50, %v7341_v1  ;;  %v829_v4 = vshrl.u32 %v761_v10, 16 }
 0x2a0   : > { %v7505_v8 = vrot.slane %v2197_v60, %v7341_v1  ;;  %v2263_v31 = vcombine.high %v1907_v59, %v7337_v56  ;;  %v1243_v2 = vcombine.high %v826_v53, %v7337_v56  ;;  %v1881_v0 = vshrl.u32 %v7471_v6, 16 }
 0x2a1   : > { %1831 = vst.msk [vmem:[#allocation2 + $0x30] sm:$0xff] %vm1824_vm0, %v1798_v62  ;;  %1839 = vst.msk [vmem:[#allocation2 + $0x70] sm:$0xff] %vm1824_vm0, %v1806_v3  ;;  %v7513_v15 = vrot.slane %v1907_v59, %v7341_v1  ;;  %v830_v9 = vpack.i.b16 %v829_v4, %v828_v7  ;;  %v1250_v10 = vrot.slane %v826_v53, %v7341_v1  ;;  %v1890_v11 = vshrl.u32 %v1848_v29, 16 }
 0x2a2   : > { %v7517_v63 = vrot.slane %v2263_v31, %v7341_v1  ;;  %v1257_v12 = vrot.slane %v1243_v2, %v7341_v1  ;;  %v1887_v16 = vpack.i.b16 %v1848_v29, %v7308_v44  ;;  %v1913_v21 = vshrl.u32 %v7502_v5, 16 }
 0x2a3   : > { %v1258_v22 = vcombine.low %v7377_v35, %v1250_v10  ;;  %v1259_v24 = vcombine.high %v7377_v35, %v1250_v10  ;;  %v1309_v26 = vcombine.high %v830_v9, %v7337_v56  ;;  %v1316_v7 = vrot.slane %v830_v9, %v7341_v1  ;;  %v1862_v10 = vpop.permute.xlu0 %1861 }
 0x2a4   : > { %v1274_v27 = vcombine.low %v7382_v39, %v1257_v12  ;;  %v1275_v33 = vcombine.high %v7382_v39, %v1257_v12  ;;  %v1891_v34 = vpack.i.b16 %v1890_v11, %v1889_v17  ;;  %v1919_v30 = vpack.i.b16 %v1852_v19, %v7306_v43 }
 0x2a5   : > { %v1266_v32 = vrot.slane %v1258_v22, %v7351_v13  ;;  %v1273_v28 = vrot.slane %v1259_v24, %v7351_v13  ;;  %v1323_v45 = vrot.slane %v1309_v26, %v7341_v1  ;;  %v1324_v35 = vcombine.low %v7385_v41, %v1316_v7 }
 0x2a6   : > { %v1282_v20 = vrot.slane %v1274_v27, %v7351_v13  ;;  %v1289_v42 = vrot.slane %v1275_v33, %v7351_v13  ;;  %v1325_v29 = vcombine.high %v7385_v41, %v1316_v7  ;;  %v2065_v39 = vcombine.high %v1887_v16, %v7337_v56 }
 0x2a7   : > { %v1332_v44 = vrot.slane %v1324_v35, %v7351_v13  ;;  %v1340_v17 = vcombine.low %v7389_v47, %v1323_v45  ;;  %v1341_v48 = vcombine.high %v7389_v47, %v1323_v45  ;;  %v1660_v50 = vcombine.low %v1266_v32, %v1273_v28 }
 0x2a8   : > { %v1339_v51 = vrot.slane %v1325_v29, %v7351_v13  ;;  %v5803_v52 = vcombine.high %v1266_v32, %v1273_v28  ;;  %v1676_v54 = vcombine.low %v1282_v20, %v1289_v42  ;;  %v5804_v55 = vcombine.high %v1282_v20, %v1289_v42 }
 0x2a9   : > { %v1348_v57 = vrot.slane %v1340_v17, %v7351_v13  ;;  %v1355_v59 = vrot.slane %v1341_v48, %v7351_v13  ;;  %v1667_v41 = vrot.slane %v1660_v50, %v7341_v1  ;;  %v7547_v60 = vrot.slane %v1887_v16, %v7341_v1 }
 0x2aa   : > { %v1675_v53 = vrot.slane %v5803_v52, %v7341_v1  ;;  %v1683_v62 = vrot.slane %v1676_v54, %v7341_v1  ;;  %v1691_v47 = vrot.slane %v5804_v55, %v7341_v1  ;;  %v1710_v3 = vcombine.low %v1332_v44, %v1339_v51  ;;  %v7580_v52 = vpop.permute.xlu1 %1855  ;;  %v741_v54 = vpop.permute.xlu0 %740 }
 0x2ab   : > { %v5805_v4 = vcombine.high %v1332_v44, %v1339_v51  ;;  %v1726_v31 = vcombine.low %v1348_v57, %v1355_v59  ;;  %v5806_v2 = vcombine.high %v1348_v57, %v1355_v59  ;;  %v2131_v9 = vcombine.high %v1891_v34, %v7337_v56 }
 0x2ac   : > { %v1692_v11 = vcombine.low %v1667_v41, %v1675_v53  ;;  %v1700_v12 = vcombine.low %v1683_v62, %v1691_v47  ;;  %v1717_v22 = vrot.slane %v1710_v3, %v7341_v1  ;;  %v7555_v16 = vrot.slane %v2065_v39, %v7341_v1 }
 0x2ad   : > { %v1725_v24 = vrot.slane %v5805_v4, %v7341_v1  ;;  %v1733_v26 = vrot.slane %v1726_v31, %v7341_v1  ;;  %v1741_v7 = vrot.slane %v5806_v2, %v7341_v1  ;;  %v7561_v27 = vrot.slane %v1891_v34, %v7341_v1 }
 0x2ae   : > { %v1699_v33 = vrot.slane %v1692_v11, %v7351_v13  ;;  %v1707_v32 = vrot.slane %v1700_v12, %v7351_v13  ;;  %v1922_v28 = vshrl.u32 %v1852_v19, 16  ;;  %v2329_v45 = vcombine.high %v1919_v30, %v7337_v56 }
 0x2af   : > { %v1742_v35 = vcombine.low %v1717_v22, %v1725_v24  ;;  %v1750_v20 = vcombine.low %v1733_v26, %v1741_v7  ;;  %v7567_v42 = vrot.slane %v2131_v9, %v7341_v1  ;;  %v1879_v29 = vpack.i.b16 %v1862_v10, %v7471_v6 }
 0x2b0   : > { %v1708_v39 = vcombine.low %v1699_v33, %v1707_v32  ;;  %v1709_v44 = vcombine.high %v1699_v33, %v1707_v32  ;;  %v7572_v34 = vpack.i.b16 %v1922_v28, %v1921_v18  ;;  %v7575_v17 = vrot.slane %v1919_v30, %v7341_v1 }
 0x2b1   : > { %v1749_v19 = vrot.slane %v1742_v35, %v7351_v13  ;;  %v1757_v48 = vrot.slane %v1750_v20, %v7351_v13  ;;  %v1882_v50 = vshrl.u32 %v1862_v10, 16  ;;  %v1948_v51 = vcombine.high %v1879_v29, %v7337_v56 }
 0x2b2   : > { %v1812_v55 = vshrl.u32 %v1708_v39, 16  ;;  %v1820_v57 = vshrl.u32 %v1709_v44, 16  ;;  %v7583_v59 = vrot.slane %v2329_v45, %v7341_v1  ;;  %v2395_v43 = vcombine.high %v7572_v34, %v7337_v56 }
 0x2b3   : > { %v1758_v18 = vcombine.low %v1749_v19, %v1757_v48  ;;  %v1759_v30 = vcombine.high %v1749_v19, %v1757_v48  ;;  %v1883_v41 = vpack.i.b16 %v1882_v50, %v1881_v0  ;;  %v1955_v53 = vrot.slane %v1879_v29, %v7341_v1 }
 0x2b4   : > { %v7592_v62 = vrot.slane %v7572_v34, %v7341_v1  ;;  %v1962_v47 = vrot.slane %v1948_v51, %v7341_v1  ;;  %v1897_v3 = vshrl.u32 %v7580_v52, 16  ;;  %v786_v4 = vpack.i.b16 %v741_v54, %v7304_v40 }
 0x2b5   : > { %v1810_v31 = vpack.i.b16 %v1758_v18, %v1708_v39  ;;  %v1813_v2 = vshrl.u32 %v1758_v18, 16  ;;  %v1818_v9 = vpack.i.b16 %v1759_v30, %v1709_v44  ;;  %v1821_v10 = vshrl.u32 %v1759_v30, 16 }
 0x2b6   : > { %v1963_v11 = vcombine.low %v7460_v23, %v1955_v53  ;;  %v1964_v6 = vcombine.high %v7460_v23, %v1955_v53  ;;  %v1979_v0 = vcombine.low %v7464_v25, %v1962_v47  ;;  %v1980_v12 = vcombine.high %v7464_v25, %v1962_v47 }
 0x2b7   : > { %v1814_v22 = vpack.i.b16 %v1813_v2, %v1812_v55  ;;  %v1822_v24 = vpack.i.b16 %v1821_v10, %v1820_v57  ;;  %1828 = vst.msk [vmem:[#allocation2 + $0x18] sm:$0xff] %vm1824_vm0, %v1810_v31  ;;  %1836 = vst.msk [vmem:[#allocation2 + $0x58] sm:$0xff] %vm1824_vm0, %v1818_v9  ;;  %v2014_v26 = vcombine.high %v1883_v41, %v7337_v56  ;;  %v789_v20 = vshrl.u32 %v741_v54, 16 }
 0x2b8   : > { %v2021_v7 = vrot.slane %v1883_v41, %v7341_v1  ;;  %v1971_v33 = vrot.slane %v1963_v11, %v7351_v13  ;;  %v1978_v32 = vrot.slane %v1964_v6, %v7351_v13  ;;  %v1987_v23 = vrot.slane %v1979_v0, %v7351_v13 }
 0x2b9   : > { %v1994_v28 = vrot.slane %v1980_v12, %v7351_v13  ;;  %1832 = vst.msk [vmem:[#allocation2 + $0x38] sm:$0xff] %vm1824_vm0, %v1814_v22  ;;  %1840 = vst.msk [vmem:[#allocation2 + $0x78] sm:$0xff] %vm1824_vm0, %v1822_v24  ;;  %v2028_v25 = vrot.slane %v2014_v26, %v7341_v1  ;;  %v790_v9 = vpack.i.b16 %v789_v20, %v788_v14 }
 0x2ba   : > { %v2029_v45 = vcombine.low %v7474_v36, %v2021_v7  ;;  %v2030_v35 = vcombine.high %v7474_v36, %v2021_v7  ;;  %v2461_v29 = vcombine.low %v1971_v33, %v1978_v32  ;;  %v5807_v39 = vcombine.high %v1971_v33, %v1978_v32 }
 0x2bb   : > { %v2477_v44 = vcombine.low %v1987_v23, %v1994_v28  ;;  %v5808_v19 = vcombine.high %v1987_v23, %v1994_v28  ;;  %v2045_v51 = vcombine.low %v7487_v49, %v2028_v25  ;;  %v2046_v55 = vcombine.high %v7487_v49, %v2028_v25 }
 0x2bc   : > { %v2037_v48 = vrot.slane %v2029_v45, %v7351_v13  ;;  %v2044_v50 = vrot.slane %v2030_v35, %v7351_v13  ;;  %v2468_v57 = vrot.slane %v2461_v29, %v7341_v1  ;;  %v2476_v18 = vrot.slane %v5807_v39, %v7341_v1  ;;  %v7641_v29 = vpop.permute.xlu1 %1859 }
 0x2bd   : > { %v2484_v30 = vrot.slane %v2477_v44, %v7341_v1  ;;  %v2492_v36 = vrot.slane %v5808_v19, %v7341_v1  ;;  %v2053_v54 = vrot.slane %v2045_v51, %v7351_v13  ;;  %v2060_v41 = vrot.slane %v2046_v55, %v7351_v13 }
 0x2be   : > { %v2511_v53 = vcombine.low %v2037_v48, %v2044_v50  ;;  %v5809_v47 = vcombine.high %v2037_v48, %v2044_v50  ;;  %v2493_v31 = vcombine.low %v2468_v57, %v2476_v18  ;;  %v964_v49 = vcombine.high %v786_v4, %v7337_v56 }
 0x2bf   : > { %v2501_v2 = vcombine.low %v2484_v30, %v2492_v36  ;;  %v2527_v6 = vcombine.low %v2053_v54, %v2060_v41  ;;  %v5810_v0 = vcombine.high %v2053_v54, %v2060_v41  ;;  %v971_v24 = vrot.slane %v786_v4, %v7341_v1 }
 0x2c0   : > { %v2518_v10 = vrot.slane %v2511_v53, %v7341_v1  ;;  %v2526_v11 = vrot.slane %v5809_v47, %v7341_v1  ;;  %v2500_v12 = vrot.slane %v2493_v31, %v7351_v13  ;;  %v978_v26 = vrot.slane %v964_v49, %v7341_v1 }
 0x2c1   : > { %v2508_v22 = vrot.slane %v2501_v2, %v7351_v13  ;;  %v2534_v7 = vrot.slane %v2527_v6, %v7341_v1  ;;  %v2542_v40 = vrot.slane %v5810_v0, %v7341_v1  ;;  %v1030_v33 = vcombine.high %v790_v9, %v7337_v56 }
 0x2c2   : > { %v2543_v14 = vcombine.low %v2518_v10, %v2526_v11  ;;  %v994_v28 = vcombine.low %v971_v24, %v7477_v37  ;;  %v995_v25 = vcombine.high %v971_v24, %v7477_v37  ;;  %v1010_v4 = vcombine.low %v978_v26, %v7480_v38  ;;  %v1866_v24 = vpop.permute.xlu0 %1865 }
 0x2c3   : > { %v2509_v32 = vcombine.low %v2500_v12, %v2508_v22  ;;  %v2510_v23 = vcombine.high %v2500_v12, %v2508_v22  ;;  %v2551_v35 = vcombine.low %v2534_v7, %v2542_v40  ;;  %v1011_v20 = vcombine.high %v978_v26, %v7480_v38 }
 0x2c4   : > { %v2550_v45 = vrot.slane %v2543_v14, %v7351_v13  ;;  %v1002_v19 = vrot.slane %v994_v28, %v7351_v13  ;;  %v1009_v48 = vrot.slane %v995_v25, %v7351_v13  ;;  %v1018_v51 = vrot.slane %v1010_v4, %v7351_v13  ;;  %v1864_v4 = vpop.permute.xlu1 %1863 }
 0x2c5   : > { %v2865_v39 = vshrl.u32 %v2509_v32, 16  ;;  %v2873_v44 = vshrl.u32 %v2510_v23, 16  ;;  %v2558_v50 = vrot.slane %v2551_v35, %v7351_v13  ;;  %v1025_v37 = vrot.slane %v1011_v20, %v7351_v13 }
 0x2c6   : > { %v1037_v55 = vrot.slane %v790_v9, %v7341_v1  ;;  %v1044_v57 = vrot.slane %v1030_v33, %v7341_v1  ;;  %v1460_v18 = vcombine.low %v1002_v19, %v1009_v48  ;;  %v5795_v38 = vcombine.high %v1002_v19, %v1009_v48 }
 0x2c7   : > { %v1929_v30 = vshrl.u32 %v7641_v29, 16  ;;  %v2559_v36 = vcombine.low %v2550_v45, %v2558_v50  ;;  %v2560_v54 = vcombine.high %v2550_v45, %v2558_v50  ;;  %v5796_v40 = vcombine.high %v1018_v51, %v1025_v37 }
 0x2c8   : > { %v1060_v41 = vcombine.low %v1037_v55, %v7484_v46  ;;  %v1061_v53 = vcombine.high %v1037_v55, %v7484_v46  ;;  %v1076_v47 = vcombine.low %v1044_v57, %v7491_v58  ;;  %v1077_v31 = vcombine.high %v1044_v57, %v7491_v58 }
 0x2c9   : > { %v1467_v2 = vrot.slane %v1460_v18, %v7341_v1  ;;  %v1475_v9 = vrot.slane %v5795_v38, %v7341_v1  ;;  %v2863_v49 = vpack.i.b16 %v2559_v36, %v2509_v32  ;;  %v2866_v10 = vshrl.u32 %v2559_v36, 16 }
 0x2ca   : > { %v2871_v11 = vpack.i.b16 %v2560_v54, %v2510_v23  ;;  %v2874_v6 = vshrl.u32 %v2560_v54, 16  ;;  %v1068_v0 = vrot.slane %v1060_v41, %v7351_v13  ;;  %v1075_v12 = vrot.slane %v1061_v53, %v7351_v13 }
 0x2cb   : > { %v1084_v22 = vrot.slane %v1076_v47, %v7351_v13  ;;  %v1091_v46 = vrot.slane %v1077_v31, %v7351_v13  ;;  %v2867_v26 = vpack.i.b16 %v2866_v10, %v2865_v39  ;;  %2925 = vst.msk [vmem:[#allocation3] sm:$0xff] %vm1824_vm0, %v2863_v49  ;;  %v1476_v58 = vcombine.low %v1018_v51, %v1025_v37 }
 0x2cc   : > { %v2875_v7 = vpack.i.b16 %v2874_v6, %v2873_v44  ;;  %2933 = vst.msk [vmem:[#allocation3 + $0x40] sm:$0xff] %vm1824_vm0, %v2871_v11  ;;  %v1492_v14 = vcombine.low %v1467_v2, %v1475_v9  ;;  %v1510_v33 = vcombine.low %v1068_v0, %v1075_v12  ;;  %v5797_v32 = vcombine.high %v1068_v0, %v1075_v12 }
 0x2cd   : > { %v1526_v23 = vcombine.low %v1084_v22, %v1091_v46  ;;  %2929 = vst.msk [vmem:[#allocation3 + $0x20] sm:$0xff] %vm1824_vm0, %v2867_v26  ;;  %v1483_v28 = vrot.slane %v1476_v58, %v7341_v1  ;;  %v1491_v25 = vrot.slane %v5796_v40, %v7341_v1  ;;  %v5798_v45 = vcombine.high %v1084_v22, %v1091_v46 }
 0x2ce   : > { %2937 = vst.msk [vmem:[#allocation3 + $0x60] sm:$0xff] %vm1824_vm0, %v2875_v7  ;;  %v1911_v35 = vpack.i.b16 %v1866_v24, %v7502_v5  ;;  %v1499_v20 = vrot.slane %v1492_v14, %v7351_v13  ;;  %v1517_v39 = vrot.slane %v1510_v33, %v7341_v1  ;;  %v1525_v44 = vrot.slane %v5797_v32, %v7341_v1 }
 0x2cf   : > { %v1533_v19 = vrot.slane %v1526_v23, %v7341_v1  ;;  %v1500_v48 = vcombine.low %v1483_v28, %v1491_v25  ;;  %v1541_v50 = vrot.slane %v5798_v45, %v7341_v1  ;;  %v1914_v51 = vshrl.u32 %v1866_v24, 16 }
 0x2d0   : > { %v2212_v37 = vcombine.high %v1911_v35, %v7337_v56  ;;  %v1542_v55 = vcombine.low %v1517_v39, %v1525_v44  ;;  %v2219_v57 = vrot.slane %v1911_v35, %v7341_v1  ;;  %v7676_v18 = vpack.i.b16 %v1864_v4, %v7580_v52 }
 0x2d1   : > { %v1898_v38 = vshrl.u32 %v1864_v4, 16  ;;  %v1507_v36 = vrot.slane %v1500_v48, %v7351_v13  ;;  %v1550_v54 = vcombine.low %v1533_v19, %v1541_v50  ;;  %v1915_v41 = vpack.i.b16 %v1914_v51, %v1913_v21 }
 0x2d2   : > { %v2226_v53 = vrot.slane %v2212_v37, %v7341_v1  ;;  %v1549_v47 = vrot.slane %v1542_v55, %v7351_v13  ;;  %v2227_v31 = vcombine.low %v7500_v61, %v2219_v57  ;;  %v2228_v2 = vcombine.high %v7500_v61, %v2219_v57 }
 0x2d3   : > { %v7687_v9 = vpack.i.b16 %v1898_v38, %v1897_v3  ;;  %v1508_v49 = vcombine.low %v1499_v20, %v1507_v36  ;;  %v1509_v10 = vcombine.high %v1499_v20, %v1507_v36  ;;  %v1557_v11 = vrot.slane %v1550_v54, %v7351_v13 }
 0x2d4   : > { %v2243_v6 = vcombine.low %v7505_v8, %v2226_v53  ;;  %v2235_v5 = vrot.slane %v2227_v31, %v7351_v13  ;;  %v2242_v21 = vrot.slane %v2228_v2, %v7351_v13  ;;  %v2244_v0 = vcombine.high %v7505_v8, %v2226_v53 }
 0x2d5   : > { %v2278_v12 = vcombine.high %v1915_v41, %v7337_v56  ;;  %v1558_v22 = vcombine.low %v1549_v47, %v1557_v11  ;;  %v1559_v61 = vcombine.high %v1549_v47, %v1557_v11  ;;  %v1780_v46 = vshrl.u32 %v1508_v49, 16 }
 0x2d6   : > { %v1788_v52 = vshrl.u32 %v1509_v10, 16  ;;  %v2251_v3 = vrot.slane %v2243_v6, %v7351_v13  ;;  %v2258_v24 = vrot.slane %v2244_v0, %v7351_v13  ;;  %v2285_v26 = vrot.slane %v1915_v41, %v7341_v1 }
 0x2d7   : > { %v2292_v7 = vrot.slane %v2278_v12, %v7341_v1  ;;  %v1778_v58 = vpack.i.b16 %v1558_v22, %v1508_v49  ;;  %v1781_v40 = vshrl.u32 %v1558_v22, 16  ;;  %v1786_v14 = vpack.i.b16 %v1559_v61, %v1509_v10 }
 0x2d8   : > { %v1789_v33 = vshrl.u32 %v1559_v61, 16  ;;  %v2293_v8 = vcombine.low %v7513_v15, %v2285_v26  ;;  %v2294_v32 = vcombine.high %v7513_v15, %v2285_v26  ;;  %v2661_v35 = vcombine.low %v2235_v5, %v2242_v21 }
 0x2d9   : > { %v2309_v23 = vcombine.low %v7517_v63, %v2292_v7  ;;  %v2310_v28 = vcombine.high %v7517_v63, %v2292_v7  ;;  %v1782_v25 = vpack.i.b16 %v1781_v40, %v1780_v46  ;;  %1826 = vst.msk [vmem:[#allocation2 + $0x8] sm:$0xff] %vm1824_vm0, %v1778_v58  ;;  %1834 = vst.msk [vmem:[#allocation2 + $0x48] sm:$0xff] %vm1824_vm0, %v1786_v14 }
 0x2da   : > { %v1790_v45 = vpack.i.b16 %v1789_v33, %v1788_v52  ;;  %v5815_v4 = vcombine.high %v2235_v5, %v2242_v21  ;;  %v2301_v20 = vrot.slane %v2293_v8, %v7351_v13  ;;  %v2308_v39 = vrot.slane %v2294_v32, %v7351_v13 }
 0x2db   : > { %v2317_v44 = vrot.slane %v2309_v23, %v7351_v13  ;;  %v2324_v15 = vrot.slane %v2310_v28, %v7351_v13  ;;  %1830 = vst.msk [vmem:[#allocation2 + $0x28] sm:$0xff] %vm1824_vm0, %v1782_v25  ;;  %v2668_v63 = vrot.slane %v2661_v35, %v7341_v1  ;;  %v2677_v48 = vcombine.low %v2251_v3, %v2258_v24 }
 0x2dc   : > { %1838 = vst.msk [vmem:[#allocation2 + $0x68] sm:$0xff] %vm1824_vm0, %v1790_v45  ;;  %v2676_v19 = vrot.slane %v5815_v4, %v7341_v1  ;;  %v5816_v50 = vcombine.high %v2251_v3, %v2258_v24  ;;  %v2711_v51 = vcombine.low %v2301_v20, %v2308_v39  ;;  %v5817_v37 = vcombine.high %v2301_v20, %v2308_v39 }
 0x2dd   : > { %v2727_v55 = vcombine.low %v2317_v44, %v2324_v15  ;;  %v5818_v57 = vcombine.high %v2317_v44, %v2324_v15  ;;  %v2684_v38 = vrot.slane %v2677_v48, %v7341_v1  ;;  %v2080_v41 = vcombine.high %v7676_v18, %v7337_v56 }
 0x2de   : > { %v2692_v36 = vrot.slane %v5816_v50, %v7341_v1  ;;  %v2693_v54 = vcombine.low %v2668_v63, %v2676_v19  ;;  %v2718_v53 = vrot.slane %v2711_v51, %v7341_v1  ;;  %v2726_v47 = vrot.slane %v5817_v37, %v7341_v1 }
 0x2df   : > { %v2734_v31 = vrot.slane %v2727_v55, %v7341_v1  ;;  %v2742_v2 = vrot.slane %v5818_v57, %v7341_v1  ;;  %v2087_v11 = vrot.slane %v7676_v18, %v7341_v1  ;;  %v2094_v6 = vrot.slane %v2080_v41, %v7341_v1  ;;  %v1868_v57 = vpop.permute.xlu1 %1867 }
 0x2e0   : > { %v2700_v49 = vrot.slane %v2693_v54, %v7351_v13  ;;  %v2701_v10 = vcombine.low %v2684_v38, %v2692_v36  ;;  %v2743_v5 = vcombine.low %v2718_v53, %v2726_v47  ;;  %v2146_v0 = vcombine.high %v7687_v9, %v7337_v56 }
 0x2e1   : > { %v2751_v21 = vcombine.low %v2734_v31, %v2742_v2  ;;  %v2153_v12 = vrot.slane %v7687_v9, %v7341_v1  ;;  %v2095_v61 = vcombine.low %v7547_v60, %v2087_v11  ;;  %v2096_v46 = vcombine.high %v7547_v60, %v2087_v11 }
 0x2e2   : > { %v2708_v22 = vrot.slane %v2701_v10, %v7351_v13  ;;  %v2111_v52 = vcombine.low %v7555_v16, %v2094_v6  ;;  %v2750_v18 = vrot.slane %v2743_v5, %v7351_v13  ;;  %v2112_v24 = vcombine.high %v7555_v16, %v2094_v6 }
 0x2e3   : > { %v2758_v3 = vrot.slane %v2751_v21, %v7351_v13  ;;  %v2160_v26 = vrot.slane %v2146_v0, %v7341_v1  ;;  %v2103_v9 = vrot.slane %v2095_v61, %v7351_v13  ;;  %v2110_v40 = vrot.slane %v2096_v46, %v7351_v13 }
 0x2e4   : > { %v2709_v7 = vcombine.low %v2700_v49, %v2708_v22  ;;  %v2710_v58 = vcombine.high %v2700_v49, %v2708_v22  ;;  %v2119_v60 = vrot.slane %v2111_v52, %v7351_v13  ;;  %v2126_v8 = vrot.slane %v2112_v24, %v7351_v13 }
 0x2e5   : > { %v2759_v14 = vcombine.low %v2750_v18, %v2758_v3  ;;  %v2760_v33 = vcombine.high %v2750_v18, %v2758_v3  ;;  %v2161_v28 = vcombine.low %v7561_v27, %v2153_v12  ;;  %v2162_v16 = vcombine.high %v7561_v27, %v2153_v12 }
 0x2e6   : > { %v2897_v32 = vshrl.u32 %v2709_v7, 16  ;;  %v2905_v23 = vshrl.u32 %v2710_v58, 16  ;;  %v2177_v44 = vcombine.low %v7567_v42, %v2160_v26  ;;  %v2178_v15 = vcombine.high %v7567_v42, %v2160_v26 }
 0x2e7   : > { %v2895_v25 = vpack.i.b16 %v2759_v14, %v2709_v7  ;;  %v2898_v45 = vshrl.u32 %v2759_v14, 16  ;;  %v2903_v35 = vpack.i.b16 %v2760_v33, %v2710_v58  ;;  %v2906_v4 = vshrl.u32 %v2760_v33, 16 }
 0x2e8   : > { %v2169_v20 = vrot.slane %v2161_v28, %v7351_v13  ;;  %v2176_v39 = vrot.slane %v2162_v16, %v7351_v13  ;;  %v2561_v48 = vcombine.low %v2103_v9, %v2110_v40  ;;  %v5811_v27 = vcombine.high %v2103_v9, %v2110_v40 }
 0x2e9   : > { %v2899_v63 = vpack.i.b16 %v2898_v45, %v2897_v32  ;;  %v2907_v19 = vpack.i.b16 %v2906_v4, %v2905_v23  ;;  %2927 = vst.msk [vmem:[#allocation3 + $0x10] sm:$0xff] %vm1824_vm0, %v2895_v25  ;;  %2935 = vst.msk [vmem:[#allocation3 + $0x50] sm:$0xff] %vm1824_vm0, %v2903_v35  ;;  %v2185_v50 = vrot.slane %v2177_v44, %v7351_v13  ;;  %v1930_v0 = vshrl.u32 %v1868_v57, 16 }
 0x2ea   : > { %v2192_v51 = vrot.slane %v2178_v15, %v7351_v13  ;;  %v2577_v37 = vcombine.low %v2119_v60, %v2126_v8  ;;  %v5812_v55 = vcombine.high %v2119_v60, %v2126_v8  ;;  %v2568_v42 = vrot.slane %v2561_v48, %v7341_v1 }
 0x2eb   : > { %2931 = vst.msk [vmem:[#allocation3 + $0x30] sm:$0xff] %vm1824_vm0, %v2899_v63  ;;  %2939 = vst.msk [vmem:[#allocation3 + $0x70] sm:$0xff] %vm1824_vm0, %v2907_v19  ;;  %v2576_v38 = vrot.slane %v5811_v27, %v7341_v1  ;;  %v2611_v36 = vcombine.low %v2169_v20, %v2176_v39  ;;  %v5813_v54 = vcombine.high %v2169_v20, %v2176_v39 }
 0x2ec   : > { %v2584_v41 = vrot.slane %v2577_v37, %v7341_v1  ;;  %v2592_v53 = vrot.slane %v5812_v55, %v7341_v1  ;;  %v2627_v47 = vcombine.low %v2185_v50, %v2192_v51  ;;  %v5814_v31 = vcombine.high %v2185_v50, %v2192_v51 }
 0x2ed   : > { %v2593_v2 = vcombine.low %v2568_v42, %v2576_v38  ;;  %v2618_v49 = vrot.slane %v2611_v36, %v7341_v1  ;;  %v2626_v10 = vrot.slane %v5813_v54, %v7341_v1  ;;  %v1927_v11 = vpack.i.b16 %v1868_v57, %v7641_v29 }
 0x2ee   : > { %v2601_v6 = vcombine.low %v2584_v41, %v2592_v53  ;;  %v2634_v5 = vrot.slane %v2627_v47, %v7341_v1  ;;  %v2642_v21 = vrot.slane %v5814_v31, %v7341_v1  ;;  %v2409_v12 = vrot.slane %v2395_v43, %v7341_v1 }
 0x2ef   : > { %v2643_v22 = vcombine.low %v2618_v49, %v2626_v10  ;;  %v2344_v61 = vcombine.high %v1927_v11, %v7337_v56  ;;  %v2351_v46 = vrot.slane %v1927_v11, %v7341_v1  ;;  %v2600_v52 = vrot.slane %v2593_v2, %v7351_v13 }
 0x2f0   : > { %v2608_v18 = vrot.slane %v2601_v6, %v7351_v13  ;;  %v2651_v3 = vcombine.low %v2634_v5, %v2642_v21  ;;  %v1931_v24 = vpack.i.b16 %v1930_v0, %v1929_v30 }
 0x2f1   : > { %v2650_v26 = vrot.slane %v2643_v22, %v7351_v13  ;;  %v2358_v7 = vrot.slane %v2344_v61, %v7341_v1  ;;  %v2359_v34 = vcombine.low %v7575_v17, %v2351_v46  ;;  %v2360_v43 = vcombine.high %v7575_v17, %v2351_v46 }
 0x2f2   : > { %v2609_v58 = vcombine.low %v2600_v52, %v2608_v18  ;;  %v2610_v9 = vcombine.high %v2600_v52, %v2608_v18  ;;  %v2658_v40 = vrot.slane %v2651_v3, %v7351_v13  ;;  %v2410_v14 = vcombine.high %v1931_v24, %v7337_v56 }
 0x2f3   : > { %v2367_v33 = vrot.slane %v2359_v34, %v7351_v13  ;;  %v2374_v60 = vrot.slane %v2360_v43, %v7351_v13  ;;  %v2375_v29 = vcombine.low %v7583_v59, %v2358_v7  ;;  %v2376_v30 = vcombine.high %v7583_v59, %v2358_v7 }
 0x2f4   : > { %v2659_v8 = vcombine.low %v2650_v26, %v2658_v40  ;;  %v2660_v32 = vcombine.high %v2650_v26, %v2658_v40  ;;  %v2881_v23 = vshrl.u32 %v2609_v58, 16  ;;  %v2889_v28 = vshrl.u32 %v2610_v9, 16 }
 0x2f5   : > { %v2383_v17 = vrot.slane %v2375_v29, %v7351_v13  ;;  %v2390_v16 = vrot.slane %v2376_v30, %v7351_v13  ;;  %v2417_v25 = vrot.slane %v1931_v24, %v7341_v1  ;;  %v2424_v56 = vrot.slane %v2410_v14, %v7341_v1 }
 0x2f6   : > { %v2879_v45 = vpack.i.b16 %v2659_v8, %v2609_v58  ;;  %v2882_v35 = vshrl.u32 %v2659_v8, 16  ;;  %v2887_v4 = vpack.i.b16 %v2660_v32, %v2610_v9  ;;  %v2890_v20 = vshrl.u32 %v2660_v32, 16 }
 0x2f7   : > { %v2425_v39 = vcombine.low %v7592_v62, %v2417_v25  ;;  %v2426_v59 = vcombine.high %v7592_v62, %v2417_v25  ;;  %v2441_v44 = vcombine.low %v2409_v12, %v2424_v56  ;;  %v2442_v15 = vcombine.high %v2409_v12, %v2424_v56 }
 0x2f8   : > { %v2883_v63 = vpack.i.b16 %v2882_v35, %v2881_v23  ;;  %v2891_v19 = vpack.i.b16 %v2890_v20, %v2889_v28  ;;  %2926 = vst.msk [vmem:[#allocation3 + $0x8] sm:$0xff] %vm1824_vm0, %v2879_v45  ;;  %2934 = vst.msk [vmem:[#allocation3 + $0x48] sm:$0xff] %vm1824_vm0, %v2887_v4  ;;  %v2761_v48 = vcombine.low %v2367_v33, %v2374_v60 }
 0x2f9   : > { %v5819_v27 = vcombine.high %v2367_v33, %v2374_v60  ;;  %v2433_v50 = vrot.slane %v2425_v39, %v7351_v13  ;;  %v2440_v51 = vrot.slane %v2426_v59, %v7351_v13  ;;  %v2449_v37 = vrot.slane %v2441_v44, %v7351_v13 }
 0x2fa   : > { %v2456_v55 = vrot.slane %v2442_v15, %v7351_v13  ;;  %2930 = vst.msk [vmem:[#allocation3 + $0x28] sm:$0xff] %vm1824_vm0, %v2883_v63  ;;  %2938 = vst.msk [vmem:[#allocation3 + $0x68] sm:$0xff] %vm1824_vm0, %v2891_v19  ;;  %v2768_v62 = vrot.slane %v2761_v48, %v7341_v1  ;;  %v2777_v42 = vcombine.low %v2383_v17, %v2390_v16 }
 0x2fb   : > { %v2776_v57 = vrot.slane %v5819_v27, %v7341_v1  ;;  %v5820_v38 = vcombine.high %v2383_v17, %v2390_v16  ;;  %v2811_v36 = vcombine.low %v2433_v50, %v2440_v51  ;;  %v5821_v54 = vcombine.high %v2433_v50, %v2440_v51 }
 0x2fc   : > { %v2827_v41 = vcombine.low %v2449_v37, %v2456_v55  ;;  %v5822_v53 = vcombine.high %v2449_v37, %v2456_v55  ;;  %v2784_v47 = vrot.slane %v2777_v42, %v7341_v1 }
 0x2fd   : > { %v2792_v31 = vrot.slane %v5820_v38, %v7341_v1  ;;  %v2793_v2 = vcombine.low %v2768_v62, %v2776_v57  ;;  %v2818_v49 = vrot.slane %v2811_v36, %v7341_v1  ;;  %v2826_v10 = vrot.slane %v5821_v54, %v7341_v1 }
 0x2fe   : > { %v2834_v11 = vrot.slane %v2827_v41, %v7341_v1  ;;  %v2842_v6 = vrot.slane %v5822_v53, %v7341_v1 }
 0x2ff   : > { %v2801_v5 = vcombine.low %v2784_v47, %v2792_v31  ;;  %v2843_v21 = vcombine.low %v2818_v49, %v2826_v10  ;;  %v2800_v12 = vrot.slane %v2793_v2, %v7351_v13 }
 0x300   : > { %v2851_v0 = vcombine.low %v2834_v11, %v2842_v6 }
 0x301   : > { %v2808_v22 = vrot.slane %v2801_v5, %v7351_v13  ;;  %v2850_v61 = vrot.slane %v2843_v21, %v7351_v13 }
 0x302   : > { %v2858_v46 = vrot.slane %v2851_v0, %v7351_v13 }
 0x303   : > { %v2809_v52 = vcombine.low %v2800_v12, %v2808_v22  ;;  %v2810_v18 = vcombine.high %v2800_v12, %v2808_v22 }
 0x304   : > { %v2859_v3 = vcombine.low %v2850_v61, %v2858_v46  ;;  %v2860_v24 = vcombine.high %v2850_v61, %v2858_v46 }
 0x305   : > { %v2913_v26 = vshrl.u32 %v2809_v52, 16  ;;  %v2921_v7 = vshrl.u32 %v2810_v18, 16 }
 0x306   : > { %v2911_v34 = vpack.i.b16 %v2859_v3, %v2809_v52  ;;  %v2914_v43 = vshrl.u32 %v2859_v3, 16  ;;  %v2919_v1 = vpack.i.b16 %v2860_v24, %v2810_v18  ;;  %v2922_v58 = vshrl.u32 %v2860_v24, 16 }
 0x308   : > { %v2915_v9 = vpack.i.b16 %v2914_v43, %v2913_v26  ;;  %v2923_v40 = vpack.i.b16 %v2922_v58, %v2921_v7  ;;  %2928 = vst.msk [vmem:[#allocation3 + $0x18] sm:$0xff] %vm1824_vm0, %v2911_v34  ;;  %2936 = vst.msk [vmem:[#allocation3 + $0x58] sm:$0xff] %vm1824_vm0, %v2919_v1 }
 0x30a   : > { %2932 = vst.msk [vmem:[#allocation3 + $0x38] sm:$0xff] %vm1824_vm0, %v2915_v9  ;;  %2940 = vst.msk [vmem:[#allocation3 + $0x78] sm:$0xff] %vm1824_vm0, %v2923_v40 }
 0x30b PF: > { %v6412_v13 = vld [vmem:[#allocation7] sm:$0xff]   ;;  %s8521_s12 = sld [smem:[#allocation21_spill]]  ;;  %v6413_v14 = vld [vmem:[#allocation7 + $0x8] sm:$0xff]   ;;  %v6414_v33 = vld [vmem:[#allocation7 + $0x10] sm:$0xff]   ;;  %vm3683_vm1 = vcmask 261120   ;;  %s6876_s9 = smov 96   ;;  %v3120_v41 = vlaneseq }
 0x30c   : > { %6015 = vmatprep.subr.bf16.mxu0 %v6412_v13  ;;  %v6415_v60 = vld [vmem:[#allocation7 + $0x18] sm:$0xff]   ;;  %v6416_v30 = vld [vmem:[#allocation7 + $0x20] sm:$0xff]   ;;  %v6417_v8 = vld [vmem:[#allocation7 + $0x28] sm:$0xff]   ;;  %s6877_s11 = smov 64   ;;  %s6878_s1 = smov 32   ;;  %vm3952_vm2 = vcmask 523264  }
 0x30d   : > { %6016 = vmatpush3.bf16.msra.mxu0 %v6412_v13  ;;  %v6418_v32 = vld [vmem:[#allocation7 + $0x30] sm:$0xff]   ;;  %v6419_v23 = vld [vmem:[#allocation7 + $0x38] sm:$0xff]   ;;  %v3667_v17 = vld [vmem:[#allocation2] sm:$0xff]  ;;  %v6879_v36 = vmov 1983009808   ;;  %v7872_v10 = vshrl.u32 %v3120_v41, 7 }
 0x30e   : > { %6017 = vmatprep.subr.bf16.mxu0 %v6413_v14  ;;  %v3671_v16 = vld [vmem:[#allocation2 + $0x20] sm:$0xff]  ;;  %6167 = vmatprep.subr.msk.bf16.mxu1 %vm3683_vm1, %v3667_v17  ;;  %v3691_v25 = vsel %vm3683_vm1, %v3667_v17, 0  ;;  %v3668_v39 = vld [vmem:[#allocation2 + $0x8] sm:$0xff]  ;;  %v3669_v63 = vld [vmem:[#allocation2 + $0x10] sm:$0xff]  ;;  %v3118_v54 = vunpack.c.l.s4 %v6879_v36  ;;  %v6880_v31 = vmov 1934713408  }
 0x30f   : > { %v3758_v56 = vsel %vm3683_vm1, %v3671_v16, 0  ;;  %6036 = vmatpush3.bf16.xpose.msra.mxu1 %v3691_v25  ;;  %v3672_v59 = vld [vmem:[#allocation2 + $0x28] sm:$0xff]  ;;  %v3694_v44 = vsel %vm3683_vm1, %v3668_v39, 0  ;;  %v3673_v19 = vld [vmem:[#allocation2 + $0x30] sm:$0xff]  ;;  %v3697_v48 = vsel %vm3683_vm1, %v3669_v63, 0  ;;  %v3670_v50 = vld [vmem:[#allocation2 + $0x18] sm:$0xff]  ;;  %v3150_v2 = vunpack.c.l.s4 %v6880_v31 }
 0x310   : > { %6168 = vmatprep.subr.msk.bf16.mxu1 %vm3683_vm1, %v3668_v39  ;;  %v3761_v15 = vsel %vm3683_vm1, %v3672_v59, 0  ;;  %v3764_v27 = vsel %vm3683_vm1, %v3673_v19, 0  ;;  %v3674_v51 = vld [vmem:[#allocation2 + $0x38] sm:$0xff]  ;;  %v3700_v37 = vsel %vm3683_vm1, %v3670_v50, 0  ;;  %v3675_v62 = vld [vmem:[#allocation2 + $0x40] sm:$0xff]  ;;  %v3119_v49 = vunpack.c.0.s8 %v3118_v54  ;;  %s8522_s0 = sld [smem:[#allocation30_spill]] }
 0x311   : > { %s5823_s3 = sshll.u32 %s8521_s12, 5  ;;  %6018 = vmatpush3.bf16.msra.mxu0 %v6413_v14  ;;  %v3767_v55 = vsel %vm3683_vm1, %v3674_v51, 0  ;;  %v3679_v57 = vld [vmem:[#allocation2 + $0x60] sm:$0xff]  ;;  %v3151_v5 = vunpack.c.0.s8 %v3150_v2  ;;  %v7887_v34 = vsel %vm3683_vm1, %v3675_v62, 0  ;;  %vm4973_vm3 = vcmask 785408   ;;  %s8523_s27 = sld [smem:[#allocation31_spill]] }
 0x312   : > { %s2942_s7 = sshra.s32 %s5823_s3, 3  ;;  %6019 = vmatprep.subr.bf16.mxu0 %v6414_v33  ;;  %v7875_v21 = vsub.s32 %v3119_v49, %v7872_v10  ;;  %v7890_v43 = vsel %vm3683_vm1, %v3679_v57, 0  ;;  %s8528_s15 = sld [smem:[#allocation37_spill]] }
 0x313   : > { %s5824_s17 = sshll.u32 %s2942_s7, 2  ;;  %v7882_v52 = vsub.s32 %v3151_v5, %v7872_v10  ;;  %s8524_s7 = sld [smem:[#allocation33_spill]] }
 0x314   : > { %s7814_s8 = scalar_lea.vmem %s7260_s24, %s5824_s17 [#allocation4]  ;;  %s8527_s24 = sld [smem:[#allocation36_spill]] }
 0x315   : > { %v2946_v29 = vld [vmem:[%s7814_s8] sm:$0xff]   ;;  %6020 = vmatpush3.bf16.msra.mxu0 %v6414_v33  ;;  %v2948_v28 = vld [vmem:[%s7814_s8 + $0x8] sm:$0xff]   ;;  %p8530_p6 = scmp.ne.s32.totalorder %s8513_s10, 0 }
 0x316   : > { %6031 = vmatprep.mubr.bf16.mxu0 %v2946_v29  ;;  %6021 = vmatprep.subr.bf16.mxu0 %v6415_v60 }
 0x317   : > { %6038 = vmatpush3.bf16.xpose.msra.mxu1 %v3694_v44 }
 0x318   : > { %6169 = vmatprep.subr.msk.bf16.mxu1 %vm3683_vm1, %v3669_v63 }
 0x319   : > { %6022 = vmatpush3.bf16.msra.mxu0 %v6415_v60 }
 0x31a   : > { %6023 = vmatprep.subr.bf16.mxu0 %v6416_v30 }
 0x31d   : > { %6024 = vmatpush3.bf16.msra.mxu0 %v6416_v30 }
 0x31e   : > { %6025 = vmatprep.subr.bf16.mxu0 %v6417_v8 }
 0x31f   : > { %6040 = vmatpush3.bf16.xpose.msra.mxu1 %v3697_v48 }
 0x320   : > { %6170 = vmatprep.subr.msk.bf16.mxu1 %vm3683_vm1, %v3670_v50 }
 0x321   : > { %6026 = vmatpush3.bf16.msra.mxu0 %v6417_v8 }
 0x322   : > { %6027 = vmatprep.subr.bf16.mxu0 %v6418_v32 }
 0x325   : > { %6028 = vmatpush3.bf16.msra.mxu0 %v6418_v32 }
 0x326   : > { %6029 = vmatprep.subr.bf16.mxu0 %v6419_v23 }
 0x327   : > { %6042 = vmatpush3.bf16.xpose.msra.mxu1 %v3700_v37 }
 0x328   : > { %6175 = vmatprep.subr.msk.bf16.mxu1 %vm3683_vm1, %v3675_v62 }
 0x329   : > { %6030 = vmatpush3.bf16.msra.mxu0 %v6419_v23 }
 0x32a   : > { %6171 = vmatprep.subr.msk.bf16.mxu0 %vm3683_vm1, %v3671_v16 }
 0x32c   : > { %6032 = vmatmul.mubr.bf16.vlgmr.msra.gmra.mrb[0].mxu0 %v2948_v28 }
 0x332   : > { %6048 = vmatpush3.bf16.xpose.msra.mxu0 %v3758_v56 }
 0x333   : > { %6172 = vmatprep.subr.msk.bf16.mxu0 %vm3683_vm1, %v3672_v59 }
 0x33a   : > { %6050 = vmatpush3.bf16.xpose.msra.mxu0 %v3761_v15 }
 0x33b   : > { %6173 = vmatprep.subr.msk.bf16.mxu0 %vm3683_vm1, %v3673_v19 }
 0x342   : > { %6052 = vmatpush3.bf16.xpose.msra.mxu0 %v3764_v27 }
 0x343   : > { %6174 = vmatprep.subr.msk.bf16.mxu0 %vm3683_vm1, %v3674_v51 }
 0x34a   : > { %6054 = vmatpush3.bf16.xpose.msra.mxu0 %v3767_v55 }
 0x34b   : > { %6179 = vmatprep.subr.msk.bf16.mxu0 %vm3683_vm1, %v3679_v57 }
 0x3ff   : > { %v7822_v45 = vpop.f32.mrb[0].mxu0 }
 0x400   : > { %3083 = vrot.lane.b32.xlu0 %v7822_v45, %s6876_s9  ;;  %v7826_v35 = vpop.f32.mrb[1].mxu0 }
 0x401   : > { %3091 = vrot.lane.b32.xlu1 %v7826_v35, %s6877_s11  ;;  %v7830_v4 = vpop.f32.mrb[2].mxu0 }
 0x402   : > { %v7832_v20 = vpop.f32.mrb[3].mxu0 }
 0x404   : > { %3095 = vrot.lane.b32.xlu0 %v7822_v45, %s6877_s11 }
 0x405   : > { %3085 = vrot.lane.b32.xlu1 %v7830_v4, %s6876_s9 }
 0x408   : > { %3079 = vrot.lane.b32.xlu0 %v7826_v35, %s6876_s9 }
 0x409   : > { %3097 = vrot.lane.b32.xlu1 %v7830_v4, %s6877_s11 }
 0x40c   : > { %3103 = vrot.lane.b32.xlu0 %v7826_v35, %s6878_s1 }
 0x40d   : > { %3093 = vrot.lane.b32.xlu1 %v7832_v20, %s6877_s11 }
 0x410   : > { %3081 = vrot.lane.b32.xlu0 %v7832_v20, %s6876_s9 }
 0x411   : > { %3105 = vrot.lane.b32.xlu1 %v7832_v20, %s6878_s1 }
 0x414   : > { %3107 = vrot.lane.b32.xlu0 %v7822_v45, %s6878_s1 }
 0x415   : > { %3109 = vrot.lane.b32.xlu1 %v7830_v4, %s6878_s1 }
 0x472   : > { %v7868_v42 = vpop.permute.xlu0 %3083 }
 0x473   : > { %v3092_v38 = vpop.permute.xlu1 %3091 }
 0x474   : > { %v3115_v0 = vcombine.low %v7826_v35, %v3092_v38  ;;  %v3116_v12 = vcombine.high %v7826_v35, %v3092_v38 }
 0x476   : > { %v3096_v53 = vpop.permute.xlu0 %3095  ;;  %v3123_v1 = vrot.slane %v3115_v0, %v7875_v21  ;;  %v3130_v58 = vrot.slane %v3116_v12, %v7875_v21 }
 0x477   : > { %v7870_v47 = vpop.permute.xlu1 %3085  ;;  %v3251_v22 = vcombine.low %v7822_v45, %v3096_v53  ;;  %v3252_v61 = vcombine.high %v7822_v45, %v3096_v53 }
 0x479   : > { %v3259_v13 = vrot.slane %v3251_v22, %v7875_v21  ;;  %v3266_v14 = vrot.slane %v3252_v61, %v7875_v21 }
 0x47a   : > { %v3080_v11 = vpop.permute.xlu0 %3079 }
 0x47b   : > { %v3098_v6 = vpop.permute.xlu1 %3097 }
 0x47c   : > { %v3319_v26 = vcombine.low %v7830_v4, %v3098_v6  ;;  %v3320_v7 = vcombine.high %v7830_v4, %v3098_v6 }
 0x47e   : > { %v3104_v46 = vpop.permute.xlu0 %3103  ;;  %v3327_v17 = vrot.slane %v3319_v26, %v7875_v21  ;;  %v3334_v16 = vrot.slane %v3320_v7, %v7875_v21 }
 0x47f   : > { %v3131_v18 = vcombine.low %v3080_v11, %v3104_v46  ;;  %v3132_v3 = vcombine.high %v3080_v11, %v3104_v46  ;;  %v3094_v24 = vpop.permute.xlu1 %3093 }
 0x480   : > { %v3183_v33 = vcombine.low %v7832_v20, %v3094_v24  ;;  %v3184_v60 = vcombine.high %v7832_v20, %v3094_v24 }
 0x481   : > { %v3139_v9 = vrot.slane %v3131_v18, %v7875_v21  ;;  %v3146_v40 = vrot.slane %v3132_v3, %v7875_v21 }
 0x482   : > { %v3082_v29 = vpop.permute.xlu0 %3081  ;;  %v3191_v39 = vrot.slane %v3183_v33, %v7875_v21  ;;  %v3198_v59 = vrot.slane %v3184_v60, %v7875_v21 }
 0x483   : > { %v3147_v30 = vcombine.low %v3123_v1, %v3139_v9  ;;  %v3148_v8 = vcombine.high %v3123_v1, %v3139_v9  ;;  %v3163_v32 = vcombine.low %v3130_v58, %v3146_v40  ;;  %v3164_v23 = vcombine.high %v3130_v58, %v3146_v40  ;;  %v3106_v28 = vpop.permute.xlu1 %3105 }
 0x484   : > { %v3199_v25 = vcombine.low %v3082_v29, %v3106_v28  ;;  %v3200_v56 = vcombine.high %v3082_v29, %v3106_v28 }
 0x485   : > { %v7903_v45 = vrot.slane %v3147_v30, %v7882_v52  ;;  %v7906_v35 = vrot.slane %v3148_v8, %v7882_v52  ;;  %v7909_v4 = vrot.slane %v3163_v32, %v7882_v52  ;;  %v7912_v20 = vrot.slane %v3164_v23, %v7882_v52 }
 0x486   : > { %v3207_v44 = vrot.slane %v3199_v25, %v7875_v21  ;;  %v3214_v15 = vrot.slane %v3200_v56, %v7875_v21  ;;  %v3108_v63 = vpop.permute.xlu0 %3107 }
 0x487   : > { %v3387_v19 = vcombine.low %v7903_v45, %v7906_v35  ;;  %v5835_v48 = vcombine.high %v7903_v45, %v7906_v35  ;;  %v3403_v27 = vcombine.low %v7909_v4, %v7912_v20  ;;  %v5836_v50 = vcombine.high %v7909_v4, %v7912_v20  ;;  %v3110_v51 = vpop.permute.xlu1 %3109 }
 0x488   : > { %v3215_v37 = vcombine.low %v3191_v39, %v3207_v44  ;;  %v3216_v55 = vcombine.high %v3191_v39, %v3207_v44  ;;  %v3231_v62 = vcombine.low %v3198_v59, %v3214_v15  ;;  %v3232_v57 = vcombine.high %v3198_v59, %v3214_v15 }
 0x489   : > { %v3267_v38 = vcombine.low %v7868_v42, %v3108_v63  ;;  %v3268_v36 = vcombine.high %v7868_v42, %v3108_v63  ;;  %v3335_v54 = vcombine.low %v7870_v47, %v3110_v51  ;;  %v3336_v41 = vcombine.high %v7870_v47, %v3110_v51 }
 0x48a   : > { %v7931_v53 = vrot.slane %v3215_v37, %v7882_v52  ;;  %v3230_v31 = vrot.slane %v3216_v55, %v7882_v52  ;;  %v7935_v2 = vrot.slane %v3231_v62, %v7882_v52  ;;  %v7938_v49 = vrot.slane %v3232_v57, %v7882_v52 }
 0x48b   : > { %v3275_v11 = vrot.slane %v3267_v38, %v7875_v21  ;;  %v3282_v6 = vrot.slane %v3268_v36, %v7875_v21  ;;  %v3343_v42 = vrot.slane %v3335_v54, %v7875_v21  ;;  %v3350_v5 = vrot.slane %v3336_v41, %v7875_v21 }
 0x48c   : > { %v3455_v47 = vcombine.low %v7931_v53, %v3230_v31  ;;  %v5837_v0 = vcombine.high %v7931_v53, %v3230_v31  ;;  %v3471_v12 = vcombine.low %v7935_v2, %v7938_v49  ;;  %v5838_v22 = vcombine.high %v7935_v2, %v7938_v49 }
 0x48d   : > { %v3283_v61 = vcombine.low %v3259_v13, %v3275_v11  ;;  %v3284_v46 = vcombine.high %v3259_v13, %v3275_v11  ;;  %v3299_v18 = vcombine.low %v3266_v14, %v3282_v6  ;;  %v3300_v3 = vcombine.high %v3266_v14, %v3282_v6 }
 0x48e   : > { %v3351_v24 = vcombine.low %v3327_v17, %v3343_v42  ;;  %v3352_v26 = vcombine.high %v3327_v17, %v3343_v42  ;;  %v3367_v7 = vcombine.low %v3334_v16, %v3350_v5  ;;  %v3368_v1 = vcombine.high %v3334_v16, %v3350_v5 }
 0x48f   : > { %v3291_v58 = vrot.slane %v3283_v61, %v7882_v52  ;;  %v3298_v9 = vrot.slane %v3284_v46, %v7882_v52  ;;  %v3307_v40 = vrot.slane %v3299_v18, %v7882_v52  ;;  %v3314_v33 = vrot.slane %v3300_v3, %v7882_v52 }
 0x490   : > { %v3359_v60 = vrot.slane %v3351_v24, %v7882_v52  ;;  %v3366_v29 = vrot.slane %v3352_v26, %v7882_v52  ;;  %v3375_v13 = vrot.slane %v3367_v7, %v7882_v52  ;;  %v3382_v14 = vrot.slane %v3368_v1, %v7882_v52 }
 0x491   : > { %v3523_v30 = vcombine.low %v3291_v58, %v3298_v9  ;;  %v5839_v8 = vcombine.high %v3291_v58, %v3298_v9  ;;  %v3539_v32 = vcombine.low %v3307_v40, %v3314_v33  ;;  %v5840_v23 = vcombine.high %v3307_v40, %v3314_v33 }
 0x492   : > { %v3591_v28 = vcombine.low %v3359_v60, %v3366_v29  ;;  %v5841_v17 = vcombine.high %v3359_v60, %v3366_v29  ;;  %v3607_v16 = vcombine.low %v3375_v13, %v3382_v14  ;;  %v5842_v25 = vcombine.high %v3375_v13, %v3382_v14 }
 0x493   : > { %v3530_v56 = vrot.slane %v3523_v30, %v7875_v21  ;;  %v3538_v45 = vrot.slane %v5839_v8, %v7875_v21  ;;  %v3546_v35 = vrot.slane %v3539_v32, %v7875_v21  ;;  %v3554_v4 = vrot.slane %v5840_v23, %v7875_v21 }
 0x494   : > { %v3598_v20 = vrot.slane %v3591_v28, %v7875_v21  ;;  %v3606_v39 = vrot.slane %v5841_v17, %v7875_v21  ;;  %v3614_v59 = vrot.slane %v3607_v16, %v7875_v21  ;;  %v3622_v44 = vrot.slane %v5842_v25, %v7875_v21 }
 0x495   : > { %v3556_v15 = vcombine.high %v3530_v56, %v3538_v45  ;;  %v3572_v63 = vcombine.high %v3546_v35, %v3554_v4  ;;  %v3394_v51 = vrot.slane %v3387_v19, %v7875_v21  ;;  %v3402_v37 = vrot.slane %v5835_v48, %v7875_v21 }
 0x496   : > { %v3624_v55 = vcombine.high %v3598_v20, %v3606_v39  ;;  %v3640_v62 = vcombine.high %v3614_v59, %v3622_v44  ;;  %v3410_v57 = vrot.slane %v3403_v27, %v7875_v21  ;;  %v3418_v38 = vrot.slane %v5836_v50, %v7875_v21 }
 0x497   : > { %v7971_v36 = vrot.slane %v3556_v15, %v7882_v52  ;;  %v7974_v54 = vrot.slane %v3572_v63, %v7882_v52  ;;  %v3419_v41 = vcombine.low %v3394_v51, %v3402_v37  ;;  %v3420_v53 = vcombine.high %v3394_v51, %v3402_v37  ;;  %v3676_v37 = vld [vmem:[#allocation2 + $0x48] sm:$0xff] }
 0x498   : > { %v3638_v31 = vrot.slane %v3624_v55, %v7882_v52  ;;  %v3654_v19 = vrot.slane %v3640_v62, %v7882_v52  ;;  %v3435_v2 = vcombine.low %v3410_v57, %v3418_v38  ;;  %v3436_v48 = vcombine.high %v3410_v57, %v3418_v38  ;;  %v3680_v55 = vld [vmem:[#allocation2 + $0x68] sm:$0xff] }
 0x499   : > { %v3427_v49 = vrot.slane %v3419_v41, %v7882_v52  ;;  %v3462_v27 = vrot.slane %v3455_v47, %v7875_v21  ;;  %v3470_v50 = vrot.slane %v5837_v0, %v7875_v21  ;;  %v3478_v11 = vrot.slane %v3471_v12, %v7875_v21  ;;  %v3681_v41 = vld [vmem:[#allocation2 + $0x70] sm:$0xff] }
 0x49a   : > { %v3443_v6 = vrot.slane %v3435_v2, %v7882_v52  ;;  %v3486_v42 = vrot.slane %v5838_v22, %v7875_v21  ;;  %v3555_v5 = vcombine.low %v3530_v56, %v3538_v45  ;;  %v3571_v61 = vcombine.low %v3546_v35, %v3554_v4 }
 0x49b   : > { %v3487_v46 = vcombine.low %v3462_v27, %v3470_v50  ;;  %v3488_v18 = vcombine.high %v3462_v27, %v3470_v50  ;;  %v3623_v3 = vcombine.low %v3598_v20, %v3606_v39  ;;  %v3639_v24 = vcombine.low %v3614_v59, %v3622_v44 }
 0x49c   : > { %v3451_v26 = vcombine.low %v3427_v49, %v3443_v6  ;;  %v3452_v7 = vcombine.high %v3427_v49, %v3443_v6  ;;  %v3503_v1 = vcombine.low %v3478_v11, %v3486_v42  ;;  %v3504_v58 = vcombine.high %v3478_v11, %v3486_v42 }
 0x49d   : > { %v3495_v47 = vrot.slane %v3487_v46, %v7882_v52  ;;  %v3563_v0 = vrot.slane %v3555_v5, %v7882_v52  ;;  %v3579_v12 = vrot.slane %v3571_v61, %v7882_v52  ;;  %v3631_v9 = vrot.slane %v3623_v3, %v7882_v52 }
 0x49e   : > { %v3511_v22 = vrot.slane %v3503_v1, %v7882_v52  ;;  %v3647_v40 = vrot.slane %v3639_v24, %v7882_v52  ;;  %v3434_v33 = vrot.slane %v3420_v53, %v7882_v52  ;;  %v3450_v60 = vrot.slane %v3436_v48, %v7882_v52  ;;  %v3678_v53 = vld [vmem:[#allocation2 + $0x58] sm:$0xff] }
 0x49f   : > { %v3587_v29 = vcombine.low %v3563_v0, %v3579_v12  ;;  %v3588_v13 = vcombine.high %v3563_v0, %v3579_v12  ;;  %v3502_v14 = vrot.slane %v3488_v18, %v7882_v52  ;;  %v3518_v30 = vrot.slane %v3504_v58, %v7882_v52 }
 0x4a0   : > { %v3519_v8 = vcombine.low %v3495_v47, %v3511_v22  ;;  %v3520_v32 = vcombine.high %v3495_v47, %v3511_v22  ;;  %v3655_v23 = vcombine.low %v3631_v9, %v3647_v40  ;;  %v3656_v28 = vcombine.high %v3631_v9, %v3647_v40 }
 0x4a1   : > { %v3453_v17 = vcombine.low %v3434_v33, %v3450_v60  ;;  %v3521_v16 = vcombine.low %v3502_v14, %v3518_v30  ;;  %v3454_v25 = vcombine.high %v3434_v33, %v3450_v60  ;;  %v3522_v56 = vcombine.high %v3502_v14, %v3518_v30 }
 0x4a2   : > { %v3659_v45 = vpack.c.bf16 %v3519_v8, %v3451_v26  ;;  %v3661_v35 = vpack.c.bf16 %v3520_v32, %v3452_v7  ;;  %v3660_v4 = vpack.c.bf16 %v3655_v23, %v3587_v29  ;;  %v3662_v20 = vpack.c.bf16 %v3656_v28, %v3588_v13 }
 0x4a3   : > { %v3663_v39 = vpack.c.bf16 %v3521_v16, %v3453_v17  ;;  %v3665_v59 = vpack.c.bf16 %v3522_v56, %v3454_v25  ;;  %v3589_v44 = vcombine.low %v7971_v36, %v7974_v54  ;;  %v3657_v15 = vcombine.low %v3638_v31, %v3654_v19 }
 0x4a4   : > { %6043 = vmatprep.mubr.msk.bf16.mxu1 %vm3683_vm1, %v3659_v45  ;;  %6055 = vmatprep.mubr.msk.bf16.mxu0 %vm3683_vm1, %v3661_v35  ;;  %v3590_v63 = vcombine.high %v7971_v36, %v7974_v54  ;;  %v3658_v51 = vcombine.high %v3638_v31, %v3654_v19  ;;  %v3828_v38 = vsel %vm3683_vm1, %v3676_v37, 0  ;;  %v3895_v36 = vsel %vm3683_vm1, %v3680_v55, 0  ;;  %v3677_v54 = vld [vmem:[#allocation2 + $0x50] sm:$0xff]  ;;  %v3682_v31 = vld [vmem:[#allocation2 + $0x78] sm:$0xff] }
 0x4a5   : > { %6044 = vmatmul.mubr.msk.bf16.vlgmr.msra.gmra.mrb[0].mxu1 %vm3683_vm1, %v3660_v4  ;;  %6056 = vmatmul.mubr.msk.bf16.vlgmr.msra.gmra.mrb[4].mxu0 %vm3683_vm1, %v3662_v20  ;;  %v3664_v62 = vpack.c.bf16 %v3657_v15, %v3589_v44  ;;  %v3834_v19 = vsel %vm3683_vm1, %v3678_v53, 0  ;;  %v3901_v2 = vsel %vm3683_vm1, %v3682_v31, 0 }
 0x4a6   : > { %6060 = vmatpush3.bf16.xpose.msra.mxu1 %v7887_v34  ;;  %6072 = vmatpush3.bf16.xpose.msra.mxu0 %v7890_v43  ;;  %v3666_v57 = vpack.c.bf16 %v3658_v51, %v3590_v63  ;;  %v3831_v34 = vsel %vm3683_vm1, %v3677_v54, 0  ;;  %v3898_v43 = vsel %vm3683_vm1, %v3681_v41, 0 }
 0x4a7   : > { %6067 = vmatprep.mubr.msk.bf16.mxu1 %vm3683_vm1, %v3663_v39  ;;  %6079 = vmatprep.mubr.msk.bf16.mxu0 %vm3683_vm1, %v3665_v59 }
 0x4a8   : > { %6176 = vmatprep.subr.msk.bf16.mxu1 %vm3683_vm1, %v3676_v37  ;;  %6180 = vmatprep.subr.msk.bf16.mxu0 %vm3683_vm1, %v3680_v55 }
 0x4ae   : > { %6062 = vmatpush3.bf16.xpose.msra.mxu1 %v3828_v38  ;;  %6074 = vmatpush3.bf16.xpose.msra.mxu0 %v3895_v36 }
 0x4af   : > { %6177 = vmatprep.subr.msk.bf16.mxu1 %vm3683_vm1, %v3677_v54  ;;  %6181 = vmatprep.subr.msk.bf16.mxu0 %vm3683_vm1, %v3681_v41 }
 0x4b6   : > { %6064 = vmatpush3.bf16.xpose.msra.mxu1 %v3831_v34  ;;  %6076 = vmatpush3.bf16.xpose.msra.mxu0 %v3898_v43 }
 0x4b7   : > { %6178 = vmatprep.subr.msk.bf16.mxu1 %vm3683_vm1, %v3678_v53  ;;  %6182 = vmatprep.subr.msk.bf16.mxu0 %vm3683_vm1, %v3682_v31 }
 0x4be   : > { %6066 = vmatpush3.bf16.xpose.msra.mxu1 %v3834_v19  ;;  %6078 = vmatpush3.bf16.xpose.msra.mxu0 %v3901_v2 }
 0x4c5   : > { %6068 = vmatmul.mubr.msk.bf16.vlgmr.msra.gmra.mrb[4].mxu1 %vm3683_vm1, %v3664_v62  ;;  %6080 = vmatmul.mubr.msk.bf16.vlgmr.msra.gmra.mrb[8].mxu0 %vm3683_vm1, %v3666_v57 }
 0x578   : > { %v6045_v48 = vpop.f32.mrb[0].mxu1  ;;  %v8020_v49 = vpop.f32.mrb[4].mxu0 }
 0x579   : > { %v3736_v27 = vpop.f32.mrb[1].mxu1  ;;  %v3803_v50 = vpop.f32.mrb[5].mxu0  ;;  %v3959_v18 = vsel %vm3952_vm2, %v6045_v48, -inf  ;;  %v3971_v26 = vsel %vm3952_vm2, %v8020_v49, -inf }
 0x57a   : > { %v8022_v11 = vpop.f32.mrb[2].mxu1  ;;  %v8024_v6 = vpop.f32.mrb[6].mxu0  ;;  %v3953_v42 = vsel %vm3952_vm2, %v3736_v27, -inf  ;;  %v3965_v3 = vsel %vm3952_vm2, %v3803_v50, -inf }
 0x57b   : > { %v8027_v5 = vpop.f32.mrb[7].mxu0  ;;  %3954 = vmax.xlane.f32.xlu0 %v3953_v42  ;;  %v3739_v61 = vpop.f32.mrb[3].mxu1  ;;  %v3962_v24 = vsel %vm3952_vm2, %v8022_v11, -inf  ;;  %v3974_v1 = vsel %vm3952_vm2, %v8024_v6, -inf }
 0x57c   : > { %v3956_v46 = vsel %vm3952_vm2, %v3739_v61, -inf  ;;  %v3968_v7 = vsel %vm3952_vm2, %v8027_v5, -inf }
 0x57d   : > { %3957 = vmax.xlane.f32.xlu1 %v3956_v46 }
 0x57f   : > { %3960 = vmax.xlane.f32.xlu0 %v3959_v18 }
 0x581   : > { %3966 = vmax.xlane.f32.xlu1 %v3965_v3 }
 0x583   : > { %3963 = vmax.xlane.f32.xlu0 %v3962_v24 }
 0x585   : > { %3972 = vmax.xlane.f32.xlu1 %v3971_v26 }
 0x587   : > { %3969 = vmax.xlane.f32.xlu0 %v3968_v7 }
 0x58b   : > { %3975 = vmax.xlane.f32.xlu0 %v3974_v1 }
 0x598   : > { %v8040_v58 = vpop.f32.mrb[4].mxu1  ;;  %v8042_v47 = vpop.f32.mrb[8].mxu0 }
 0x599   : > { %v8044_v0 = vpop.f32.mrb[5].mxu1  ;;  %v8046_v12 = vpop.f32.mrb[9].mxu0  ;;  %v3983_v13 = vsel %vm3952_vm2, %v8040_v58, -inf  ;;  %v3995_v32 = vsel %vm3952_vm2, %v8042_v47, -inf }
 0x59a   : > { %v8048_v9 = vpop.f32.mrb[6].mxu1  ;;  %v8050_v22 = vpop.f32.mrb[10].mxu0  ;;  %v3977_v40 = vsel %vm3952_vm2, %v8044_v0, -inf  ;;  %v3989_v30 = vsel %vm3952_vm2, %v8046_v12, -inf }
 0x59b   : > { %v8054_v33 = vpop.f32.mrb[11].mxu0  ;;  %3978 = vmax.xlane.f32.xlu1 %v3977_v40  ;;  %v8056_v60 = vpop.f32.mrb[7].mxu1  ;;  %v3986_v14 = vsel %vm3952_vm2, %v8048_v9, -inf  ;;  %v3998_v23 = vsel %vm3952_vm2, %v8050_v22, -inf }
 0x59c   : > { %v3980_v29 = vsel %vm3952_vm2, %v8056_v60, -inf  ;;  %v3992_v8 = vsel %vm3952_vm2, %v8054_v33, -inf }
 0x59d   : > { %3981 = vmax.xlane.f32.xlu0 %v3980_v29 }
 0x59f   : > { %3984 = vmax.xlane.f32.xlu1 %v3983_v13 }
 0x5a1   : > { %3987 = vmax.xlane.f32.xlu0 %v3986_v14 }
 0x5a3   : > { %3990 = vmax.xlane.f32.xlu1 %v3989_v30 }
 0x5a5   : > { %3993 = vmax.xlane.f32.xlu0 %v3992_v8 }
 0x5a7   : > { %3996 = vmax.xlane.f32.xlu1 %v3995_v32 }
 0x5a9   : > { %3999 = vmax.xlane.f32.xlu0 %v3998_v23 }
 0x608   : > { %v3955_v28 = vpop.xlane.xlu0 %3954 }
 0x609   : > { %v4001_v17 = vsub.f32 %v3736_v27, %v3955_v28 }
 0x60a   : > { %v3958_v16 = vpop.xlane.xlu1 %3957 }
 0x60b   : > { %v4017_v25 = vmul.f32 1.442695, %v4001_v17  ;;  %v4002_v56 = vsub.f32 %v3739_v61, %v3958_v16 }
 0x60c   : > { %v3961_v45 = vpop.xlane.xlu0 %3960 }
 0x60d   : > { %6472 = vpow2.f32 %v4017_v25  ;;  %v4019_v35 = vmul.f32 1.442695, %v4002_v56  ;;  %v4003_v4 = vsub.f32 %v6045_v48, %v3961_v45  ;;  %v4137_v56 = vld [vmem:[#allocation3] sm:$0xff] }
 0x60e   : > { %v3967_v20 = vpop.xlane.xlu1 %3966  ;;  %6083 = vmatprep.subr.bf16.mxu1 %v4137_v56 }
 0x60f   : > { %6474 = vpow2.f32 %v4019_v35  ;;  %v4021_v39 = vmul.f32 1.442695, %v4003_v4  ;;  %v4005_v59 = vsub.f32 %v3803_v50, %v3967_v20  ;;  %6084 = vmatpush3.bf16.msra.mxu1 %v4137_v56 }
 0x610   : > { %v3964_v44 = vpop.xlane.xlu0 %3963 }
 0x611   : > { %6476 = vpow2.f32 %v4021_v39  ;;  %v4025_v15 = vmul.f32 1.442695, %v4005_v59  ;;  %v4004_v63 = vsub.f32 %v8022_v11, %v3964_v44  ;;  %v4138_v39 = vld [vmem:[#allocation3 + $0x8] sm:$0xff] }
 0x612   : > { %v3973_v51 = vpop.xlane.xlu1 %3972  ;;  %6085 = vmatprep.subr.bf16.mxu1 %v4138_v39 }
 0x613   : > { %6478 = vpow2.f32 %v4025_v15  ;;  %v4023_v37 = vmul.f32 1.442695, %v4004_v63  ;;  %v4007_v55 = vsub.f32 %v8020_v49, %v3973_v51  ;;  %6086 = vmatpush3.bf16.msra.mxu1 %v4138_v39  ;;  %v4139_v15 = vld [vmem:[#allocation3 + $0x10] sm:$0xff] }
 0x614   : > { %v3970_v62 = vpop.xlane.xlu0 %3969  ;;  %6087 = vmatprep.subr.bf16.mxu1 %v4139_v15 }
 0x615   : > { %6480 = vpow2.f32 %v4023_v37  ;;  %v4029_v57 = vmul.f32 1.442695, %v4007_v55  ;;  %v4006_v38 = vsub.f32 %v8027_v5, %v3970_v62  ;;  %v4140_v62 = vld [vmem:[#allocation3 + $0x18] sm:$0xff] }
 0x617   : > { %v8075_v36 = vpop.eup %6472  ;;  %6482 = vpow2.f32 %v4029_v57  ;;  %v4027_v54 = vmul.f32 1.442695, %v4006_v38  ;;  %6088 = vmatpush3.bf16.msra.mxu1 %v4139_v15  ;;  %v4141_v38 = vld [vmem:[#allocation3 + $0x20] sm:$0xff]  ;;  %v4148_v15 = vld [vmem:[#allocation3 + $0x58] sm:$0xff] }
 0x618   : > { %v3976_v41 = vpop.xlane.xlu0 %3975  ;;  %v4049_v34 = vsel %vm3952_vm2, %v8075_v36, 0.0  ;;  %6089 = vmatprep.subr.bf16.mxu1 %v4140_v62 }
 0x619   : > { %v8079_v43 = vpop.eup %6474  ;;  %6484 = vpow2.f32 %v4027_v54  ;;  %v4008_v53 = vsub.f32 %v8024_v6, %v3976_v41  ;;  %4050 = vadd.xlane.f32.xlu1 %v4049_v34 }
 0x61a   : > { %v4052_v31 = vsel %vm3952_vm2, %v8079_v43, 0.0 }
 0x61b   : > { %v8084_v19 = vpop.eup %6476  ;;  %v4031_v2 = vmul.f32 1.442695, %v4008_v53  ;;  %4053 = vadd.xlane.f32.xlu0 %v4052_v31  ;;  %6090 = vmatpush3.bf16.msra.mxu1 %v4140_v62 }
 0x61c   : > { %v4055_v48 = vsel %vm3952_vm2, %v8084_v19, 0.0  ;;  %6095 = vmatprep.subr.bf16.mxu1 %v4141_v38 }
 0x61d   : > { %v8088_v49 = vpop.eup %6478  ;;  %6486 = vpow2.f32 %v4031_v2  ;;  %4056 = vadd.xlane.f32.xlu1 %v4055_v48 }
 0x61e   : > { %v4061_v50 = vsel %vm3952_vm2, %v8088_v49, 0.0 }
 0x61f   : > { %v8090_v27 = vpop.eup %6480 }
 0x620   : > { %v4058_v11 = vsel %vm3952_vm2, %v8090_v27, 0.0 }
 0x621   : > { %v8096_v6 = vpop.eup %6482  ;;  %4062 = vadd.xlane.f32.xlu1 %v4061_v50  ;;  %4059 = vadd.xlane.f32.xlu0 %v4058_v11 }
 0x622   : > { %v4067_v5 = vsel %vm3952_vm2, %v8096_v6, 0.0 }
 0x623   : > { %v8098_v42 = vpop.eup %6484 }
 0x624   : > { %v4064_v61 = vsel %vm3952_vm2, %v8098_v42, 0.0 }
 0x625   : > { %4068 = vadd.xlane.f32.xlu1 %v4067_v5  ;;  %4065 = vadd.xlane.f32.xlu0 %v4064_v61 }
 0x627   : > { %v8104_v46 = vpop.eup %6486 }
 0x628   : > { %v3979_v18 = vpop.xlane.xlu1 %3978  ;;  %v4070_v3 = vsel %vm3952_vm2, %v8104_v46, 0.0 }
 0x629   : > { %v4009_v24 = vsub.f32 %v8044_v0, %v3979_v18  ;;  %4071 = vadd.xlane.f32.xlu0 %v4070_v3 }
 0x62a   : > { %v3982_v26 = vpop.xlane.xlu0 %3981 }
 0x62b   : > { %v4033_v7 = vmul.f32 1.442695, %v4009_v24  ;;  %v4010_v1 = vsub.f32 %v8056_v60, %v3982_v26 }
 0x62c   : > { %v3985_v40 = vpop.xlane.xlu1 %3984 }
 0x62d   : > { %6488 = vpow2.f32 %v4033_v7  ;;  %v4035_v29 = vmul.f32 1.442695, %v4010_v1  ;;  %v4011_v13 = vsub.f32 %v8040_v58, %v3985_v40 }
 0x62e   : > { %v3988_v14 = vpop.xlane.xlu0 %3987 }
 0x62f   : > { %6490 = vpow2.f32 %v4035_v29  ;;  %v4037_v30 = vmul.f32 1.442695, %v4011_v13  ;;  %v4012_v8 = vsub.f32 %v8048_v9, %v3988_v14 }
 0x630   : > { %v3991_v32 = vpop.xlane.xlu1 %3990 }
 0x631   : > { %6492 = vpow2.f32 %v4037_v30  ;;  %v4039_v23 = vmul.f32 1.442695, %v4012_v8  ;;  %v4013_v0 = vsub.f32 %v8046_v12, %v3991_v32 }
 0x632   : > { %v3994_v28 = vpop.xlane.xlu0 %3993 }
 0x633   : > { %6494 = vpow2.f32 %v4039_v23  ;;  %v4041_v17 = vmul.f32 1.442695, %v4013_v0  ;;  %v4014_v60 = vsub.f32 %v8054_v33, %v3994_v28  ;;  %v4142_v23 = vld [vmem:[#allocation3 + $0x28] sm:$0xff]  ;;  %v4143_v28 = vld [vmem:[#allocation3 + $0x30] sm:$0xff] }
 0x634   : > { %v3997_v16 = vpop.xlane.xlu1 %3996 }
 0x635   : > { %6496 = vpow2.f32 %v4041_v17  ;;  %v4043_v25 = vmul.f32 1.442695, %v4014_v60  ;;  %v4015_v58 = vsub.f32 %v8042_v47, %v3997_v16  ;;  %v4144_v17 = vld [vmem:[#allocation3 + $0x38] sm:$0xff] }
 0x636   : > { %v4000_v45 = vpop.xlane.xlu0 %3999 }
 0x637   : > { %v8115_v35 = vpop.eup %6488  ;;  %6498 = vpow2.f32 %v4043_v25  ;;  %v4045_v9 = vmul.f32 1.442695, %v4015_v58  ;;  %v4016_v4 = vsub.f32 %v8050_v22, %v4000_v45 }
 0x638   : > { %v4073_v12 = vsel %vm3952_vm2, %v8115_v35, 0.0 }
 0x639   : > { %v8120_v20 = vpop.eup %6490  ;;  %6500 = vpow2.f32 %v4045_v9  ;;  %v4047_v33 = vmul.f32 1.442695, %v4016_v4  ;;  %4074 = vadd.xlane.f32.xlu1 %v4073_v12  ;;  %v4146_v4 = vld [vmem:[#allocation3 + $0x48] sm:$0xff] }
 0x63a   : > { %v4076_v47 = vsel %vm3952_vm2, %v8120_v20, 0.0 }
 0x63b   : > { %v8124_v59 = vpop.eup %6492  ;;  %6502 = vpow2.f32 %v4047_v33  ;;  %4077 = vadd.xlane.f32.xlu0 %v4076_v47  ;;  %v4147_v33 = vld [vmem:[#allocation3 + $0x50] sm:$0xff] }
 0x63c   : > { %v4079_v22 = vsel %vm3952_vm2, %v8124_v59, 0.0 }
 0x63d   : > { %v8128_v44 = vpop.eup %6494  ;;  %4080 = vadd.xlane.f32.xlu1 %v4079_v22 }
 0x63e   : > { %v4082_v63 = vsel %vm3952_vm2, %v8128_v44, 0.0 }
 0x63f   : > { %v8132_v51 = vpop.eup %6496  ;;  %4083 = vadd.xlane.f32.xlu0 %v4082_v63 }
 0x640   : > { %v4085_v37 = vsel %vm3952_vm2, %v8132_v51, 0.0 }
 0x641   : > { %v8136_v55 = vpop.eup %6498  ;;  %4086 = vadd.xlane.f32.xlu1 %v4085_v37 }
 0x642   : > { %v4088_v57 = vsel %vm3952_vm2, %v8136_v55, 0.0 }
 0x643   : > { %v8140_v54 = vpop.eup %6500  ;;  %4089 = vadd.xlane.f32.xlu0 %v4088_v57 }
 0x644   : > { %v4091_v41 = vsel %vm3952_vm2, %v8140_v54, 0.0 }
 0x645   : > { %v8144_v34 = vpop.eup %6502  ;;  %4092 = vadd.xlane.f32.xlu1 %v4091_v41  ;;  %v4149_v41 = vld [vmem:[#allocation3 + $0x60] sm:$0xff] }
 0x646   : > { %v4094_v53 = vsel %vm3952_vm2, %v8144_v34, 0.0 }
 0x647   : > { %4095 = vadd.xlane.f32.xlu0 %v4094_v53 }
 0x6a6   : > { %v4051_v31 = vpop.xlane.xlu1 %4050 }
 0x6a7   : > { %6504 = vrcp.f32 %v4051_v31 }
 0x6a8   : > { %v4054_v2 = vpop.xlane.xlu0 %4053 }
 0x6a9   : > { %6506 = vrcp.f32 %v4054_v2 }
 0x6aa   : > { %v4057_v48 = vpop.xlane.xlu1 %4056 }
 0x6ab   : > { %6508 = vrcp.f32 %v4057_v48 }
 0x6ae   : > { %v4060_v50 = vpop.xlane.xlu0 %4059  ;;  %v4063_v11 = vpop.xlane.xlu1 %4062 }
 0x6af   : > { %6510 = vrcp.f32 %v4060_v50 }
 0x6b0   : > { %6512 = vrcp.f32 %v4063_v11  ;;  %v4150_v11 = vld [vmem:[#allocation3 + $0x68] sm:$0xff] }
 0x6b1   : > { %v6505_v5 = vpop.eup %6504 }
 0x6b2   : > { %v4066_v61 = vpop.xlane.xlu0 %4065  ;;  %v4098_v3 = vmul.f32 %v6505_v5, %v8075_v36  ;;  %v4069_v14 = vpop.xlane.xlu1 %4068  ;;  %v4152_v5 = vld [vmem:[#allocation3 + $0x78] sm:$0xff] }
 0x6b3   : > { %v6507_v18 = vpop.eup %6506  ;;  %6514 = vrcp.f32 %v4066_v61 }
 0x6b4   : > { %v4100_v24 = vmul.f32 %v6507_v18, %v8079_v43 }
 0x6b5   : > { %v6509_v7 = vpop.eup %6508 }
 0x6b6   : > { %v4129_v26 = vpack.c.bf16 %v4100_v24, %v4098_v3  ;;  %v4072_v1 = vpop.xlane.xlu0 %4071  ;;  %v4102_v29 = vmul.f32 %v6509_v7, %v8084_v19  ;;  %v6422_v3 = vld [vmem:[#allocation10] sm:$0xff]   ;;  %v6423_v24 = vld [vmem:[#allocation10 + $0x8] sm:$0xff]   ;;  %v6425_v7 = vld [vmem:[#allocation10 + $0x18] sm:$0xff]  }
 0x6b7   : > { %6516 = vrcp.f32 %v4072_v1  ;;  %6131 = vmatprep.subr.bf16.mxu0 %v6422_v3 }
 0x6b8   : > { %6091 = vmatprep.mubr.msk.bf16.mxu1 %vm3952_vm2, %v4129_v26  ;;  %6518 = vrcp.f32 %v4069_v14  ;;  %6132 = vmatpush3.bf16.msra.mxu0 %v6422_v3  ;;  %v6424_v26 = vld [vmem:[#allocation10 + $0x10] sm:$0xff]  }
 0x6b9   : > { %v6511_v40 = vpop.eup %6510  ;;  %6133 = vmatprep.subr.bf16.mxu0 %v6423_v24 }
 0x6ba   : > { %v4104_v13 = vmul.f32 %v6511_v40, %v8090_v27  ;;  %v6513_v30 = vpop.eup %6512 }
 0x6bb   : > { %v4106_v36 = vmul.f32 %v6513_v30, %v8088_v49 }
 0x6bc   : > { %v4130_v8 = vpack.c.bf16 %v4104_v13, %v4102_v29  ;;  %6134 = vmatpush3.bf16.msra.mxu0 %v6423_v24 }
 0x6bd   : > { %v6515_v32 = vpop.eup %6514  ;;  %6135 = vmatprep.subr.bf16.mxu0 %v6424_v26 }
 0x6be   : > { %6092 = vmatmul.mubr.msk.bf16.vlgmr.msra.gmra.mrb[8].mxu1 %vm3952_vm2, %v4130_v8  ;;  %v4108_v43 = vmul.f32 %v6515_v32, %v8098_v42  ;;  %v4145_v42 = vld [vmem:[#allocation3 + $0x40] sm:$0xff] }
 0x6bf   : > { %6096 = vmatpush3.bf16.msra.mxu1 %v4141_v38 }
 0x6c0   : > { %6097 = vmatprep.subr.bf16.mxu1 %v4142_v23  ;;  %v4131_v0 = vpack.c.bf16 %v4108_v43, %v4106_v36  ;;  %6136 = vmatpush3.bf16.msra.mxu0 %v6424_v26 }
 0x6c1   : > { %v6517_v19 = vpop.eup %6516  ;;  %6137 = vmatprep.subr.bf16.mxu0 %v6425_v7 }
 0x6c2   : > { %6103 = vmatprep.mubr.msk.bf16.mxu1 %vm3952_vm2, %v4131_v0  ;;  %v6519_v60 = vpop.eup %6518  ;;  %v4112_v25 = vmul.f32 %v6517_v19, %v8104_v46 }
 0x6c3   : > { %6098 = vmatpush3.bf16.msra.mxu1 %v4142_v23  ;;  %v4110_v58 = vmul.f32 %v6519_v60, %v8096_v6 }
 0x6c4   : > { %6099 = vmatprep.subr.bf16.mxu1 %v4143_v28  ;;  %6138 = vmatpush3.bf16.msra.mxu0 %v6425_v7 }
 0x6c5   : > { %v4132_v45 = vpack.c.bf16 %v4112_v25, %v4110_v58 }
 0x6c6   : > { %v4075_v27 = vpop.xlane.xlu1 %4074 }
 0x6c7   : > { %6520 = vrcp.f32 %v4075_v27  ;;  %6100 = vmatpush3.bf16.msra.mxu1 %v4143_v28 }
 0x6c8   : > { %v4078_v16 = vpop.xlane.xlu0 %4077  ;;  %6101 = vmatprep.subr.bf16.mxu1 %v4144_v17 }
 0x6c9   : > { %6522 = vrcp.f32 %v4078_v16 }
 0x6ca   : > { %v4081_v49 = vpop.xlane.xlu1 %4080 }
 0x6cb   : > { %6102 = vmatpush3.bf16.msra.mxu1 %v4144_v17 }
 0x6cc   : > { %v4084_v56 = vpop.xlane.xlu0 %4083  ;;  %6107 = vmatprep.subr.bf16.mxu1 %v4145_v42 }
 0x6cd   : > { %6524 = vrcp.f32 %v4084_v56 }
 0x6ce   : > { %6526 = vrcp.f32 %v4081_v49  ;;  %v4087_v9 = vpop.xlane.xlu1 %4086  ;;  %6104 = vmatmul.mubr.msk.bf16.vlgmr.msra.gmra.mrb[12].mxu1 %vm3952_vm2, %v4132_v45 }
 0x6cf   : > { %6528 = vrcp.f32 %v4087_v9  ;;  %6108 = vmatpush3.bf16.msra.mxu1 %v4145_v42 }
 0x6d0   : > { %v4090_v12 = vpop.xlane.xlu0 %4089  ;;  %6109 = vmatprep.subr.bf16.mxu1 %v4146_v4 }
 0x6d1   : > { %v6521_v46 = vpop.eup %6520  ;;  %6530 = vrcp.f32 %v4090_v12 }
 0x6d2   : > { %v4114_v6 = vmul.f32 %v6521_v46, %v8115_v35  ;;  %v4093_v35 = vpop.xlane.xlu1 %4092 }
 0x6d3   : > { %v6523_v39 = vpop.eup %6522  ;;  %6110 = vmatpush3.bf16.msra.mxu1 %v4146_v4 }
 0x6d4   : > { %v4116_v47 = vmul.f32 %v6523_v39, %v8120_v20  ;;  %6111 = vmatprep.subr.bf16.mxu1 %v4147_v33  ;;  %v4096_v38 = vpop.xlane.xlu0 %4095 }
 0x6d5   : > { %6532 = vrcp.f32 %v4096_v38 }
 0x6d6   : > { %v4133_v22 = vpack.c.bf16 %v4116_v47, %v4114_v6  ;;  %6534 = vrcp.f32 %v4093_v35 }
 0x6d7   : > { %v6525_v63 = vpop.eup %6524  ;;  %6112 = vmatpush3.bf16.msra.mxu1 %v4147_v33 }
 0x6d8   : > { %v6527_v37 = vpop.eup %6526  ;;  %6115 = vmatprep.mubr.msk.bf16.mxu1 %vm3952_vm2, %v4133_v22  ;;  %v4120_v57 = vmul.f32 %v6525_v63, %v8128_v44  ;;  %6113 = vmatprep.subr.bf16.mxu1 %v4148_v15  ;;  %v4151_v44 = vld [vmem:[#allocation3 + $0x70] sm:$0xff] }
 0x6d9   : > { %v6529_v62 = vpop.eup %6528  ;;  %v4118_v31 = vmul.f32 %v6527_v37, %v8124_v59 }
 0x6da   : > { %v4122_v20 = vmul.f32 %v6529_v62, %v8132_v51 }
 0x6db   : > { %v6531_v53 = vpop.eup %6530  ;;  %6114 = vmatpush3.bf16.msra.mxu1 %v4148_v15  ;;  %v4134_v48 = vpack.c.bf16 %v4120_v57, %v4118_v31 }
 0x6dc   : > { %v4124_v2 = vmul.f32 %v6531_v53, %v8136_v55  ;;  %6119 = vmatprep.subr.bf16.mxu1 %v4149_v41 }
 0x6de   : > { %v4135_v50 = vpack.c.bf16 %v4124_v2, %v4122_v20  ;;  %6116 = vmatmul.mubr.msk.bf16.vlgmr.msra.gmra.mrb[16].mxu1 %vm3952_vm2, %v4134_v48 }
 0x6df   : > { %6120 = vmatpush3.bf16.msra.mxu1 %v4149_v41  ;;  %v6533_v59 = vpop.eup %6532 }
 0x6e0   : > { %6127 = vmatprep.mubr.msk.bf16.mxu1 %vm3952_vm2, %v4135_v50  ;;  %6121 = vmatprep.subr.bf16.mxu1 %v4150_v11  ;;  %v6535_v61 = vpop.eup %6534  ;;  %v4128_v51 = vmul.f32 %v6533_v59, %v8144_v34 }
 0x6e1   : > { %v4126_v55 = vmul.f32 %v6535_v61, %v8140_v54 }
 0x6e3   : > { %6122 = vmatpush3.bf16.msra.mxu1 %v4150_v11  ;;  %v4136_v18 = vpack.c.bf16 %v4128_v51, %v4126_v55 }
 0x6e4   : > { %6123 = vmatprep.subr.bf16.mxu1 %v4151_v44 }
 0x6e7   : > { %6124 = vmatpush3.bf16.msra.mxu1 %v4151_v44 }
 0x6e8   : > { %6125 = vmatprep.subr.bf16.mxu1 %v4152_v5 }
 0x6eb   : > { %6126 = vmatpush3.bf16.msra.mxu1 %v4152_v5 }
 0x6ee   : > { %6128 = vmatmul.mubr.msk.bf16.vlgmr.msra.gmra.mrb[20].mxu1 %vm3952_vm2, %v4136_v18 }
 0x791   : > { %v6093_v34 = vpop.f32.mrb[8].mxu1 }
 0x792   : > { %v4193_v1 = vpop.f32.mrb[9].mxu1 }
 0x793   : > { %v6094_v40 = vpop.f32.mrb[10].mxu1 }
 0x794   : > { %v4196_v54 = vpop.f32.mrb[11].mxu1 }
 0x7a1   : > { %v6105_v29 = vpop.f32.mrb[12].mxu1 }
 0x7a2   : > { %v4248_v13 = vpop.f32.mrb[13].mxu1 }
 0x7a3   : > { %v8172_v14 = vpop.f32.mrb[14].mxu1 }
 0x7a4   : > { %v8174_v30 = vpop.f32.mrb[15].mxu1 }
 0x7b1   : > { %v6117_v8 = vpop.f32.mrb[16].mxu1 }
 0x7b2   : > { %v4509_v32 = vcombine.low %v6093_v34, %v6117_v8  ;;  %v4510_v23 = vcombine.high %v6093_v34, %v6117_v8  ;;  %v4303_v36 = vpop.f32.mrb[17].mxu1 }
 0x7b3   : > { %v4373_v43 = vcombine.low %v4193_v1, %v4303_v36  ;;  %v4374_v0 = vcombine.high %v4193_v1, %v4303_v36  ;;  %v6118_v28 = vpop.f32.mrb[18].mxu1 }
 0x7b4   : > { %v4577_v19 = vcombine.low %v6094_v40, %v6118_v28  ;;  %v4578_v27 = vcombine.high %v6094_v40, %v6118_v28  ;;  %v4306_v17 = vpop.f32.mrb[19].mxu1  ;;  %v4517_v25 = vrot.slane %v4509_v32, %v7875_v21  ;;  %v4524_v49 = vrot.slane %v4510_v23, %v7875_v21 }
 0x7b5   : > { %v4441_v60 = vcombine.low %v4196_v54, %v4306_v17  ;;  %v4442_v16 = vcombine.high %v4196_v54, %v4306_v17  ;;  %v4381_v42 = vrot.slane %v4373_v43, %v7875_v21  ;;  %v4388_v58 = vrot.slane %v4374_v0, %v7875_v21 }
 0x7b6   : > { %v8181_v45 = vrot.slane %v4577_v19, %v7875_v21  ;;  %v8184_v9 = vrot.slane %v4578_v27, %v7875_v21 }
 0x7b7   : > { %v8187_v33 = vrot.slane %v4441_v60, %v7875_v21  ;;  %v8190_v39 = vrot.slane %v4442_v16, %v7875_v21 }
 0x7c1   : > { %v6129_v56 = vpop.f32.mrb[20].mxu1 }
 0x7c2   : > { %v4525_v4 = vcombine.low %v6105_v29, %v6129_v56  ;;  %v4526_v12 = vcombine.high %v6105_v29, %v6129_v56  ;;  %v4358_v46 = vpop.f32.mrb[21].mxu1 }
 0x7c3   : > { %v4389_v6 = vcombine.low %v4248_v13, %v4358_v46  ;;  %v4390_v47 = vcombine.high %v4248_v13, %v4358_v46  ;;  %v6130_v22 = vpop.f32.mrb[22].mxu1 }
 0x7c4   : > { %v4533_v15 = vrot.slane %v4525_v4, %v7875_v21  ;;  %v4540_v63 = vrot.slane %v4526_v12, %v7875_v21  ;;  %v4593_v37 = vcombine.low %v8172_v14, %v6130_v22  ;;  %v4594_v62 = vcombine.high %v8172_v14, %v6130_v22  ;;  %v4361_v57 = vpop.f32.mrb[23].mxu1 }
 0x7c5   : > { %v4397_v38 = vrot.slane %v4389_v6, %v7875_v21  ;;  %v4404_v41 = vrot.slane %v4390_v47, %v7875_v21  ;;  %v4457_v53 = vcombine.low %v8174_v30, %v4361_v57  ;;  %v4458_v31 = vcombine.high %v8174_v30, %v4361_v57 }
 0x7c6   : > { %v4541_v35 = vcombine.low %v4517_v25, %v4533_v15  ;;  %v4542_v20 = vcombine.high %v4517_v25, %v4533_v15  ;;  %v4557_v2 = vcombine.low %v4524_v49, %v4540_v63  ;;  %v4558_v48 = vcombine.high %v4524_v49, %v4540_v63 }
 0x7c7   : > { %v4405_v50 = vcombine.low %v4381_v42, %v4397_v38  ;;  %v4406_v11 = vcombine.high %v4381_v42, %v4397_v38  ;;  %v4421_v44 = vcombine.low %v4388_v58, %v4404_v41  ;;  %v4422_v59 = vcombine.high %v4388_v58, %v4404_v41 }
 0x7c8   : > { %v4549_v5 = vrot.slane %v4541_v35, %v7882_v52  ;;  %v4556_v61 = vrot.slane %v4542_v20, %v7882_v52  ;;  %v4565_v51 = vrot.slane %v4557_v2, %v7882_v52  ;;  %v4572_v55 = vrot.slane %v4558_v48, %v7882_v52 }
 0x7c9   : > { %v4413_v18 = vrot.slane %v4405_v50, %v7882_v52  ;;  %v4420_v3 = vrot.slane %v4406_v11, %v7882_v52  ;;  %v4429_v24 = vrot.slane %v4421_v44, %v7882_v52  ;;  %v4436_v26 = vrot.slane %v4422_v59, %v7882_v52  ;;  %v6426_v59 = vld [vmem:[#allocation10 + $0x20] sm:$0xff]  }
 0x7ca   : > { %v4781_v7 = vcombine.low %v4549_v5, %v4556_v61  ;;  %v5863_v34 = vcombine.high %v4549_v5, %v4556_v61  ;;  %v4797_v1 = vcombine.low %v4565_v51, %v4572_v55  ;;  %v5864_v40 = vcombine.high %v4565_v51, %v4572_v55  ;;  %6139 = vmatprep.subr.bf16.mxu0 %v6426_v59 }
 0x7cb   : > { %v4645_v54 = vcombine.low %v4413_v18, %v4420_v3  ;;  %v5859_v29 = vcombine.high %v4413_v18, %v4420_v3  ;;  %v4661_v13 = vcombine.low %v4429_v24, %v4436_v26  ;;  %v5860_v14 = vcombine.high %v4429_v24, %v4436_v26  ;;  %6140 = vmatpush3.bf16.msra.mxu0 %v6426_v59 }
 0x7cc   : > { %v4788_v30 = vrot.slane %v4781_v7, %v7875_v21  ;;  %v4796_v8 = vrot.slane %v5863_v34, %v7875_v21  ;;  %v4804_v32 = vrot.slane %v4797_v1, %v7875_v21  ;;  %v4812_v23 = vrot.slane %v5864_v40, %v7875_v21 }
 0x7cd   : > { %v8213_v36 = vrot.slane %v4645_v54, %v7875_v21  ;;  %v8216_v43 = vrot.slane %v5859_v29, %v7875_v21  ;;  %v8219_v0 = vrot.slane %v4661_v13, %v7875_v21  ;;  %v8222_v28 = vrot.slane %v5860_v14, %v7875_v21 }
 0x7ce   : > { %v4601_v19 = vrot.slane %v4593_v37, %v7875_v21  ;;  %v4608_v27 = vrot.slane %v4594_v62, %v7875_v21  ;;  %v4465_v17 = vrot.slane %v4457_v53, %v7875_v21  ;;  %v4472_v60 = vrot.slane %v4458_v31, %v7875_v21 }
 0x7cf   : > { %v4814_v16 = vcombine.high %v4788_v30, %v4796_v8  ;;  %v4830_v25 = vcombine.high %v4804_v32, %v4812_v23  ;;  %v4813_v49 = vcombine.low %v4788_v30, %v4796_v8  ;;  %v4829_v42 = vcombine.low %v4804_v32, %v4812_v23 }
 0x7d0   : > { %v4609_v58 = vcombine.low %v8181_v45, %v4601_v19  ;;  %v4610_v56 = vcombine.high %v8181_v45, %v4601_v19  ;;  %v4625_v4 = vcombine.low %v8184_v9, %v4608_v27  ;;  %v4626_v12 = vcombine.high %v8184_v9, %v4608_v27 }
 0x7d1   : > { %v4473_v46 = vcombine.low %v8187_v33, %v4465_v17  ;;  %v4474_v6 = vcombine.high %v8187_v33, %v4465_v17  ;;  %v4489_v47 = vcombine.low %v8190_v39, %v4472_v60  ;;  %v4490_v22 = vcombine.high %v8190_v39, %v4472_v60 }
 0x7d2   : > { %v4617_v15 = vrot.slane %v4609_v58, %v7882_v52  ;;  %v4624_v63 = vrot.slane %v4610_v56, %v7882_v52  ;;  %v4633_v37 = vrot.slane %v4625_v4, %v7882_v52  ;;  %v4640_v45 = vrot.slane %v4626_v12, %v7882_v52 }
 0x7d3   : > { %v4481_v62 = vrot.slane %v4473_v46, %v7882_v52  ;;  %v4488_v9 = vrot.slane %v4474_v6, %v7882_v52  ;;  %v4497_v57 = vrot.slane %v4489_v47, %v7882_v52  ;;  %v4504_v33 = vrot.slane %v4490_v22, %v7882_v52 }
 0x7d4   : > { %v4849_v38 = vcombine.low %v4617_v15, %v4624_v63  ;;  %v5865_v41 = vcombine.high %v4617_v15, %v4624_v63  ;;  %v4865_v53 = vcombine.low %v4633_v37, %v4640_v45  ;;  %v5866_v39 = vcombine.high %v4633_v37, %v4640_v45 }
 0x7d5   : > { %v4713_v31 = vcombine.low %v4481_v62, %v4488_v9  ;;  %v5861_v35 = vcombine.high %v4481_v62, %v4488_v9  ;;  %v4729_v20 = vcombine.low %v4497_v57, %v4504_v33  ;;  %v5862_v2 = vcombine.high %v4497_v57, %v4504_v33  ;;  %v6428_v62 = vld [vmem:[#allocation10 + $0x30] sm:$0xff]  }
 0x7d6   : > { %v4856_v48 = vrot.slane %v4849_v38, %v7875_v21  ;;  %v4864_v50 = vrot.slane %v5865_v41, %v7875_v21  ;;  %v4872_v11 = vrot.slane %v4865_v53, %v7875_v21  ;;  %v4880_v44 = vrot.slane %v5866_v39, %v7875_v21 }
 0x7d7   : > { %v4720_v5 = vrot.slane %v4713_v31, %v7875_v21  ;;  %v4728_v61 = vrot.slane %v5861_v35, %v7875_v21  ;;  %v4736_v51 = vrot.slane %v4729_v20, %v7875_v21  ;;  %v4744_v55 = vrot.slane %v5862_v2, %v7875_v21  ;;  %v6429_v20 = vld [vmem:[#allocation10 + $0x38] sm:$0xff]  }
 0x7d8   : > { %v4828_v18 = vrot.slane %v4814_v16, %v7882_v52  ;;  %v4844_v3 = vrot.slane %v4830_v25, %v7882_v52  ;;  %v4882_v24 = vcombine.high %v4856_v48, %v4864_v50  ;;  %v4898_v26 = vcombine.high %v4872_v11, %v4880_v44 }
 0x7d9   : > { %v8255_v7 = vrot.slane %v4813_v49, %v7882_v52  ;;  %v8258_v34 = vrot.slane %v4829_v42, %v7882_v52  ;;  %v4881_v1 = vcombine.low %v4856_v48, %v4864_v50  ;;  %v4897_v40 = vcombine.low %v4872_v11, %v4880_v44  ;;  %v6427_v42 = vld [vmem:[#allocation10 + $0x28] sm:$0xff]  }
 0x7da   : > { %v4847_v54 = vcombine.low %v4828_v18, %v4844_v3  ;;  %v4896_v29 = vrot.slane %v4882_v24, %v7882_v52  ;;  %v4912_v21 = vrot.slane %v4898_v26, %v7882_v52  ;;  %v4678_v13 = vcombine.high %v8213_v36, %v8216_v43  ;;  %6141 = vmatprep.subr.bf16.mxu0 %v6427_v42 }
 0x7db   : > { %v4845_v14 = vcombine.low %v8255_v7, %v8258_v34  ;;  %v4846_v30 = vcombine.high %v8255_v7, %v8258_v34  ;;  %v8269_v8 = vrot.slane %v4881_v1, %v7882_v52  ;;  %v8272_v32 = vrot.slane %v4897_v40, %v7882_v52  ;;  %6142 = vmatpush3.bf16.msra.mxu0 %v6427_v42 }
 0x7dc   : > { %v4915_v23 = vcombine.low %v4896_v29, %v4912_v21  ;;  %v4692_v19 = vrot.slane %v4678_v13, %v7882_v52  ;;  %v4694_v27 = vcombine.high %v8219_v0, %v8222_v28  ;;  %v4746_v17 = vcombine.high %v4720_v5, %v4728_v61  ;;  %6143 = vmatprep.subr.bf16.mxu0 %v6428_v62 }
 0x7dd   : > { %v4914_v60 = vcombine.high %v8269_v8, %v8272_v32  ;;  %v4913_v16 = vcombine.low %v8269_v8, %v8272_v32  ;;  %v4762_v25 = vcombine.high %v4736_v51, %v4744_v55  ;;  %v4677_v49 = vcombine.low %v8213_v36, %v8216_v43 }
 0x7de   : > { %v6387_v58 = vpack.i.bf16 %v4915_v23, %v4847_v54  ;;  %v4708_v56 = vrot.slane %v4694_v27, %v7882_v52  ;;  %v4760_v4 = vrot.slane %v4746_v17, %v7882_v52  ;;  %v4693_v12 = vcombine.low %v8219_v0, %v8222_v28 }
 0x7df   : > { %v6382_v46 = vpack.i.bf16 %v4914_v60, %v4846_v30  ;;  %v4776_v6 = vrot.slane %v4762_v25, %v7882_v52  ;;  %v4685_v47 = vrot.slane %v4677_v49, %v7882_v52  ;;  %v4745_v22 = vcombine.low %v4720_v5, %v4728_v61  ;;  %6144 = vmatpush3.bf16.msra.mxu0 %v6428_v62  ;;  %v6552_v25 = vld [vmem:[%s7814_s8] sm:$0xff]  }
 0x7e0   : > { %6388 = vrot.lane.b32.xlu1 %v6387_v58, %s6877_s11  ;;  %v4712_v15 = vcombine.high %v4692_v19, %v4708_v56  ;;  %v4701_v36 = vrot.slane %v4693_v12, %v7882_v52  ;;  %v4761_v43 = vcombine.low %v4736_v51, %v4744_v55  ;;  %v4711_v63 = vcombine.low %v4692_v19, %v4708_v56 }
 0x7e1   : > { %6383 = vrot.lane.b32.xlu0 %v6382_v46, %s6878_s1  ;;  %v4780_v37 = vcombine.high %v4760_v4, %v4776_v6  ;;  %v4753_v45 = vrot.slane %v4745_v22, %v7882_v52  ;;  %v4779_v0 = vcombine.low %v4760_v4, %v4776_v6  ;;  %v4848_v28 = vcombine.high %v4828_v18, %v4844_v3  ;;  %v6553_v4 = vld [vmem:[%s7814_s8 + $0x8] sm:$0xff]  }
 0x7e2   : > { %v4709_v9 = vcombine.low %v4685_v47, %v4701_v36  ;;  %v4710_v57 = vcombine.high %v4685_v47, %v4701_v36  ;;  %v4769_v33 = vrot.slane %v4761_v43, %v7882_v52  ;;  %v4916_v38 = vcombine.high %v4896_v29, %v4912_v21  ;;  %6145 = vmatprep.subr.bf16.mxu0 %v6429_v20 }
 0x7e3   : > { %v6402_v41 = vpack.i.bf16 %v4780_v37, %v4712_v15  ;;  %v6397_v53 = vpack.i.bf16 %v4779_v0, %v4711_v63  ;;  %6146 = vmatpush3.bf16.msra.mxu0 %v6429_v20  ;;  %v4996_v49 = vunpack.c.l.bf16 %v6552_v25  ;;  %v4997_v42 = vunpack.c.h.bf16 %v6552_v25  ;;  %v6430_v63 = vld [vmem:[#allocation12] ss:$8 sps:$4 sm:$0xff]   ;;  %v6432_v37 = vld [vmem:[#allocation12 + $0x4] ss:$8 sps:$4 sm:$0xff]   ;;  %v6433_v0 = vld [vmem:[#allocation12 + $0x10] ss:$8 sps:$4 sm:$0xff]  }
 0x7e4   : > { %v4778_v39 = vcombine.high %v4753_v45, %v4769_v33  ;;  %v4777_v31 = vcombine.low %v4753_v45, %v4769_v33  ;;  %v6407_v35 = vpack.i.bf16 %v4916_v38, %v4848_v28  ;;  %v4998_v12 = vunpack.c.l.bf16 %v6553_v4  ;;  %v6435_v45 = vld [vmem:[#allocation12 + $0x14] ss:$8 sps:$4 sm:$0xff]   ;;  %5274 = vmatprep.subr.bf16.mxu1 %v6432_v37 }
 0x7e5   : > { %6403 = vrot.lane.b32.xlu0 %v6402_v41, %s6876_s9  ;;  %v4999_v36 = vunpack.c.h.bf16 %v6553_v4  ;;  %5275 = vmatpush1.bf16.msra.mxu1 %v6430_v63  ;;  %v5876_v63 = vld [vmem:[%s8523_s27] ss:$0 sm:$0xff]  ;;  %s5913_s27 = sshll.u32 %s8521_s12, 2 }
 0x7e6   : > { %v6392_v2 = vpack.i.bf16 %v4778_v39, %v4710_v57  ;;  %5276 = vmatprep.subr.bf16.mxu1 %v6435_v45 }
 0x7e8   : > { %6393 = vrot.lane.b32.xlu1 %v6392_v2, %s6878_s1  ;;  %s8390_s1 = scalar_lea.sflag [#allocation6], %s516_s6 }
 0x7e9   : > { %5277 = vmatpush1.bf16.msra.mxu1 %v6433_v0 }
 0x7ec   : > { %6398 = vrot.lane.b32.xlu1 %v6397_v53, %s6877_s11  ;;  %s8526_s11 = sld [smem:[#allocation22_spill]] }
 0x7f0   : > { %6408 = vrot.lane.b32.xlu1 %v6407_v35, %s6876_s9  ;;  %s8525_s9 = sld [smem:[#allocation35_spill]] }
 0x7f2   : > { %s5914_s4 = sshll.u32 %s8526_s11, 3 }
 0x7f3   : > { %s5610_s3 = sadd.s32 %s5914_s4, %s5913_s27 }
 0x7f4   : > { %s5915_s17 = sshll.u32 %s5610_s3, 7 }
 0x852   : > { %v6389_v52 = vpop.permute.xlu1 %6388 }
 0x853   : > { %v6384_v48 = vpop.permute.xlu0 %6383  ;;  %v6391_v55 = vunpack.i.h.bf16 %v6389_v52  ;;  %v6390_v18 = vunpack.i.l.bf16 %v6389_v52 }
 0x854   : > { %v6386_v59 = vunpack.i.h.bf16 %v6384_v48  ;;  %v6385_v5 = vunpack.i.l.bf16 %v6384_v48 }
 0x856   : > { %v4967_v29 = vsel %vm3683_vm1, %v4845_v14, %v6385_v5  ;;  %v4968_v21 = vsel %vm3683_vm1, %v4913_v16, %v6386_v59  ;;  %v6441_v59 = vld [vmem:[#allocation12 + $0x34] ss:$8 sps:$4 sm:$0xff]   ;;  %v6439_v5 = vld [vmem:[#allocation12 + $0x30] ss:$8 sps:$4 sm:$0xff]  }
 0x857   : > { %v6404_v61 = vpop.permute.xlu0 %6403  ;;  %v4971_v14 = vsel %vm3952_vm2, %v4967_v29, %v6390_v18  ;;  %v4972_v8 = vsel %vm3952_vm2, %v4968_v21, %v6391_v55  ;;  %v6447_v55 = vld [vmem:[#allocation12 + $0x54] ss:$8 sps:$4 sm:$0xff]   ;;  %v6445_v18 = vld [vmem:[#allocation12 + $0x50] ss:$8 sps:$4 sm:$0xff]   ;;  %v6455_v29 = vld [vmem:[#allocation13] sm:$0xff]  }
 0x858   : > { %v6406_v26 = vunpack.i.h.bf16 %v6404_v61  ;;  %v6405_v1 = vunpack.i.l.bf16 %v6404_v61  ;;  %v6444_v61 = vld [vmem:[#allocation12 + $0x44] ss:$8 sps:$4 sm:$0xff]  }
 0x859   : > { %v6456_v21 = vld [vmem:[#allocation13 + $0x48] sm:$0xff]  }
 0x85a   : > { %v6394_v50 = vpop.permute.xlu1 %6393 }
 0x85b   : > { %v6396_v11 = vunpack.i.h.bf16 %v6394_v50  ;;  %v6395_v44 = vunpack.i.l.bf16 %v6394_v50 }
 0x85d   : > { %v4965_v40 = vsel %vm3683_vm1, %v4709_v9, %v6395_v44  ;;  %v4966_v54 = vsel %vm3683_vm1, %v4777_v31, %v6396_v11  ;;  %v6438_v11 = vld [vmem:[#allocation12 + $0x24] ss:$8 sps:$4 sm:$0xff]   ;;  %v6436_v44 = vld [vmem:[#allocation12 + $0x20] ss:$8 sps:$4 sm:$0xff]  }
 0x85e   : > { %v6399_v51 = vpop.permute.xlu1 %6398  ;;  %5278 = vmatprep.subr.bf16.mxu1 %v6438_v11  ;;  %v5190_v11 = vsub.s32 1, %v7872_v10 }
 0x85f   : > { %v6401_v3 = vunpack.i.h.bf16 %v6399_v51  ;;  %v6400_v24 = vunpack.i.l.bf16 %v6399_v51  ;;  %5279 = vmatpush1.bf16.msra.mxu1 %v6436_v44  ;;  %v6442_v51 = vld [vmem:[#allocation12 + $0x40] ss:$8 sps:$4 sm:$0xff]  }
 0x860   : > { %5280 = vmatprep.subr.bf16.mxu1 %v6441_v59 }
 0x861   : > { %v4969_v13 = vsel %vm3952_vm2, %v4965_v40, %v6400_v24  ;;  %v4970_v30 = vsel %vm3952_vm2, %v4966_v54, %v6401_v3  ;;  %v6448_v3 = vld [vmem:[#allocation12 + $0x60] ss:$8 sps:$4 sm:$0xff]   ;;  %v6450_v24 = vld [vmem:[#allocation12 + $0x64] ss:$8 sps:$4 sm:$0xff]   ;;  %v6451_v40 = vld [vmem:[#allocation12 + $0x70] ss:$8 sps:$4 sm:$0xff]  }
 0x862   : > { %v6409_v23 = vpop.permute.xlu1 %6408  ;;  %v4974_v19 = vsel %vm4973_vm3, %v4969_v13, %v6405_v1  ;;  %v4975_v27 = vsel %vm4973_vm3, %v4970_v30, %v6406_v26  ;;  %v6453_v26 = vld [vmem:[#allocation12 + $0x74] ss:$8 sps:$4 sm:$0xff]   ;;  %v6881_v1 = vmov 0   ;;  %v6454_v54 = vld [vmem:[#allocation13 + $0x40] sm:$0xff]   ;;  %v6457_v13 = vld [vmem:[#allocation13 + $0x8] sm:$0xff]  }
 0x863   : > { %v6411_v17 = vunpack.i.h.bf16 %v6409_v23  ;;  %v6410_v7 = vunpack.i.l.bf16 %v6409_v23  ;;  %v4978_v34 = vpack.c.bf16 %v4975_v27, %v4974_v19  ;;  %5281 = vmatpush1.bf16.msra.mxu1 %v6439_v5  ;;  %5306 = vmatprep.mubr.bf16.mxu1 %v6881_v1  ;;  %v6458_v30 = vld [vmem:[#allocation13 + $0x50] sm:$0xff]   ;;  %v6460_v19 = vld [vmem:[#allocation13 + $0x58] sm:$0xff]  }
 0x864   : > { %5282 = vmatprep.subr.bf16.mxu1 %v6444_v61  ;;  %5987 = vmatprep.subr.bf16.mxu0 %v6454_v54  ;;  %v6459_v23 = vld [vmem:[#allocation13 + $0x10] sm:$0xff]   ;;  %v6461_v27 = vld [vmem:[#allocation13 + $0x18] sm:$0xff]  }
 0x865   : > { %v4977_v32 = vsel %vm4973_vm3, %v4972_v8, %v6411_v17  ;;  %v4976_v60 = vsel %vm4973_vm3, %v4971_v14, %v6410_v7  ;;  %6147 = vmatprep.mubr.bf16.mxu0 %v4978_v34  ;;  %v6462_v17 = vld [vmem:[#allocation13 + $0x60] sm:$0xff]   ;;  %v6464_v34 = vld [vmem:[#allocation13 + $0x68] sm:$0xff]  }
 0x866   : > { %v4979_v16 = vpack.c.bf16 %v4977_v32, %v4976_v60  ;;  %v6463_v7 = vld [vmem:[#allocation13 + $0x20] sm:$0xff]  }
 0x867   : > { %5283 = vmatpush1.bf16.msra.mxu1 %v6442_v51 }
 0x868   : > { %6148 = vmatmul.mubr.bf16.vlgmr.msra.gmra.mrb[12].mxu0 %v4979_v16  ;;  %5284 = vmatprep.subr.bf16.mxu1 %v6447_v55 }
 0x869   : > { %5988 = vmatpush3.bf16.msra.mxu0 %v6455_v29 }
 0x86a   : > { %5989 = vmatprep.subr.bf16.mxu0 %v6456_v21 }
 0x86b   : > { %5285 = vmatpush1.bf16.msra.mxu1 %v6445_v18 }
 0x86c   : > { %5286 = vmatprep.subr.bf16.mxu1 %v6450_v24 }
 0x86d   : > { %5990 = vmatpush3.bf16.msra.mxu0 %v6457_v13 }
 0x86e   : > { %5991 = vmatprep.subr.bf16.mxu0 %v6458_v30 }
 0x86f   : > { %5287 = vmatpush1.bf16.msra.mxu1 %v6448_v3 }
 0x870   : > { %5288 = vmatprep.subr.bf16.mxu1 %v6453_v26 }
 0x871   : > { %5992 = vmatpush3.bf16.msra.mxu0 %v6459_v23 }
 0x872   : > { %5993 = vmatprep.subr.bf16.mxu0 %v6460_v19 }
 0x873   : > { %5289 = vmatpush1.bf16.msra.mxu1 %v6451_v40 }
 0x875   : > { %5994 = vmatpush3.bf16.msra.mxu0 %v6461_v27 }
 0x876   : > { %5995 = vmatprep.subr.bf16.mxu0 %v6462_v17 }
 0x879   : > { %5996 = vmatpush3.bf16.msra.mxu0 %v6463_v7 }
 0x87a   : > { %5997 = vmatprep.subr.bf16.mxu0 %v6464_v34 }
 0x93b   : > { %v6149_v58 = vpop.f32.mrb[12].mxu0 }
 0x93c   : > { %v5082_v56 = vpop.f32.mrb[13].mxu0  ;;  %v5091_v15 = vadd.f32 %v6149_v58, %v4998_v12 }
 0x93d   : > { %v5083_v46 = vadd.f32 %v5082_v56, %v4996_v49  ;;  %v6150_v6 = vpop.f32.mrb[14].mxu0 }
 0x93e   : > { %v5085_v47 = vpop.f32.mrb[15].mxu0  ;;  %v5094_v43 = vadd.f32 %v6150_v6, %v4999_v36  ;;  %v5875_v6 = vld [vmem:[%s8522_s0] ss:$0 sm:$0xff] }
 0x93f   : > { %v5086_v22 = vadd.f32 %v5085_v47, %v4997_v42  ;;  %5099 = vadd.xlane.f32.xlu0 %v5083_v46 }
 0x941   : > { %5101 = vadd.xlane.f32.xlu1 %v5086_v22 }
 0x943   : > { %5103 = vadd.xlane.f32.xlu0 %v5091_v15 }
 0x947   : > { %5105 = vadd.xlane.f32.xlu0 %v5094_v43 }
 0x9cc   : > { %v5100_v28 = vpop.xlane.xlu0 %5099 }
 0x9cd   : > { %v5108_v62 = vmul.f32 0.0078125, %v5100_v28 }
 0x9ce   : > { %v5102_v9 = vpop.xlane.xlu1 %5101 }
 0x9cf   : > { %v8318_v57 = vsub.f32 %v5083_v46, %v5108_v62  ;;  %v5109_v33 = vmul.f32 0.0078125, %v5102_v9 }
 0x9d0   : > { %v5104_v38 = vpop.xlane.xlu0 %5103 }
 0x9d1   : > { %v8320_v41 = vsub.f32 %v5086_v22, %v5109_v33  ;;  %v5110_v53 = vmul.f32 0.0078125, %v5104_v38  ;;  %v5116_v39 = vmul.f32 %v8318_v57, %v8318_v57 }
 0x9d3   : > { %v8324_v31 = vsub.f32 %v5091_v15, %v5110_v53  ;;  %5120 = vadd.xlane.f32.xlu1 %v5116_v39  ;;  %v5117_v35 = vmul.f32 %v8320_v41, %v8320_v41 }
 0x9d4   : > { %v5106_v20 = vpop.xlane.xlu0 %5105 }
 0x9d5   : > { %v5111_v2 = vmul.f32 0.0078125, %v5106_v20  ;;  %5122 = vadd.xlane.f32.xlu0 %v5117_v35  ;;  %v5118_v52 = vmul.f32 %v8324_v31, %v8324_v31  ;;  %v6465_v35 = vld [vmem:[#allocation13 + $0x28] sm:$0xff]   ;;  %v6467_v20 = vld [vmem:[#allocation13 + $0x30] sm:$0xff]  }
 0x9d6   : > { %5998 = vmatpush3.bf16.msra.mxu0 %v6465_v35 }
 0x9d7   : > { %v8330_v48 = vsub.f32 %v5094_v43, %v5111_v2  ;;  %5124 = vadd.xlane.f32.xlu1 %v5118_v52  ;;  %v6468_v2 = vld [vmem:[#allocation13 + $0x78] sm:$0xff]  }
 0x9d8   : > { %v6469_v52 = vld [vmem:[#allocation13 + $0x38] sm:$0xff]  }
 0x9d9   : > { %v5119_v50 = vmul.f32 %v8330_v48, %v8330_v48 }
 0x9db   : > { %5126 = vadd.xlane.f32.xlu0 %v5119_v50  ;;  %v5182_v50 = vld [vmem:[%s8524_s7] sm:$0x3]  ;;  %s5613_s7 = sshll.u32 %s7281_s28, 4  ;;  %s8379_s7 = int_to_ptr.vmem [resolvable:$true] %s5613_s7 }
 0x9dc   : > { %v5191_v59 = vrot.slane %v5182_v50, %v5190_v11  ;;  %s6724_s14 = scalar_lea.vmem %s8379_s7, 512 }
 0x9dd   : > { %p6725_p0 = scmp.ne.s32.totalorder %s8379_s7, %s6724_s14 }
 0x9df   : > { %p6726_p9 = pnand %p6725_p0, %p8530_p6 }
 0x9e1   : > { %p6727_p11 = pneg %p6726_p9 }
 0xa60   : > { %v5121_v14 = vpop.xlane.xlu1 %5120 }
 0xa61   : > { %v5128_v8 = vmul.f32 0.0078125, %v5121_v14 }
 0xa62   : > { %v5123_v32 = vpop.xlane.xlu0 %5122 }
 0xa63   : > { %v5132_v60 = vadd.f32 1e-05, %v5128_v8  ;;  %v5129_v16 = vmul.f32 0.0078125, %v5123_v32 }
 0xa64   : > { %v5125_v25 = vpop.xlane.xlu1 %5124 }
 0xa65   : > { %6536 = vrsqrt.f32 %v5132_v60  ;;  %v5133_v49 = vadd.f32 1e-05, %v5129_v16  ;;  %v5130_v42 = vmul.f32 0.0078125, %v5125_v25 }
 0xa67   : > { %6538 = vrsqrt.f32 %v5133_v49  ;;  %v5134_v58 = vadd.f32 1e-05, %v5130_v42  ;;  %v5893_v42 = vld [vmem:[%s8525_s9] ss:$0 sm:$0xff]  ;;  %s8529_s9 = sld [smem:[#allocation38_spill]] }
 0xa68   : > { %v5127_v56 = vpop.xlane.xlu0 %5126 }
 0xa69   : > { %6540 = vrsqrt.f32 %v5134_v58  ;;  %v5131_v4 = vmul.f32 0.0078125, %v5127_v56 }
 0xa6b   : > { %v5135_v12 = vadd.f32 1e-05, %v5131_v4 }
 0xa6d   : > { %6542 = vrsqrt.f32 %v5135_v12  ;;  %s8385_s11 = scalar_lea.hbm %s8529_s9, %s5915_s17 }
 0xa6f   : > { %v6537_v46 = vpop.eup %6536 }
 0xa70   : > { %v5140_v47 = vmul.f32 %v6537_v46, %v8318_v57 }
 0xa71   : > { %v6539_v22 = vpop.eup %6538 }
 0xa72   : > { %v5141_v15 = vmul.f32 %v6539_v22, %v8320_v41  ;;  %v5150_v36 = vmul.f32 %v5875_v6, %v5140_v47 }
 0xa73   : > { %v6541_v43 = vpop.eup %6540 }
 0xa74   : > { %v5151_v37 = vmul.f32 %v5875_v6, %v5141_v15  ;;  %v8342_v45 = vadd.f32 %v5876_v63, %v5150_v36  ;;  %v5142_v28 = vmul.f32 %v6541_v43, %v8324_v31  ;;  %v6466_v31 = vld [vmem:[#allocation13 + $0x70] sm:$0xff]  }
 0xa75   : > { %5999 = vmatprep.subr.bf16.mxu0 %v6466_v31 }
 0xa76   : > { %v8344_v0 = vadd.f32 %v5876_v63, %v5151_v37  ;;  %v5152_v33 = vmul.f32 %v5875_v6, %v5142_v28  ;;  %6000 = vmatpush3.bf16.msra.mxu0 %v6467_v20 }
 0xa77   : > { %v6543_v62 = vpop.eup %6542  ;;  %6001 = vmatprep.subr.bf16.mxu0 %v6468_v2 }
 0xa78   : > { %v5164_v9 = vpack.c.bf16 %v8344_v0, %v8342_v45  ;;  %v5143_v57 = vmul.f32 %v6543_v62, %v8330_v48  ;;  %v8352_v53 = vadd.f32 %v5876_v63, %v5152_v33  ;;  %v5186_v48 = vsub.s32 0, %v7872_v10 }
 0xa7a   : > { %5307 = vmatmul.mubr.bf16.vlgmr.msra.gmra.mrb[24].mxu1 %v5164_v9  ;;  %v5153_v38 = vmul.f32 %v5875_v6, %v5143_v57  ;;  %6002 = vmatpush3.bf16.msra.mxu0 %v6469_v52  ;;  %v5187_v44 = vrot.slane %v5182_v50, %v5186_v48 }
 0xa7b   : > { %5316 = vmatprep.mubr.bf16.mxu1 %v6881_v1 }
 0xa7c   : > { %v8350_v41 = vadd.f32 %v5876_v63, %v5153_v38 }
 0xa7e   : > { %v5165_v39 = vpack.c.bf16 %v8350_v41, %v8352_v53 }
 0xa82   : > { %5317 = vmatmul.mubr.bf16.gmra.mrb[28].mxu1 %v5165_v39 }
 0xb4d   : > { %v5308_v5 = vpop.f32.mrb[24].mxu1 }
 0xb4e   : > { %v5309_v61 = vadd.f32 %v5308_v5, %v5187_v44  ;;  %v5310_v51 = vpop.f32.mrb[25].mxu1 }
 0xb4f   : > { %v5311_v55 = vadd.f32 %v5310_v51, %v5191_v59  ;;  %v5312_v18 = vpop.f32.mrb[26].mxu1 }
 0xb50   : > { %v5313_v3 = vadd.f32 %v5312_v18, %v5187_v44  ;;  %v5314_v24 = vpop.f32.mrb[27].mxu1  ;;  %v5327_v1 = vmax.f32 %v5309_v61, 0.0 }
 0xb51   : > { %v5315_v26 = vadd.f32 %v5314_v24, %v5191_v59  ;;  %v5328_v54 = vmax.f32 %v5311_v55, 0.0 }
 0xb52   : > { %v5329_v40 = vmax.f32 %v5313_v3, 0.0 }
 0xb53   : > { %v5330_v29 = vmax.f32 %v5315_v26, 0.0 }
 0xb54   : > { %v5335_v21 = vpack.c.bf16 %v5329_v40, %v5327_v1 }
 0xb55   : > { %v5336_v13 = vpack.c.bf16 %v5330_v29, %v5328_v54  ;;  %v5318_v30 = vpop.f32.mrb[28].mxu1 }
 0xb56   : > { %v5319_v23 = vadd.f32 %v5318_v30, %v5187_v44  ;;  %v5320_v19 = vpop.f32.mrb[29].mxu1  ;;  %v5910_v30 = vld [vmem:[%s8527_s24] ss:$0 sm:$0xff]  ;;  %s6882_s24 = smov [#allocation15]  }
 0xb57   : > { %v5321_v10 = vadd.f32 %v5320_v19, %v5191_v59  ;;  %v5322_v27 = vpop.f32.mrb[30].mxu1  ;;  %5506 = vmatprep.mubr.bf16.mxu0 %v5336_v13  ;;  %s6728_s0 = sshll.u32 %s6882_s24, 4  ;;  %s6729_s0 = int_to_ptr.vmem [resolvable:$false] %s6728_s0 }
 0xb58   : > { %v5323_v17 = vadd.f32 %v5322_v27, %v5187_v44  ;;  %v5324_v7 = vpop.f32.mrb[31].mxu1  ;;  %5507 = vmatmul.mubr.bf16.vlgmr.msra.gmra.mrb[16].mxu0 %v5335_v21  ;;  %v5331_v14 = vmax.f32 %v5319_v23, 0.0  ;;  %s6730_s5 = scalar_lea.vmem %s6729_s0, 1024  ;;  %p6731_p8 = scmp.lt.s32.totalorder %s8379_s7, %s6729_s0 }
 0xb59   : > { %v5325_v34 = vadd.f32 %v5324_v7, %v5191_v59  ;;  %v5332_v32 = vmax.f32 %v5321_v10, 0.0  ;;  %v5911_v10 = vld [vmem:[%s8528_s15] ss:$0 sm:$0xff]  ;;  %p6732_p13 = scmp.lt.s32.totalorder %s6730_s5, %s6724_s14 }
 0xb5a   : > { %v5333_v8 = vmax.f32 %v5323_v17, 0.0 }
 0xb5b   : > { %v5334_v60 = vmax.f32 %v5325_v34, 0.0  ;;  %p6733_p3 = por %p6732_p13, %p6731_p8 }
 0xb5c   : > { %v5337_v16 = vpack.c.bf16 %v5333_v8, %v5331_v14 }
 0xb5d   : > { %v5338_v25 = vpack.c.bf16 %v5334_v60, %v5332_v32  ;;  %p6734_p7 = pnand %p6733_p3, %p6727_p11 }
 0xb5f   : > { %5514 = vmatprep.mubr.bf16.mxu0 %v5338_v25 }
 0xb60   : > { %5515 = vmatmul.mubr.bf16.gmra.mrb[20].mxu0 %v5337_v16 }
 0xc2b   : > { %v6003_v49 = vpop.f32.mrb[16].mxu0 }
 0xc2c   : > { %v6004_v58 = vpop.f32.mrb[17].mxu0 }
 0xc2d   : > { %v6005_v56 = vadd.f32 %v6004_v58, %v6003_v49  ;;  %v6006_v4 = vpop.f32.mrb[18].mxu0 }
 0xc2e   : > { %v6007_v12 = vpop.f32.mrb[19].mxu0 }
 0xc2f   : > { %v5509_v46 = vadd.f32 %v6005_v56, %v5893_v42  ;;  %v6008_v6 = vadd.f32 %v6007_v12, %v6006_v4 }
 0xc31   : > { %v5512_v47 = vadd.f32 %v6008_v6, %v5893_v42  ;;  %v5523_v22 = vadd.f32 %v5509_v46, %v8342_v45 }
 0xc33   : > { %5529 = vadd.xlane.f32.xlu1 %v5523_v22  ;;  %v6009_v15 = vpop.f32.mrb[20].mxu0  ;;  %v5524_v36 = vadd.f32 %v5512_v47, %v8344_v0 }
 0xc34   : > { %v6010_v43 = vpop.f32.mrb[21].mxu0 }
 0xc35   : > { %v6011_v63 = vadd.f32 %v6010_v43, %v6009_v15  ;;  %5531 = vadd.xlane.f32.xlu0 %v5524_v36  ;;  %v6012_v37 = vpop.f32.mrb[22].mxu0 }
 0xc36   : > { %v6013_v28 = vpop.f32.mrb[23].mxu0 }
 0xc37   : > { %v5517_v62 = vadd.f32 %v6011_v63, %v5893_v42  ;;  %v6014_v9 = vadd.f32 %v6013_v28, %v6012_v37 }
 0xc39   : > { %v5520_v57 = vadd.f32 %v6014_v9, %v5893_v42  ;;  %v5525_v33 = vadd.f32 %v5517_v62, %v8352_v53 }
 0xc3b   : > { %5533 = vadd.xlane.f32.xlu1 %v5525_v33  ;;  %v5526_v38 = vadd.f32 %v5520_v57, %v8350_v41 }
 0xc3d   : > { %5535 = vadd.xlane.f32.xlu0 %v5526_v38 }
 0xcc0   : > { %v5530_v39 = vpop.xlane.xlu1 %5529 }
 0xcc1   : > { %v5537_v45 = vmul.f32 0.0078125, %v5530_v39 }
 0xcc2   : > { %v5532_v35 = vpop.xlane.xlu0 %5531 }
 0xcc3   : > { %v5541_v31 = vsub.f32 %v5523_v22, %v5537_v45  ;;  %v5538_v20 = vmul.f32 0.0078125, %v5532_v35 }
 0xcc5   : > { %v5542_v0 = vsub.f32 %v5524_v36, %v5538_v20  ;;  %v5545_v2 = vmul.f32 %v5541_v31, %v5541_v31 }
 0xcc7   : > { %5549 = vadd.xlane.f32.xlu1 %v5545_v2  ;;  %v5546_v52 = vmul.f32 %v5542_v0, %v5542_v0 }
 0xcc8   : > { %v5534_v48 = vpop.xlane.xlu1 %5533 }
 0xcc9   : > { %v5539_v50 = vmul.f32 0.0078125, %v5534_v48  ;;  %5551 = vadd.xlane.f32.xlu0 %v5546_v52 }
 0xcca   : > { %v5536_v11 = vpop.xlane.xlu0 %5535 }
 0xccb   : > { %v5543_v44 = vsub.f32 %v5525_v33, %v5539_v50  ;;  %v5540_v59 = vmul.f32 0.0078125, %v5536_v11 }
 0xccd   : > { %v5544_v53 = vsub.f32 %v5526_v38, %v5540_v59  ;;  %v5547_v5 = vmul.f32 %v5543_v44, %v5543_v44 }
 0xccf   : > { %5553 = vadd.xlane.f32.xlu1 %v5547_v5  ;;  %v5548_v41 = vmul.f32 %v5544_v53, %v5544_v53 }
 0xcd1   : > { %5555 = vadd.xlane.f32.xlu0 %v5548_v41 }
 0xd54   : > { %v5550_v61 = vpop.xlane.xlu1 %5549 }
 0xd55   : > { %v5557_v51 = vmul.f32 0.0078125, %v5550_v61 }
 0xd56   : > { %v5552_v55 = vpop.xlane.xlu0 %5551 }
 0xd57   : > { %v5561_v18 = vadd.f32 1e-05, %v5557_v51  ;;  %v5558_v3 = vmul.f32 0.0078125, %v5552_v55 }
 0xd59   : > { %6544 = vrsqrt.f32 %v5561_v18  ;;  %v5562_v24 = vadd.f32 1e-05, %v5558_v3 }
 0xd5b   : > { %6546 = vrsqrt.f32 %v5562_v24 }
 0xd5c   : > { %v5554_v26 = vpop.xlane.xlu1 %5553 }
 0xd5d   : > { %v5559_v1 = vmul.f32 0.0078125, %v5554_v26 }
 0xd5e   : > { %v5556_v40 = vpop.xlane.xlu0 %5555 }
 0xd5f   : > { %v5563_v54 = vadd.f32 1e-05, %v5559_v1  ;;  %v5560_v29 = vmul.f32 0.0078125, %v5556_v40 }
 0xd61   : > { %6548 = vrsqrt.f32 %v5563_v54  ;;  %v5564_v21 = vadd.f32 1e-05, %v5560_v29 }
 0xd63   : > { %v6545_v13 = vpop.eup %6544  ;;  %6550 = vrsqrt.f32 %v5564_v21 }
 0xd64   : > { %v5569_v23 = vmul.f32 %v6545_v13, %v5541_v31 }
 0xd65   : > { %v6547_v19 = vpop.eup %6546 }
 0xd66   : > { %v5579_v27 = vmul.f32 %v5910_v30, %v5569_v23  ;;  %v5570_v17 = vmul.f32 %v6547_v19, %v5542_v0 }
 0xd68   : > { %v5589_v7 = vadd.f32 %v5911_v10, %v5579_v27  ;;  %v5580_v34 = vmul.f32 %v5910_v30, %v5570_v17 }
 0xd6a   : > { %5593 = vst [vmem:[%s7281_s28] sm:$0xff] %v5589_v7  ;;  %v5590_v14 = vadd.f32 %v5911_v10, %v5580_v34 }
 0xd6b   : > { %v6549_v8 = vpop.eup %6548 }
 0xd6c   : > { %5594 = vst [vmem:[%s7281_s28 + $0x8] sm:$0xff] %v5590_v14  ;;  %v5571_v32 = vmul.f32 %v6549_v8, %v5543_v44 }
 0xd6d   : > { %v6551_v60 = vpop.eup %6550 }
 0xd6e   : > { %v5581_v16 = vmul.f32 %v5910_v30, %v5571_v32  ;;  %v5572_v25 = vmul.f32 %v6551_v60, %v5544_v53 }
 0xd70   : > { %v5591_v49 = vadd.f32 %v5911_v10, %v5581_v16  ;;  %v5582_v42 = vmul.f32 %v5910_v30, %v5572_v25 }
 0xd72   : > { %5595 = vst [vmem:[%s7281_s28 + $0x10] sm:$0xff] %v5591_v49  ;;  %v5592_v58 = vadd.f32 %v5911_v10, %v5582_v42 }
 0xd74   : > { %5596 = vst [vmem:[%s7281_s28 + $0x18] sm:$0xff] %v5592_v58 }
 0xd75   : > { %6737 = shalt.err (!%p6734_p7)
}
 0xd76   : > { %s6738_s6 = scalar_lea.hbm %s8385_s11, 512  ;;  %s6742_s27 = scalar_lea.hbm %s8529_s9, 2048 }
 0xd77   : > { %p6739_p1 = scmp.ne.s32.totalorder %s8385_s11, %s6738_s6  ;;  %p6743_p2 = scmp.lt.u32.totalorder %s8385_s11, %s8529_s9 }
 0xd78   : > { %p6744_p12 = scmp.lt.u32.totalorder %s6742_s27, %s6738_s6  ;;  %p6746_p0 = scmp.lt.u32.totalorder %s6738_s6, %s8385_s11 }
 0xd79   : > { %p6740_p4 = pnand %p6739_p1, %p8530_p6 }
 0xd7a   : > { %p6745_p5 = por %p6744_p12, %p6743_p2 }
 0xd7b   : > { %p6741_p10 = pneg %p6740_p4 }
 0xd7c   : > { %p6747_p9 = por %p6746_p0, %p6745_p5 }
 0xd7e   : > { %p6748_p11 = pnand %p6747_p9, %p6741_p10 }
 0xd80   : > { %6751 = shalt.err (!%p6748_p11)
}
 0xd81   : > { %s6883_s17 = smov 128   ;;  %s6884_s12 = smov 8  }
 0xd82   : > { %6205 = dma.vmem_to_hbm [thread:$0]  (%p8530_p6), %s8379_s7, 512, %s8385_s11, %s8390_s1, %s6883_s17, %s6883_s17, %s6884_s12  }
 0xd83 PF: > { %p6242_p8 = scmp.ge.s32.totalorder %s6858_s13, 2  ;;  %s5628_s8 = sand.u32 1, %s6818_s21  }
 0xd84   : > { %p8531_p13 = scmp.ne.s32.totalorder %s8514_s2, 0  ;;  %s5629_s14 = scalar_lea.sflag [#allocation6], %s5628_s8 }
 0xd86   : > { %p6228_p3 = pnand %p6242_p8, %p8531_p13 }
 0xd88   : > { %6813 = dma.done.wait (!%p6228_p3), %s5629_s14, 512  }
 0xd89   : > { %6815 = vsyncadd (!%p6228_p3), %s5629_s14, 4294966784  ;;  %s31_s13 = sadd.s32 1, %s6858_s13   ;;  %s8532_s10 = sld [smem:[#allocation25_spill]] }
 0xd8a   : > { %p28_p7 = scmp.ge.s32.totalorder %s31_s13, 6   ;;  %s8533_s21 = smov %s6822_s22 }
 0xd8b   : > { %s8534_s22 = smov %s6826_s23  ;;  %s8535_s23 = smov %s7204_s16 }
 0xd8c   : > { %s8536_s24 = smov %s6834_s25  ;;  %s8537_s25 = smov %s6838_s26 }
 0xd8d   : > { %s8538_s26 = smov %s7201_s19  ;;  %s8539_s27 = smov %s6850_s29 }
 0xd8e   : > { %s8540_s28 = smov %s6854_s30  ;;  %s8541_s29 = smov %s8544_s20 }
 0xd8f   : > { %s8542_s30 = smov %s8532_s10  ;;  %30 = sbr.rel (!%p28_p7) target bundleno = 26 (0x1a), region = 138 }
 0xd96   :  { %5634 = vsyncpa [#allocation5], 1 }
 0xd97   :  { %5636 = vsyncpa [#allocation5 + $0x1], 1 }
 0xd98   :  { %5637 = vsyncpa [#allocation8], 1 }
 0xd99   :  { %5638 = vsyncpa [#allocation11], 1 }
 0xd9a   :  { %5639 = vsyncpa [#allocation14], 1 }
 0xd9b   :  { %5640 = vsyncpa [#allocation6], 1 }
 0xd9c   :  { %5642 = vsyncpa [#allocation6 + $0x1], 1 }

// kernel: tpu_custom_call.1
= control target key start
LH: loop header
LB: loop body
LE: loop exit
PB: predicated region body
PF: predicated region fallthrough
CT: control target
= control target key end

     0   :  { %s8451_s0 = inlined_call_operand.hbm [shape: bf16[2,64,128], index: 0, kind: input, shape index: {}]   ;;  %s8452_s1 = inlined_call_operand.hbm [shape: bf16[128,128], index: 1, kind: input, shape index: {}]   ;;  %s8453_s2 = inlined_call_operand.hbm [shape: bf16[128,256], index: 2, kind: input, shape index: {}]   ;;  %s8454_s3 = inlined_call_operand.hbm [shape: bf16[128,128], index: 3, kind: input, shape index: {}]   ;;  %s8455_s4 = inlined_call_operand.vmem [shape: f32[1,128], index: 4, kind: input, shape index: {}]   ;;  %s8456_s5 = inlined_call_operand.vmem [shape: f32[1,128], index: 5, kind: input, shape index: {}]   ;;  %s8457_s6 = inlined_call_operand.hbm [shape: bf16[128,256], index: 6, kind: input, shape index: {}]   ;;  %s8458_s7 = inlined_call_operand.vmem [shape: f32[1,256], index: 7, kind: input, shape index: {}]   ;;  %s8459_s8 = inlined_call_operand.hbm [shape: bf16[256,128], index: 8, kind: input, shape index: {}]   ;;  %s8460_s9 = inlined_call_operand.vmem [shape: f32[1,128], index: 9, kind: input, shape index: {}]   ;;  %s8461_s10 = inlined_call_operand.vmem [shape: f32[1,128], index: 10, kind: input, shape index: {}]   ;;  %s8462_s11 = inlined_call_operand.vmem [shape: f32[1,128], index: 11, kind: input, shape index: {}]   ;;  %s8463_s12 = inlined_call_operand.hbm [shape: f32[2,64,128], index: 12, kind: output, shape index: {}]  }
   0x1   :  { %8478 = sst [smem:[#allocation26_spill]] %s8451_s0 }
   0x2   :  { %8479 = sst [smem:[#allocation27_spill]] %s8452_s1 }
   0x3   :  { %8480 = sst [smem:[#allocation28_spill]] %s8453_s2 }
   0x4   :  { %8481 = sst [smem:[#allocation29_spill]] %s8454_s3 }
   0x5   :  { %8482 = sst [smem:[#allocation30_spill]] %s8455_s4 }
   0x6   :  { %8483 = sst [smem:[#allocation31_spill]] %s8456_s5 }
   0x7   :  { %8484 = sst [smem:[#allocation32_spill]] %s8457_s6 }
   0x8   :  { %8485 = sst [smem:[#allocation33_spill]] %s8458_s7 }
   0x9   :  { %8486 = sst [smem:[#allocation34_spill]] %s8459_s8 }
   0xa   :  { %8487 = sst [smem:[#allocation35_spill]] %s8460_s9 }
   0xb   :  { %8488 = sst [smem:[#allocation36_spill]] %s8461_s10 }
   0xc   :  { %8489 = sst [smem:[#allocation37_spill]] %s8462_s11 }
   0xd   :  { %8490 = sst [smem:[#allocation38_spill]] %s8463_s12 }
   0xe   :  { %17 = vsyncpa [#allocation5], 0 }
   0xf   :  { %19 = vsyncpa [#allocation5 + $0x1], 0 }
  0x10   :  { %20 = vsyncpa [#allocation8], 0 }
  0x11   :  { %21 = vsyncpa [#allocation11], 0 }
  0x12   :  { %22 = vsyncpa [#allocation14], 0 }
  0x13   :  { %23 = vsyncpa [#allocation6], 0 }
  0x14   :  { %25 = vsyncpa [#allocation6 + $0x1], 0  ;;  %s6950_s21 = smov 0   ;;  %s6952_s22 = smov 0  }
  0x15   :  { %s6954_s23 = smov 0   ;;  %s6956_s24 = smov 0  }
  0x16   :  { %s6958_s25 = smov 0   ;;  %s6960_s26 = smov 0  }
  0x17   :  { %s6962_s27 = smov 0   ;;  %s6964_s28 = smov 0  }
  0x18   :  { %s6966_s29 = smov 0   ;;  %s6968_s30 = smov 0  }
  0x19   :  { %s6970_s13 = smov 0  }
  0x1a LB: > { %8491 = sst [smem:[#allocation21_spill]] %s6842_s27  ;;  %s5750_s14 = sadd.s32 4294967295, %s6858_s13   ;;  %s6858_s13 = sphi %s6970_s13, %s31_s13   ;;  %s6854_s30 = sphi %s6968_s30, %s8542_s30   ;;  %s6850_s29 = sphi %s6966_s29, %s8541_s29   ;;  %s6846_s28 = sphi %s6964_s28, %s8540_s28   ;;  %s6842_s27 = sphi %s6962_s27, %s8539_s27   ;;  %s6838_s26 = sphi %s6960_s26, %s8538_s26   ;;  %s6834_s25 = sphi %s6958_s25, %s8537_s25   ;;  %s6830_s24 = sphi %s6956_s24, %s8536_s24   ;;  %s6826_s23 = sphi %s6954_s23, %s8535_s23   ;;  %s6822_s22 = sphi %s6952_s22, %s8534_s22   ;;  %s6818_s21 = sphi %s6950_s21, %s8533_s21  }
  0x1b   : > { %8492 = sst [smem:[#allocation22_spill]] %s6846_s28  ;;  %p5752_p0 = scmp.ge.s32.totalorder %s6858_s13, 1 }
  0x1c   : > { %p7007_p1 = scmp.eq.s32.totalorder %s5750_s14, 0  ;;  %p7011_p2 = scmp.eq.s32.totalorder %s5750_s14, 3 }
  0x1d   : > { %p333_p3 = scmp.lt.s32.totalorder %s6858_s13, 5  ;;  %s6860_s18 = smov [#allocation7]  }
  0x1e   : > { %s8493_s15 = scalar_select %p7007_p1, 1, 0 }
  0x1f   : > { %s8494_s16 = scalar_select %p7011_p2, 1, 0 }
  0x20   : > { %p7016_p4 = pnand %p5752_p0, %p333_p3  ;;  %s345_s19 = sshll.u32 %s6860_s18, 4  ;;  %s7020_s19 = int_to_ptr.vmem [resolvable:$true] %s345_s19 }
  0x21   : > { %8495 = sst [smem:[#allocation23_spill]] %s8494_s16  ;;  %s6861_s14 = smov [#allocation10]  }
  0x22   : > { %s8496_s17 = scalar_select %p7016_p4, 1, 0 }
  0x23   : > { %p6207_p5 = pneg %p7016_p4  ;;  %s371_s12 = sshll.u32 %s6861_s14, 4  ;;  %s7030_s12 = int_to_ptr.vmem [resolvable:$true] %s371_s12 }
  0x24   : > { %8497 = sst [smem:[#allocation24_spill]] %s8496_s17  ;;  %s6862_s11 = smov [#allocation9]  }
  0x25   : > { %p7026_p6 = pnand %p6207_p5, %p7007_p1  ;;  %s358_s10 = sshll.u32 %s6862_s11, 4  ;;  %s7032_s10 = int_to_ptr.vmem [resolvable:$true] %s358_s10 }
  0x26   : > { %s8499_s1 = sld [smem:[#allocation27_spill]] }
  0x27   : > { %p7042_p8 = pneg %p7026_p6 }
  0x2c   : > { %s6554_s9 = scalar_lea.hbm %s8499_s1, 1024 }
  0x2d   : > { %p6555_p7 = scmp.ne.s32.totalorder %s8499_s1, %s6554_s9  ;;  %p6561_p11 = scmp.lt.u32.totalorder %s6554_s9, %s8499_s1 }
  0x2f   : > { %p6557_p9 = pnand %p7042_p8, %p6555_p7 }
  0x31   : > { %p6558_p10 = pneg %p6557_p9 }
  0x33   : > { %p6563_p12 = pnand %p6561_p11, %p6558_p10 }
  0x35   : > { %6566 = shalt.err (!%p6563_p12)
}
  0x36   : > { %s6567_s5 = scalar_lea.vmem %s7020_s19, 1024  ;;  %p6575_p5 = scmp.lt.s32.totalorder %s7020_s19, %s7020_s19 }
  0x37   : > { %p6568_p13 = scmp.ne.s32.totalorder %s7020_s19, %s6567_s5  ;;  %p6576_p4 = scmp.lt.s32.totalorder %s6567_s5, %s6567_s5 }
  0x39   : > { %p6570_p0 = pnand %p6568_p13, %p7042_p8  ;;  %p6577_p7 = por %p6576_p4, %p6575_p5 }
  0x3b   : > { %p6571_p3 = pneg %p6570_p0 }
  0x3d   : > { %p6578_p9 = pnand %p6577_p7, %p6571_p3 }
  0x3f   : > { %6581 = shalt.err (!%p6578_p9)
}
  0x40   : > { %s8470_s7 = smov 64   ;;  %s8472_s9 = smov 4  }
  0x41   : > { %6210 = dma.hbm_to_vmem [thread:$0]  (!%p7026_p6), %s8499_s1, 1024, %s7020_s19, [#allocation8], %s8470_s7, %s8470_s7, %s8472_s9  }
  0x42   : > { %s8501_s3 = sld [smem:[#allocation29_spill]] }
  0x48   : > { %s6582_s5 = scalar_lea.hbm %s8501_s3, 1024 }
  0x49   : > { %p6583_p4 = scmp.ne.s32.totalorder %s8501_s3, %s6582_s5  ;;  %p6589_p12 = scmp.lt.u32.totalorder %s6582_s5, %s8501_s3 }
  0x4b   : > { %p6585_p10 = pnand %p6583_p4, %p7042_p8 }
  0x4d   : > { %p6586_p11 = pneg %p6585_p10 }
  0x4f   : > { %p6591_p13 = pnand %p6589_p12, %p6586_p11 }
  0x51   : > { %6594 = shalt.err (!%p6591_p13)
}
  0x52   : > { %s6595_s19 = scalar_lea.vmem %s7030_s12, 1024  ;;  %p6603_p7 = scmp.lt.s32.totalorder %s7030_s12, %s7030_s12 }
  0x53   : > { %p6596_p0 = scmp.ne.s32.totalorder %s7030_s12, %s6595_s19  ;;  %p6604_p9 = scmp.lt.s32.totalorder %s6595_s19, %s6595_s19 }
  0x55   : > { %p6598_p3 = pnand %p6596_p0, %p7042_p8  ;;  %p6605_p4 = por %p6604_p9, %p6603_p7 }
  0x57   : > { %p6599_p5 = pneg %p6598_p3 }
  0x59   : > { %p6606_p10 = pnand %p6605_p4, %p6599_p5 }
  0x5b   : > { %6609 = shalt.err (!%p6606_p10)
}
  0x5c   : > { %6216 = dma.hbm_to_vmem [thread:$0]  (!%p7026_p6), %s8501_s3, 1024, %s7030_s12, [#allocation11], %s8470_s7, %s8470_s7, %s8472_s9  }
  0x5d   : > { %s8502_s2 = sld [smem:[#allocation28_spill]] }
  0x63   : > { %s6610_s28 = scalar_lea.hbm %s8502_s2, 2048 }
  0x64   : > { %p6611_p11 = scmp.ne.s32.totalorder %s8502_s2, %s6610_s28  ;;  %p6617_p0 = scmp.lt.u32.totalorder %s6610_s28, %s8502_s2 }
  0x66   : > { %p6613_p12 = pnand %p6611_p11, %p7042_p8 }
  0x68   : > { %p6614_p13 = pneg %p6613_p12 }
  0x6a   : > { %p6619_p3 = pnand %p6617_p0, %p6614_p13 }
  0x6c   : > { %6622 = shalt.err (!%p6619_p3)
}
  0x6d   : > { %s6623_s12 = scalar_lea.vmem %s7032_s10, 2048  ;;  %p6631_p4 = scmp.lt.s32.totalorder %s7032_s10, %s7032_s10 }
  0x6e   : > { %p6624_p5 = scmp.ne.s32.totalorder %s7032_s10, %s6623_s12  ;;  %p6632_p10 = scmp.lt.s32.totalorder %s6623_s12, %s6623_s12 }
  0x70   : > { %p6626_p7 = pnand %p6624_p5, %p7042_p8  ;;  %p6633_p11 = por %p6632_p10, %p6631_p4 }
  0x72   : > { %p6627_p9 = pneg %p6626_p7 }
  0x74   : > { %p6634_p12 = pnand %p6633_p11, %p6627_p9 }
  0x76   : > { %6637 = shalt.err (!%p6634_p12)
}
  0x77   : > { %s6865_s19 = smov 128   ;;  %s6866_s0 = smov 8  }
  0x78   : > { %6213 = dma.hbm_to_vmem [thread:$0]  (!%p7026_p6), %s8502_s2, 2048, %s7032_s10, [#allocation8], %s6865_s19, %s6865_s19, %s6866_s0  }
  0x79   : > { %s6867_s17 = smov [#allocation12]   ;;  %s6868_s18 = smov [#allocation13]  }
  0x7a   : > { %s390_s28 = sshll.u32 %s6867_s17, 4  ;;  %s406_s11 = sshll.u32 %s6868_s18, 4  ;;  %s391_s28 = int_to_ptr.vmem [resolvable:$true] %s390_s28  ;;  %s7115_s11 = int_to_ptr.vmem [resolvable:$true] %s406_s11 }
  0x7b   : > { %s8503_s6 = sld [smem:[#allocation32_spill]] }
  0x81   : > { %s6638_s12 = scalar_lea.hbm %s8503_s6, 2048 }
  0x82   : > { %p6639_p13 = scmp.ne.s32.totalorder %s8503_s6, %s6638_s12  ;;  %p6645_p5 = scmp.lt.u32.totalorder %s6638_s12, %s8503_s6 }
  0x84   : > { %p6641_p0 = pnand %p6639_p13, %p7042_p8 }
  0x86   : > { %p6642_p3 = pneg %p6641_p0 }
  0x88   : > { %p6647_p7 = pnand %p6645_p5, %p6642_p3 }
  0x8a   : > { %6650 = shalt.err (!%p6647_p7)
}
  0x8b   : > { %s6651_s16 = scalar_lea.vmem %s391_s28, 2048  ;;  %p6659_p11 = scmp.lt.s32.totalorder %s391_s28, %s391_s28 }
  0x8c   : > { %p6652_p9 = scmp.ne.s32.totalorder %s391_s28, %s6651_s16  ;;  %p6660_p12 = scmp.lt.s32.totalorder %s6651_s16, %s6651_s16 }
  0x8e   : > { %p6654_p4 = pnand %p6652_p9, %p7042_p8  ;;  %p6661_p2 = por %p6660_p12, %p6659_p11 }
  0x90   : > { %p6655_p10 = pneg %p6654_p4 }
  0x92   : > { %p6662_p1 = pnand %p6661_p2, %p6655_p10 }
  0x94   : > { %6665 = shalt.err (!%p6662_p1)
}
  0x95   : > { %6219 = dma.hbm_to_vmem [thread:$0]  (!%p7026_p6), %s8503_s6, 2048, %s391_s28, [#allocation11], %s6865_s19, %s6865_s19, %s6866_s0  }
  0x96   : > { %s8504_s8 = sld [smem:[#allocation34_spill]] }
  0x9c   : > { %s6666_s14 = scalar_lea.hbm %s8504_s8, 2048 }
  0x9d   : > { %p6667_p13 = scmp.ne.s32.totalorder %s8504_s8, %s6666_s14  ;;  %p6673_p1 = scmp.lt.u32.totalorder %s6666_s14, %s8504_s8 }
  0x9f   : > { %p6669_p0 = pnand %p6667_p13, %p7042_p8 }
  0xa1   : > { %p6670_p3 = pneg %p6669_p0 }
  0xa3   : > { %p6675_p2 = pnand %p6673_p1, %p6670_p3 }
  0xa5   : > { %6678 = shalt.err (!%p6675_p2)
}
  0xa6   : > { %s6679_s19 = scalar_lea.vmem %s7115_s11, 2048  ;;  %p6687_p4 = scmp.lt.s32.totalorder %s7115_s11, %s7115_s11 }
  0xa7   : > { %p6680_p5 = scmp.ne.s32.totalorder %s7115_s11, %s6679_s19  ;;  %p6688_p10 = scmp.lt.s32.totalorder %s6679_s19, %s6679_s19 }
  0xa9   : > { %p6682_p7 = pnand %p6680_p5, %p7042_p8  ;;  %p6689_p11 = por %p6688_p10, %p6687_p4 }
  0xab   : > { %p6683_p9 = pneg %p6682_p7 }
  0xad   : > { %p6690_p12 = pnand %p6689_p11, %p6683_p9 }
  0xaf   : > { %6693 = shalt.err (!%p6690_p12)
}
  0xb0   : > { %s8505_s0 = smov 4   ;;  %s8506_s28 = smov 64  }
  0xb1   : > { %6222 = dma.hbm_to_vmem [thread:$0]  (!%p7026_p6), %s8504_s8, 2048, %s7115_s11, [#allocation14], %s8506_s28, %s8506_s28, %s8505_s0  }
  0xb2   : > { %s5751_s4 = sadd.s32 4294967294, %s6858_s13   ;;  %s40_s20 = sadd.s32 1, %s6850_s29 }
  0xb3   : > { %p41_p8 = scmp.ge.s32.totalorder %s40_s20, 2  ;;  %s43_s9 = sadd.s32 1, %s6854_s30 }
  0xb4   : > { %s50_s17 = sadd.s32 1, %s6838_s26  ;;  %p57_p13 = scmp.ne.s32.totalorder %s6838_s26, %s6834_s25 }
  0xb5   : > { %s8544_s20 = smov (%p41_p8, %s40_s20), 0  ;;  %s8507_s18 = sld [smem:[#allocation23_spill]] }
  0xb6   : > { %s8546_s9 = smov (!%p41_p8, %s43_s9), %s6854_s30  ;;  %p58_p0 = scmp.eq.s32.totalorder %s6858_s13, 0 }
  0xb7   : > { %p63_p6 = scmp.ne.s32.totalorder %s6834_s25, %s6830_s24  ;;  %p45_p3 = scmp.ge.s32.totalorder %s8546_s9, 2 }
  0xb8   : > { %s305_s11 = ssub.s32 %s6850_s29, %s8544_s20  ;;  %p7175_p1 = por %p58_p0, %p57_p13 }
  0xb9   : > { %p8509_p2 = scmp.ne.s32.totalorder %s8493_s15, 0  ;;  %s8548_s9 = smov (%p45_p3, %s8546_s9), 0 }
  0xba   : > { %8511 = sst [smem:[#allocation25_spill]] %s8548_s9  ;;  %s309_s12 = sadd.s32 1, %s6826_s23 }
  0xbb   : > { %p7181_p5 = por %p8509_p2, %p63_p6  ;;  %p319_p7 = scmp.ne.s32.totalorder %s6826_s23, %s6822_s22 }
  0xbc   : > { %s47_s24 = ssub.s32 %s6854_s30, %s8548_s9  ;;  %p325_p9 = scmp.ne.s32.totalorder %s6822_s22, %s6818_s21 }
  0xbd   : > { %p48_p4 = scmp.eq.s32.totalorder %s47_s24, 0  ;;  %s306_s27 = sor.u32 %s305_s11, %s47_s24 }
  0xbe   : > { %p307_p10 = scmp.eq.s32.totalorder %s306_s27, 0  ;;  %p8512_p11 = scmp.ne.s32.totalorder %s8507_s18, 0 }
  0xbf   : > { %s7201_s19 = scalar_select %p48_p4, %s6838_s26, %s50_s17  }
  0xc0   : > { %p7196_p12 = por %p8512_p11, %p319_p7  ;;  %p326_p8 = scmp.eq.s32.totalorder %s5751_s4, 3 }
  0xc1   : > { %s7204_s16 = scalar_select %p307_p10, %s6826_s23, %s309_s12  }
  0xc2   : > { %s8513_s10 = scalar_select %p7196_p12, 1, 0 }
  0xc3   : > { %p6236_p13 = scmp.lt.s32.totalorder %s6858_s13, 4  ;;  %s429_s7 = sand.u32 1, %s6838_s26  }
  0xc4   : > { %s5918_s1 = sshll.u32 %s6854_s30, 9  ;;  %p7209_p0 = por %p326_p8, %p325_p9 }
  0xc5   : > { %s5759_s3 = sshll.u32 %s429_s7, 5  ;;  %s8515_s18 = sld [smem:[#allocation26_spill]] }
  0xc6   : > { %s8514_s2 = scalar_select %p7209_p0, 1, 0 }
  0xc7   : > { %p7220_p6 = pnand %p6236_p13, %p7175_p1  ;;  %s433_s17 = scalar_lea.vmem [#allocation4], %s5759_s3 }
  0xc8   : > { %s440_s12 = sshll.u32 %s433_s17, 4  ;;  %s7226_s6 = scalar_lea.sflag [#allocation5], %s429_s7  ;;  %s7224_s12 = int_to_ptr.vmem [resolvable:$true] %s440_s12 }
  0xc9   : > { %p6696_p2 = pneg %p7220_p6 }
  0xcb   : > { %s7216_s27 = scalar_lea.hbm %s8515_s18, %s5918_s1  ;;  %s6699_s24 = scalar_lea.hbm %s8515_s18, 1024 }
  0xcc   : > { %s6694_s11 = scalar_lea.hbm %s7216_s27, 512  ;;  %p6700_p1 = scmp.lt.u32.totalorder %s7216_s27, %s8515_s18 }
  0xcd   : > { %p6695_p3 = scmp.ne.s32.totalorder %s7216_s27, %s6694_s11  ;;  %p6701_p4 = scmp.lt.u32.totalorder %s6699_s24, %s6694_s11 }
  0xce   : > { %p6703_p11 = scmp.lt.u32.totalorder %s6694_s11, %s7216_s27 }
  0xcf   : > { %p6697_p7 = pnand %p6696_p2, %p6695_p3  ;;  %p6702_p10 = por %p6701_p4, %p6700_p1 }
  0xd1   : > { %p6698_p9 = pneg %p6697_p7  ;;  %p6704_p8 = por %p6703_p11, %p6702_p10 }
  0xd3   : > { %p6705_p13 = pnand %p6704_p8, %p6698_p9 }
  0xd5   : > { %6708 = shalt.err (!%p6705_p13)
}
  0xd6   : > { %s6709_s3 = scalar_lea.vmem %s7224_s12, 512  ;;  %s6869_s7 = smov [#allocation4]  }
  0xd7   : > { %p6710_p3 = scmp.ne.s32.totalorder %s7224_s12, %s6709_s3  ;;  %s6714_s17 = sshll.u32 %s6869_s7, 4  ;;  %s6715_s17 = int_to_ptr.vmem [resolvable:$false] %s6714_s17 }
  0xd8   : > { %s6716_s8 = scalar_lea.vmem %s6715_s17, 1024  ;;  %p6717_p12 = scmp.lt.s32.totalorder %s7224_s12, %s6715_s17 }
  0xd9   : > { %p6712_p7 = pnand %p6710_p3, %p6696_p2  ;;  %p6718_p1 = scmp.lt.s32.totalorder %s6716_s8, %s6709_s3 }
  0xdb   : > { %p6713_p0 = pneg %p6712_p7  ;;  %p6719_p4 = por %p6718_p1, %p6717_p12 }
  0xdd   : > { %p6720_p10 = pnand %p6719_p4, %p6713_p0 }
  0xdf   : > { %6723 = shalt.err (!%p6720_p10)
}
  0xe0   : > { %6226 = dma.hbm_to_vmem [thread:$0]  (!%p7220_p6), %s7216_s27, 512, %s7224_s12, %s7226_s6, %s8506_s28, %s8506_s28, %s8505_s0  }
  0xe1   : > { %s8517_s9 = sld [smem:[#allocation24_spill]] }
  0xe7   : > { %p8518_p2 = scmp.ne.s32.totalorder %s8517_s9, 0 }
  0xe8   : > { %s454_s11 = sand.u32 (!%p8518_p2), 1, %s6834_s25  }
  0xe9   : > { %452 = sbr.rel (%p8518_p2) target bundleno = 3459 (0xd83), region = 68  ;;  %s5763_s1 = sshll.u32 (!%p8518_p2), %s454_s11, 5 }
  0xea   : > { %s455_s14 = scalar_lea.sflag (!%p8518_p2), [#allocation5], %s454_s11  ;;  %s7260_s24 = scalar_lea.vmem (!%p8518_p2), [#allocation4], %s5763_s1 }
  0xf0   : > { %6797 = dma.done.wait (%p7181_p5), %s455_s14, 512  }
  0xf1   : > { %6799 = vsyncadd (%p7181_p5), %s455_s14, 4294966784  ;;  %p8519_p12 = scmp.ne.s32.totalorder %s8493_s15, 0 }
  0xf3   : > { %6801 = dma.done.wait (%p8519_p12), [#allocation8], 3072  }
  0xf4   : > { %6803 = vsyncadd (%p8519_p12), [#allocation8], 4294964224 }
  0xf5   : > { %6805 = dma.done.wait (%p8519_p12), [#allocation11], 3072  }
  0xf6   : > { %6807 = vsyncadd (%p8519_p12), [#allocation11], 4294964224 }
  0xf7   : > { %6809 = dma.done.wait (%p8519_p12), [#allocation14], 2048  }
  0xf8   : > { %6811 = vsyncadd (%p8519_p12), [#allocation14], 4294965248  ;;  %s516_s6 = sand.u32 1, %s6822_s22   ;;  %s8520_s5 = sld [smem:[#allocation21_spill]] }
  0xf9   : > { %s5769_s0 = sshll.u32 %s516_s6, 5 }
  0xfa   : > { %s7281_s28 = scalar_lea.vmem [#allocation15], %s5769_s0 }
  0xfe   : > { %p5770_p5 = scmp.ne.s32.totalorder %s8520_s5, 0 }
  0xff   : > { %v6354_v0 = vld [vmem:[#allocation9 + $0x4] ss:$8 sps:$4 sm:$0xff] (!%p5770_p5)   ;;  %v6356_v1 = vld [vmem:[#allocation9] ss:$8 sps:$4 sm:$0xff] (!%p5770_p5)   ;;  %v6870_v2 = vmov (!%p5770_p5), 0   ;;  %v6379_v18 = vld [vmem:[%s7260_s24 + $0x10] sm:$0xff] (!%p5770_p5)   ;;  %v836_v47 = vlaneseq (!%p5770_p5) }
 0x100   : > { %524 = sbr.rel (%p5770_p5) target bundleno = 779 (0x30b), region = 96  ;;  %685 = vmatprep.mubr.bf16.mxu0 (!%p5770_p5), %v6870_v2  ;;  %705 = vmatprep.mubr.bf16.mxu1 (!%p5770_p5), %v6870_v2  ;;  %v6357_v3 = vld [vmem:[#allocation9 + $0x14] ss:$8 sps:$4 sm:$0xff] (!%p5770_p5)   ;;  %v6359_v4 = vld [vmem:[#allocation9 + $0x10] ss:$8 sps:$4 sm:$0xff] (!%p5770_p5)   ;;  %v6378_v17 = vld [vmem:[%s7260_s24] sm:$0xff] (!%p5770_p5)   ;;  %v7337_v56 = vpack.i.b16 (!%p5770_p5), %v6870_v2, %v6870_v2 }
 0x101   : > { %653 = vmatprep.subr.bf16.mxu0 (!%p5770_p5), %v6354_v0  ;;  %6151 = vmatprep.subr.bf16.mxu1 (!%p5770_p5), %v6354_v0  ;;  %v6360_v5 = vld [vmem:[#allocation9 + $0x24] ss:$8 sps:$4 sm:$0xff] (!%p5770_p5)   ;;  %v6362_v6 = vld [vmem:[#allocation9 + $0x20] ss:$8 sps:$4 sm:$0xff] (!%p5770_p5)   ;;  %v6363_v7 = vld [vmem:[#allocation9 + $0x34] ss:$8 sps:$4 sm:$0xff] (!%p5770_p5)  }
 0x102   : > { %654 = vmatpush1.bf16.msra.mxu0 (!%p5770_p5), %v6356_v1  ;;  %6159 = vmatpush1.bf16.msra.mxu1 (!%p5770_p5), %v6356_v1  ;;  %v6365_v8 = vld [vmem:[#allocation9 + $0x30] ss:$8 sps:$4 sm:$0xff] (!%p5770_p5)   ;;  %v6366_v9 = vld [vmem:[#allocation9 + $0x44] ss:$8 sps:$4 sm:$0xff] (!%p5770_p5)   ;;  %v6368_v10 = vld [vmem:[#allocation9 + $0x40] ss:$8 sps:$4 sm:$0xff] (!%p5770_p5)  }
 0x103   : > { %655 = vmatprep.subr.bf16.mxu0 (!%p5770_p5), %v6357_v3  ;;  %6152 = vmatprep.subr.bf16.mxu1 (!%p5770_p5), %v6357_v3  ;;  %v6369_v11 = vld [vmem:[#allocation9 + $0x54] ss:$8 sps:$4 sm:$0xff] (!%p5770_p5)   ;;  %v6371_v12 = vld [vmem:[#allocation9 + $0x50] ss:$8 sps:$4 sm:$0xff] (!%p5770_p5)   ;;  %v6372_v13 = vld [vmem:[#allocation9 + $0x64] ss:$8 sps:$4 sm:$0xff] (!%p5770_p5)  }
 0x104   : > { %v6374_v14 = vld [vmem:[#allocation9 + $0x60] ss:$8 sps:$4 sm:$0xff] (!%p5770_p5)   ;;  %v6375_v15 = vld [vmem:[#allocation9 + $0x74] ss:$8 sps:$4 sm:$0xff] (!%p5770_p5)   ;;  %v6377_v16 = vld [vmem:[#allocation9 + $0x70] ss:$8 sps:$4 sm:$0xff] (!%p5770_p5)  }
 0x105   : > { %v6380_v19 = vld [vmem:[%s7260_s24 + $0x18] sm:$0xff] (!%p5770_p5)   ;;  %v6381_v20 = vld [vmem:[%s7260_s24 + $0x8] sm:$0xff] (!%p5770_p5)   ;;  %s6871_s15 = smov (!%p5770_p5), 96   ;;  %s6872_s27 = smov (!%p5770_p5), 64   ;;  %v6874_v45 = vmov (!%p5770_p5), 1983009808  }
 0x106   : > { %656 = vmatpush1.bf16.msra.mxu0 (!%p5770_p5), %v6359_v4  ;;  %6160 = vmatpush1.bf16.msra.mxu1 (!%p5770_p5), %v6359_v4  ;;  %s6873_s4 = smov (!%p5770_p5), 32   ;;  %v834_v46 = vunpack.c.l.s4 (!%p5770_p5), %v6874_v45  ;;  %v6875_v52 = vmov (!%p5770_p5), 1934713408   ;;  %v837_v55 = vshrl.u32 (!%p5770_p5), %v836_v47, 7  ;;  %vm1824_vm0 = vcmask (!%p5770_p5), 261120  }
 0x107   : > { %657 = vmatprep.subr.bf16.mxu0 %v6360_v5  ;;  %6153 = vmatprep.subr.bf16.mxu1 %v6360_v5  ;;  %v865_v53 = vunpack.c.l.s4 %v6875_v52 }
 0x108   : > { %v835_v54 = vunpack.c.0.s8 %v834_v46 }
 0x109   : > { %v866_v0 = vunpack.c.0.s8 %v865_v53 }
 0x10a   : > { %658 = vmatpush1.bf16.msra.mxu0 %v6362_v6  ;;  %6161 = vmatpush1.bf16.msra.mxu1 %v6362_v6  ;;  %v7341_v1 = vsub.s32 %v835_v54, %v837_v55 }
 0x10b   : > { %659 = vmatprep.subr.bf16.mxu0 %v6363_v7  ;;  %6154 = vmatprep.subr.bf16.mxu1 %v6363_v7 }
 0x10e   : > { %660 = vmatpush1.bf16.msra.mxu0 %v6365_v8  ;;  %6162 = vmatpush1.bf16.msra.mxu1 %v6365_v8 }
 0x10f   : > { %661 = vmatprep.subr.bf16.mxu0 %v6366_v9  ;;  %6155 = vmatprep.subr.bf16.mxu1 %v6366_v9 }
 0x112   : > { %662 = vmatpush1.bf16.msra.mxu0 %v6368_v10  ;;  %6163 = vmatpush1.bf16.msra.mxu1 %v6368_v10 }
 0x113   : > { %663 = vmatprep.subr.bf16.mxu0 %v6369_v11  ;;  %6156 = vmatprep.subr.bf16.mxu1 %v6369_v11 }
 0x116   : > { %664 = vmatpush1.bf16.msra.mxu0 %v6371_v12  ;;  %6164 = vmatpush1.bf16.msra.mxu1 %v6371_v12 }
 0x117   : > { %665 = vmatprep.subr.bf16.mxu0 %v6372_v13  ;;  %6157 = vmatprep.subr.bf16.mxu1 %v6372_v13  ;;  %v7351_v13 = vsub.s32 %v866_v0, %v837_v55 }
 0x11a   : > { %666 = vmatpush1.bf16.msra.mxu0 %v6374_v14  ;;  %6165 = vmatpush1.bf16.msra.mxu1 %v6374_v14 }
 0x11b   : > { %667 = vmatprep.subr.bf16.mxu0 %v6375_v15  ;;  %6158 = vmatprep.subr.bf16.mxu1 %v6375_v15 }
 0x11e   : > { %668 = vmatpush1.bf16.msra.mxu0 %v6377_v16  ;;  %6166 = vmatpush1.bf16.msra.mxu1 %v6377_v16 }
 0x121   : > { %686 = vmatmul.mubr.bf16.vlgmr.msra.gmra.mrb[0].mxu0 %v6378_v17  ;;  %706 = vmatmul.mubr.bf16.vlgmr.msra.gmra.mrb[0].mxu1 %v6379_v18 }
 0x122   : > { %715 = vmatprep.mubr.bf16.mxu1 %v6870_v2  ;;  %695 = vmatprep.mubr.bf16.mxu0 %v6870_v2 }
 0x129   : > { %716 = vmatmul.mubr.bf16.gmra.mrb[4].mxu1 %v6380_v19  ;;  %696 = vmatmul.mubr.bf16.gmra.mrb[4].mxu0 %v6381_v20 }
 0x1f4   : > { %v687_v21 = vpop.f32.mrb[0].mxu0  ;;  %v707_v22 = vpop.f32.mrb[0].mxu1 }
 0x1f5   : > { %v689_v23 = vpop.f32.mrb[1].mxu0  ;;  %v709_v24 = vpop.f32.mrb[1].mxu1 }
 0x1f6   : > { %v691_v25 = vpop.f32.mrb[2].mxu0  ;;  %v711_v26 = vpop.f32.mrb[2].mxu1 }
 0x1f7   : > { %v7292_v27 = vpack.c.bf16 %v691_v25, %v687_v21  ;;  %v728_v28 = vpack.c.bf16 %v711_v26, %v707_v22  ;;  %v713_v29 = vpop.f32.mrb[3].mxu1  ;;  %v693_v30 = vpop.f32.mrb[3].mxu0 }
 0x1f8   : > { %v7294_v31 = vpack.c.bf16 %v713_v29, %v709_v24  ;;  %v7296_v32 = vpack.c.bf16 %v693_v30, %v689_v23 }
 0x1f9   : > { %742 = vrot.lane.b32.xlu1 %v728_v28, %s6871_s15  ;;  %738 = vrot.lane.b32.xlu0 %v7292_v27, %s6871_s15  ;;  %v804_v58 = vshrl.u32 %v728_v28, 16  ;;  %v766_v59 = vshrl.u32 %v7292_v27, 16 }
 0x1fa   : > { %v1873_v6 = vshrl.u32 %v7296_v32, 16  ;;  %v1905_v2 = vshrl.u32 %v7294_v31, 16 }
 0x1fc   : > { %v717_v33 = vpop.f32.mrb[4].mxu1  ;;  %v697_v34 = vpop.f32.mrb[4].mxu0 }
 0x1fd   : > { %v719_v35 = vpop.f32.mrb[5].mxu1  ;;  %746 = vrot.lane.b32.xlu0 %v7292_v27, %s6872_s27  ;;  %v699_v36 = vpop.f32.mrb[5].mxu0 }
 0x1fe   : > { %v721_v37 = vpop.f32.mrb[6].mxu1  ;;  %v701_v38 = vpop.f32.mrb[6].mxu0 }
 0x1ff   : > { %v7302_v39 = vpack.c.bf16 %v721_v37, %v717_v33  ;;  %v7304_v40 = vpack.c.bf16 %v701_v38, %v697_v34  ;;  %v723_v41 = vpop.f32.mrb[7].mxu1  ;;  %v703_v42 = vpop.f32.mrb[7].mxu0 }
 0x200   : > { %v7306_v43 = vpack.c.bf16 %v723_v41, %v719_v35  ;;  %v7308_v44 = vpack.c.bf16 %v703_v42, %v699_v36 }
 0x201   : > { %744 = vrot.lane.b32.xlu1 %v7302_v39, %s6871_s15  ;;  %750 = vrot.lane.b32.xlu0 %v728_v28, %s6872_s27  ;;  %v820_v9 = vshrl.u32 %v7302_v39, 16  ;;  %v788_v14 = vshrl.u32 %v7304_v40, 16 }
 0x202   : > { %v1889_v17 = vshrl.u32 %v7308_v44, 16  ;;  %v1921_v18 = vshrl.u32 %v7306_v43, 16 }
 0x205   : > { %754 = vrot.lane.b32.xlu0 %v7292_v27, %s6873_s4  ;;  %748 = vrot.lane.b32.xlu1 %v7304_v40, %s6872_s27 }
 0x209   : > { %758 = vrot.lane.b32.xlu0 %v728_v28, %s6873_s4  ;;  %752 = vrot.lane.b32.xlu1 %v7302_v39, %s6872_s27 }
 0x20d   : > { %1845 = vrot.lane.b32.xlu0 %v7296_v32, %s6871_s15  ;;  %756 = vrot.lane.b32.xlu1 %v7304_v40, %s6873_s4 }
 0x211   : > { %1849 = vrot.lane.b32.xlu0 %v7294_v31, %s6871_s15  ;;  %760 = vrot.lane.b32.xlu1 %v7302_v39, %s6873_s4 }
 0x215   : > { %1853 = vrot.lane.b32.xlu0 %v7296_v32, %s6872_s27  ;;  %1847 = vrot.lane.b32.xlu1 %v7308_v44, %s6871_s15 }
 0x219   : > { %1857 = vrot.lane.b32.xlu0 %v7294_v31, %s6872_s27  ;;  %1851 = vrot.lane.b32.xlu1 %v7306_v43, %s6871_s15 }
 0x21d   : > { %1861 = vrot.lane.b32.xlu0 %v7296_v32, %s6873_s4  ;;  %1855 = vrot.lane.b32.xlu1 %v7308_v44, %s6872_s27 }
 0x221   : > { %740 = vrot.lane.b32.xlu0 %v7304_v40, %s6871_s15  ;;  %1859 = vrot.lane.b32.xlu1 %v7306_v43, %s6872_s27 }
 0x225   : > { %1865 = vrot.lane.b32.xlu0 %v7294_v31, %s6873_s4  ;;  %1863 = vrot.lane.b32.xlu1 %v7308_v44, %s6873_s4 }
 0x229   : > { %1867 = vrot.lane.b32.xlu1 %v7306_v43, %s6873_s4 }
 0x26b   : > { %v743_v48 = vpop.permute.xlu1 %742  ;;  %v739_v49 = vpop.permute.xlu0 %738 }
 0x26c   : > { %v805_v50 = vshrl.u32 %v743_v48, 16  ;;  %v767_v51 = vshrl.u32 %v739_v49, 16  ;;  %v802_v57 = vpack.i.b16 %v743_v48, %v728_v28  ;;  %v764_v61 = vpack.i.b16 %v739_v49, %v7292_v27 }
 0x26e   : > { %v806_v62 = vpack.i.b16 %v805_v50, %v804_v58  ;;  %v768_v63 = vpack.i.b16 %v767_v51, %v766_v59  ;;  %v1096_v3 = vcombine.high %v802_v57, %v7337_v56  ;;  %v832_v7 = vcombine.high %v764_v61, %v7337_v56 }
 0x26f   : > { %v747_v60 = vpop.permute.xlu0 %746  ;;  %v7355_v15 = vrot.slane %v802_v57, %v7341_v1  ;;  %v839_v21 = vrot.slane %v764_v61, %v7341_v1 }
 0x270   : > { %v1162_v11 = vcombine.high %v806_v62, %v7337_v56  ;;  %v898_v12 = vcombine.high %v768_v63, %v7337_v56  ;;  %v7360_v19 = vrot.slane %v1096_v3, %v7341_v1  ;;  %v7363_v20 = vrot.slane %v806_v62, %v7341_v1 }
 0x271   : > { %v846_v24 = vrot.slane %v832_v7, %v7341_v1  ;;  %v905_v25 = vrot.slane %v768_v63, %v7341_v1  ;;  %v774_v33 = vshrl.u32 %v747_v60, 16 }
 0x272   : > { %v7373_v29 = vrot.slane %v1162_v11, %v7341_v1  ;;  %v912_v30 = vrot.slane %v898_v12, %v7341_v1 }
 0x273   : > { %v745_v4 = vpop.permute.xlu1 %744  ;;  %v751_v5 = vpop.permute.xlu0 %750 }
 0x274   : > { %v818_v8 = vpack.i.b16 %v745_v4, %v7302_v39  ;;  %v821_v10 = vshrl.u32 %v745_v4, 16  ;;  %v812_v36 = vshrl.u32 %v751_v5, 16 }
 0x276   : > { %v822_v16 = vpack.i.b16 %v821_v10, %v820_v9  ;;  %v1228_v22 = vcombine.high %v818_v8, %v7337_v56  ;;  %v7377_v35 = vrot.slane %v818_v8, %v7341_v1 }
 0x277   : > { %v755_v23 = vpop.permute.xlu0 %754  ;;  %v7370_v28 = vpop.permute.xlu1 %748 }
 0x278   : > { %v1294_v26 = vcombine.high %v822_v16, %v7337_v56  ;;  %v772_v27 = vpack.i.b16 %v755_v23, %v747_v60  ;;  %v775_v34 = vshrl.u32 %v755_v23, 16  ;;  %v7382_v39 = vrot.slane %v1228_v22, %v7341_v1 }
 0x279   : > { %v7385_v41 = vrot.slane %v822_v16, %v7341_v1  ;;  %v796_v45 = vshrl.u32 %v7370_v28, 16 }
 0x27a   : > { %v847_v37 = vcombine.high %v772_v27, %v7337_v56  ;;  %v854_v38 = vrot.slane %v772_v27, %v7341_v1  ;;  %v776_v42 = vpack.i.b16 %v775_v34, %v774_v33  ;;  %v7389_v47 = vrot.slane %v1294_v26, %v7341_v1 }
 0x27b   : > { %v759_v46 = vpop.permute.xlu0 %758 }
 0x27c   : > { %v861_v48 = vrot.slane %v847_v37, %v7341_v1  ;;  %v862_v49 = vcombine.low %v839_v21, %v854_v38  ;;  %v863_v50 = vcombine.high %v839_v21, %v854_v38  ;;  %v913_v51 = vcombine.high %v776_v42, %v7337_v56 }
 0x27d   : > { %v920_v52 = vrot.slane %v776_v42, %v7341_v1  ;;  %v810_v53 = vpack.i.b16 %v759_v46, %v751_v5  ;;  %v813_v54 = vshrl.u32 %v759_v46, 16 }
 0x27e   : > { %v870_v55 = vrot.slane %v862_v49, %v7351_v13  ;;  %v877_v57 = vrot.slane %v863_v50, %v7351_v13  ;;  %v878_v58 = vcombine.low %v846_v24, %v861_v48  ;;  %v879_v59 = vcombine.high %v846_v24, %v861_v48 }
 0x27f   : > { %v927_v60 = vrot.slane %v913_v51, %v7341_v1  ;;  %v928_v61 = vcombine.low %v905_v25, %v920_v52  ;;  %v929_v62 = vcombine.high %v905_v25, %v920_v52  ;;  %v814_v63 = vpack.i.b16 %v813_v54, %v812_v36 }
 0x280   : > { %v886_v0 = vrot.slane %v878_v58, %v7351_v13  ;;  %v893_v3 = vrot.slane %v879_v59, %v7351_v13  ;;  %v1360_v4 = vcombine.low %v870_v55, %v877_v57  ;;  %v5791_v7 = vcombine.high %v870_v55, %v877_v57 }
 0x281   : > { %v936_v5 = vrot.slane %v928_v61, %v7351_v13  ;;  %v943_v8 = vrot.slane %v929_v62, %v7351_v13  ;;  %v944_v9 = vcombine.low %v912_v30, %v927_v60  ;;  %v945_v10 = vcombine.high %v912_v30, %v927_v60 }
 0x282   : > { %v1367_v11 = vrot.slane %v1360_v4, %v7341_v1  ;;  %v1375_v12 = vrot.slane %v5791_v7, %v7341_v1  ;;  %v1376_v16 = vcombine.low %v886_v0, %v893_v3  ;;  %v5792_v21 = vcombine.high %v886_v0, %v893_v3  ;;  %v7423_v0 = vpop.permute.xlu1 %752 }
 0x283   : > { %v952_v22 = vrot.slane %v944_v9, %v7351_v13  ;;  %v959_v23 = vrot.slane %v945_v10, %v7351_v13  ;;  %v1410_v24 = vcombine.low %v936_v5, %v943_v8  ;;  %v5793_v25 = vcombine.high %v936_v5, %v943_v8 }
 0x284   : > { %v1383_v26 = vrot.slane %v1376_v16, %v7341_v1  ;;  %v1391_v27 = vrot.slane %v5792_v21, %v7341_v1  ;;  %v1392_v33 = vcombine.low %v1367_v11, %v1375_v12  ;;  %v1111_v34 = vcombine.high %v810_v53, %v7337_v56 }
 0x285   : > { %v1417_v30 = vrot.slane %v1410_v24, %v7341_v1  ;;  %v1425_v36 = vrot.slane %v5793_v25, %v7341_v1  ;;  %v1426_v37 = vcombine.low %v952_v22, %v959_v23  ;;  %v5794_v38 = vcombine.high %v952_v22, %v959_v23  ;;  %v1846_v24 = vpop.permute.xlu0 %1845 }
 0x286   : > { %v1399_v42 = vrot.slane %v1392_v33, %v7351_v13  ;;  %v1400_v46 = vcombine.low %v1383_v26, %v1391_v27  ;;  %v1118_v48 = vrot.slane %v810_v53, %v7341_v1  ;;  %v1125_v49 = vrot.slane %v1111_v34, %v7341_v1 }
 0x287   : > { %v1433_v50 = vrot.slane %v1426_v37, %v7341_v1  ;;  %v1441_v51 = vrot.slane %v5794_v38, %v7341_v1  ;;  %v1442_v52 = vcombine.low %v1417_v30, %v1425_v36  ;;  %v1177_v54 = vcombine.high %v814_v63, %v7337_v56  ;;  %v757_v38 = vpop.permute.xlu1 %756 }
 0x288   : > { %v1407_v55 = vrot.slane %v1400_v46, %v7351_v13  ;;  %v1126_v57 = vcombine.low %v7355_v15, %v1118_v48  ;;  %v1127_v58 = vcombine.high %v7355_v15, %v1118_v48  ;;  %v1142_v59 = vcombine.low %v7360_v19, %v1125_v49 }
 0x289   : > { %v1449_v60 = vrot.slane %v1442_v52, %v7351_v13  ;;  %v1450_v53 = vcombine.low %v1433_v50, %v1441_v51  ;;  %v1143_v61 = vcombine.high %v7360_v19, %v1125_v49  ;;  %v1184_v62 = vrot.slane %v814_v63, %v7341_v1 }
 0x28a   : > { %v1408_v3 = vcombine.low %v1399_v42, %v1407_v55  ;;  %v1409_v4 = vcombine.high %v1399_v42, %v1407_v55  ;;  %v1134_v7 = vrot.slane %v1126_v57, %v7351_v13  ;;  %v1141_v5 = vrot.slane %v1127_v58, %v7351_v13 }
 0x28b   : > { %v1457_v8 = vrot.slane %v1450_v53, %v7351_v13  ;;  %v1150_v15 = vrot.slane %v1142_v59, %v7351_v13  ;;  %v1157_v9 = vrot.slane %v1143_v61, %v7351_v13  ;;  %v1191_v10 = vrot.slane %v1177_v54, %v7341_v1  ;;  %v1850_v61 = vpop.permute.xlu0 %1849 }
 0x28c   : > { %v1764_v11 = vshrl.u32 %v1408_v3, 16  ;;  %v1772_v19 = vshrl.u32 %v1409_v4, 16  ;;  %v1192_v63 = vcombine.low %v7363_v20, %v1184_v62  ;;  %v1193_v12 = vcombine.high %v7363_v20, %v1184_v62 }
 0x28d   : > { %v1458_v16 = vcombine.low %v1449_v60, %v1457_v8  ;;  %v1459_v21 = vcombine.high %v1449_v60, %v1457_v8  ;;  %v1208_v22 = vcombine.low %v7373_v29, %v1191_v10  ;;  %v1209_v23 = vcombine.high %v7373_v29, %v1191_v10  ;;  %v761_v10 = vpop.permute.xlu1 %760 }
 0x28e   : > { %v1200_v25 = vrot.slane %v1192_v63, %v7351_v13  ;;  %v1207_v26 = vrot.slane %v1193_v12, %v7351_v13  ;;  %v1560_v27 = vcombine.low %v1134_v7, %v1141_v5  ;;  %v5799_v33 = vcombine.high %v1134_v7, %v1141_v5 }
 0x28f   : > { %v1762_v34 = vpack.i.b16 %v1458_v16, %v1408_v3  ;;  %v1765_v30 = vshrl.u32 %v1458_v16, 16  ;;  %v1770_v36 = vpack.i.b16 %v1459_v21, %v1409_v4  ;;  %v1773_v37 = vshrl.u32 %v1459_v21, 16 }
 0x290   : > { %v1216_v20 = vrot.slane %v1208_v22, %v7351_v13  ;;  %v1223_v42 = vrot.slane %v1209_v23, %v7351_v13  ;;  %v1567_v46 = vrot.slane %v1560_v27, %v7341_v1  ;;  %v1575_v29 = vrot.slane %v5799_v33, %v7341_v1 }
 0x291   : > { %v1766_v48 = vpack.i.b16 %v1765_v30, %v1764_v11  ;;  %v1774_v49 = vpack.i.b16 %v1773_v37, %v1772_v19  ;;  %1825 = vst.msk [vmem:[#allocation2] sm:$0xff] %vm1824_vm0, %v1762_v34  ;;  %1833 = vst.msk [vmem:[#allocation2 + $0x40] sm:$0xff] %vm1824_vm0, %v1770_v36  ;;  %v1576_v50 = vcombine.low %v1150_v15, %v1157_v9  ;;  %v828_v7 = vshrl.u32 %v7423_v0, 16 }
 0x292   : > { %v5800_v51 = vcombine.high %v1150_v15, %v1157_v9  ;;  %v1592_v52 = vcombine.low %v1567_v46, %v1575_v29  ;;  %v1610_v54 = vcombine.low %v1200_v25, %v1207_v26  ;;  %v5801_v55 = vcombine.high %v1200_v25, %v1207_v26  ;;  %v1848_v29 = vpop.permute.xlu1 %1847 }
 0x293   : > { %v1626_v57 = vcombine.low %v1216_v20, %v1223_v42  ;;  %1829 = vst.msk [vmem:[#allocation2 + $0x20] sm:$0xff] %vm1824_vm0, %v1766_v48  ;;  %1837 = vst.msk [vmem:[#allocation2 + $0x60] sm:$0xff] %vm1824_vm0, %v1774_v49  ;;  %v1583_v58 = vrot.slane %v1576_v50, %v7341_v1  ;;  %v5802_v60 = vcombine.high %v1216_v20, %v1223_v42  ;;  %v1874_v15 = vshrl.u32 %v1846_v24, 16 }
 0x294   : > { %v1591_v59 = vrot.slane %v5800_v51, %v7341_v1  ;;  %v1871_v53 = vpack.i.b16 %v1846_v24, %v7296_v32  ;;  %v1617_v62 = vrot.slane %v1610_v54, %v7341_v1  ;;  %v1625_v3 = vrot.slane %v5801_v55, %v7341_v1 }
 0x295   : > { %v1633_v4 = vrot.slane %v1626_v57, %v7341_v1  ;;  %v1641_v8 = vrot.slane %v5802_v60, %v7341_v1  ;;  %v1599_v11 = vrot.slane %v1592_v52, %v7351_v13  ;;  %v794_v63 = vpack.i.b16 %v757_v38, %v7370_v28 }
 0x296   : > { %v1600_v5 = vcombine.low %v1583_v58, %v1591_v59  ;;  %v1933_v9 = vcombine.high %v1871_v53, %v7337_v56  ;;  %v1642_v19 = vcombine.low %v1617_v62, %v1625_v3  ;;  %v797_v12 = vshrl.u32 %v757_v38, 16 }
 0x297   : > { %v1650_v21 = vcombine.low %v1633_v4, %v1641_v8  ;;  %v1875_v22 = vpack.i.b16 %v1874_v15, %v1873_v6  ;;  %v7460_v23 = vrot.slane %v1871_v53, %v7341_v1  ;;  %v979_v27 = vcombine.high %v794_v63, %v7337_v56  ;;  %v7471_v6 = vpop.permute.xlu0 %1853 }
 0x298   : > { %v1607_v16 = vrot.slane %v1600_v5, %v7351_v13  ;;  %v1649_v24 = vrot.slane %v1642_v19, %v7351_v13  ;;  %v7464_v25 = vrot.slane %v1933_v9, %v7341_v1  ;;  %v798_v26 = vpack.i.b16 %v797_v12, %v796_v45  ;;  %v1852_v19 = vpop.permute.xlu1 %1851 }
 0x299   : > { %v1657_v30 = vrot.slane %v1650_v21, %v7351_v13  ;;  %v1999_v32 = vcombine.high %v1875_v22, %v7337_v56  ;;  %v7474_v36 = vrot.slane %v1875_v22, %v7341_v1  ;;  %v7477_v37 = vrot.slane %v794_v63, %v7341_v1 }
 0x29a   : > { %v1608_v33 = vcombine.low %v1599_v11, %v1607_v16  ;;  %v1609_v34 = vcombine.high %v1599_v11, %v1607_v16  ;;  %v7480_v38 = vrot.slane %v979_v27, %v7341_v1  ;;  %v1045_v28 = vcombine.high %v798_v26, %v7337_v56 }
 0x29b   : > { %v1658_v45 = vcombine.low %v1649_v24, %v1657_v30  ;;  %v1659_v20 = vcombine.high %v1649_v24, %v1657_v30  ;;  %v7484_v46 = vrot.slane %v798_v26, %v7341_v1  ;;  %v7487_v49 = vrot.slane %v1999_v32, %v7341_v1  ;;  %v7502_v5 = vpop.permute.xlu0 %1857 }
 0x29c   : > { %v1796_v42 = vshrl.u32 %v1608_v33, 16  ;;  %v1804_v48 = vshrl.u32 %v1609_v34, 16  ;;  %v1903_v50 = vpack.i.b16 %v1850_v61, %v7294_v31  ;;  %v1906_v51 = vshrl.u32 %v1850_v61, 16 }
 0x29d   : > { %v1794_v52 = vpack.i.b16 %v1658_v45, %v1608_v33  ;;  %v1797_v54 = vshrl.u32 %v1658_v45, 16  ;;  %v1802_v55 = vpack.i.b16 %v1659_v20, %v1609_v34  ;;  %v1805_v57 = vshrl.u32 %v1659_v20, 16 }
 0x29e   : > { %v7491_v58 = vrot.slane %v1045_v28, %v7341_v1  ;;  %v1907_v59 = vpack.i.b16 %v1906_v51, %v1905_v2  ;;  %v2197_v60 = vcombine.high %v1903_v50, %v7337_v56  ;;  %v826_v53 = vpack.i.b16 %v761_v10, %v7423_v0 }
 0x29f   : > { %v1798_v62 = vpack.i.b16 %v1797_v54, %v1796_v42  ;;  %v1806_v3 = vpack.i.b16 %v1805_v57, %v1804_v48  ;;  %1827 = vst.msk [vmem:[#allocation2 + $0x10] sm:$0xff] %vm1824_vm0, %v1794_v52  ;;  %1835 = vst.msk [vmem:[#allocation2 + $0x50] sm:$0xff] %vm1824_vm0, %v1802_v55  ;;  %v7500_v61 = vrot.slane %v1903_v50, %v7341_v1  ;;  %v829_v4 = vshrl.u32 %v761_v10, 16 }
 0x2a0   : > { %v7505_v8 = vrot.slane %v2197_v60, %v7341_v1  ;;  %v2263_v31 = vcombine.high %v1907_v59, %v7337_v56  ;;  %v1243_v2 = vcombine.high %v826_v53, %v7337_v56  ;;  %v1881_v0 = vshrl.u32 %v7471_v6, 16 }
 0x2a1   : > { %1831 = vst.msk [vmem:[#allocation2 + $0x30] sm:$0xff] %vm1824_vm0, %v1798_v62  ;;  %1839 = vst.msk [vmem:[#allocation2 + $0x70] sm:$0xff] %vm1824_vm0, %v1806_v3  ;;  %v7513_v15 = vrot.slane %v1907_v59, %v7341_v1  ;;  %v830_v9 = vpack.i.b16 %v829_v4, %v828_v7  ;;  %v1250_v10 = vrot.slane %v826_v53, %v7341_v1  ;;  %v1890_v11 = vshrl.u32 %v1848_v29, 16 }
 0x2a2   : > { %v7517_v63 = vrot.slane %v2263_v31, %v7341_v1  ;;  %v1257_v12 = vrot.slane %v1243_v2, %v7341_v1  ;;  %v1887_v16 = vpack.i.b16 %v1848_v29, %v7308_v44  ;;  %v1913_v21 = vshrl.u32 %v7502_v5, 16 }
 0x2a3   : > { %v1258_v22 = vcombine.low %v7377_v35, %v1250_v10  ;;  %v1259_v24 = vcombine.high %v7377_v35, %v1250_v10  ;;  %v1309_v26 = vcombine.high %v830_v9, %v7337_v56  ;;  %v1316_v7 = vrot.slane %v830_v9, %v7341_v1  ;;  %v1862_v10 = vpop.permute.xlu0 %1861 }
 0x2a4   : > { %v1274_v27 = vcombine.low %v7382_v39, %v1257_v12  ;;  %v1275_v33 = vcombine.high %v7382_v39, %v1257_v12  ;;  %v1891_v34 = vpack.i.b16 %v1890_v11, %v1889_v17  ;;  %v1919_v30 = vpack.i.b16 %v1852_v19, %v7306_v43 }
 0x2a5   : > { %v1266_v32 = vrot.slane %v1258_v22, %v7351_v13  ;;  %v1273_v28 = vrot.slane %v1259_v24, %v7351_v13  ;;  %v1323_v45 = vrot.slane %v1309_v26, %v7341_v1  ;;  %v1324_v35 = vcombine.low %v7385_v41, %v1316_v7 }
 0x2a6   : > { %v1282_v20 = vrot.slane %v1274_v27, %v7351_v13  ;;  %v1289_v42 = vrot.slane %v1275_v33, %v7351_v13  ;;  %v1325_v29 = vcombine.high %v7385_v41, %v1316_v7  ;;  %v2065_v39 = vcombine.high %v1887_v16, %v7337_v56 }
 0x2a7   : > { %v1332_v44 = vrot.slane %v1324_v35, %v7351_v13  ;;  %v1340_v17 = vcombine.low %v7389_v47, %v1323_v45  ;;  %v1341_v48 = vcombine.high %v7389_v47, %v1323_v45  ;;  %v1660_v50 = vcombine.low %v1266_v32, %v1273_v28 }
 0x2a8   : > { %v1339_v51 = vrot.slane %v1325_v29, %v7351_v13  ;;  %v5803_v52 = vcombine.high %v1266_v32, %v1273_v28  ;;  %v1676_v54 = vcombine.low %v1282_v20, %v1289_v42  ;;  %v5804_v55 = vcombine.high %v1282_v20, %v1289_v42 }
 0x2a9   : > { %v1348_v57 = vrot.slane %v1340_v17, %v7351_v13  ;;  %v1355_v59 = vrot.slane %v1341_v48, %v7351_v13  ;;  %v1667_v41 = vrot.slane %v1660_v50, %v7341_v1  ;;  %v7547_v60 = vrot.slane %v1887_v16, %v7341_v1 }
 0x2aa   : > { %v1675_v53 = vrot.slane %v5803_v52, %v7341_v1  ;;  %v1683_v62 = vrot.slane %v1676_v54, %v7341_v1  ;;  %v1691_v47 = vrot.slane %v5804_v55, %v7341_v1  ;;  %v1710_v3 = vcombine.low %v1332_v44, %v1339_v51  ;;  %v7580_v52 = vpop.permute.xlu1 %1855  ;;  %v741_v54 = vpop.permute.xlu0 %740 }
 0x2ab   : > { %v5805_v4 = vcombine.high %v1332_v44, %v1339_v51  ;;  %v1726_v31 = vcombine.low %v1348_v57, %v1355_v59  ;;  %v5806_v2 = vcombine.high %v1348_v57, %v1355_v59  ;;  %v2131_v9 = vcombine.high %v1891_v34, %v7337_v56 }
 0x2ac   : > { %v1692_v11 = vcombine.low %v1667_v41, %v1675_v53  ;;  %v1700_v12 = vcombine.low %v1683_v62, %v1691_v47  ;;  %v1717_v22 = vrot.slane %v1710_v3, %v7341_v1  ;;  %v7555_v16 = vrot.slane %v2065_v39, %v7341_v1 }
 0x2ad   : > { %v1725_v24 = vrot.slane %v5805_v4, %v7341_v1  ;;  %v1733_v26 = vrot.slane %v1726_v31, %v7341_v1  ;;  %v1741_v7 = vrot.slane %v5806_v2, %v7341_v1  ;;  %v7561_v27 = vrot.slane %v1891_v34, %v7341_v1 }
 0x2ae   : > { %v1699_v33 = vrot.slane %v1692_v11, %v7351_v13  ;;  %v1707_v32 = vrot.slane %v1700_v12, %v7351_v13  ;;  %v1922_v28 = vshrl.u32 %v1852_v19, 16  ;;  %v2329_v45 = vcombine.high %v1919_v30, %v7337_v56 }
 0x2af   : > { %v1742_v35 = vcombine.low %v1717_v22, %v1725_v24  ;;  %v1750_v20 = vcombine.low %v1733_v26, %v1741_v7  ;;  %v7567_v42 = vrot.slane %v2131_v9, %v7341_v1  ;;  %v1879_v29 = vpack.i.b16 %v1862_v10, %v7471_v6 }
 0x2b0   : > { %v1708_v39 = vcombine.low %v1699_v33, %v1707_v32  ;;  %v1709_v44 = vcombine.high %v1699_v33, %v1707_v32  ;;  %v7572_v34 = vpack.i.b16 %v1922_v28, %v1921_v18  ;;  %v7575_v17 = vrot.slane %v1919_v30, %v7341_v1 }
 0x2b1   : > { %v1749_v19 = vrot.slane %v1742_v35, %v7351_v13  ;;  %v1757_v48 = vrot.slane %v1750_v20, %v7351_v13  ;;  %v1882_v50 = vshrl.u32 %v1862_v10, 16  ;;  %v1948_v51 = vcombine.high %v1879_v29, %v7337_v56 }
 0x2b2   : > { %v1812_v55 = vshrl.u32 %v1708_v39, 16  ;;  %v1820_v57 = vshrl.u32 %v1709_v44, 16  ;;  %v7583_v59 = vrot.slane %v2329_v45, %v7341_v1  ;;  %v2395_v43 = vcombine.high %v7572_v34, %v7337_v56 }
 0x2b3   : > { %v1758_v18 = vcombine.low %v1749_v19, %v1757_v48  ;;  %v1759_v30 = vcombine.high %v1749_v19, %v1757_v48  ;;  %v1883_v41 = vpack.i.b16 %v1882_v50, %v1881_v0  ;;  %v1955_v53 = vrot.slane %v1879_v29, %v7341_v1 }
 0x2b4   : > { %v7592_v62 = vrot.slane %v7572_v34, %v7341_v1  ;;  %v1962_v47 = vrot.slane %v1948_v51, %v7341_v1  ;;  %v1897_v3 = vshrl.u32 %v7580_v52, 16  ;;  %v786_v4 = vpack.i.b16 %v741_v54, %v7304_v40 }
 0x2b5   : > { %v1810_v31 = vpack.i.b16 %v1758_v18, %v1708_v39  ;;  %v1813_v2 = vshrl.u32 %v1758_v18, 16  ;;  %v1818_v9 = vpack.i.b16 %v1759_v30, %v1709_v44  ;;  %v1821_v10 = vshrl.u32 %v1759_v30, 16 }
 0x2b6   : > { %v1963_v11 = vcombine.low %v7460_v23, %v1955_v53  ;;  %v1964_v6 = vcombine.high %v7460_v23, %v1955_v53  ;;  %v1979_v0 = vcombine.low %v7464_v25, %v1962_v47  ;;  %v1980_v12 = vcombine.high %v7464_v25, %v1962_v47 }
 0x2b7   : > { %v1814_v22 = vpack.i.b16 %v1813_v2, %v1812_v55  ;;  %v1822_v24 = vpack.i.b16 %v1821_v10, %v1820_v57  ;;  %1828 = vst.msk [vmem:[#allocation2 + $0x18] sm:$0xff] %vm1824_vm0, %v1810_v31  ;;  %1836 = vst.msk [vmem:[#allocation2 + $0x58] sm:$0xff] %vm1824_vm0, %v1818_v9  ;;  %v2014_v26 = vcombine.high %v1883_v41, %v7337_v56  ;;  %v789_v20 = vshrl.u32 %v741_v54, 16 }
 0x2b8   : > { %v2021_v7 = vrot.slane %v1883_v41, %v7341_v1  ;;  %v1971_v33 = vrot.slane %v1963_v11, %v7351_v13  ;;  %v1978_v32 = vrot.slane %v1964_v6, %v7351_v13  ;;  %v1987_v23 = vrot.slane %v1979_v0, %v7351_v13 }
 0x2b9   : > { %v1994_v28 = vrot.slane %v1980_v12, %v7351_v13  ;;  %1832 = vst.msk [vmem:[#allocation2 + $0x38] sm:$0xff] %vm1824_vm0, %v1814_v22  ;;  %1840 = vst.msk [vmem:[#allocation2 + $0x78] sm:$0xff] %vm1824_vm0, %v1822_v24  ;;  %v2028_v25 = vrot.slane %v2014_v26, %v7341_v1  ;;  %v790_v9 = vpack.i.b16 %v789_v20, %v788_v14 }
 0x2ba   : > { %v2029_v45 = vcombine.low %v7474_v36, %v2021_v7  ;;  %v2030_v35 = vcombine.high %v7474_v36, %v2021_v7  ;;  %v2461_v29 = vcombine.low %v1971_v33, %v1978_v32  ;;  %v5807_v39 = vcombine.high %v1971_v33, %v1978_v32 }
 0x2bb   : > { %v2477_v44 = vcombine.low %v1987_v23, %v1994_v28  ;;  %v5808_v19 = vcombine.high %v1987_v23, %v1994_v28  ;;  %v2045_v51 = vcombine.low %v7487_v49, %v2028_v25  ;;  %v2046_v55 = vcombine.high %v7487_v49, %v2028_v25 }
 0x2bc   : > { %v2037_v48 = vrot.slane %v2029_v45, %v7351_v13  ;;  %v2044_v50 = vrot.slane %v2030_v35, %v7351_v13  ;;  %v2468_v57 = vrot.slane %v2461_v29, %v7341_v1  ;;  %v2476_v18 = vrot.slane %v5807_v39, %v7341_v1  ;;  %v7641_v29 = vpop.permute.xlu1 %1859 }
 0x2bd   : > { %v2484_v30 = vrot.slane %v2477_v44, %v7341_v1  ;;  %v2492_v36 = vrot.slane %v5808_v19, %v7341_v1  ;;  %v2053_v54 = vrot.slane %v2045_v51, %v7351_v13  ;;  %v2060_v41 = vrot.slane %v2046_v55, %v7351_v13 }
 0x2be   : > { %v2511_v53 = vcombine.low %v2037_v48, %v2044_v50  ;;  %v5809_v47 = vcombine.high %v2037_v48, %v2044_v50  ;;  %v2493_v31 = vcombine.low %v2468_v57, %v2476_v18  ;;  %v964_v49 = vcombine.high %v786_v4, %v7337_v56 }
 0x2bf   : > { %v2501_v2 = vcombine.low %v2484_v30, %v2492_v36  ;;  %v2527_v6 = vcombine.low %v2053_v54, %v2060_v41  ;;  %v5810_v0 = vcombine.high %v2053_v54, %v2060_v41  ;;  %v971_v24 = vrot.slane %v786_v4, %v7341_v1 }
 0x2c0   : > { %v2518_v10 = vrot.slane %v2511_v53, %v7341_v1  ;;  %v2526_v11 = vrot.slane %v5809_v47, %v7341_v1  ;;  %v2500_v12 = vrot.slane %v2493_v31, %v7351_v13  ;;  %v978_v26 = vrot.slane %v964_v49, %v7341_v1 }
 0x2c1   : > { %v2508_v22 = vrot.slane %v2501_v2, %v7351_v13  ;;  %v2534_v7 = vrot.slane %v2527_v6, %v7341_v1  ;;  %v2542_v40 = vrot.slane %v5810_v0, %v7341_v1  ;;  %v1030_v33 = vcombine.high %v790_v9, %v7337_v56 }
 0x2c2   : > { %v2543_v14 = vcombine.low %v2518_v10, %v2526_v11  ;;  %v994_v28 = vcombine.low %v971_v24, %v7477_v37  ;;  %v995_v25 = vcombine.high %v971_v24, %v7477_v37  ;;  %v1010_v4 = vcombine.low %v978_v26, %v7480_v38  ;;  %v1866_v24 = vpop.permute.xlu0 %1865 }
 0x2c3   : > { %v2509_v32 = vcombine.low %v2500_v12, %v2508_v22  ;;  %v2510_v23 = vcombine.high %v2500_v12, %v2508_v22  ;;  %v2551_v35 = vcombine.low %v2534_v7, %v2542_v40  ;;  %v1011_v20 = vcombine.high %v978_v26, %v7480_v38 }
 0x2c4   : > { %v2550_v45 = vrot.slane %v2543_v14, %v7351_v13  ;;  %v1002_v19 = vrot.slane %v994_v28, %v7351_v13  ;;  %v1009_v48 = vrot.slane %v995_v25, %v7351_v13  ;;  %v1018_v51 = vrot.slane %v1010_v4, %v7351_v13  ;;  %v1864_v4 = vpop.permute.xlu1 %1863 }
 0x2c5   : > { %v2865_v39 = vshrl.u32 %v2509_v32, 16  ;;  %v2873_v44 = vshrl.u32 %v2510_v23, 16  ;;  %v2558_v50 = vrot.slane %v2551_v35, %v7351_v13  ;;  %v1025_v37 = vrot.slane %v1011_v20, %v7351_v13 }
 0x2c6   : > { %v1037_v55 = vrot.slane %v790_v9, %v7341_v1  ;;  %v1044_v57 = vrot.slane %v1030_v33, %v7341_v1  ;;  %v1460_v18 = vcombine.low %v1002_v19, %v1009_v48  ;;  %v5795_v38 = vcombine.high %v1002_v19, %v1009_v48 }
 0x2c7   : > { %v1929_v30 = vshrl.u32 %v7641_v29, 16  ;;  %v2559_v36 = vcombine.low %v2550_v45, %v2558_v50  ;;  %v2560_v54 = vcombine.high %v2550_v45, %v2558_v50  ;;  %v5796_v40 = vcombine.high %v1018_v51, %v1025_v37 }
 0x2c8   : > { %v1060_v41 = vcombine.low %v1037_v55, %v7484_v46  ;;  %v1061_v53 = vcombine.high %v1037_v55, %v7484_v46  ;;  %v1076_v47 = vcombine.low %v1044_v57, %v7491_v58  ;;  %v1077_v31 = vcombine.high %v1044_v57, %v7491_v58 }
 0x2c9   : > { %v1467_v2 = vrot.slane %v1460_v18, %v7341_v1  ;;  %v1475_v9 = vrot.slane %v5795_v38, %v7341_v1  ;;  %v2863_v49 = vpack.i.b16 %v2559_v36, %v2509_v32  ;;  %v2866_v10 = vshrl.u32 %v2559_v36, 16 }
 0x2ca   : > { %v2871_v11 = vpack.i.b16 %v2560_v54, %v2510_v23  ;;  %v2874_v6 = vshrl.u32 %v2560_v54, 16  ;;  %v1068_v0 = vrot.slane %v1060_v41, %v7351_v13  ;;  %v1075_v12 = vrot.slane %v1061_v53, %v7351_v13 }
 0x2cb   : > { %v1084_v22 = vrot.slane %v1076_v47, %v7351_v13  ;;  %v1091_v46 = vrot.slane %v1077_v31, %v7351_v13  ;;  %v2867_v26 = vpack.i.b16 %v2866_v10, %v2865_v39  ;;  %2925 = vst.msk [vmem:[#allocation3] sm:$0xff] %vm1824_vm0, %v2863_v49  ;;  %v1476_v58 = vcombine.low %v1018_v51, %v1025_v37 }
 0x2cc   : > { %v2875_v7 = vpack.i.b16 %v2874_v6, %v2873_v44  ;;  %2933 = vst.msk [vmem:[#allocation3 + $0x40] sm:$0xff] %vm1824_vm0, %v2871_v11  ;;  %v1492_v14 = vcombine.low %v1467_v2, %v1475_v9  ;;  %v1510_v33 = vcombine.low %v1068_v0, %v1075_v12  ;;  %v5797_v32 = vcombine.high %v1068_v0, %v1075_v12 }
 0x2cd   : > { %v1526_v23 = vcombine.low %v1084_v22, %v1091_v46  ;;  %2929 = vst.msk [vmem:[#allocation3 + $0x20] sm:$0xff] %vm1824_vm0, %v2867_v26  ;;  %v1483_v28 = vrot.slane %v1476_v58, %v7341_v1  ;;  %v1491_v25 = vrot.slane %v5796_v40, %v7341_v1  ;;  %v5798_v45 = vcombine.high %v1084_v22, %v1091_v46 }
 0x2ce   : > { %2937 = vst.msk [vmem:[#allocation3 + $0x60] sm:$0xff] %vm1824_vm0, %v2875_v7  ;;  %v1911_v35 = vpack.i.b16 %v1866_v24, %v7502_v5  ;;  %v1499_v20 = vrot.slane %v1492_v14, %v7351_v13  ;;  %v1517_v39 = vrot.slane %v1510_v33, %v7341_v1  ;;  %v1525_v44 = vrot.slane %v5797_v32, %v7341_v1 }
 0x2cf   : > { %v1533_v19 = vrot.slane %v1526_v23, %v7341_v1  ;;  %v1500_v48 = vcombine.low %v1483_v28, %v1491_v25  ;;  %v1541_v50 = vrot.slane %v5798_v45, %v7341_v1  ;;  %v1914_v51 = vshrl.u32 %v1866_v24, 16 }
 0x2d0   : > { %v2212_v37 = vcombine.high %v1911_v35, %v7337_v56  ;;  %v1542_v55 = vcombine.low %v1517_v39, %v1525_v44  ;;  %v2219_v57 = vrot.slane %v1911_v35, %v7341_v1  ;;  %v7676_v18 = vpack.i.b16 %v1864_v4, %v7580_v52 }
 0x2d1   : > { %v1898_v38 = vshrl.u32 %v1864_v4, 16  ;;  %v1507_v36 = vrot.slane %v1500_v48, %v7351_v13  ;;  %v1550_v54 = vcombine.low %v1533_v19, %v1541_v50  ;;  %v1915_v41 = vpack.i.b16 %v1914_v51, %v1913_v21 }
 0x2d2   : > { %v2226_v53 = vrot.slane %v2212_v37, %v7341_v1  ;;  %v1549_v47 = vrot.slane %v1542_v55, %v7351_v13  ;;  %v2227_v31 = vcombine.low %v7500_v61, %v2219_v57  ;;  %v2228_v2 = vcombine.high %v7500_v61, %v2219_v57 }
 0x2d3   : > { %v7687_v9 = vpack.i.b16 %v1898_v38, %v1897_v3  ;;  %v1508_v49 = vcombine.low %v1499_v20, %v1507_v36  ;;  %v1509_v10 = vcombine.high %v1499_v20, %v1507_v36  ;;  %v1557_v11 = vrot.slane %v1550_v54, %v7351_v13 }
 0x2d4   : > { %v2243_v6 = vcombine.low %v7505_v8, %v2226_v53  ;;  %v2235_v5 = vrot.slane %v2227_v31, %v7351_v13  ;;  %v2242_v21 = vrot.slane %v2228_v2, %v7351_v13  ;;  %v2244_v0 = vcombine.high %v7505_v8, %v2226_v53 }
 0x2d5   : > { %v2278_v12 = vcombine.high %v1915_v41, %v7337_v56  ;;  %v1558_v22 = vcombine.low %v1549_v47, %v1557_v11  ;;  %v1559_v61 = vcombine.high %v1549_v47, %v1557_v11  ;;  %v1780_v46 = vshrl.u32 %v1508_v49, 16 }
 0x2d6   : > { %v1788_v52 = vshrl.u32 %v1509_v10, 16  ;;  %v2251_v3 = vrot.slane %v2243_v6, %v7351_v13  ;;  %v2258_v24 = vrot.slane %v2244_v0, %v7351_v13  ;;  %v2285_v26 = vrot.slane %v1915_v41, %v7341_v1 }
 0x2d7   : > { %v2292_v7 = vrot.slane %v2278_v12, %v7341_v1  ;;  %v1778_v58 = vpack.i.b16 %v1558_v22, %v1508_v49  ;;  %v1781_v40 = vshrl.u32 %v1558_v22, 16  ;;  %v1786_v14 = vpack.i.b16 %v1559_v61, %v1509_v10 }
 0x2d8   : > { %v1789_v33 = vshrl.u32 %v1559_v61, 16  ;;  %v2293_v8 = vcombine.low %v7513_v15, %v2285_v26  ;;  %v2294_v32 = vcombine.high %v7513_v15, %v2285_v26  ;;  %v2661_v35 = vcombine.low %v2235_v5, %v2242_v21 }
 0x2d9   : > { %v2309_v23 = vcombine.low %v7517_v63, %v2292_v7  ;;  %v2310_v28 = vcombine.high %v7517_v63, %v2292_v7  ;;  %v1782_v25 = vpack.i.b16 %v1781_v40, %v1780_v46  ;;  %1826 = vst.msk [vmem:[#allocation2 + $0x8] sm:$0xff] %vm1824_vm0, %v1778_v58  ;;  %1834 = vst.msk [vmem:[#allocation2 + $0x48] sm:$0xff] %vm1824_vm0, %v1786_v14 }
 0x2da   : > { %v1790_v45 = vpack.i.b16 %v1789_v33, %v1788_v52  ;;  %v5815_v4 = vcombine.high %v2235_v5, %v2242_v21  ;;  %v2301_v20 = vrot.slane %v2293_v8, %v7351_v13  ;;  %v2308_v39 = vrot.slane %v2294_v32, %v7351_v13 }
 0x2db   : > { %v2317_v44 = vrot.slane %v2309_v23, %v7351_v13  ;;  %v2324_v15 = vrot.slane %v2310_v28, %v7351_v13  ;;  %1830 = vst.msk [vmem:[#allocation2 + $0x28] sm:$0xff] %vm1824_vm0, %v1782_v25  ;;  %v2668_v63 = vrot.slane %v2661_v35, %v7341_v1  ;;  %v2677_v48 = vcombine.low %v2251_v3, %v2258_v24 }
 0x2dc   : > { %1838 = vst.msk [vmem:[#allocation2 + $0x68] sm:$0xff] %vm1824_vm0, %v1790_v45  ;;  %v2676_v19 = vrot.slane %v5815_v4, %v7341_v1  ;;  %v5816_v50 = vcombine.high %v2251_v3, %v2258_v24  ;;  %v2711_v51 = vcombine.low %v2301_v20, %v2308_v39  ;;  %v5817_v37 = vcombine.high %v2301_v20, %v2308_v39 }
 0x2dd   : > { %v2727_v55 = vcombine.low %v2317_v44, %v2324_v15  ;;  %v5818_v57 = vcombine.high %v2317_v44, %v2324_v15  ;;  %v2684_v38 = vrot.slane %v2677_v48, %v7341_v1  ;;  %v2080_v41 = vcombine.high %v7676_v18, %v7337_v56 }
 0x2de   : > { %v2692_v36 = vrot.slane %v5816_v50, %v7341_v1  ;;  %v2693_v54 = vcombine.low %v2668_v63, %v2676_v19  ;;  %v2718_v53 = vrot.slane %v2711_v51, %v7341_v1  ;;  %v2726_v47 = vrot.slane %v5817_v37, %v7341_v1 }
 0x2df   : > { %v2734_v31 = vrot.slane %v2727_v55, %v7341_v1  ;;  %v2742_v2 = vrot.slane %v5818_v57, %v7341_v1  ;;  %v2087_v11 = vrot.slane %v7676_v18, %v7341_v1  ;;  %v2094_v6 = vrot.slane %v2080_v41, %v7341_v1  ;;  %v1868_v57 = vpop.permute.xlu1 %1867 }
 0x2e0   : > { %v2700_v49 = vrot.slane %v2693_v54, %v7351_v13  ;;  %v2701_v10 = vcombine.low %v2684_v38, %v2692_v36  ;;  %v2743_v5 = vcombine.low %v2718_v53, %v2726_v47  ;;  %v2146_v0 = vcombine.high %v7687_v9, %v7337_v56 }
 0x2e1   : > { %v2751_v21 = vcombine.low %v2734_v31, %v2742_v2  ;;  %v2153_v12 = vrot.slane %v7687_v9, %v7341_v1  ;;  %v2095_v61 = vcombine.low %v7547_v60, %v2087_v11  ;;  %v2096_v46 = vcombine.high %v7547_v60, %v2087_v11 }
 0x2e2   : > { %v2708_v22 = vrot.slane %v2701_v10, %v7351_v13  ;;  %v2111_v52 = vcombine.low %v7555_v16, %v2094_v6  ;;  %v2750_v18 = vrot.slane %v2743_v5, %v7351_v13  ;;  %v2112_v24 = vcombine.high %v7555_v16, %v2094_v6 }
 0x2e3   : > { %v2758_v3 = vrot.slane %v2751_v21, %v7351_v13  ;;  %v2160_v26 = vrot.slane %v2146_v0, %v7341_v1  ;;  %v2103_v9 = vrot.slane %v2095_v61, %v7351_v13  ;;  %v2110_v40 = vrot.slane %v2096_v46, %v7351_v13 }
 0x2e4   : > { %v2709_v7 = vcombine.low %v2700_v49, %v2708_v22  ;;  %v2710_v58 = vcombine.high %v2700_v49, %v2708_v22  ;;  %v2119_v60 = vrot.slane %v2111_v52, %v7351_v13  ;;  %v2126_v8 = vrot.slane %v2112_v24, %v7351_v13 }
 0x2e5   : > { %v2759_v14 = vcombine.low %v2750_v18, %v2758_v3  ;;  %v2760_v33 = vcombine.high %v2750_v18, %v2758_v3  ;;  %v2161_v28 = vcombine.low %v7561_v27, %v2153_v12  ;;  %v2162_v16 = vcombine.high %v7561_v27, %v2153_v12 }
 0x2e6   : > { %v2897_v32 = vshrl.u32 %v2709_v7, 16  ;;  %v2905_v23 = vshrl.u32 %v2710_v58, 16  ;;  %v2177_v44 = vcombine.low %v7567_v42, %v2160_v26  ;;  %v2178_v15 = vcombine.high %v7567_v42, %v2160_v26 }
 0x2e7   : > { %v2895_v25 = vpack.i.b16 %v2759_v14, %v2709_v7  ;;  %v2898_v45 = vshrl.u32 %v2759_v14, 16  ;;  %v2903_v35 = vpack.i.b16 %v2760_v33, %v2710_v58  ;;  %v2906_v4 = vshrl.u32 %v2760_v33, 16 }
 0x2e8   : > { %v2169_v20 = vrot.slane %v2161_v28, %v7351_v13  ;;  %v2176_v39 = vrot.slane %v2162_v16, %v7351_v13  ;;  %v2561_v48 = vcombine.low %v2103_v9, %v2110_v40  ;;  %v5811_v27 = vcombine.high %v2103_v9, %v2110_v40 }
 0x2e9   : > { %v2899_v63 = vpack.i.b16 %v2898_v45, %v2897_v32  ;;  %v2907_v19 = vpack.i.b16 %v2906_v4, %v2905_v23  ;;  %2927 = vst.msk [vmem:[#allocation3 + $0x10] sm:$0xff] %vm1824_vm0, %v2895_v25  ;;  %2935 = vst.msk [vmem:[#allocation3 + $0x50] sm:$0xff] %vm1824_vm0, %v2903_v35  ;;  %v2185_v50 = vrot.slane %v2177_v44, %v7351_v13  ;;  %v1930_v0 = vshrl.u32 %v1868_v57, 16 }
 0x2ea   : > { %v2192_v51 = vrot.slane %v2178_v15, %v7351_v13  ;;  %v2577_v37 = vcombine.low %v2119_v60, %v2126_v8  ;;  %v5812_v55 = vcombine.high %v2119_v60, %v2126_v8  ;;  %v2568_v42 = vrot.slane %v2561_v48, %v7341_v1 }
 0x2eb   : > { %2931 = vst.msk [vmem:[#allocation3 + $0x30] sm:$0xff] %vm1824_vm0, %v2899_v63  ;;  %2939 = vst.msk [vmem:[#allocation3 + $0x70] sm:$0xff] %vm1824_vm0, %v2907_v19  ;;  %v2576_v38 = vrot.slane %v5811_v27, %v7341_v1  ;;  %v2611_v36 = vcombine.low %v2169_v20, %v2176_v39  ;;  %v5813_v54 = vcombine.high %v2169_v20, %v2176_v39 }
 0x2ec   : > { %v2584_v41 = vrot.slane %v2577_v37, %v7341_v1  ;;  %v2592_v53 = vrot.slane %v5812_v55, %v7341_v1  ;;  %v2627_v47 = vcombine.low %v2185_v50, %v2192_v51  ;;  %v5814_v31 = vcombine.high %v2185_v50, %v2192_v51 }
 0x2ed   : > { %v2593_v2 = vcombine.low %v2568_v42, %v2576_v38  ;;  %v2618_v49 = vrot.slane %v2611_v36, %v7341_v1  ;;  %v2626_v10 = vrot.slane %v5813_v54, %v7341_v1  ;;  %v1927_v11 = vpack.i.b16 %v1868_v57, %v7641_v29 }
 0x2ee   : > { %v2601_v6 = vcombine.low %v2584_v41, %v2592_v53  ;;  %v2634_v5 = vrot.slane %v2627_v47, %v7341_v1  ;;  %v2642_v21 = vrot.slane %v5814_v31, %v7341_v1  ;;  %v2409_v12 = vrot.slane %v2395_v43, %v7341_v1 }
 0x2ef   : > { %v2643_v22 = vcombine.low %v2618_v49, %v2626_v10  ;;  %v2344_v61 = vcombine.high %v1927_v11, %v7337_v56  ;;  %v2351_v46 = vrot.slane %v1927_v11, %v7341_v1  ;;  %v2600_v52 = vrot.slane %v2593_v2, %v7351_v13 }
 0x2f0   : > { %v2608_v18 = vrot.slane %v2601_v6, %v7351_v13  ;;  %v2651_v3 = vcombine.low %v2634_v5, %v2642_v21  ;;  %v1931_v24 = vpack.i.b16 %v1930_v0, %v1929_v30 }
 0x2f1   : > { %v2650_v26 = vrot.slane %v2643_v22, %v7351_v13  ;;  %v2358_v7 = vrot.slane %v2344_v61, %v7341_v1  ;;  %v2359_v34 = vcombine.low %v7575_v17, %v2351_v46  ;;  %v2360_v43 = vcombine.high %v7575_v17, %v2351_v46 }
 0x2f2   : > { %v2609_v58 = vcombine.low %v2600_v52, %v2608_v18  ;;  %v2610_v9 = vcombine.high %v2600_v52, %v2608_v18  ;;  %v2658_v40 = vrot.slane %v2651_v3, %v7351_v13  ;;  %v2410_v14 = vcombine.high %v1931_v24, %v7337_v56 }
 0x2f3   : > { %v2367_v33 = vrot.slane %v2359_v34, %v7351_v13  ;;  %v2374_v60 = vrot.slane %v2360_v43, %v7351_v13  ;;  %v2375_v29 = vcombine.low %v7583_v59, %v2358_v7  ;;  %v2376_v30 = vcombine.high %v7583_v59, %v2358_v7 }
 0x2f4   : > { %v2659_v8 = vcombine.low %v2650_v26, %v2658_v40  ;;  %v2660_v32 = vcombine.high %v2650_v26, %v2658_v40  ;;  %v2881_v23 = vshrl.u32 %v2609_v58, 16  ;;  %v2889_v28 = vshrl.u32 %v2610_v9, 16 }
 0x2f5   : > { %v2383_v17 = vrot.slane %v2375_v29, %v7351_v13  ;;  %v2390_v16 = vrot.slane %v2376_v30, %v7351_v13  ;;  %v2417_v25 = vrot.slane %v1931_v24, %v7341_v1  ;;  %v2424_v56 = vrot.slane %v2410_v14, %v7341_v1 }
 0x2f6   : > { %v2879_v45 = vpack.i.b16 %v2659_v8, %v2609_v58  ;;  %v2882_v35 = vshrl.u32 %v2659_v8, 16  ;;  %v2887_v4 = vpack.i.b16 %v2660_v32, %v2610_v9  ;;  %v2890_v20 = vshrl.u32 %v2660_v32, 16 }
 0x2f7   : > { %v2425_v39 = vcombine.low %v7592_v62, %v2417_v25  ;;  %v2426_v59 = vcombine.high %v7592_v62, %v2417_v25  ;;  %v2441_v44 = vcombine.low %v2409_v12, %v2424_v56  ;;  %v2442_v15 = vcombine.high %v2409_v12, %v2424_v56 }
 0x2f8   : > { %v2883_v63 = vpack.i.b16 %v2882_v35, %v2881_v23  ;;  %v2891_v19 = vpack.i.b16 %v2890_v20, %v2889_v28  ;;  %2926 = vst.msk [vmem:[#allocation3 + $0x8] sm:$0xff] %vm1824_vm0, %v2879_v45  ;;  %2934 = vst.msk [vmem:[#allocation3 + $0x48] sm:$0xff] %vm1824_vm0, %v2887_v4  ;;  %v2761_v48 = vcombine.low %v2367_v33, %v2374_v60 }
 0x2f9   : > { %v5819_v27 = vcombine.high %v2367_v33, %v2374_v60  ;;  %v2433_v50 = vrot.slane %v2425_v39, %v7351_v13  ;;  %v2440_v51 = vrot.slane %v2426_v59, %v7351_v13  ;;  %v2449_v37 = vrot.slane %v2441_v44, %v7351_v13 }
 0x2fa   : > { %v2456_v55 = vrot.slane %v2442_v15, %v7351_v13  ;;  %2930 = vst.msk [vmem:[#allocation3 + $0x28] sm:$0xff] %vm1824_vm0, %v2883_v63  ;;  %2938 = vst.msk [vmem:[#allocation3 + $0x68] sm:$0xff] %vm1824_vm0, %v2891_v19  ;;  %v2768_v62 = vrot.slane %v2761_v48, %v7341_v1  ;;  %v2777_v42 = vcombine.low %v2383_v17, %v2390_v16 }
 0x2fb   : > { %v2776_v57 = vrot.slane %v5819_v27, %v7341_v1  ;;  %v5820_v38 = vcombine.high %v2383_v17, %v2390_v16  ;;  %v2811_v36 = vcombine.low %v2433_v50, %v2440_v51  ;;  %v5821_v54 = vcombine.high %v2433_v50, %v2440_v51 }
 0x2fc   : > { %v2827_v41 = vcombine.low %v2449_v37, %v2456_v55  ;;  %v5822_v53 = vcombine.high %v2449_v37, %v2456_v55  ;;  %v2784_v47 = vrot.slane %v2777_v42, %v7341_v1 }
 0x2fd   : > { %v2792_v31 = vrot.slane %v5820_v38, %v7341_v1  ;;  %v2793_v2 = vcombine.low %v2768_v62, %v2776_v57  ;;  %v2818_v49 = vrot.slane %v2811_v36, %v7341_v1  ;;  %v2826_v10 = vrot.slane %v5821_v54, %v7341_v1 }
 0x2fe   : > { %v2834_v11 = vrot.slane %v2827_v41, %v7341_v1  ;;  %v2842_v6 = vrot.slane %v5822_v53, %v7341_v1 }
 0x2ff   : > { %v2801_v5 = vcombine.low %v2784_v47, %v2792_v31  ;;  %v2843_v21 = vcombine.low %v2818_v49, %v2826_v10  ;;  %v2800_v12 = vrot.slane %v2793_v2, %v7351_v13 }
 0x300   : > { %v2851_v0 = vcombine.low %v2834_v11, %v2842_v6 }
 0x301   : > { %v2808_v22 = vrot.slane %v2801_v5, %v7351_v13  ;;  %v2850_v61 = vrot.slane %v2843_v21, %v7351_v13 }
 0x302   : > { %v2858_v46 = vrot.slane %v2851_v0, %v7351_v13 }
 0x303   : > { %v2809_v52 = vcombine.low %v2800_v12, %v2808_v22  ;;  %v2810_v18 = vcombine.high %v2800_v12, %v2808_v22 }
 0x304   : > { %v2859_v3 = vcombine.low %v2850_v61, %v2858_v46  ;;  %v2860_v24 = vcombine.high %v2850_v61, %v2858_v46 }
 0x305   : > { %v2913_v26 = vshrl.u32 %v2809_v52, 16  ;;  %v2921_v7 = vshrl.u32 %v2810_v18, 16 }
 0x306   : > { %v2911_v34 = vpack.i.b16 %v2859_v3, %v2809_v52  ;;  %v2914_v43 = vshrl.u32 %v2859_v3, 16  ;;  %v2919_v1 = vpack.i.b16 %v2860_v24, %v2810_v18  ;;  %v2922_v58 = vshrl.u32 %v2860_v24, 16 }
 0x308   : > { %v2915_v9 = vpack.i.b16 %v2914_v43, %v2913_v26  ;;  %v2923_v40 = vpack.i.b16 %v2922_v58, %v2921_v7  ;;  %2928 = vst.msk [vmem:[#allocation3 + $0x18] sm:$0xff] %vm1824_vm0, %v2911_v34  ;;  %2936 = vst.msk [vmem:[#allocation3 + $0x58] sm:$0xff] %vm1824_vm0, %v2919_v1 }
 0x30a   : > { %2932 = vst.msk [vmem:[#allocation3 + $0x38] sm:$0xff] %vm1824_vm0, %v2915_v9  ;;  %2940 = vst.msk [vmem:[#allocation3 + $0x78] sm:$0xff] %vm1824_vm0, %v2923_v40 }
 0x30b PF: > { %v6412_v13 = vld [vmem:[#allocation7] sm:$0xff]   ;;  %s8521_s12 = sld [smem:[#allocation21_spill]]  ;;  %v6413_v14 = vld [vmem:[#allocation7 + $0x8] sm:$0xff]   ;;  %v6414_v33 = vld [vmem:[#allocation7 + $0x10] sm:$0xff]   ;;  %vm3683_vm1 = vcmask 261120   ;;  %s6876_s9 = smov 96   ;;  %v3120_v41 = vlaneseq }
 0x30c   : > { %6015 = vmatprep.subr.bf16.mxu0 %v6412_v13  ;;  %v6415_v60 = vld [vmem:[#allocation7 + $0x18] sm:$0xff]   ;;  %v6416_v30 = vld [vmem:[#allocation7 + $0x20] sm:$0xff]   ;;  %v6417_v8 = vld [vmem:[#allocation7 + $0x28] sm:$0xff]   ;;  %s6877_s11 = smov 64   ;;  %s6878_s1 = smov 32   ;;  %vm3952_vm2 = vcmask 523264  }
 0x30d   : > { %6016 = vmatpush3.bf16.msra.mxu0 %v6412_v13  ;;  %v6418_v32 = vld [vmem:[#allocation7 + $0x30] sm:$0xff]   ;;  %v6419_v23 = vld [vmem:[#allocation7 + $0x38] sm:$0xff]   ;;  %v3667_v17 = vld [vmem:[#allocation2] sm:$0xff]  ;;  %v6879_v36 = vmov 1983009808   ;;  %v7872_v10 = vshrl.u32 %v3120_v41, 7 }
 0x30e   : > { %6017 = vmatprep.subr.bf16.mxu0 %v6413_v14  ;;  %v3671_v16 = vld [vmem:[#allocation2 + $0x20] sm:$0xff]  ;;  %6167 = vmatprep.subr.msk.bf16.mxu1 %vm3683_vm1, %v3667_v17  ;;  %v3691_v25 = vsel %vm3683_vm1, %v3667_v17, 0  ;;  %v3668_v39 = vld [vmem:[#allocation2 + $0x8] sm:$0xff]  ;;  %v3669_v63 = vld [vmem:[#allocation2 + $0x10] sm:$0xff]  ;;  %v3118_v54 = vunpack.c.l.s4 %v6879_v36  ;;  %v6880_v31 = vmov 1934713408  }
 0x30f   : > { %v3758_v56 = vsel %vm3683_vm1, %v3671_v16, 0  ;;  %6036 = vmatpush3.bf16.xpose.msra.mxu1 %v3691_v25  ;;  %v3672_v59 = vld [vmem:[#allocation2 + $0x28] sm:$0xff]  ;;  %v3694_v44 = vsel %vm3683_vm1, %v3668_v39, 0  ;;  %v3673_v19 = vld [vmem:[#allocation2 + $0x30] sm:$0xff]  ;;  %v3697_v48 = vsel %vm3683_vm1, %v3669_v63, 0  ;;  %v3670_v50 = vld [vmem:[#allocation2 + $0x18] sm:$0xff]  ;;  %v3150_v2 = vunpack.c.l.s4 %v6880_v31 }
 0x310   : > { %6168 = vmatprep.subr.msk.bf16.mxu1 %vm3683_vm1, %v3668_v39  ;;  %v3761_v15 = vsel %vm3683_vm1, %v3672_v59, 0  ;;  %v3764_v27 = vsel %vm3683_vm1, %v3673_v19, 0  ;;  %v3674_v51 = vld [vmem:[#allocation2 + $0x38] sm:$0xff]  ;;  %v3700_v37 = vsel %vm3683_vm1, %v3670_v50, 0  ;;  %v3675_v62 = vld [vmem:[#allocation2 + $0x40] sm:$0xff]  ;;  %v3119_v49 = vunpack.c.0.s8 %v3118_v54  ;;  %s8522_s0 = sld [smem:[#allocation30_spill]] }
 0x311   : > { %s5823_s3 = sshll.u32 %s8521_s12, 5  ;;  %6018 = vmatpush3.bf16.msra.mxu0 %v6413_v14  ;;  %v3767_v55 = vsel %vm3683_vm1, %v3674_v51, 0  ;;  %v3679_v57 = vld [vmem:[#allocation2 + $0x60] sm:$0xff]  ;;  %v3151_v5 = vunpack.c.0.s8 %v3150_v2  ;;  %v7887_v34 = vsel %vm3683_vm1, %v3675_v62, 0  ;;  %vm4973_vm3 = vcmask 785408   ;;  %s8523_s27 = sld [smem:[#allocation31_spill]] }
 0x312   : > { %s2942_s7 = sshra.s32 %s5823_s3, 3  ;;  %6019 = vmatprep.subr.bf16.mxu0 %v6414_v33  ;;  %v7875_v21 = vsub.s32 %v3119_v49, %v7872_v10  ;;  %v7890_v43 = vsel %vm3683_vm1, %v3679_v57, 0  ;;  %s8528_s15 = sld [smem:[#allocation37_spill]] }
 0x313   : > { %s5824_s17 = sshll.u32 %s2942_s7, 2  ;;  %v7882_v52 = vsub.s32 %v3151_v5, %v7872_v10  ;;  %s8524_s7 = sld [smem:[#allocation33_spill]] }
 0x314   : > { %s7814_s8 = scalar_lea.vmem %s7260_s24, %s5824_s17 [#allocation4]  ;;  %s8527_s24 = sld [smem:[#allocation36_spill]] }
 0x315   : > { %v2946_v29 = vld [vmem:[%s7814_s8] sm:$0xff]   ;;  %6020 = vmatpush3.bf16.msra.mxu0 %v6414_v33  ;;  %v2948_v28 = vld [vmem:[%s7814_s8 + $0x8] sm:$0xff]   ;;  %p8530_p6 = scmp.ne.s32.totalorder %s8513_s10, 0 }
 0x316   : > { %6031 = vmatprep.mubr.bf16.mxu0 %v2946_v29  ;;  %6021 = vmatprep.subr.bf16.mxu0 %v6415_v60 }
 0x317   : > { %6038 = vmatpush3.bf16.xpose.msra.mxu1 %v3694_v44 }
 0x318   : > { %6169 = vmatprep.subr.msk.bf16.mxu1 %vm3683_vm1, %v3669_v63 }
 0x319   : > { %6022 = vmatpush3.bf16.msra.mxu0 %v6415_v60 }
 0x31a   : > { %6023 = vmatprep.subr.bf16.mxu0 %v6416_v30 }
 0x31d   : > { %6024 = vmatpush3.bf16.msra.mxu0 %v6416_v30 }
 0x31e   : > { %6025 = vmatprep.subr.bf16.mxu0 %v6417_v8 }
 0x31f   : > { %6040 = vmatpush3.bf16.xpose.msra.mxu1 %v3697_v48 }
 0x320   : > { %6170 = vmatprep.subr.msk.bf16.mxu1 %vm3683_vm1, %v3670_v50 }
 0x321   : > { %6026 = vmatpush3.bf16.msra.mxu0 %v6417_v8 }
 0x322   : > { %6027 = vmatprep.subr.bf16.mxu0 %v6418_v32 }
 0x325   : > { %6028 = vmatpush3.bf16.msra.mxu0 %v6418_v32 }
 0x326   : > { %6029 = vmatprep.subr.bf16.mxu0 %v6419_v23 }
 0x327   : > { %6042 = vmatpush3.bf16.xpose.msra.mxu1 %v3700_v37 }
 0x328   : > { %6175 = vmatprep.subr.msk.bf16.mxu1 %vm3683_vm1, %v3675_v62 }
 0x329   : > { %6030 = vmatpush3.bf16.msra.mxu0 %v6419_v23 }
 0x32a   : > { %6171 = vmatprep.subr.msk.bf16.mxu0 %vm3683_vm1, %v3671_v16 }
 0x32c   : > { %6032 = vmatmul.mubr.bf16.vlgmr.msra.gmra.mrb[0].mxu0 %v2948_v28 }
 0x332   : > { %6048 = vmatpush3.bf16.xpose.msra.mxu0 %v3758_v56 }
 0x333   : > { %6172 = vmatprep.subr.msk.bf16.mxu0 %vm3683_vm1, %v3672_v59 }
 0x33a   : > { %6050 = vmatpush3.bf16.xpose.msra.mxu0 %v3761_v15 }
 0x33b   : > { %6173 = vmatprep.subr.msk.bf16.mxu0 %vm3683_vm1, %v3673_v19 }
 0x342   : > { %6052 = vmatpush3.bf16.xpose.msra.mxu0 %v3764_v27 }
 0x343   : > { %6174 = vmatprep.subr.msk.bf16.mxu0 %vm3683_vm1, %v3674_v51 }
 0x34a   : > { %6054 = vmatpush3.bf16.xpose.msra.mxu0 %v3767_v55 }
 0x34b   : > { %6179 = vmatprep.subr.msk.bf16.mxu0 %vm3683_vm1, %v3679_v57 }
 0x3ff   : > { %v7822_v45 = vpop.f32.mrb[0].mxu0 }
 0x400   : > { %3083 = vrot.lane.b32.xlu0 %v7822_v45, %s6876_s9  ;;  %v7826_v35 = vpop.f32.mrb[1].mxu0 }
 0x401   : > { %3091 = vrot.lane.b32.xlu1 %v7826_v35, %s6877_s11  ;;  %v7830_v4 = vpop.f32.mrb[2].mxu0 }
 0x402   : > { %v7832_v20 = vpop.f32.mrb[3].mxu0 }
 0x404   : > { %3095 = vrot.lane.b32.xlu0 %v7822_v45, %s6877_s11 }
 0x405   : > { %3085 = vrot.lane.b32.xlu1 %v7830_v4, %s6876_s9 }
 0x408   : > { %3079 = vrot.lane.b32.xlu0 %v7826_v35, %s6876_s9 }
 0x409   : > { %3097 = vrot.lane.b32.xlu1 %v7830_v4, %s6877_s11 }
 0x40c   : > { %3103 = vrot.lane.b32.xlu0 %v7826_v35, %s6878_s1 }
 0x40d   : > { %3093 = vrot.lane.b32.xlu1 %v7832_v20, %s6877_s11 }
 0x410   : > { %3081 = vrot.lane.b32.xlu0 %v7832_v20, %s6876_s9 }
 0x411   : > { %3105 = vrot.lane.b32.xlu1 %v7832_v20, %s6878_s1 }
 0x414   : > { %3107 = vrot.lane.b32.xlu0 %v7822_v45, %s6878_s1 }
 0x415   : > { %3109 = vrot.lane.b32.xlu1 %v7830_v4, %s6878_s1 }
 0x472   : > { %v7868_v42 = vpop.permute.xlu0 %3083 }
 0x473   : > { %v3092_v38 = vpop.permute.xlu1 %3091 }
 0x474   : > { %v3115_v0 = vcombine.low %v7826_v35, %v3092_v38  ;;  %v3116_v12 = vcombine.high %v7826_v35, %v3092_v38 }
 0x476   : > { %v3096_v53 = vpop.permute.xlu0 %3095  ;;  %v3123_v1 = vrot.slane %v3115_v0, %v7875_v21  ;;  %v3130_v58 = vrot.slane %v3116_v12, %v7875_v21 }
 0x477   : > { %v7870_v47 = vpop.permute.xlu1 %3085  ;;  %v3251_v22 = vcombine.low %v7822_v45, %v3096_v53  ;;  %v3252_v61 = vcombine.high %v7822_v45, %v3096_v53 }
 0x479   : > { %v3259_v13 = vrot.slane %v3251_v22, %v7875_v21  ;;  %v3266_v14 = vrot.slane %v3252_v61, %v7875_v21 }
 0x47a   : > { %v3080_v11 = vpop.permute.xlu0 %3079 }
 0x47b   : > { %v3098_v6 = vpop.permute.xlu1 %3097 }
 0x47c   : > { %v3319_v26 = vcombine.low %v7830_v4, %v3098_v6  ;;  %v3320_v7 = vcombine.high %v7830_v4, %v3098_v6 }
 0x47e   : > { %v3104_v46 = vpop.permute.xlu0 %3103  ;;  %v3327_v17 = vrot.slane %v3319_v26, %v7875_v21  ;;  %v3334_v16 = vrot.slane %v3320_v7, %v7875_v21 }
 0x47f   : > { %v3131_v18 = vcombine.low %v3080_v11, %v3104_v46  ;;  %v3132_v3 = vcombine.high %v3080_v11, %v3104_v46  ;;  %v3094_v24 = vpop.permute.xlu1 %3093 }
 0x480   : > { %v3183_v33 = vcombine.low %v7832_v20, %v3094_v24  ;;  %v3184_v60 = vcombine.high %v7832_v20, %v3094_v24 }
 0x481   : > { %v3139_v9 = vrot.slane %v3131_v18, %v7875_v21  ;;  %v3146_v40 = vrot.slane %v3132_v3, %v7875_v21 }
 0x482   : > { %v3082_v29 = vpop.permute.xlu0 %3081  ;;  %v3191_v39 = vrot.slane %v3183_v33, %v7875_v21  ;;  %v3198_v59 = vrot.slane %v3184_v60, %v7875_v21 }
 0x483   : > { %v3147_v30 = vcombine.low %v3123_v1, %v3139_v9  ;;  %v3148_v8 = vcombine.high %v3123_v1, %v3139_v9  ;;  %v3163_v32 = vcombine.low %v3130_v58, %v3146_v40  ;;  %v3164_v23 = vcombine.high %v3130_v58, %v3146_v40  ;;  %v3106_v28 = vpop.permute.xlu1 %3105 }
 0x484   : > { %v3199_v25 = vcombine.low %v3082_v29, %v3106_v28  ;;  %v3200_v56 = vcombine.high %v3082_v29, %v3106_v28 }
 0x485   : > { %v7903_v45 = vrot.slane %v3147_v30, %v7882_v52  ;;  %v7906_v35 = vrot.slane %v3148_v8, %v7882_v52  ;;  %v7909_v4 = vrot.slane %v3163_v32, %v7882_v52  ;;  %v7912_v20 = vrot.slane %v3164_v23, %v7882_v52 }
 0x486   : > { %v3207_v44 = vrot.slane %v3199_v25, %v7875_v21  ;;  %v3214_v15 = vrot.slane %v3200_v56, %v7875_v21  ;;  %v3108_v63 = vpop.permute.xlu0 %3107 }
 0x487   : > { %v3387_v19 = vcombine.low %v7903_v45, %v7906_v35  ;;  %v5835_v48 = vcombine.high %v7903_v45, %v7906_v35  ;;  %v3403_v27 = vcombine.low %v7909_v4, %v7912_v20  ;;  %v5836_v50 = vcombine.high %v7909_v4, %v7912_v20  ;;  %v3110_v51 = vpop.permute.xlu1 %3109 }
 0x488   : > { %v3215_v37 = vcombine.low %v3191_v39, %v3207_v44  ;;  %v3216_v55 = vcombine.high %v3191_v39, %v3207_v44  ;;  %v3231_v62 = vcombine.low %v3198_v59, %v3214_v15  ;;  %v3232_v57 = vcombine.high %v3198_v59, %v3214_v15 }
 0x489   : > { %v3267_v38 = vcombine.low %v7868_v42, %v3108_v63  ;;  %v3268_v36 = vcombine.high %v7868_v42, %v3108_v63  ;;  %v3335_v54 = vcombine.low %v7870_v47, %v3110_v51  ;;  %v3336_v41 = vcombine.high %v7870_v47, %v3110_v51 }
 0x48a   : > { %v7931_v53 = vrot.slane %v3215_v37, %v7882_v52  ;;  %v3230_v31 = vrot.slane %v3216_v55, %v7882_v52  ;;  %v7935_v2 = vrot.slane %v3231_v62, %v7882_v52  ;;  %v7938_v49 = vrot.slane %v3232_v57, %v7882_v52 }
 0x48b   : > { %v3275_v11 = vrot.slane %v3267_v38, %v7875_v21  ;;  %v3282_v6 = vrot.slane %v3268_v36, %v7875_v21  ;;  %v3343_v42 = vrot.slane %v3335_v54, %v7875_v21  ;;  %v3350_v5 = vrot.slane %v3336_v41, %v7875_v21 }
 0x48c   : > { %v3455_v47 = vcombine.low %v7931_v53, %v3230_v31  ;;  %v5837_v0 = vcombine.high %v7931_v53, %v3230_v31  ;;  %v3471_v12 = vcombine.low %v7935_v2, %v7938_v49  ;;  %v5838_v22 = vcombine.high %v7935_v2, %v7938_v49 }
 0x48d   : > { %v3283_v61 = vcombine.low %v3259_v13, %v3275_v11  ;;  %v3284_v46 = vcombine.high %v3259_v13, %v3275_v11  ;;  %v3299_v18 = vcombine.low %v3266_v14, %v3282_v6  ;;  %v3300_v3 = vcombine.high %v3266_v14, %v3282_v6 }
 0x48e   : > { %v3351_v24 = vcombine.low %v3327_v17, %v3343_v42  ;;  %v3352_v26 = vcombine.high %v3327_v17, %v3343_v42  ;;  %v3367_v7 = vcombine.low %v3334_v16, %v3350_v5  ;;  %v3368_v1 = vcombine.high %v3334_v16, %v3350_v5 }
 0x48f   : > { %v3291_v58 = vrot.slane %v3283_v61, %v7882_v52  ;;  %v3298_v9 = vrot.slane %v3284_v46, %v7882_v52  ;;  %v3307_v40 = vrot.slane %v3299_v18, %v7882_v52  ;;  %v3314_v33 = vrot.slane %v3300_v3, %v7882_v52 }
 0x490   : > { %v3359_v60 = vrot.slane %v3351_v24, %v7882_v52  ;;  %v3366_v29 = vrot.slane %v3352_v26, %v7882_v52  ;;  %v3375_v13 = vrot.slane %v3367_v7, %v7882_v52  ;;  %v3382_v14 = vrot.slane %v3368_v1, %v7882_v52 }
 0x491   : > { %v3523_v30 = vcombine.low %v3291_v58, %v3298_v9  ;;  %v5839_v8 = vcombine.high %v3291_v58, %v3298_v9  ;;  %v3539_v32 = vcombine.low %v3307_v40, %v3314_v33  ;;  %v5840_v23 = vcombine.high %v3307_v40, %v3314_v33 }
 0x492   : > { %v3591_v28 = vcombine.low %v3359_v60, %v3366_v29  ;;  %v5841_v17 = vcombine.high %v3359_v60, %v3366_v29  ;;  %v3607_v16 = vcombine.low %v3375_v13, %v3382_v14  ;;  %v5842_v25 = vcombine.high %v3375_v13, %v3382_v14 }
 0x493   : > { %v3530_v56 = vrot.slane %v3523_v30, %v7875_v21  ;;  %v3538_v45 = vrot.slane %v5839_v8, %v7875_v21  ;;  %v3546_v35 = vrot.slane %v3539_v32, %v7875_v21  ;;  %v3554_v4 = vrot.slane %v5840_v23, %v7875_v21 }
 0x494   : > { %v3598_v20 = vrot.slane %v3591_v28, %v7875_v21  ;;  %v3606_v39 = vrot.slane %v5841_v17, %v7875_v21  ;;  %v3614_v59 = vrot.slane %v3607_v16, %v7875_v21  ;;  %v3622_v44 = vrot.slane %v5842_v25, %v7875_v21 }
 0x495   : > { %v3556_v15 = vcombine.high %v3530_v56, %v3538_v45  ;;  %v3572_v63 = vcombine.high %v3546_v35, %v3554_v4  ;;  %v3394_v51 = vrot.slane %v3387_v19, %v7875_v21  ;;  %v3402_v37 = vrot.slane %v5835_v48, %v7875_v21 }
 0x496   : > { %v3624_v55 = vcombine.high %v3598_v20, %v3606_v39  ;;  %v3640_v62 = vcombine.high %v3614_v59, %v3622_v44  ;;  %v3410_v57 = vrot.slane %v3403_v27, %v7875_v21  ;;  %v3418_v38 = vrot.slane %v5836_v50, %v7875_v21 }
 0x497   : > { %v7971_v36 = vrot.slane %v3556_v15, %v7882_v52  ;;  %v7974_v54 = vrot.slane %v3572_v63, %v7882_v52  ;;  %v3419_v41 = vcombine.low %v3394_v51, %v3402_v37  ;;  %v3420_v53 = vcombine.high %v3394_v51, %v3402_v37  ;;  %v3676_v37 = vld [vmem:[#allocation2 + $0x48] sm:$0xff] }
 0x498   : > { %v3638_v31 = vrot.slane %v3624_v55, %v7882_v52  ;;  %v3654_v19 = vrot.slane %v3640_v62, %v7882_v52  ;;  %v3435_v2 = vcombine.low %v3410_v57, %v3418_v38  ;;  %v3436_v48 = vcombine.high %v3410_v57, %v3418_v38  ;;  %v3680_v55 = vld [vmem:[#allocation2 + $0x68] sm:$0xff] }
 0x499   : > { %v3427_v49 = vrot.slane %v3419_v41, %v7882_v52  ;;  %v3462_v27 = vrot.slane %v3455_v47, %v7875_v21  ;;  %v3470_v50 = vrot.slane %v5837_v0, %v7875_v21  ;;  %v3478_v11 = vrot.slane %v3471_v12, %v7875_v21  ;;  %v3681_v41 = vld [vmem:[#allocation2 + $0x70] sm:$0xff] }
 0x49a   : > { %v3443_v6 = vrot.slane %v3435_v2, %v7882_v52  ;;  %v3486_v42 = vrot.slane %v5838_v22, %v7875_v21  ;;  %v3555_v5 = vcombine.low %v3530_v56, %v3538_v45  ;;  %v3571_v61 = vcombine.low %v3546_v35, %v3554_v4 }
 0x49b   : > { %v3487_v46 = vcombine.low %v3462_v27, %v3470_v50  ;;  %v3488_v18 = vcombine.high %v3462_v27, %v3470_v50  ;;  %v3623_v3 = vcombine.low %v3598_v20, %v3606_v39  ;;  %v3639_v24 = vcombine.low %v3614_v59, %v3622_v44 }
 0x49c   : > { %v3451_v26 = vcombine.low %v3427_v49, %v3443_v6  ;;  %v3452_v7 = vcombine.high %v3427_v49, %v3443_v6  ;;  %v3503_v1 = vcombine.low %v3478_v11, %v3486_v42  ;;  %v3504_v58 = vcombine.high %v3478_v11, %v3486_v42 }
 0x49d   : > { %v3495_v47 = vrot.slane %v3487_v46, %v7882_v52  ;;  %v3563_v0 = vrot.slane %v3555_v5, %v7882_v52  ;;  %v3579_v12 = vrot.slane %v3571_v61, %v7882_v52  ;;  %v3631_v9 = vrot.slane %v3623_v3, %v7882_v52 }
 0x49e   : > { %v3511_v22 = vrot.slane %v3503_v1, %v7882_v52  ;;  %v3647_v40 = vrot.slane %v3639_v24, %v7882_v52  ;;  %v3434_v33 = vrot.slane %v3420_v53, %v7882_v52  ;;  %v3450_v60 = vrot.slane %v3436_v48, %v7882_v52  ;;  %v3678_v53 = vld [vmem:[#allocation2 + $0x58] sm:$0xff] }
 0x49f   : > { %v3587_v29 = vcombine.low %v3563_v0, %v3579_v12  ;;  %v3588_v13 = vcombine.high %v3563_v0, %v3579_v12  ;;  %v3502_v14 = vrot.slane %v3488_v18, %v7882_v52  ;;  %v3518_v30 = vrot.slane %v3504_v58, %v7882_v52 }
 0x4a0   : > { %v3519_v8 = vcombine.low %v3495_v47, %v3511_v22  ;;  %v3520_v32 = vcombine.high %v3495_v47, %v3511_v22  ;;  %v3655_v23 = vcombine.low %v3631_v9, %v3647_v40  ;;  %v3656_v28 = vcombine.high %v3631_v9, %v3647_v40 }
 0x4a1   : > { %v3453_v17 = vcombine.low %v3434_v33, %v3450_v60  ;;  %v3521_v16 = vcombine.low %v3502_v14, %v3518_v30  ;;  %v3454_v25 = vcombine.high %v3434_v33, %v3450_v60  ;;  %v3522_v56 = vcombine.high %v3502_v14, %v3518_v30 }
 0x4a2   : > { %v3659_v45 = vpack.c.bf16 %v3519_v8, %v3451_v26  ;;  %v3661_v35 = vpack.c.bf16 %v3520_v32, %v3452_v7  ;;  %v3660_v4 = vpack.c.bf16 %v3655_v23, %v3587_v29  ;;  %v3662_v20 = vpack.c.bf16 %v3656_v28, %v3588_v13 }
 0x4a3   : > { %v3663_v39 = vpack.c.bf16 %v3521_v16, %v3453_v17  ;;  %v3665_v59 = vpack.c.bf16 %v3522_v56, %v3454_v25  ;;  %v3589_v44 = vcombine.low %v7971_v36, %v7974_v54  ;;  %v3657_v15 = vcombine.low %v3638_v31, %v3654_v19 }
 0x4a4   : > { %6043 = vmatprep.mubr.msk.bf16.mxu1 %vm3683_vm1, %v3659_v45  ;;  %6055 = vmatprep.mubr.msk.bf16.mxu0 %vm3683_vm1, %v3661_v35  ;;  %v3590_v63 = vcombine.high %v7971_v36, %v7974_v54  ;;  %v3658_v51 = vcombine.high %v3638_v31, %v3654_v19  ;;  %v3828_v38 = vsel %vm3683_vm1, %v3676_v37, 0  ;;  %v3895_v36 = vsel %vm3683_vm1, %v3680_v55, 0  ;;  %v3677_v54 = vld [vmem:[#allocation2 + $0x50] sm:$0xff]  ;;  %v3682_v31 = vld [vmem:[#allocation2 + $0x78] sm:$0xff] }
 0x4a5   : > { %6044 = vmatmul.mubr.msk.bf16.vlgmr.msra.gmra.mrb[0].mxu1 %vm3683_vm1, %v3660_v4  ;;  %6056 = vmatmul.mubr.msk.bf16.vlgmr.msra.gmra.mrb[4].mxu0 %vm3683_vm1, %v3662_v20  ;;  %v3664_v62 = vpack.c.bf16 %v3657_v15, %v3589_v44  ;;  %v3834_v19 = vsel %vm3683_vm1, %v3678_v53, 0  ;;  %v3901_v2 = vsel %vm3683_vm1, %v3682_v31, 0 }
 0x4a6   : > { %6060 = vmatpush3.bf16.xpose.msra.mxu1 %v7887_v34  ;;  %6072 = vmatpush3.bf16.xpose.msra.mxu0 %v7890_v43  ;;  %v3666_v57 = vpack.c.bf16 %v3658_v51, %v3590_v63  ;;  %v3831_v34 = vsel %vm3683_vm1, %v3677_v54, 0  ;;  %v3898_v43 = vsel %vm3683_vm1, %v3681_v41, 0 }
 0x4a7   : > { %6067 = vmatprep.mubr.msk.bf16.mxu1 %vm3683_vm1, %v3663_v39  ;;  %6079 = vmatprep.mubr.msk.bf16.mxu0 %vm3683_vm1, %v3665_v59 }
 0x4a8   : > { %6176 = vmatprep.subr.msk.bf16.mxu1 %vm3683_vm1, %v3676_v37  ;;  %6180 = vmatprep.subr.msk.bf16.mxu0 %vm3683_vm1, %v3680_v55 }
 0x4ae   : > { %6062 = vmatpush3.bf16.xpose.msra.mxu1 %v3828_v38  ;;  %6074 = vmatpush3.bf16.xpose.msra.mxu0 %v3895_v36 }
 0x4af   : > { %6177 = vmatprep.subr.msk.bf16.mxu1 %vm3683_vm1, %v3677_v54  ;;  %6181 = vmatprep.subr.msk.bf16.mxu0 %vm3683_vm1, %v3681_v41 }
 0x4b6   : > { %6064 = vmatpush3.bf16.xpose.msra.mxu1 %v3831_v34  ;;  %6076 = vmatpush3.bf16.xpose.msra.mxu0 %v3898_v43 }
 0x4b7   : > { %6178 = vmatprep.subr.msk.bf16.mxu1 %vm3683_vm1, %v3678_v53  ;;  %6182 = vmatprep.subr.msk.bf16.mxu0 %vm3683_vm1, %v3682_v31 }
 0x4be   : > { %6066 = vmatpush3.bf16.xpose.msra.mxu1 %v3834_v19  ;;  %6078 = vmatpush3.bf16.xpose.msra.mxu0 %v3901_v2 }
 0x4c5   : > { %6068 = vmatmul.mubr.msk.bf16.vlgmr.msra.gmra.mrb[4].mxu1 %vm3683_vm1, %v3664_v62  ;;  %6080 = vmatmul.mubr.msk.bf16.vlgmr.msra.gmra.mrb[8].mxu0 %vm3683_vm1, %v3666_v57 }
 0x578   : > { %v6045_v48 = vpop.f32.mrb[0].mxu1  ;;  %v8020_v49 = vpop.f32.mrb[4].mxu0 }
 0x579   : > { %v3736_v27 = vpop.f32.mrb[1].mxu1  ;;  %v3803_v50 = vpop.f32.mrb[5].mxu0  ;;  %v3959_v18 = vsel %vm3952_vm2, %v6045_v48, -inf  ;;  %v3971_v26 = vsel %vm3952_vm2, %v8020_v49, -inf }
 0x57a   : > { %v8022_v11 = vpop.f32.mrb[2].mxu1  ;;  %v8024_v6 = vpop.f32.mrb[6].mxu0  ;;  %v3953_v42 = vsel %vm3952_vm2, %v3736_v27, -inf  ;;  %v3965_v3 = vsel %vm3952_vm2, %v3803_v50, -inf }
 0x57b   : > { %v8027_v5 = vpop.f32.mrb[7].mxu0  ;;  %3954 = vmax.xlane.f32.xlu0 %v3953_v42  ;;  %v3739_v61 = vpop.f32.mrb[3].mxu1  ;;  %v3962_v24 = vsel %vm3952_vm2, %v8022_v11, -inf  ;;  %v3974_v1 = vsel %vm3952_vm2, %v8024_v6, -inf }
 0x57c   : > { %v3956_v46 = vsel %vm3952_vm2, %v3739_v61, -inf  ;;  %v3968_v7 = vsel %vm3952_vm2, %v8027_v5, -inf }
 0x57d   : > { %3957 = vmax.xlane.f32.xlu1 %v3956_v46 }
 0x57f   : > { %3960 = vmax.xlane.f32.xlu0 %v3959_v18 }
 0x581   : > { %3966 = vmax.xlane.f32.xlu1 %v3965_v3 }
 0x583   : > { %3963 = vmax.xlane.f32.xlu0 %v3962_v24 }
 0x585   : > { %3972 = vmax.xlane.f32.xlu1 %v3971_v26 }
 0x587   : > { %3969 = vmax.xlane.f32.xlu0 %v3968_v7 }
 0x58b   : > { %3975 = vmax.xlane.f32.xlu0 %v3974_v1 }
 0x598   : > { %v8040_v58 = vpop.f32.mrb[4].mxu1  ;;  %v8042_v47 = vpop.f32.mrb[8].mxu0 }
 0x599   : > { %v8044_v0 = vpop.f32.mrb[5].mxu1  ;;  %v8046_v12 = vpop.f32.mrb[9].mxu0  ;;  %v3983_v13 = vsel %vm3952_vm2, %v8040_v58, -inf  ;;  %v3995_v32 = vsel %vm3952_vm2, %v8042_v47, -inf }
 0x59a   : > { %v8048_v9 = vpop.f32.mrb[6].mxu1  ;;  %v8050_v22 = vpop.f32.mrb[10].mxu0  ;;  %v3977_v40 = vsel %vm3952_vm2, %v8044_v0, -inf  ;;  %v3989_v30 = vsel %vm3952_vm2, %v8046_v12, -inf }
 0x59b   : > { %v8054_v33 = vpop.f32.mrb[11].mxu0  ;;  %3978 = vmax.xlane.f32.xlu1 %v3977_v40  ;;  %v8056_v60 = vpop.f32.mrb[7].mxu1  ;;  %v3986_v14 = vsel %vm3952_vm2, %v8048_v9, -inf  ;;  %v3998_v23 = vsel %vm3952_vm2, %v8050_v22, -inf }
 0x59c   : > { %v3980_v29 = vsel %vm3952_vm2, %v8056_v60, -inf  ;;  %v3992_v8 = vsel %vm3952_vm2, %v8054_v33, -inf }
 0x59d   : > { %3981 = vmax.xlane.f32.xlu0 %v3980_v29 }
 0x59f   : > { %3984 = vmax.xlane.f32.xlu1 %v3983_v13 }
 0x5a1   : > { %3987 = vmax.xlane.f32.xlu0 %v3986_v14 }
 0x5a3   : > { %3990 = vmax.xlane.f32.xlu1 %v3989_v30 }
 0x5a5   : > { %3993 = vmax.xlane.f32.xlu0 %v3992_v8 }
 0x5a7   : > { %3996 = vmax.xlane.f32.xlu1 %v3995_v32 }
 0x5a9   : > { %3999 = vmax.xlane.f32.xlu0 %v3998_v23 }
 0x608   : > { %v3955_v28 = vpop.xlane.xlu0 %3954 }
 0x609   : > { %v4001_v17 = vsub.f32 %v3736_v27, %v3955_v28 }
 0x60a   : > { %v3958_v16 = vpop.xlane.xlu1 %3957 }
 0x60b   : > { %v4017_v25 = vmul.f32 1.442695, %v4001_v17  ;;  %v4002_v56 = vsub.f32 %v3739_v61, %v3958_v16 }
 0x60c   : > { %v3961_v45 = vpop.xlane.xlu0 %3960 }
 0x60d   : > { %6472 = vpow2.f32 %v4017_v25  ;;  %v4019_v35 = vmul.f32 1.442695, %v4002_v56  ;;  %v4003_v4 = vsub.f32 %v6045_v48, %v3961_v45  ;;  %v4137_v56 = vld [vmem:[#allocation3] sm:$0xff] }
 0x60e   : > { %v3967_v20 = vpop.xlane.xlu1 %3966  ;;  %6083 = vmatprep.subr.bf16.mxu1 %v4137_v56 }
 0x60f   : > { %6474 = vpow2.f32 %v4019_v35  ;;  %v4021_v39 = vmul.f32 1.442695, %v4003_v4  ;;  %v4005_v59 = vsub.f32 %v3803_v50, %v3967_v20  ;;  %6084 = vmatpush3.bf16.msra.mxu1 %v4137_v56 }
 0x610   : > { %v3964_v44 = vpop.xlane.xlu0 %3963 }
 0x611   : > { %6476 = vpow2.f32 %v4021_v39  ;;  %v4025_v15 = vmul.f32 1.442695, %v4005_v59  ;;  %v4004_v63 = vsub.f32 %v8022_v11, %v3964_v44  ;;  %v4138_v39 = vld [vmem:[#allocation3 + $0x8] sm:$0xff] }
 0x612   : > { %v3973_v51 = vpop.xlane.xlu1 %3972  ;;  %6085 = vmatprep.subr.bf16.mxu1 %v4138_v39 }
 0x613   : > { %6478 = vpow2.f32 %v4025_v15  ;;  %v4023_v37 = vmul.f32 1.442695, %v4004_v63  ;;  %v4007_v55 = vsub.f32 %v8020_v49, %v3973_v51  ;;  %6086 = vmatpush3.bf16.msra.mxu1 %v4138_v39  ;;  %v4139_v15 = vld [vmem:[#allocation3 + $0x10] sm:$0xff] }
 0x614   : > { %v3970_v62 = vpop.xlane.xlu0 %3969  ;;  %6087 = vmatprep.subr.bf16.mxu1 %v4139_v15 }
 0x615   : > { %6480 = vpow2.f32 %v4023_v37  ;;  %v4029_v57 = vmul.f32 1.442695, %v4007_v55  ;;  %v4006_v38 = vsub.f32 %v8027_v5, %v3970_v62  ;;  %v4140_v62 = vld [vmem:[#allocation3 + $0x18] sm:$0xff] }
 0x617   : > { %v8075_v36 = vpop.eup %6472  ;;  %6482 = vpow2.f32 %v4029_v57  ;;  %v4027_v54 = vmul.f32 1.442695, %v4006_v38  ;;  %6088 = vmatpush3.bf16.msra.mxu1 %v4139_v15  ;;  %v4141_v38 = vld [vmem:[#allocation3 + $0x20] sm:$0xff]  ;;  %v4148_v15 = vld [vmem:[#allocation3 + $0x58] sm:$0xff] }
 0x618   : > { %v3976_v41 = vpop.xlane.xlu0 %3975  ;;  %v4049_v34 = vsel %vm3952_vm2, %v8075_v36, 0.0  ;;  %6089 = vmatprep.subr.bf16.mxu1 %v4140_v62 }
 0x619   : > { %v8079_v43 = vpop.eup %6474  ;;  %6484 = vpow2.f32 %v4027_v54  ;;  %v4008_v53 = vsub.f32 %v8024_v6, %v3976_v41  ;;  %4050 = vadd.xlane.f32.xlu1 %v4049_v34 }
 0x61a   : > { %v4052_v31 = vsel %vm3952_vm2, %v8079_v43, 0.0 }
 0x61b   : > { %v8084_v19 = vpop.eup %6476  ;;  %v4031_v2 = vmul.f32 1.442695, %v4008_v53  ;;  %4053 = vadd.xlane.f32.xlu0 %v4052_v31  ;;  %6090 = vmatpush3.bf16.msra.mxu1 %v4140_v62 }
 0x61c   : > { %v4055_v48 = vsel %vm3952_vm2, %v8084_v19, 0.0  ;;  %6095 = vmatprep.subr.bf16.mxu1 %v4141_v38 }
 0x61d   : > { %v8088_v49 = vpop.eup %6478  ;;  %6486 = vpow2.f32 %v4031_v2  ;;  %4056 = vadd.xlane.f32.xlu1 %v4055_v48 }
 0x61e   : > { %v4061_v50 = vsel %vm3952_vm2, %v8088_v49, 0.0 }
 0x61f   : > { %v8090_v27 = vpop.eup %6480 }
 0x620   : > { %v4058_v11 = vsel %vm3952_vm2, %v8090_v27, 0.0 }
 0x621   : > { %v8096_v6 = vpop.eup %6482  ;;  %4062 = vadd.xlane.f32.xlu1 %v4061_v50  ;;  %4059 = vadd.xlane.f32.xlu0 %v4058_v11 }
 0x622   : > { %v4067_v5 = vsel %vm3952_vm2, %v8096_v6, 0.0 }
 0x623   : > { %v8098_v42 = vpop.eup %6484 }
 0x624   : > { %v4064_v61 = vsel %vm3952_vm2, %v8098_v42, 0.0 }
 0x625   : > { %4068 = vadd.xlane.f32.xlu1 %v4067_v5  ;;  %4065 = vadd.xlane.f32.xlu0 %v4064_v61 }
 0x627   : > { %v8104_v46 = vpop.eup %6486 }
 0x628   : > { %v3979_v18 = vpop.xlane.xlu1 %3978  ;;  %v4070_v3 = vsel %vm3952_vm2, %v8104_v46, 0.0 }
 0x629   : > { %v4009_v24 = vsub.f32 %v8044_v0, %v3979_v18  ;;  %4071 = vadd.xlane.f32.xlu0 %v4070_v3 }
 0x62a   : > { %v3982_v26 = vpop.xlane.xlu0 %3981 }
 0x62b   : > { %v4033_v7 = vmul.f32 1.442695, %v4009_v24  ;;  %v4010_v1 = vsub.f32 %v8056_v60, %v3982_v26 }
 0x62c   : > { %v3985_v40 = vpop.xlane.xlu1 %3984 }
 0x62d   : > { %6488 = vpow2.f32 %v4033_v7  ;;  %v4035_v29 = vmul.f32 1.442695, %v4010_v1  ;;  %v4011_v13 = vsub.f32 %v8040_v58, %v3985_v40 }
 0x62e   : > { %v3988_v14 = vpop.xlane.xlu0 %3987 }
 0x62f   : > { %6490 = vpow2.f32 %v4035_v29  ;;  %v4037_v30 = vmul.f32 1.442695, %v4011_v13  ;;  %v4012_v8 = vsub.f32 %v8048_v9, %v3988_v14 }
 0x630   : > { %v3991_v32 = vpop.xlane.xlu1 %3990 }
 0x631   : > { %6492 = vpow2.f32 %v4037_v30  ;;  %v4039_v23 = vmul.f32 1.442695, %v4012_v8  ;;  %v4013_v0 = vsub.f32 %v8046_v12, %v3991_v32 }
 0x632   : > { %v3994_v28 = vpop.xlane.xlu0 %3993 }
 0x633   : > { %6494 = vpow2.f32 %v4039_v23  ;;  %v4041_v17 = vmul.f32 1.442695, %v4013_v0  ;;  %v4014_v60 = vsub.f32 %v8054_v33, %v3994_v28  ;;  %v4142_v23 = vld [vmem:[#allocation3 + $0x28] sm:$0xff]  ;;  %v4143_v28 = vld [vmem:[#allocation3 + $0x30] sm:$0xff] }
 0x634   : > { %v3997_v16 = vpop.xlane.xlu1 %3996 }
 0x635   : > { %6496 = vpow2.f32 %v4041_v17  ;;  %v4043_v25 = vmul.f32 1.442695, %v4014_v60  ;;  %v4015_v58 = vsub.f32 %v8042_v47, %v3997_v16  ;;  %v4144_v17 = vld [vmem:[#allocation3 + $0x38] sm:$0xff] }
 0x636   : > { %v4000_v45 = vpop.xlane.xlu0 %3999 }
 0x637   : > { %v8115_v35 = vpop.eup %6488  ;;  %6498 = vpow2.f32 %v4043_v25  ;;  %v4045_v9 = vmul.f32 1.442695, %v4015_v58  ;;  %v4016_v4 = vsub.f32 %v8050_v22, %v4000_v45 }
 0x638   : > { %v4073_v12 = vsel %vm3952_vm2, %v8115_v35, 0.0 }
 0x639   : > { %v8120_v20 = vpop.eup %6490  ;;  %6500 = vpow2.f32 %v4045_v9  ;;  %v4047_v33 = vmul.f32 1.442695, %v4016_v4  ;;  %4074 = vadd.xlane.f32.xlu1 %v4073_v12  ;;  %v4146_v4 = vld [vmem:[#allocation3 + $0x48] sm:$0xff] }
 0x63a   : > { %v4076_v47 = vsel %vm3952_vm2, %v8120_v20, 0.0 }
 0x63b   : > { %v8124_v59 = vpop.eup %6492  ;;  %6502 = vpow2.f32 %v4047_v33  ;;  %4077 = vadd.xlane.f32.xlu0 %v4076_v47  ;;  %v4147_v33 = vld [vmem:[#allocation3 + $0x50] sm:$0xff] }
 0x63c   : > { %v4079_v22 = vsel %vm3952_vm2, %v8124_v59, 0.0 }
 0x63d   : > { %v8128_v44 = vpop.eup %6494  ;;  %4080 = vadd.xlane.f32.xlu1 %v4079_v22 }
 0x63e   : > { %v4082_v63 = vsel %vm3952_vm2, %v8128_v44, 0.0 }
 0x63f   : > { %v8132_v51 = vpop.eup %6496  ;;  %4083 = vadd.xlane.f32.xlu0 %v4082_v63 }
 0x640   : > { %v4085_v37 = vsel %vm3952_vm2, %v8132_v51, 0.0 }
 0x641   : > { %v8136_v55 = vpop.eup %6498  ;;  %4086 = vadd.xlane.f32.xlu1 %v4085_v37 }
 0x642   : > { %v4088_v57 = vsel %vm3952_vm2, %v8136_v55, 0.0 }
 0x643   : > { %v8140_v54 = vpop.eup %6500  ;;  %4089 = vadd.xlane.f32.xlu0 %v4088_v57 }
 0x644   : > { %v4091_v41 = vsel %vm3952_vm2, %v8140_v54, 0.0 }
 0x645   : > { %v8144_v34 = vpop.eup %6502  ;;  %4092 = vadd.xlane.f32.xlu1 %v4091_v41  ;;  %v4149_v41 = vld [vmem:[#allocation3 + $0x60] sm:$0xff] }
 0x646   : > { %v4094_v53 = vsel %vm3952_vm2, %v8144_v34, 0.0 }
 0x647   : > { %4095 = vadd.xlane.f32.xlu0 %v4094_v53 }
 0x6a6   : > { %v4051_v31 = vpop.xlane.xlu1 %4050 }
 0x6a7   : > { %6504 = vrcp.f32 %v4051_v31 }
 0x6a8   : > { %v4054_v2 = vpop.xlane.xlu0 %4053 }
 0x6a9   : > { %6506 = vrcp.f32 %v4054_v2 }
 0x6aa   : > { %v4057_v48 = vpop.xlane.xlu1 %4056 }
 0x6ab   : > { %6508 = vrcp.f32 %v4057_v48 }
 0x6ae   : > { %v4060_v50 = vpop.xlane.xlu0 %4059  ;;  %v4063_v11 = vpop.xlane.xlu1 %4062 }
 0x6af   : > { %6510 = vrcp.f32 %v4060_v50 }
 0x6b0   : > { %6512 = vrcp.f32 %v4063_v11  ;;  %v4150_v11 = vld [vmem:[#allocation3 + $0x68] sm:$0xff] }
 0x6b1   : > { %v6505_v5 = vpop.eup %6504 }
 0x6b2   : > { %v4066_v61 = vpop.xlane.xlu0 %4065  ;;  %v4098_v3 = vmul.f32 %v6505_v5, %v8075_v36  ;;  %v4069_v14 = vpop.xlane.xlu1 %4068  ;;  %v4152_v5 = vld [vmem:[#allocation3 + $0x78] sm:$0xff] }
 0x6b3   : > { %v6507_v18 = vpop.eup %6506  ;;  %6514 = vrcp.f32 %v4066_v61 }
 0x6b4   : > { %v4100_v24 = vmul.f32 %v6507_v18, %v8079_v43 }
 0x6b5   : > { %v6509_v7 = vpop.eup %6508 }
 0x6b6   : > { %v4129_v26 = vpack.c.bf16 %v4100_v24, %v4098_v3  ;;  %v4072_v1 = vpop.xlane.xlu0 %4071  ;;  %v4102_v29 = vmul.f32 %v6509_v7, %v8084_v19  ;;  %v6422_v3 = vld [vmem:[#allocation10] sm:$0xff]   ;;  %v6423_v24 = vld [vmem:[#allocation10 + $0x8] sm:$0xff]   ;;  %v6425_v7 = vld [vmem:[#allocation10 + $0x18] sm:$0xff]  }
 0x6b7   : > { %6516 = vrcp.f32 %v4072_v1  ;;  %6131 = vmatprep.subr.bf16.mxu0 %v6422_v3 }
 0x6b8   : > { %6091 = vmatprep.mubr.msk.bf16.mxu1 %vm3952_vm2, %v4129_v26  ;;  %6518 = vrcp.f32 %v4069_v14  ;;  %6132 = vmatpush3.bf16.msra.mxu0 %v6422_v3  ;;  %v6424_v26 = vld [vmem:[#allocation10 + $0x10] sm:$0xff]  }
 0x6b9   : > { %v6511_v40 = vpop.eup %6510  ;;  %6133 = vmatprep.subr.bf16.mxu0 %v6423_v24 }
 0x6ba   : > { %v4104_v13 = vmul.f32 %v6511_v40, %v8090_v27  ;;  %v6513_v30 = vpop.eup %6512 }
 0x6bb   : > { %v4106_v36 = vmul.f32 %v6513_v30, %v8088_v49 }
 0x6bc   : > { %v4130_v8 = vpack.c.bf16 %v4104_v13, %v4102_v29  ;;  %6134 = vmatpush3.bf16.msra.mxu0 %v6423_v24 }
 0x6bd   : > { %v6515_v32 = vpop.eup %6514  ;;  %6135 = vmatprep.subr.bf16.mxu0 %v6424_v26 }
 0x6be   : > { %6092 = vmatmul.mubr.msk.bf16.vlgmr.msra.gmra.mrb[8].mxu1 %vm3952_vm2, %v4130_v8  ;;  %v4108_v43 = vmul.f32 %v6515_v32, %v8098_v42  ;;  %v4145_v42 = vld [vmem:[#allocation3 + $0x40] sm:$0xff] }
 0x6bf   : > { %6096 = vmatpush3.bf16.msra.mxu1 %v4141_v38 }
 0x6c0   : > { %6097 = vmatprep.subr.bf16.mxu1 %v4142_v23  ;;  %v4131_v0 = vpack.c.bf16 %v4108_v43, %v4106_v36  ;;  %6136 = vmatpush3.bf16.msra.mxu0 %v6424_v26 }
 0x6c1   : > { %v6517_v19 = vpop.eup %6516  ;;  %6137 = vmatprep.subr.bf16.mxu0 %v6425_v7 }
 0x6c2   : > { %6103 = vmatprep.mubr.msk.bf16.mxu1 %vm3952_vm2, %v4131_v0  ;;  %v6519_v60 = vpop.eup %6518  ;;  %v4112_v25 = vmul.f32 %v6517_v19, %v8104_v46 }
 0x6c3   : > { %6098 = vmatpush3.bf16.msra.mxu1 %v4142_v23  ;;  %v4110_v58 = vmul.f32 %v6519_v60, %v8096_v6 }
 0x6c4   : > { %6099 = vmatprep.subr.bf16.mxu1 %v4143_v28  ;;  %6138 = vmatpush3.bf16.msra.mxu0 %v6425_v7 }
 0x6c5   : > { %v4132_v45 = vpack.c.bf16 %v4112_v25, %v4110_v58 }
 0x6c6   : > { %v4075_v27 = vpop.xlane.xlu1 %4074 }
 0x6c7   : > { %6520 = vrcp.f32 %v4075_v27  ;;  %6100 = vmatpush3.bf16.msra.mxu1 %v4143_v28 }
 0x6c8   : > { %v4078_v16 = vpop.xlane.xlu0 %4077  ;;  %6101 = vmatprep.subr.bf16.mxu1 %v4144_v17 }
 0x6c9   : > { %6522 = vrcp.f32 %v4078_v16 }
 0x6ca   : > { %v4081_v49 = vpop.xlane.xlu1 %4080 }
 0x6cb   : > { %6102 = vmatpush3.bf16.msra.mxu1 %v4144_v17 }
 0x6cc   : > { %v4084_v56 = vpop.xlane.xlu0 %4083  ;;  %6107 = vmatprep.subr.bf16.mxu1 %v4145_v42 }
 0x6cd   : > { %6524 = vrcp.f32 %v4084_v56 }
 0x6ce   : > { %6526 = vrcp.f32 %v4081_v49  ;;  %v4087_v9 = vpop.xlane.xlu1 %4086  ;;  %6104 = vmatmul.mubr.msk.bf16.vlgmr.msra.gmra.mrb[12].mxu1 %vm3952_vm2, %v4132_v45 }
 0x6cf   : > { %6528 = vrcp.f32 %v4087_v9  ;;  %6108 = vmatpush3.bf16.msra.mxu1 %v4145_v42 }
 0x6d0   : > { %v4090_v12 = vpop.xlane.xlu0 %4089  ;;  %6109 = vmatprep.subr.bf16.mxu1 %v4146_v4 }
 0x6d1   : > { %v6521_v46 = vpop.eup %6520  ;;  %6530 = vrcp.f32 %v4090_v12 }
 0x6d2   : > { %v4114_v6 = vmul.f32 %v6521_v46, %v8115_v35  ;;  %v4093_v35 = vpop.xlane.xlu1 %4092 }
 0x6d3   : > { %v6523_v39 = vpop.eup %6522  ;;  %6110 = vmatpush3.bf16.msra.mxu1 %v4146_v4 }
 0x6d4   : > { %v4116_v47 = vmul.f32 %v6523_v39, %v8120_v20  ;;  %6111 = vmatprep.subr.bf16.mxu1 %v4147_v33  ;;  %v4096_v38 = vpop.xlane.xlu0 %4095 }
 0x6d5   : > { %6532 = vrcp.f32 %v4096_v38 }
 0x6d6   : > { %v4133_v22 = vpack.c.bf16 %v4116_v47, %v4114_v6  ;;  %6534 = vrcp.f32 %v4093_v35 }
 0x6d7   : > { %v6525_v63 = vpop.eup %6524  ;;  %6112 = vmatpush3.bf16.msra.mxu1 %v4147_v33 }
 0x6d8   : > { %v6527_v37 = vpop.eup %6526  ;;  %6115 = vmatprep.mubr.msk.bf16.mxu1 %vm3952_vm2, %v4133_v22  ;;  %v4120_v57 = vmul.f32 %v6525_v63, %v8128_v44  ;;  %6113 = vmatprep.subr.bf16.mxu1 %v4148_v15  ;;  %v4151_v44 = vld [vmem:[#allocation3 + $0x70] sm:$0xff] }
 0x6d9   : > { %v6529_v62 = vpop.eup %6528  ;;  %v4118_v31 = vmul.f32 %v6527_v37, %v8124_v59 }
 0x6da   : > { %v4122_v20 = vmul.f32 %v6529_v62, %v8132_v51 }
 0x6db   : > { %v6531_v53 = vpop.eup %6530  ;;  %6114 = vmatpush3.bf16.msra.mxu1 %v4148_v15  ;;  %v4134_v48 = vpack.c.bf16 %v4120_v57, %v4118_v31 }
 0x6dc   : > { %v4124_v2 = vmul.f32 %v6531_v53, %v8136_v55  ;;  %6119 = vmatprep.subr.bf16.mxu1 %v4149_v41 }
 0x6de   : > { %v4135_v50 = vpack.c.bf16 %v4124_v2, %v4122_v20  ;;  %6116 = vmatmul.mubr.msk.bf16.vlgmr.msra.gmra.mrb[16].mxu1 %vm3952_vm2, %v4134_v48 }
 0x6df   : > { %6120 = vmatpush3.bf16.msra.mxu1 %v4149_v41  ;;  %v6533_v59 = vpop.eup %6532 }
 0x6e0   : > { %6127 = vmatprep.mubr.msk.bf16.mxu1 %vm3952_vm2, %v4135_v50  ;;  %6121 = vmatprep.subr.bf16.mxu1 %v4150_v11  ;;  %v6535_v61 = vpop.eup %6534  ;;  %v4128_v51 = vmul.f32 %v6533_v59, %v8144_v34 }
 0x6e1   : > { %v4126_v55 = vmul.f32 %v6535_v61, %v8140_v54 }
 0x6e3   : > { %6122 = vmatpush3.bf16.msra.mxu1 %v4150_v11  ;;  %v4136_v18 = vpack.c.bf16 %v4128_v51, %v4126_v55 }
 0x6e4   : > { %6123 = vmatprep.subr.bf16.mxu1 %v4151_v44 }
 0x6e7   : > { %6124 = vmatpush3.bf16.msra.mxu1 %v4151_v44 }
 0x6e8   : > { %6125 = vmatprep.subr.bf16.mxu1 %v4152_v5 }
 0x6eb   : > { %6126 = vmatpush3.bf16.msra.mxu1 %v4152_v5 }
 0x6ee   : > { %6128 = vmatmul.mubr.msk.bf16.vlgmr.msra.gmra.mrb[20].mxu1 %vm3952_vm2, %v4136_v18 }
 0x791   : > { %v6093_v34 = vpop.f32.mrb[8].mxu1 }
 0x792   : > { %v4193_v1 = vpop.f32.mrb[9].mxu1 }
 0x793   : > { %v6094_v40 = vpop.f32.mrb[10].mxu1 }
 0x794   : > { %v4196_v54 = vpop.f32.mrb[11].mxu1 }
 0x7a1   : > { %v6105_v29 = vpop.f32.mrb[12].mxu1 }
 0x7a2   : > { %v4248_v13 = vpop.f32.mrb[13].mxu1 }
 0x7a3   : > { %v8172_v14 = vpop.f32.mrb[14].mxu1 }
 0x7a4   : > { %v8174_v30 = vpop.f32.mrb[15].mxu1 }
 0x7b1   : > { %v6117_v8 = vpop.f32.mrb[16].mxu1 }
 0x7b2   : > { %v4509_v32 = vcombine.low %v6093_v34, %v6117_v8  ;;  %v4510_v23 = vcombine.high %v6093_v34, %v6117_v8  ;;  %v4303_v36 = vpop.f32.mrb[17].mxu1 }
 0x7b3   : > { %v4373_v43 = vcombine.low %v4193_v1, %v4303_v36  ;;  %v4374_v0 = vcombine.high %v4193_v1, %v4303_v36  ;;  %v6118_v28 = vpop.f32.mrb[18].mxu1 }
 0x7b4   : > { %v4577_v19 = vcombine.low %v6094_v40, %v6118_v28  ;;  %v4578_v27 = vcombine.high %v6094_v40, %v6118_v28  ;;  %v4306_v17 = vpop.f32.mrb[19].mxu1  ;;  %v4517_v25 = vrot.slane %v4509_v32, %v7875_v21  ;;  %v4524_v49 = vrot.slane %v4510_v23, %v7875_v21 }
 0x7b5   : > { %v4441_v60 = vcombine.low %v4196_v54, %v4306_v17  ;;  %v4442_v16 = vcombine.high %v4196_v54, %v4306_v17  ;;  %v4381_v42 = vrot.slane %v4373_v43, %v7875_v21  ;;  %v4388_v58 = vrot.slane %v4374_v0, %v7875_v21 }
 0x7b6   : > { %v8181_v45 = vrot.slane %v4577_v19, %v7875_v21  ;;  %v8184_v9 = vrot.slane %v4578_v27, %v7875_v21 }
 0x7b7   : > { %v8187_v33 = vrot.slane %v4441_v60, %v7875_v21  ;;  %v8190_v39 = vrot.slane %v4442_v16, %v7875_v21 }
 0x7c1   : > { %v6129_v56 = vpop.f32.mrb[20].mxu1 }
 0x7c2   : > { %v4525_v4 = vcombine.low %v6105_v29, %v6129_v56  ;;  %v4526_v12 = vcombine.high %v6105_v29, %v6129_v56  ;;  %v4358_v46 = vpop.f32.mrb[21].mxu1 }
 0x7c3   : > { %v4389_v6 = vcombine.low %v4248_v13, %v4358_v46  ;;  %v4390_v47 = vcombine.high %v4248_v13, %v4358_v46  ;;  %v6130_v22 = vpop.f32.mrb[22].mxu1 }
 0x7c4   : > { %v4533_v15 = vrot.slane %v4525_v4, %v7875_v21  ;;  %v4540_v63 = vrot.slane %v4526_v12, %v7875_v21  ;;  %v4593_v37 = vcombine.low %v8172_v14, %v6130_v22  ;;  %v4594_v62 = vcombine.high %v8172_v14, %v6130_v22  ;;  %v4361_v57 = vpop.f32.mrb[23].mxu1 }
 0x7c5   : > { %v4397_v38 = vrot.slane %v4389_v6, %v7875_v21  ;;  %v4404_v41 = vrot.slane %v4390_v47, %v7875_v21  ;;  %v4457_v53 = vcombine.low %v8174_v30, %v4361_v57  ;;  %v4458_v31 = vcombine.high %v8174_v30, %v4361_v57 }
 0x7c6   : > { %v4541_v35 = vcombine.low %v4517_v25, %v4533_v15  ;;  %v4542_v20 = vcombine.high %v4517_v25, %v4533_v15  ;;  %v4557_v2 = vcombine.low %v4524_v49, %v4540_v63  ;;  %v4558_v48 = vcombine.high %v4524_v49, %v4540_v63 }
 0x7c7   : > { %v4405_v50 = vcombine.low %v4381_v42, %v4397_v38  ;;  %v4406_v11 = vcombine.high %v4381_v42, %v4397_v38  ;;  %v4421_v44 = vcombine.low %v4388_v58, %v4404_v41  ;;  %v4422_v59 = vcombine.high %v4388_v58, %v4404_v41 }
 0x7c8   : > { %v4549_v5 = vrot.slane %v4541_v35, %v7882_v52  ;;  %v4556_v61 = vrot.slane %v4542_v20, %v7882_v52  ;;  %v4565_v51 = vrot.slane %v4557_v2, %v7882_v52  ;;  %v4572_v55 = vrot.slane %v4558_v48, %v7882_v52 }
 0x7c9   : > { %v4413_v18 = vrot.slane %v4405_v50, %v7882_v52  ;;  %v4420_v3 = vrot.slane %v4406_v11, %v7882_v52  ;;  %v4429_v24 = vrot.slane %v4421_v44, %v7882_v52  ;;  %v4436_v26 = vrot.slane %v4422_v59, %v7882_v52  ;;  %v6426_v59 = vld [vmem:[#allocation10 + $0x20] sm:$0xff]  }
 0x7ca   : > { %v4781_v7 = vcombine.low %v4549_v5, %v4556_v61  ;;  %v5863_v34 = vcombine.high %v4549_v5, %v4556_v61  ;;  %v4797_v1 = vcombine.low %v4565_v51, %v4572_v55  ;;  %v5864_v40 = vcombine.high %v4565_v51, %v4572_v55  ;;  %6139 = vmatprep.subr.bf16.mxu0 %v6426_v59 }
 0x7cb   : > { %v4645_v54 = vcombine.low %v4413_v18, %v4420_v3  ;;  %v5859_v29 = vcombine.high %v4413_v18, %v4420_v3  ;;  %v4661_v13 = vcombine.low %v4429_v24, %v4436_v26  ;;  %v5860_v14 = vcombine.high %v4429_v24, %v4436_v26  ;;  %6140 = vmatpush3.bf16.msra.mxu0 %v6426_v59 }
 0x7cc   : > { %v4788_v30 = vrot.slane %v4781_v7, %v7875_v21  ;;  %v4796_v8 = vrot.slane %v5863_v34, %v7875_v21  ;;  %v4804_v32 = vrot.slane %v4797_v1, %v7875_v21  ;;  %v4812_v23 = vrot.slane %v5864_v40, %v7875_v21 }
 0x7cd   : > { %v8213_v36 = vrot.slane %v4645_v54, %v7875_v21  ;;  %v8216_v43 = vrot.slane %v5859_v29, %v7875_v21  ;;  %v8219_v0 = vrot.slane %v4661_v13, %v7875_v21  ;;  %v8222_v28 = vrot.slane %v5860_v14, %v7875_v21 }
 0x7ce   : > { %v4601_v19 = vrot.slane %v4593_v37, %v7875_v21  ;;  %v4608_v27 = vrot.slane %v4594_v62, %v7875_v21  ;;  %v4465_v17 = vrot.slane %v4457_v53, %v7875_v21  ;;  %v4472_v60 = vrot.slane %v4458_v31, %v7875_v21 }
 0x7cf   : > { %v4814_v16 = vcombine.high %v4788_v30, %v4796_v8  ;;  %v4830_v25 = vcombine.high %v4804_v32, %v4812_v23  ;;  %v4813_v49 = vcombine.low %v4788_v30, %v4796_v8  ;;  %v4829_v42 = vcombine.low %v4804_v32, %v4812_v23 }
 0x7d0   : > { %v4609_v58 = vcombine.low %v8181_v45, %v4601_v19  ;;  %v4610_v56 = vcombine.high %v8181_v45, %v4601_v19  ;;  %v4625_v4 = vcombine.low %v8184_v9, %v4608_v27  ;;  %v4626_v12 = vcombine.high %v8184_v9, %v4608_v27 }
 0x7d1   : > { %v4473_v46 = vcombine.low %v8187_v33, %v4465_v17  ;;  %v4474_v6 = vcombine.high %v8187_v33, %v4465_v17  ;;  %v4489_v47 = vcombine.low %v8190_v39, %v4472_v60  ;;  %v4490_v22 = vcombine.high %v8190_v39, %v4472_v60 }
 0x7d2   : > { %v4617_v15 = vrot.slane %v4609_v58, %v7882_v52  ;;  %v4624_v63 = vrot.slane %v4610_v56, %v7882_v52  ;;  %v4633_v37 = vrot.slane %v4625_v4, %v7882_v52  ;;  %v4640_v45 = vrot.slane %v4626_v12, %v7882_v52 }
 0x7d3   : > { %v4481_v62 = vrot.slane %v4473_v46, %v7882_v52  ;;  %v4488_v9 = vrot.slane %v4474_v6, %v7882_v52  ;;  %v4497_v57 = vrot.slane %v4489_v47, %v7882_v52  ;;  %v4504_v33 = vrot.slane %v4490_v22, %v7882_v52 }
 0x7d4   : > { %v4849_v38 = vcombine.low %v4617_v15, %v4624_v63  ;;  %v5865_v41 = vcombine.high %v4617_v15, %v4624_v63  ;;  %v4865_v53 = vcombine.low %v4633_v37, %v4640_v45  ;;  %v5866_v39 = vcombine.high %v4633_v37, %v4640_v45 }
 0x7d5   : > { %v4713_v31 = vcombine.low %v4481_v62, %v4488_v9  ;;  %v5861_v35 = vcombine.high %v4481_v62, %v4488_v9  ;;  %v4729_v20 = vcombine.low %v4497_v57, %v4504_v33  ;;  %v5862_v2 = vcombine.high %v4497_v57, %v4504_v33  ;;  %v6428_v62 = vld [vmem:[#allocation10 + $0x30] sm:$0xff]  }
 0x7d6   : > { %v4856_v48 = vrot.slane %v4849_v38, %v7875_v21  ;;  %v4864_v50 = vrot.slane %v5865_v41, %v7875_v21  ;;  %v4872_v11 = vrot.slane %v4865_v53, %v7875_v21  ;;  %v4880_v44 = vrot.slane %v5866_v39, %v7875_v21 }
 0x7d7   : > { %v4720_v5 = vrot.slane %v4713_v31, %v7875_v21  ;;  %v4728_v61 = vrot.slane %v5861_v35, %v7875_v21  ;;  %v4736_v51 = vrot.slane %v4729_v20, %v7875_v21  ;;  %v4744_v55 = vrot.slane %v5862_v2, %v7875_v21  ;;  %v6429_v20 = vld [vmem:[#allocation10 + $0x38] sm:$0xff]  }
 0x7d8   : > { %v4828_v18 = vrot.slane %v4814_v16, %v7882_v52  ;;  %v4844_v3 = vrot.slane %v4830_v25, %v7882_v52  ;;  %v4882_v24 = vcombine.high %v4856_v48, %v4864_v50  ;;  %v4898_v26 = vcombine.high %v4872_v11, %v4880_v44 }
 0x7d9   : > { %v8255_v7 = vrot.slane %v4813_v49, %v7882_v52  ;;  %v8258_v34 = vrot.slane %v4829_v42, %v7882_v52  ;;  %v4881_v1 = vcombine.low %v4856_v48, %v4864_v50  ;;  %v4897_v40 = vcombine.low %v4872_v11, %v4880_v44  ;;  %v6427_v42 = vld [vmem:[#allocation10 + $0x28] sm:$0xff]  }
 0x7da   : > { %v4847_v54 = vcombine.low %v4828_v18, %v4844_v3  ;;  %v4896_v29 = vrot.slane %v4882_v24, %v7882_v52  ;;  %v4912_v21 = vrot.slane %v4898_v26, %v7882_v52  ;;  %v4678_v13 = vcombine.high %v8213_v36, %v8216_v43  ;;  %6141 = vmatprep.subr.bf16.mxu0 %v6427_v42 }
 0x7db   : > { %v4845_v14 = vcombine.low %v8255_v7, %v8258_v34  ;;  %v4846_v30 = vcombine.high %v8255_v7, %v8258_v34  ;;  %v8269_v8 = vrot.slane %v4881_v1, %v7882_v52  ;;  %v8272_v32 = vrot.slane %v4897_v40, %v7882_v52  ;;  %6142 = vmatpush3.bf16.msra.mxu0 %v6427_v42 }
 0x7dc   : > { %v4915_v23 = vcombine.low %v4896_v29, %v4912_v21  ;;  %v4692_v19 = vrot.slane %v4678_v13, %v7882_v52  ;;  %v4694_v27 = vcombine.high %v8219_v0, %v8222_v28  ;;  %v4746_v17 = vcombine.high %v4720_v5, %v4728_v61  ;;  %6143 = vmatprep.subr.bf16.mxu0 %v6428_v62 }
 0x7dd   : > { %v4914_v60 = vcombine.high %v8269_v8, %v8272_v32  ;;  %v4913_v16 = vcombine.low %v8269_v8, %v8272_v32  ;;  %v4762_v25 = vcombine.high %v4736_v51, %v4744_v55  ;;  %v4677_v49 = vcombine.low %v8213_v36, %v8216_v43 }
 0x7de   : > { %v6387_v58 = vpack.i.bf16 %v4915_v23, %v4847_v54  ;;  %v4708_v56 = vrot.slane %v4694_v27, %v7882_v52  ;;  %v4760_v4 = vrot.slane %v4746_v17, %v7882_v52  ;;  %v4693_v12 = vcombine.low %v8219_v0, %v8222_v28 }
 0x7df   : > { %v6382_v46 = vpack.i.bf16 %v4914_v60, %v4846_v30  ;;  %v4776_v6 = vrot.slane %v4762_v25, %v7882_v52  ;;  %v4685_v47 = vrot.slane %v4677_v49, %v7882_v52  ;;  %v4745_v22 = vcombine.low %v4720_v5, %v4728_v61  ;;  %6144 = vmatpush3.bf16.msra.mxu0 %v6428_v62  ;;  %v6552_v25 = vld [vmem:[%s7814_s8] sm:$0xff]  }
 0x7e0   : > { %6388 = vrot.lane.b32.xlu1 %v6387_v58, %s6877_s11  ;;  %v4712_v15 = vcombine.high %v4692_v19, %v4708_v56  ;;  %v4701_v36 = vrot.slane %v4693_v12, %v7882_v52  ;;  %v4761_v43 = vcombine.low %v4736_v51, %v4744_v55  ;;  %v4711_v63 = vcombine.low %v4692_v19, %v4708_v56 }
 0x7e1   : > { %6383 = vrot.lane.b32.xlu0 %v6382_v46, %s6878_s1  ;;  %v4780_v37 = vcombine.high %v4760_v4, %v4776_v6  ;;  %v4753_v45 = vrot.slane %v4745_v22, %v7882_v52  ;;  %v4779_v0 = vcombine.low %v4760_v4, %v4776_v6  ;;  %v4848_v28 = vcombine.high %v4828_v18, %v4844_v3  ;;  %v6553_v4 = vld [vmem:[%s7814_s8 + $0x8] sm:$0xff]  }
 0x7e2   : > { %v4709_v9 = vcombine.low %v4685_v47, %v4701_v36  ;;  %v4710_v57 = vcombine.high %v4685_v47, %v4701_v36  ;;  %v4769_v33 = vrot.slane %v4761_v43, %v7882_v52  ;;  %v4916_v38 = vcombine.high %v4896_v29, %v4912_v21  ;;  %6145 = vmatprep.subr.bf16.mxu0 %v6429_v20 }
 0x7e3   : > { %v6402_v41 = vpack.i.bf16 %v4780_v37, %v4712_v15  ;;  %v6397_v53 = vpack.i.bf16 %v4779_v0, %v4711_v63  ;;  %6146 = vmatpush3.bf16.msra.mxu0 %v6429_v20  ;;  %v4996_v49 = vunpack.c.l.bf16 %v6552_v25  ;;  %v4997_v42 = vunpack.c.h.bf16 %v6552_v25  ;;  %v6430_v63 = vld [vmem:[#allocation12] ss:$8 sps:$4 sm:$0xff]   ;;  %v6432_v37 = vld [vmem:[#allocation12 + $0x4] ss:$8 sps:$4 sm:$0xff]   ;;  %v6433_v0 = vld [vmem:[#allocation12 + $0x10] ss:$8 sps:$4 sm:$0xff]  }
 0x7e4   : > { %v4778_v39 = vcombine.high %v4753_v45, %v4769_v33  ;;  %v4777_v31 = vcombine.low %v4753_v45, %v4769_v33  ;;  %v6407_v35 = vpack.i.bf16 %v4916_v38, %v4848_v28  ;;  %v4998_v12 = vunpack.c.l.bf16 %v6553_v4  ;;  %v6435_v45 = vld [vmem:[#allocation12 + $0x14] ss:$8 sps:$4 sm:$0xff]   ;;  %5274 = vmatprep.subr.bf16.mxu1 %v6432_v37 }
 0x7e5   : > { %6403 = vrot.lane.b32.xlu0 %v6402_v41, %s6876_s9  ;;  %v4999_v36 = vunpack.c.h.bf16 %v6553_v4  ;;  %5275 = vmatpush1.bf16.msra.mxu1 %v6430_v63  ;;  %v5876_v63 = vld [vmem:[%s8523_s27] ss:$0 sm:$0xff]  ;;  %s5913_s27 = sshll.u32 %s8521_s12, 2 }
 0x7e6   : > { %v6392_v2 = vpack.i.bf16 %v4778_v39, %v4710_v57  ;;  %5276 = vmatprep.subr.bf16.mxu1 %v6435_v45 }
 0x7e8   : > { %6393 = vrot.lane.b32.xlu1 %v6392_v2, %s6878_s1  ;;  %s8390_s1 = scalar_lea.sflag [#allocation6], %s516_s6 }
 0x7e9   : > { %5277 = vmatpush1.bf16.msra.mxu1 %v6433_v0 }
 0x7ec   : > { %6398 = vrot.lane.b32.xlu1 %v6397_v53, %s6877_s11  ;;  %s8526_s11 = sld [smem:[#allocation22_spill]] }
 0x7f0   : > { %6408 = vrot.lane.b32.xlu1 %v6407_v35, %s6876_s9  ;;  %s8525_s9 = sld [smem:[#allocation35_spill]] }
 0x7f2   : > { %s5914_s4 = sshll.u32 %s8526_s11, 3 }
 0x7f3   : > { %s5610_s3 = sadd.s32 %s5914_s4, %s5913_s27 }
 0x7f4   : > { %s5915_s17 = sshll.u32 %s5610_s3, 7 }
 0x852   : > { %v6389_v52 = vpop.permute.xlu1 %6388 }
 0x853   : > { %v6384_v48 = vpop.permute.xlu0 %6383  ;;  %v6391_v55 = vunpack.i.h.bf16 %v6389_v52  ;;  %v6390_v18 = vunpack.i.l.bf16 %v6389_v52 }
 0x854   : > { %v6386_v59 = vunpack.i.h.bf16 %v6384_v48  ;;  %v6385_v5 = vunpack.i.l.bf16 %v6384_v48 }
 0x856   : > { %v4967_v29 = vsel %vm3683_vm1, %v4845_v14, %v6385_v5  ;;  %v4968_v21 = vsel %vm3683_vm1, %v4913_v16, %v6386_v59  ;;  %v6441_v59 = vld [vmem:[#allocation12 + $0x34] ss:$8 sps:$4 sm:$0xff]   ;;  %v6439_v5 = vld [vmem:[#allocation12 + $0x30] ss:$8 sps:$4 sm:$0xff]  }
 0x857   : > { %v6404_v61 = vpop.permute.xlu0 %6403  ;;  %v4971_v14 = vsel %vm3952_vm2, %v4967_v29, %v6390_v18  ;;  %v4972_v8 = vsel %vm3952_vm2, %v4968_v21, %v6391_v55  ;;  %v6447_v55 = vld [vmem:[#allocation12 + $0x54] ss:$8 sps:$4 sm:$0xff]   ;;  %v6445_v18 = vld [vmem:[#allocation12 + $0x50] ss:$8 sps:$4 sm:$0xff]   ;;  %v6455_v29 = vld [vmem:[#allocation13] sm:$0xff]  }
 0x858   : > { %v6406_v26 = vunpack.i.h.bf16 %v6404_v61  ;;  %v6405_v1 = vunpack.i.l.bf16 %v6404_v61  ;;  %v6444_v61 = vld [vmem:[#allocation12 + $0x44] ss:$8 sps:$4 sm:$0xff]  }
 0x859   : > { %v6456_v21 = vld [vmem:[#allocation13 + $0x48] sm:$0xff]  }
 0x85a   : > { %v6394_v50 = vpop.permute.xlu1 %6393 }
 0x85b   : > { %v6396_v11 = vunpack.i.h.bf16 %v6394_v50  ;;  %v6395_v44 = vunpack.i.l.bf16 %v6394_v50 }
 0x85d   : > { %v4965_v40 = vsel %vm3683_vm1, %v4709_v9, %v6395_v44  ;;  %v4966_v54 = vsel %vm3683_vm1, %v4777_v31, %v6396_v11  ;;  %v6438_v11 = vld [vmem:[#allocation12 + $0x24] ss:$8 sps:$4 sm:$0xff]   ;;  %v6436_v44 = vld [vmem:[#allocation12 + $0x20] ss:$8 sps:$4 sm:$0xff]  }
 0x85e   : > { %v6399_v51 = vpop.permute.xlu1 %6398  ;;  %5278 = vmatprep.subr.bf16.mxu1 %v6438_v11  ;;  %v5190_v11 = vsub.s32 1, %v7872_v10 }
 0x85f   : > { %v6401_v3 = vunpack.i.h.bf16 %v6399_v51  ;;  %v6400_v24 = vunpack.i.l.bf16 %v6399_v51  ;;  %5279 = vmatpush1.bf16.msra.mxu1 %v6436_v44  ;;  %v6442_v51 = vld [vmem:[#allocation12 + $0x40] ss:$8 sps:$4 sm:$0xff]  }
 0x860   : > { %5280 = vmatprep.subr.bf16.mxu1 %v6441_v59 }
 0x861   : > { %v4969_v13 = vsel %vm3952_vm2, %v4965_v40, %v6400_v24  ;;  %v4970_v30 = vsel %vm3952_vm2, %v4966_v54, %v6401_v3  ;;  %v6448_v3 = vld [vmem:[#allocation12 + $0x60] ss:$8 sps:$4 sm:$0xff]   ;;  %v6450_v24 = vld [vmem:[#allocation12 + $0x64] ss:$8 sps:$4 sm:$0xff]   ;;  %v6451_v40 = vld [vmem:[#allocation12 + $0x70] ss:$8 sps:$4 sm:$0xff]  }
 0x862   : > { %v6409_v23 = vpop.permute.xlu1 %6408  ;;  %v4974_v19 = vsel %vm4973_vm3, %v4969_v13, %v6405_v1  ;;  %v4975_v27 = vsel %vm4973_vm3, %v4970_v30, %v6406_v26  ;;  %v6453_v26 = vld [vmem:[#allocation12 + $0x74] ss:$8 sps:$4 sm:$0xff]   ;;  %v6881_v1 = vmov 0   ;;  %v6454_v54 = vld [vmem:[#allocation13 + $0x40] sm:$0xff]   ;;  %v6457_v13 = vld [vmem:[#allocation13 + $0x8] sm:$0xff]  }
 0x863   : > { %v6411_v17 = vunpack.i.h.bf16 %v6409_v23  ;;  %v6410_v7 = vunpack.i.l.bf16 %v6409_v23  ;;  %v4978_v34 = vpack.c.bf16 %v4975_v27, %v4974_v19  ;;  %5281 = vmatpush1.bf16.msra.mxu1 %v6439_v5  ;;  %5306 = vmatprep.mubr.bf16.mxu1 %v6881_v1  ;;  %v6458_v30 = vld [vmem:[#allocation13 + $0x50] sm:$0xff]   ;;  %v6460_v19 = vld [vmem:[#allocation13 + $0x58] sm:$0xff]  }
 0x864   : > { %5282 = vmatprep.subr.bf16.mxu1 %v6444_v61  ;;  %5987 = vmatprep.subr.bf16.mxu0 %v6454_v54  ;;  %v6459_v23 = vld [vmem:[#allocation13 + $0x10] sm:$0xff]   ;;  %v6461_v27 = vld [vmem:[#allocation13 + $0x18] sm:$0xff]  }
 0x865   : > { %v4977_v32 = vsel %vm4973_vm3, %v4972_v8, %v6411_v17  ;;  %v4976_v60 = vsel %vm4973_vm3, %v4971_v14, %v6410_v7  ;;  %6147 = vmatprep.mubr.bf16.mxu0 %v4978_v34  ;;  %v6462_v17 = vld [vmem:[#allocation13 + $0x60] sm:$0xff]   ;;  %v6464_v34 = vld [vmem:[#allocation13 + $0x68] sm:$0xff]  }
 0x866   : > { %v4979_v16 = vpack.c.bf16 %v4977_v32, %v4976_v60  ;;  %v6463_v7 = vld [vmem:[#allocation13 + $0x20] sm:$0xff]  }
 0x867   : > { %5283 = vmatpush1.bf16.msra.mxu1 %v6442_v51 }
 0x868   : > { %6148 = vmatmul.mubr.bf16.vlgmr.msra.gmra.mrb[12].mxu0 %v4979_v16  ;;  %5284 = vmatprep.subr.bf16.mxu1 %v6447_v55 }
 0x869   : > { %5988 = vmatpush3.bf16.msra.mxu0 %v6455_v29 }
 0x86a   : > { %5989 = vmatprep.subr.bf16.mxu0 %v6456_v21 }
 0x86b   : > { %5285 = vmatpush1.bf16.msra.mxu1 %v6445_v18 }
 0x86c   : > { %5286 = vmatprep.subr.bf16.mxu1 %v6450_v24 }
 0x86d   : > { %5990 = vmatpush3.bf16.msra.mxu0 %v6457_v13 }
 0x86e   : > { %5991 = vmatprep.subr.bf16.mxu0 %v6458_v30 }
 0x86f   : > { %5287 = vmatpush1.bf16.msra.mxu1 %v6448_v3 }
 0x870   : > { %5288 = vmatprep.subr.bf16.mxu1 %v6453_v26 }
 0x871   : > { %5992 = vmatpush3.bf16.msra.mxu0 %v6459_v23 }
 0x872   : > { %5993 = vmatprep.subr.bf16.mxu0 %v6460_v19 }
 0x873   : > { %5289 = vmatpush1.bf16.msra.mxu1 %v6451_v40 }
 0x875   : > { %5994 = vmatpush3.bf16.msra.mxu0 %v6461_v27 }
 0x876   : > { %5995 = vmatprep.subr.bf16.mxu0 %v6462_v17 }
 0x879   : > { %5996 = vmatpush3.bf16.msra.mxu0 %v6463_v7 }
 0x87a   : > { %5997 = vmatprep.subr.bf16.mxu0 %v6464_v34 }
 0x93b   : > { %v6149_v58 = vpop.f32.mrb[12].mxu0 }
 0x93c   : > { %v5082_v56 = vpop.f32.mrb[13].mxu0  ;;  %v5091_v15 = vadd.f32 %v6149_v58, %v4998_v12 }
 0x93d   : > { %v5083_v46 = vadd.f32 %v5082_v56, %v4996_v49  ;;  %v6150_v6 = vpop.f32.mrb[14].mxu0 }
 0x93e   : > { %v5085_v47 = vpop.f32.mrb[15].mxu0  ;;  %v5094_v43 = vadd.f32 %v6150_v6, %v4999_v36  ;;  %v5875_v6 = vld [vmem:[%s8522_s0] ss:$0 sm:$0xff] }
 0x93f   : > { %v5086_v22 = vadd.f32 %v5085_v47, %v4997_v42  ;;  %5099 = vadd.xlane.f32.xlu0 %v5083_v46 }
 0x941   : > { %5101 = vadd.xlane.f32.xlu1 %v5086_v22 }
 0x943   : > { %5103 = vadd.xlane.f32.xlu0 %v5091_v15 }
 0x947   : > { %5105 = vadd.xlane.f32.xlu0 %v5094_v43 }
 0x9cc   : > { %v5100_v28 = vpop.xlane.xlu0 %5099 }
 0x9cd   : > { %v5108_v62 = vmul.f32 0.0078125, %v5100_v28 }
 0x9ce   : > { %v5102_v9 = vpop.xlane.xlu1 %5101 }
 0x9cf   : > { %v8318_v57 = vsub.f32 %v5083_v46, %v5108_v62  ;;  %v5109_v33 = vmul.f32 0.0078125, %v5102_v9 }
 0x9d0   : > { %v5104_v38 = vpop.xlane.xlu0 %5103 }
 0x9d1   : > { %v8320_v41 = vsub.f32 %v5086_v22, %v5109_v33  ;;  %v5110_v53 = vmul.f32 0.0078125, %v5104_v38  ;;  %v5116_v39 = vmul.f32 %v8318_v57, %v8318_v57 }
 0x9d3   : > { %v8324_v31 = vsub.f32 %v5091_v15, %v5110_v53  ;;  %5120 = vadd.xlane.f32.xlu1 %v5116_v39  ;;  %v5117_v35 = vmul.f32 %v8320_v41, %v8320_v41 }
 0x9d4   : > { %v5106_v20 = vpop.xlane.xlu0 %5105 }
 0x9d5   : > { %v5111_v2 = vmul.f32 0.0078125, %v5106_v20  ;;  %5122 = vadd.xlane.f32.xlu0 %v5117_v35  ;;  %v5118_v52 = vmul.f32 %v8324_v31, %v8324_v31  ;;  %v6465_v35 = vld [vmem:[#allocation13 + $0x28] sm:$0xff]   ;;  %v6467_v20 = vld [vmem:[#allocation13 + $0x30] sm:$0xff]  }
 0x9d6   : > { %5998 = vmatpush3.bf16.msra.mxu0 %v6465_v35 }
 0x9d7   : > { %v8330_v48 = vsub.f32 %v5094_v43, %v5111_v2  ;;  %5124 = vadd.xlane.f32.xlu1 %v5118_v52  ;;  %v6468_v2 = vld [vmem:[#allocation13 + $0x78] sm:$0xff]  }
 0x9d8   : > { %v6469_v52 = vld [vmem:[#allocation13 + $0x38] sm:$0xff]  }
 0x9d9   : > { %v5119_v50 = vmul.f32 %v8330_v48, %v8330_v48 }
 0x9db   : > { %5126 = vadd.xlane.f32.xlu0 %v5119_v50  ;;  %v5182_v50 = vld [vmem:[%s8524_s7] sm:$0x3]  ;;  %s5613_s7 = sshll.u32 %s7281_s28, 4  ;;  %s8379_s7 = int_to_ptr.vmem [resolvable:$true] %s5613_s7 }
 0x9dc   : > { %v5191_v59 = vrot.slane %v5182_v50, %v5190_v11  ;;  %s6724_s14 = scalar_lea.vmem %s8379_s7, 512 }
 0x9dd   : > { %p6725_p0 = scmp.ne.s32.totalorder %s8379_s7, %s6724_s14 }
 0x9df   : > { %p6726_p9 = pnand %p6725_p0, %p8530_p6 }
 0x9e1   : > { %p6727_p11 = pneg %p6726_p9 }
 0xa60   : > { %v5121_v14 = vpop.xlane.xlu1 %5120 }
 0xa61   : > { %v5128_v8 = vmul.f32 0.0078125, %v5121_v14 }
 0xa62   : > { %v5123_v32 = vpop.xlane.xlu0 %5122 }
 0xa63   : > { %v5132_v60 = vadd.f32 1e-05, %v5128_v8  ;;  %v5129_v16 = vmul.f32 0.0078125, %v5123_v32 }
 0xa64   : > { %v5125_v25 = vpop.xlane.xlu1 %5124 }
 0xa65   : > { %6536 = vrsqrt.f32 %v5132_v60  ;;  %v5133_v49 = vadd.f32 1e-05, %v5129_v16  ;;  %v5130_v42 = vmul.f32 0.0078125, %v5125_v25 }
 0xa67   : > { %6538 = vrsqrt.f32 %v5133_v49  ;;  %v5134_v58 = vadd.f32 1e-05, %v5130_v42  ;;  %v5893_v42 = vld [vmem:[%s8525_s9] ss:$0 sm:$0xff]  ;;  %s8529_s9 = sld [smem:[#allocation38_spill]] }
 0xa68   : > { %v5127_v56 = vpop.xlane.xlu0 %5126 }
 0xa69   : > { %6540 = vrsqrt.f32 %v5134_v58  ;;  %v5131_v4 = vmul.f32 0.0078125, %v5127_v56 }
 0xa6b   : > { %v5135_v12 = vadd.f32 1e-05, %v5131_v4 }
 0xa6d   : > { %6542 = vrsqrt.f32 %v5135_v12  ;;  %s8385_s11 = scalar_lea.hbm %s8529_s9, %s5915_s17 }
 0xa6f   : > { %v6537_v46 = vpop.eup %6536 }
 0xa70   : > { %v5140_v47 = vmul.f32 %v6537_v46, %v8318_v57 }
 0xa71   : > { %v6539_v22 = vpop.eup %6538 }
 0xa72   : > { %v5141_v15 = vmul.f32 %v6539_v22, %v8320_v41  ;;  %v5150_v36 = vmul.f32 %v5875_v6, %v5140_v47 }
 0xa73   : > { %v6541_v43 = vpop.eup %6540 }
 0xa74   : > { %v5151_v37 = vmul.f32 %v5875_v6, %v5141_v15  ;;  %v8342_v45 = vadd.f32 %v5876_v63, %v5150_v36  ;;  %v5142_v28 = vmul.f32 %v6541_v43, %v8324_v31  ;;  %v6466_v31 = vld [vmem:[#allocation13 + $0x70] sm:$0xff]  }
 0xa75   : > { %5999 = vmatprep.subr.bf16.mxu0 %v6466_v31 }
 0xa76   : > { %v8344_v0 = vadd.f32 %v5876_v63, %v5151_v37  ;;  %v5152_v33 = vmul.f32 %v5875_v6, %v5142_v28  ;;  %6000 = vmatpush3.bf16.msra.mxu0 %v6467_v20 }
 0xa77   : > { %v6543_v62 = vpop.eup %6542  ;;  %6001 = vmatprep.subr.bf16.mxu0 %v6468_v2 }
 0xa78   : > { %v5164_v9 = vpack.c.bf16 %v8344_v0, %v8342_v45  ;;  %v5143_v57 = vmul.f32 %v6543_v62, %v8330_v48  ;;  %v8352_v53 = vadd.f32 %v5876_v63, %v5152_v33  ;;  %v5186_v48 = vsub.s32 0, %v7872_v10 }
 0xa7a   : > { %5307 = vmatmul.mubr.bf16.vlgmr.msra.gmra.mrb[24].mxu1 %v5164_v9  ;;  %v5153_v38 = vmul.f32 %v5875_v6, %v5143_v57  ;;  %6002 = vmatpush3.bf16.msra.mxu0 %v6469_v52  ;;  %v5187_v44 = vrot.slane %v5182_v50, %v5186_v48 }
 0xa7b   : > { %5316 = vmatprep.mubr.bf16.mxu1 %v6881_v1 }
 0xa7c   : > { %v8350_v41 = vadd.f32 %v5876_v63, %v5153_v38 }
 0xa7e   : > { %v5165_v39 = vpack.c.bf16 %v8350_v41, %v8352_v53 }
 0xa82   : > { %5317 = vmatmul.mubr.bf16.gmra.mrb[28].mxu1 %v5165_v39 }
 0xb4d   : > { %v5308_v5 = vpop.f32.mrb[24].mxu1 }
 0xb4e   : > { %v5309_v61 = vadd.f32 %v5308_v5, %v5187_v44  ;;  %v5310_v51 = vpop.f32.mrb[25].mxu1 }
 0xb4f   : > { %v5311_v55 = vadd.f32 %v5310_v51, %v5191_v59  ;;  %v5312_v18 = vpop.f32.mrb[26].mxu1 }
 0xb50   : > { %v5313_v3 = vadd.f32 %v5312_v18, %v5187_v44  ;;  %v5314_v24 = vpop.f32.mrb[27].mxu1  ;;  %v5327_v1 = vmax.f32 %v5309_v61, 0.0 }
 0xb51   : > { %v5315_v26 = vadd.f32 %v5314_v24, %v5191_v59  ;;  %v5328_v54 = vmax.f32 %v5311_v55, 0.0 }
 0xb52   : > { %v5329_v40 = vmax.f32 %v5313_v3, 0.0 }
 0xb53   : > { %v5330_v29 = vmax.f32 %v5315_v26, 0.0 }
 0xb54   : > { %v5335_v21 = vpack.c.bf16 %v5329_v40, %v5327_v1 }
 0xb55   : > { %v5336_v13 = vpack.c.bf16 %v5330_v29, %v5328_v54  ;;  %v5318_v30 = vpop.f32.mrb[28].mxu1 }
 0xb56   : > { %v5319_v23 = vadd.f32 %v5318_v30, %v5187_v44  ;;  %v5320_v19 = vpop.f32.mrb[29].mxu1  ;;  %v5910_v30 = vld [vmem:[%s8527_s24] ss:$0 sm:$0xff]  ;;  %s6882_s24 = smov [#allocation15]  }
 0xb57   : > { %v5321_v10 = vadd.f32 %v5320_v19, %v5191_v59  ;;  %v5322_v27 = vpop.f32.mrb[30].mxu1  ;;  %5506 = vmatprep.mubr.bf16.mxu0 %v5336_v13  ;;  %s6728_s0 = sshll.u32 %s6882_s24, 4  ;;  %s6729_s0 = int_to_ptr.vmem [resolvable:$false] %s6728_s0 }
 0xb58   : > { %v5323_v17 = vadd.f32 %v5322_v27, %v5187_v44  ;;  %v5324_v7 = vpop.f32.mrb[31].mxu1  ;;  %5507 = vmatmul.mubr.bf16.vlgmr.msra.gmra.mrb[16].mxu0 %v5335_v21  ;;  %v5331_v14 = vmax.f32 %v5319_v23, 0.0  ;;  %s6730_s5 = scalar_lea.vmem %s6729_s0, 1024  ;;  %p6731_p8 = scmp.lt.s32.totalorder %s8379_s7, %s6729_s0 }
 0xb59   : > { %v5325_v34 = vadd.f32 %v5324_v7, %v5191_v59  ;;  %v5332_v32 = vmax.f32 %v5321_v10, 0.0  ;;  %v5911_v10 = vld [vmem:[%s8528_s15] ss:$0 sm:$0xff]  ;;  %p6732_p13 = scmp.lt.s32.totalorder %s6730_s5, %s6724_s14 }
 0xb5a   : > { %v5333_v8 = vmax.f32 %v5323_v17, 0.0 }
 0xb5b   : > { %v5334_v60 = vmax.f32 %v5325_v34, 0.0  ;;  %p6733_p3 = por %p6732_p13, %p6731_p8 }
 0xb5c   : > { %v5337_v16 = vpack.c.bf16 %v5333_v8, %v5331_v14 }
 0xb5d   : > { %v5338_v25 = vpack.c.bf16 %v5334_v60, %v5332_v32  ;;  %p6734_p7 = pnand %p6733_p3, %p6727_p11 }
 0xb5f   : > { %5514 = vmatprep.mubr.bf16.mxu0 %v5338_v25 }
 0xb60   : > { %5515 = vmatmul.mubr.bf16.gmra.mrb[20].mxu0 %v5337_v16 }
 0xc2b   : > { %v6003_v49 = vpop.f32.mrb[16].mxu0 }
 0xc2c   : > { %v6004_v58 = vpop.f32.mrb[17].mxu0 }
 0xc2d   : > { %v6005_v56 = vadd.f32 %v6004_v58, %v6003_v49  ;;  %v6006_v4 = vpop.f32.mrb[18].mxu0 }
 0xc2e   : > { %v6007_v12 = vpop.f32.mrb[19].mxu0 }
 0xc2f   : > { %v5509_v46 = vadd.f32 %v6005_v56, %v5893_v42  ;;  %v6008_v6 = vadd.f32 %v6007_v12, %v6006_v4 }
 0xc31   : > { %v5512_v47 = vadd.f32 %v6008_v6, %v5893_v42  ;;  %v5523_v22 = vadd.f32 %v5509_v46, %v8342_v45 }
 0xc33   : > { %5529 = vadd.xlane.f32.xlu1 %v5523_v22  ;;  %v6009_v15 = vpop.f32.mrb[20].mxu0  ;;  %v5524_v36 = vadd.f32 %v5512_v47, %v8344_v0 }
 0xc34   : > { %v6010_v43 = vpop.f32.mrb[21].mxu0 }
 0xc35   : > { %v6011_v63 = vadd.f32 %v6010_v43, %v6009_v15  ;;  %5531 = vadd.xlane.f32.xlu0 %v5524_v36  ;;  %v6012_v37 = vpop.f32.mrb[22].mxu0 }
 0xc36   : > { %v6013_v28 = vpop.f32.mrb[23].mxu0 }
 0xc37   : > { %v5517_v62 = vadd.f32 %v6011_v63, %v5893_v42  ;;  %v6014_v9 = vadd.f32 %v6013_v28, %v6012_v37 }
 0xc39   : > { %v5520_v57 = vadd.f32 %v6014_v9, %v5893_v42  ;;  %v5525_v33 = vadd.f32 %v5517_v62, %v8352_v53 }
 0xc3b   : > { %5533 = vadd.xlane.f32.xlu1 %v5525_v33  ;;  %v5526_v38 = vadd.f32 %v5520_v57, %v8350_v41 }
 0xc3d   : > { %5535 = vadd.xlane.f32.xlu0 %v5526_v38 }
 0xcc0   : > { %v5530_v39 = vpop.xlane.xlu1 %5529 }
 0xcc1   : > { %v5537_v45 = vmul.f32 0.0078125, %v5530_v39 }
 0xcc2   : > { %v5532_v35 = vpop.xlane.xlu0 %5531 }
 0xcc3   : > { %v5541_v31 = vsub.f32 %v5523_v22, %v5537_v45  ;;  %v5538_v20 = vmul.f32 0.0078125, %v5532_v35 }
 0xcc5   : > { %v5542_v0 = vsub.f32 %v5524_v36, %v5538_v20  ;;  %v5545_v2 = vmul.f32 %v5541_v31, %v5541_v31 }
 0xcc7   : > { %5549 = vadd.xlane.f32.xlu1 %v5545_v2  ;;  %v5546_v52 = vmul.f32 %v5542_v0, %v5542_v0 }
 0xcc8   : > { %v5534_v48 = vpop.xlane.xlu1 %5533 }
 0xcc9   : > { %v5539_v50 = vmul.f32 0.0078125, %v5534_v48  ;;  %5551 = vadd.xlane.f32.xlu0 %v5546_v52 }
 0xcca   : > { %v5536_v11 = vpop.xlane.xlu0 %5535 }
 0xccb   : > { %v5543_v44 = vsub.f32 %v5525_v33, %v5539_v50  ;;  %v5540_v59 = vmul.f32 0.0078125, %v5536_v11 }
 0xccd   : > { %v5544_v53 = vsub.f32 %v5526_v38, %v5540_v59  ;;  %v5547_v5 = vmul.f32 %v5543_v44, %v5543_v44 }
 0xccf   : > { %5553 = vadd.xlane.f32.xlu1 %v5547_v5  ;;  %v5548_v41 = vmul.f32 %v5544_v53, %v5544_v53 }
 0xcd1   : > { %5555 = vadd.xlane.f32.xlu0 %v5548_v41 }
 0xd54   : > { %v5550_v61 = vpop.xlane.xlu1 %5549 }
 0xd55   : > { %v5557_v51 = vmul.f32 0.0078125, %v5550_v61 }
 0xd56   : > { %v5552_v55 = vpop.xlane.xlu0 %5551 }
 0xd57   : > { %v5561_v18 = vadd.f32 1e-05, %v5557_v51  ;;  %v5558_v3 = vmul.f32 0.0078125, %v5552_v55 }
 0xd59   : > { %6544 = vrsqrt.f32 %v5561_v18  ;;  %v5562_v24 = vadd.f32 1e-05, %v5558_v3 }
 0xd5b   : > { %6546 = vrsqrt.f32 %v5562_v24 }
 0xd5c   : > { %v5554_v26 = vpop.xlane.xlu1 %5553 }
 0xd5d   : > { %v5559_v1 = vmul.f32 0.0078125, %v5554_v26 }
 0xd5e   : > { %v5556_v40 = vpop.xlane.xlu0 %5555 }
 0xd5f   : > { %v5563_v54 = vadd.f32 1e-05, %v5559_v1  ;;  %v5560_v29 = vmul.f32 0.0078125, %v5556_v40 }
 0xd61   : > { %6548 = vrsqrt.f32 %v5563_v54  ;;  %v5564_v21 = vadd.f32 1e-05, %v5560_v29 }
 0xd63   : > { %v6545_v13 = vpop.eup %6544  ;;  %6550 = vrsqrt.f32 %v5564_v21 }
 0xd64   : > { %v5569_v23 = vmul.f32 %v6545_v13, %v5541_v31 }
 0xd65   : > { %v6547_v19 = vpop.eup %6546 }
 0xd66   : > { %v5579_v27 = vmul.f32 %v5910_v30, %v5569_v23  ;;  %v5570_v17 = vmul.f32 %v6547_v19, %v5542_v0 }
 0xd68   : > { %v5589_v7 = vadd.f32 %v5911_v10, %v5579_v27  ;;  %v5580_v34 = vmul.f32 %v5910_v30, %v5570_v17 }
 0xd6a   : > { %5593 = vst [vmem:[%s7281_s28] sm:$0xff] %v5589_v7  ;;  %v5590_v14 = vadd.f32 %v5911_v10, %v5580_v34 }
 0xd6b   : > { %v6549_v8 = vpop.eup %6548 }
 0xd6c   : > { %5594 = vst [vmem:[%s7281_s28 + $0x8] sm:$0xff] %v5590_v14  ;;  %v5571_v32 = vmul.f32 %v6549_v8, %v5543_v44 }
 0xd6d   : > { %v6551_v60 = vpop.eup %6550 }
 0xd6e   : > { %v5581_v16 = vmul.f32 %v5910_v30, %v5571_v32  ;;  %v5572_v25 = vmul.f32 %v6551_v60, %v5544_v53 }
 0xd70   : > { %v5591_v49 = vadd.f32 %v5911_v10, %v5581_v16  ;;  %v5582_v42 = vmul.f32 %v5910_v30, %v5572_v25 }
 0xd72   : > { %5595 = vst [vmem:[%s7281_s28 + $0x10] sm:$0xff] %v5591_v49  ;;  %v5592_v58 = vadd.f32 %v5911_v10, %v5582_v42 }
 0xd74   : > { %5596 = vst [vmem:[%s7281_s28 + $0x18] sm:$0xff] %v5592_v58 }
 0xd75   : > { %6737 = shalt.err (!%p6734_p7)
}
 0xd76   : > { %s6738_s6 = scalar_lea.hbm %s8385_s11, 512  ;;  %s6742_s27 = scalar_lea.hbm %s8529_s9, 2048 }
 0xd77   : > { %p6739_p1 = scmp.ne.s32.totalorder %s8385_s11, %s6738_s6  ;;  %p6743_p2 = scmp.lt.u32.totalorder %s8385_s11, %s8529_s9 }
 0xd78   : > { %p6744_p12 = scmp.lt.u32.totalorder %s6742_s27, %s6738_s6  ;;  %p6746_p0 = scmp.lt.u32.totalorder %s6738_s6, %s8385_s11 }
 0xd79   : > { %p6740_p4 = pnand %p6739_p1, %p8530_p6 }
 0xd7a   : > { %p6745_p5 = por %p6744_p12, %p6743_p2 }
 0xd7b   : > { %p6741_p10 = pneg %p6740_p4 }
 0xd7c   : > { %p6747_p9 = por %p6746_p0, %p6745_p5 }
 0xd7e   : > { %p6748_p11 = pnand %p6747_p9, %p6741_p10 }
 0xd80   : > { %6751 = shalt.err (!%p6748_p11)
}
 0xd81   : > { %s6883_s17 = smov 128   ;;  %s6884_s12 = smov 8  }
 0xd82   : > { %6205 = dma.vmem_to_hbm [thread:$0]  (%p8530_p6), %s8379_s7, 512, %s8385_s11, %s8390_s1, %s6883_s17, %s6883_s17, %s6884_s12  }
 0xd83 PF: > { %p6242_p8 = scmp.ge.s32.totalorder %s6858_s13, 2  ;;  %s5628_s8 = sand.u32 1, %s6818_s21  }
 0xd84   : > { %p8531_p13 = scmp.ne.s32.totalorder %s8514_s2, 0  ;;  %s5629_s14 = scalar_lea.sflag [#allocation6], %s5628_s8 }
 0xd86   : > { %p6228_p3 = pnand %p6242_p8, %p8531_p13 }
 0xd88   : > { %6813 = dma.done.wait (!%p6228_p3), %s5629_s14, 512  }
 0xd89   : > { %6815 = vsyncadd (!%p6228_p3), %s5629_s14, 4294966784  ;;  %s31_s13 = sadd.s32 1, %s6858_s13   ;;  %s8532_s10 = sld [smem:[#allocation25_spill]] }
 0xd8a   : > { %p28_p7 = scmp.ge.s32.totalorder %s31_s13, 6   ;;  %s8533_s21 = smov %s6822_s22 }
 0xd8b   : > { %s8534_s22 = smov %s6826_s23  ;;  %s8535_s23 = smov %s7204_s16 }
 0xd8c   : > { %s8536_s24 = smov %s6834_s25  ;;  %s8537_s25 = smov %s6838_s26 }
 0xd8d   : > { %s8538_s26 = smov %s7201_s19  ;;  %s8539_s27 = smov %s6850_s29 }
 0xd8e   : > { %s8540_s28 = smov %s6854_s30  ;;  %s8541_s29 = smov %s8544_s20 }
 0xd8f   : > { %s8542_s30 = smov %s8532_s10  ;;  %30 = sbr.rel (!%p28_p7) target bundleno = 26 (0x1a), region = 138 }
 0xd96   :  { %5634 = vsyncpa [#allocation5], 1 }
 0xd97   :  { %5636 = vsyncpa [#allocation5 + $0x1], 1 }
 0xd98   :  { %5637 = vsyncpa [#allocation8], 1 }
 0xd99   :  { %5638 = vsyncpa [#allocation11], 1 }
 0xd9a   :  { %5639 = vsyncpa [#allocation14], 1 }
 0xd9b   :  { %5640 = vsyncpa [#allocation6], 1 }
 0xd9c   :  { %5642 = vsyncpa [#allocation6 + $0x1], 1 }

</bundles_post_ra>
